<compile_context>
chip_gen: v5e
topology: v5e:2x2
jax: 0.10.0
libtpu: 0.0.40
codegen_flags: <defaults>
</compile_context>

<pallas_src>
import functools

import jax
import jax.numpy as jnp
from jax import lax
from jax.experimental import pallas as pl
from jax.experimental.pallas import tpu as pltpu

_MIB = 1024 * 1024


def _round_up(v, m):
    return (v + m - 1) // m * m


def _cdiv(a, b):
    return (a + b - 1) // b


def _sublane_multiple(itemsize):
    # Minimum sublane tile: 8 for 4-byte, 16 for 2-byte, 32 for 1-byte dtypes.
    return max(8, 32 // int(itemsize))


def _vmem_capacity_bytes():
    try:
        info = pltpu.get_tpu_info()
        cap = getattr(info, "vmem_capacity_bytes", None)
        if cap:
            return int(cap)
    except Exception:
        pass
    try:
        kind = jax.devices()[0].device_kind.lower()
        if "v7" in kind or "7x" in kind:
            return 64 * _MIB
    except Exception:
        pass
    return 128 * _MIB


# --------------------------------------------------------------------------------------
# Kernel
# --------------------------------------------------------------------------------------
def _quad_kernel(x_ref, y_ref, wx_ref, wy_ref, wq_ref, o_ref, xy_ref, acc_ref, *,
                 chunk_n1, n2p):
    """One (block_b, block_o) output tile, one K-chunk of the contraction.

    x_ref : (1, block_b, chunk_n1)    columns [k*chunk_n1, (k+1)*chunk_n1) of x
    y_ref : (block_b, n2p)
    wx_ref: (chunk_n1, block_o)       rows of W_x for this chunk
    wy_ref: (n2p, block_o)
    wq_ref: (chunk_n1 * n2p, block_o) rows of W_quad for this chunk
    xy_ref: (block_b, chunk_n1 * n2p) VMEM scratch (flattened outer product)
    acc_ref: (block_b, block_o) f32   accumulator across the K-chunk axis
    """
    k = pl.program_id(2)

    x = x_ref[0]
    y = y_ref[...]

    # y-linear term only once per (o, b) tile (also initialises the accumulator).
    @pl.when(k == 0)
    def _():
        acc_ref[...] = jnp.dot(y, wy_ref[...], preferred_element_type=jnp.float32)

    # Flattened outer product x ⊗ y for this chunk: chunk_n1 lane-dense (block_b, n2p)
    # slabs at 128-aligned offsets (unmasked vector stores).
    if chunk_n1 <= 16:
        for i in range(chunk_n1):
            xy_ref[:, i * n2p:(i + 1) * n2p] = x[:, i:i + 1] * y
    else:
        # fori_loop keeps vreg live ranges / code size bounded for large chunks.
        def fill(i, carry):
            col = lax.dynamic_slice_in_dim(x, i, 1, axis=1)
            xy_ref[:, pl.ds(pl.multiple_of(i * n2p, n2p), n2p)] = col * y
            return carry

        lax.fori_loop(0, chunk_n1, fill, 0, unroll=4)

    # Linear x term + a single long-K quadratic contraction, fp32 accumulation.
    part = jnp.dot(x, wx_ref[...], preferred_element_type=jnp.float32)
    part = part + jnp.dot(xy_ref[...], wq_ref[...],
                          preferred_element_type=jnp.float32)
    acc_ref[...] += part

    @pl.when(k == pl.num_programs(2) - 1)
    def _():
        o_ref[...] = acc_ref[...].astype(o_ref.dtype)


# --------------------------------------------------------------------------------------
# Tiling plan
# --------------------------------------------------------------------------------------
def _plan_tiling(bs, in_n1, in_n2, out_n, act_itemsize, w_itemsize, min_sub,
                 req_block_b, req_block_o, weight_buffers, vmem_budget):
    n2p = _round_up(in_n2, 128)
    out_p = _round_up(out_n, 128)
    sub_w = _sublane_multiple(w_itemsize)

    block_b = min(_round_up(req_block_b, min_sub), _round_up(bs, min_sub))
    bs_p = _round_up(bs, block_b)

    raw = {out_p, out_p // 2, out_p // 4, 2048, 1024, 768, 512, 384, 256, 128}
    cands = {c for c in raw if c >= 128 and c % 128 == 0 and out_p % c == 0}
    if req_block_o is not None:
        ro = _round_up(req_block_o, 128)
        if out_p % ro == 0:
            cands = {ro}
    bo_cands = sorted(cands, reverse=True)

    def bytes_needed(chunk, blk_o, wbuf):
        return (2 * act_itemsize * block_b * chunk            # x chunk (pipelined)
                + 2 * act_itemsize * block_b * n2p            # y tile
                + wbuf * w_itemsize * chunk * blk_o           # wx chunk
                + wbuf * w_itemsize * n2p * blk_o             # wy
                + wbuf * w_itemsize * chunk * n2p * blk_o     # wq chunk (dominant weight)
                + 2 * act_itemsize * block_b * blk_o          # out tile
                + act_itemsize * block_b * chunk * n2p        # xy scratch
                + 4 * block_b * blk_o)                        # fp32 accumulator

    def make(blk_o, chunk, n_k):
        return dict(n2p=n2p, out_p=out_p, block_b=block_b, bs_p=bs_p,
                    block_o=blk_o, chunk=chunk, n_k=n_k, in_n1p=chunk * n_k)

    # Pass 1: whole contraction resident (weights reused across every batch tile);
    # pick the largest lane-dense out tile that fits the budget.
    for bo in bo_cands:
        if bytes_needed(in_n1, bo, weight_buffers) <= vmem_budget:
            return make(bo, in_n1, 1)

    # Pass 2: K-tile the contraction over chunks of in_n1 (weight chunks stream every
    # inner step -> double buffered); largest chunk that fits.
    for bo in ([c for c in bo_cands if c <= 512] or [min(bo_cands)]):
        slope = (2 * act_itemsize * block_b + 2 * w_itemsize * bo
                 + 2 * w_itemsize * n2p * bo + act_itemsize * block_b * n2p)
        const = (2 * act_itemsize * block_b * n2p + 2 * w_itemsize * n2p * bo
                 + 2 * act_itemsize * block_b * bo + 4 * block_b * bo)
        if const >= vmem_budget:
            continue
        chunk = ((vmem_budget - const) // slope) // sub_w * sub_w
        if chunk < sub_w:
            continue
        if chunk >= in_n1:
            return make(bo, in_n1, 1)
        return make(bo, chunk, _cdiv(in_n1, chunk))

    # Pass 3: minimal configuration; let the compiler cope (may spill).
    chunk = min(sub_w, _round_up(in_n1, sub_w))
    return make(128, chunk, _cdiv(in_n1, chunk))


# --------------------------------------------------------------------------------------
# pallas_call driver
# --------------------------------------------------------------------------------------
def _pallas_forward(xp, yp, wx, wy, wq, plan, out_dtype, act_dtype,
                    single_buffer_weights, vmem_budget):
    n2p, out_p = plan["n2p"], plan["out_p"]
    block_b, bs_p = plan["block_b"], plan["bs_p"]
    block_o, chunk, n_k = plan["block_o"], plan["chunk"], plan["n_k"]

    grid = (out_p // block_o, bs_p // block_b, n_k)

    single_buffer = single_buffer_weights and n_k == 1
    # Weight blocks only change on the outer out-tile axis when n_k == 1; double
    # buffering them just doubles the dominant resident wq footprint.
    wkw = dict(pipeline_mode=pl.Buffered(1)) if single_buffer else {}

    in_specs = [
        pl.BlockSpec((1, block_b, chunk), lambda o, b, k: (k, b, 0)),         # x chunk
        pl.BlockSpec((block_b, n2p), lambda o, b, k: (b, 0)),                 # y tile
        pl.BlockSpec((chunk, block_o), lambda o, b, k: (k, o), **wkw),        # wx chunk
        pl.BlockSpec((n2p, block_o), lambda o, b, k: (0, o), **wkw),          # wy
        pl.BlockSpec((chunk * n2p, block_o), lambda o, b, k: (k, o), **wkw),  # wq chunk
    ]
    out_specs = pl.BlockSpec((block_b, block_o), lambda o, b, k: (b, o))

    act_i = jnp.dtype(act_dtype).itemsize
    w_i = jnp.dtype(wq.dtype).itemsize
    out_i = jnp.dtype(out_dtype).itemsize
    wbuf = 1 if single_buffer else 2
    needed = (2 * act_i * block_b * chunk + 2 * act_i * block_b * n2p
              + wbuf * w_i * (chunk + n2p + chunk * n2p) * block_o
              + 2 * out_i * block_b * block_o
              + act_i * block_b * chunk * n2p
              + 4 * block_b * block_o)
    vmem_limit = int(min(vmem_budget, max(32 * _MIB, needed * 5 // 4 + 2 * _MIB)))

    kernel = functools.partial(_quad_kernel, chunk_n1=chunk, n2p=n2p)

    return pl.pallas_call(
        kernel,
        out_shape=jax.ShapeDtypeStruct((bs_p, out_p), out_dtype),
        grid_spec=pltpu.PrefetchScalarGridSpec(
            num_scalar_prefetch=0,
            grid=grid,
            in_specs=in_specs,
            out_specs=out_specs,
            scratch_shapes=[
                pltpu.VMEM((block_b, chunk * n2p), act_dtype),   # flattened x ⊗ y
                pltpu.VMEM((block_b, block_o), jnp.float32),     # fp32 accumulator
            ],
        ),
        compiler_params=pltpu.CompilerParams(
            dimension_semantics=("parallel", "parallel", "arbitrary"),
            vmem_limit_bytes=vmem_limit),
    )(xp, yp, wx, wy, wq)


# --------------------------------------------------------------------------------------
# Public wrapper
# --------------------------------------------------------------------------------------
def non_identical_quad_layer(x, weight, y=None, *, bias=None, block_b=None,
                             block_o=None, compute_dtype=None):
    """Pallas forward of NonIdenticalQuadLayer.

    weight: (out_n, in_n1*in_n2 + in_n1 + in_n2) — same layout as the PyTorch nn.Linear
    weight applied to cat([x, y, flatten(x ⊗ y)], -1).
    compute_dtype: optionally cast x/y/weights (e.g. jnp.bfloat16) for faster MXU
    matmuls and a half-size xy scratch; accumulation stays fp32, output keeps x.dtype.
    """
    if y is None:
        y = x
    bs, in_n1 = x.shape
    bs2, in_n2 = y.shape
    assert bs == bs2, "x and y must share the batch dimension"
    out_n = weight.shape[0]
    assert weight.shape[1] == in_n1 * in_n2 + in_n1 + in_n2

    out_dtype = x.dtype
    act_dtype = jnp.dtype(compute_dtype) if compute_dtype is not None else jnp.dtype(x.dtype)
    w_dtype = act_dtype if compute_dtype is not None else jnp.dtype(weight.dtype)
    act_itemsize = act_dtype.itemsize
    w_itemsize = jnp.dtype(w_dtype).itemsize
    min_sub = _sublane_multiple(min(act_itemsize, jnp.dtype(out_dtype).itemsize))

    vmem_budget = min(int(_vmem_capacity_bytes() * 0.8), 104 * _MIB)

    if block_b is not None:
        bb_cands = [block_b]
    else:
        pref = 256 if bs > 256 else 128
        bb_cands = [pref] + ([128] if pref > 128 else [])

    def build_plan(weight_buffers):
        plan = None
        for bb in bb_cands:
            p = _plan_tiling(bs, in_n1, in_n2, out_n, act_itemsize, w_itemsize,
                             min_sub, bb, block_o, weight_buffers, vmem_budget)
            if plan is None:
                plan = p
            if p["n_k"] == 1:      # prefer resident weights over a bigger batch tile
                plan = p
                break
        # Megacore (2 TensorCores): keep at least 2 tiles on a parallel axis.
        if (plan["out_p"] // plan["block_o"] == 1
                and plan["bs_p"] // plan["block_b"] == 1
                and plan["block_b"] >= 2 * min_sub):
            plan = dict(plan)
            plan["block_b"] = _round_up(plan["block_b"] // 2, min_sub)
            plan["bs_p"] = _round_up(bs, plan["block_b"])
        return plan

    def run(single_buffer_weights):
        plan = build_plan(1 if single_buffer_weights else 2)
        n2p, out_p = plan["n2p"], plan["out_p"]
        in_n1p, chunk, n_k = plan["in_n1p"], plan["chunk"], plan["n_k"]
        bs_p = plan["bs_p"]

        # ---- split / pad the Linear weight for the cat([x, y, x12]) ordering ----
        # TODO(synk): in a real model precompute wx/wy/wq once (the wq transpose + pad
        # is an HBM-level reshuffle of the largest tensor) instead of per call.
        w = weight.astype(w_dtype)
        wx = jnp.pad(w[:, :in_n1].T, ((0, in_n1p - in_n1), (0, out_p - out_n)))
        wy = jnp.pad(w[:, in_n1:in_n1 + in_n2].T,
                     ((0, n2p - in_n2), (0, out_p - out_n)))
        wq = w[:, in_n1 + in_n2:].T.reshape(in_n1, in_n2, out_n)
        wq = jnp.pad(wq, ((0, in_n1p - in_n1), (0, n2p - in_n2), (0, out_p - out_n)))
        wq = wq.reshape(in_n1p * n2p, out_p)            # row index = i * n2p + j

        xp = jnp.pad(x.astype(act_dtype), ((0, bs_p - bs), (0, in_n1p - in_n1)))
        xp = xp.reshape(bs_p, n_k, chunk).transpose(1, 0, 2)   # (n_k, bs_p, chunk)
        yp = jnp.pad(y.astype(act_dtype), ((0, bs_p - bs), (0, n2p - in_n2)))

        out = _pallas_forward(xp, yp, wx, wy, wq, plan, out_dtype, act_dtype,
                              single_buffer_weights, vmem_budget)
        return out[:bs, :out_n]

    try:
        out = run(True)
    except Exception:
        # pl.Buffered(1) single-buffered weight specs (or the tighter single-buffer
        # plan) not supported on this build: fall back to default double buffering,
        # which is strictly more conservative.
        out = run(False)

    if bias is not None:
        out = out + bias.astype(out.dtype)[None, :]
    return out


def _reference(x, y, weight):
    """Pure-JAX reference mirroring the PyTorch forward exactly."""
    bs = x.shape[0]
    x12 = jnp.matmul(x[:, :, None], y[:, None, :]).reshape(bs, -1)
    feat = jnp.concatenate([x, y, x12], axis=-1)
    return feat @ weight.T


if __name__ == "__main__":
    # Small shapes consistent with the module: bs=200 (exercises batch padding),
    # in_n1=16, in_n2=32, out_n=4 (exercises out_n / in_n2 lane padding).
    bs, in_n1, in_n2, out_n = 200, 16, 32, 4

    key = jax.random.PRNGKey(0)
    kx, ky, kw, kw2 = jax.random.split(key, 4)
    x = jax.random.normal(kx, (bs, in_n1), dtype=jnp.float32)
    y = jax.random.normal(ky, (bs, in_n2), dtype=jnp.float32)

    fan_in = in_n1 * in_n2 + in_n1 + in_n2
    weight = jax.random.uniform(kw, (out_n, fan_in), dtype=jnp.float32,
                                minval=-1.0, maxval=1.0) / jnp.sqrt(fan_in)

    out = jax.block_until_ready(non_identical_quad_layer(x, weight, y))
    ref = _reference(x, y, weight)
    assert out.shape == (bs, out_n)
    err = jnp.max(jnp.abs(out - ref))
    assert jnp.allclose(out, ref, rtol=1e-5, atol=3e-5), f"max abs err = {err}"

    # y=None path (y defaults to x) with its own square-shaped weight, matching the
    # PyTorch module's in_n2=None construction.
    fan_in_sq = in_n1 * in_n1 + 2 * in_n1
    weight_sq = jax.random.uniform(kw2, (out_n, fan_in_sq), dtype=jnp.float32,
                                   minval=-1.0, maxval=1.0) / jnp.sqrt(fan_in_sq)
    out_sq = jax.block_until_ready(non_identical_quad_layer(x, weight_sq))
    ref_sq = _reference(x, x, weight_sq)
    err_sq = jnp.max(jnp.abs(out_sq - ref_sq))
    assert jnp.allclose(out_sq, ref_sq, rtol=1e-5, atol=3e-5), (
        f"max abs err (y=None) = {err_sq}")

    print("KERNEL_OK")
</pallas_src>

<mosaic_0001>
module attributes {stable_mosaic.version = 11 : i64} {
  func.func @_quad_kernel(%arg0: i32, %arg1: i32, %arg2: i32, %arg3: memref<1x128x16xf32, #tpu.memory_space<vmem>>, %arg4: memref<128x128xf32, #tpu.memory_space<vmem>>, %arg5: memref<16x128xf32, #tpu.memory_space<vmem>>, %arg6: memref<128x128xf32, #tpu.memory_space<vmem>>, %arg7: memref<2048x128xf32, #tpu.memory_space<vmem>>, %arg8: memref<128x128xf32, #tpu.memory_space<vmem>>, %arg9: memref<128x2048xf32, #tpu.memory_space<vmem>>, %arg10: memref<128x128xf32, #tpu.memory_space<vmem>>) attributes {dimension_semantics = [#tpu.dimension_semantics<parallel>, #tpu.dimension_semantics<parallel>, #tpu.dimension_semantics<arbitrary>], iteration_bounds = array<i64: 1, 2, 1>, scalar_prefetch = 0 : i64, scratch_operands = 2 : i64, tpu.core_type = #tpu.core_type<tc>, window_params = [{transform_indices = @transform_0, window_bounds = array<i64: 1, 128, 16>}, {transform_indices = @transform_1, window_bounds = array<i64: 128, 128>}, {pipeline_mode = #tpu.pipeline_mode<synchronous>, transform_indices = @transform_2, window_bounds = array<i64: 16, 128>}, {pipeline_mode = #tpu.pipeline_mode<synchronous>, transform_indices = @transform_3, window_bounds = array<i64: 128, 128>}, {pipeline_mode = #tpu.pipeline_mode<synchronous>, transform_indices = @transform_4, window_bounds = array<i64: 2048, 128>}, {transform_indices = @transform_5, window_bounds = array<i64: 128, 128>}]} {
    %c0 = arith.constant 0 : index
    %c0_0 = arith.constant 0 : index
    %c0_1 = arith.constant 0 : index
    %0 = vector.load %arg3[%c0, %c0_0, %c0_1] : memref<1x128x16xf32, #tpu.memory_space<vmem>>, vector<1x128x16xf32>
    %1 = vector.shape_cast %0 : vector<1x128x16xf32> to vector<128x16xf32>
    %c0_2 = arith.constant 0 : index
    %c0_3 = arith.constant 0 : index
    %2 = vector.load %arg4[%c0_2, %c0_3] : memref<128x128xf32, #tpu.memory_space<vmem>>, vector<128x128xf32>
    %c0_i32 = arith.constant 0 : i32
    %3 = arith.cmpi eq, %arg2, %c0_i32 : i32
    %4 = arith.extui %3 : i1 to i32
    %c0_i32_4 = arith.constant 0 : i32
    %5 = arith.cmpi ne, %4, %c0_i32_4 : i32
    scf.if %5 {
      %c0_35 = arith.constant 0 : index
      %c0_36 = arith.constant 0 : index
      %82 = vector.load %arg6[%c0_35, %c0_36] : memref<128x128xf32, #tpu.memory_space<vmem>>, vector<128x128xf32>
      %cst_37 = arith.constant dense<0.000000e+00> : vector<128x128xf32>
      %83 = tpu.matmul %2, %82, %cst_37 {dimension_numbers = #tpu.dot_dimension_numbers<[1], [0], [0], [1], [0, 0, 1, 1], [], []>} : vector<128x128xf32>, vector<128x128xf32>, vector<128x128xf32> -> vector<128x128xf32>
      %c0_38 = arith.constant 0 : index
      %c0_39 = arith.constant 0 : index
      %84 = vector.load %arg10[%c0_38, %c0_39] : memref<128x128xf32, #tpu.memory_space<vmem>>, vector<128x128xf32>
      tpu.vector_store %arg10[%c0_38, %c0_39], %83 {strides = array<i32>} : memref<128x128xf32, #tpu.memory_space<vmem>>, vector<128x128xf32>,
    } else {
    }
    %6 = vector.extract_strided_slice %1 {offsets = [0, 0], sizes = [128, 1], strides = [1, 1]} : vector<128x16xf32> to vector<128x1xf32>
    %7 = vector.broadcast %6 : vector<128x1xf32> to vector<128x128xf32>
    %8 = arith.mulf %7, %2 : vector<128x128xf32>
    %c0_5 = arith.constant 0 : index
    %c0_6 = arith.constant 0 : index
    %9 = vector.load %arg9[%c0_5, %c0_6] : memref<128x2048xf32, #tpu.memory_space<vmem>>, vector<128x128xf32>
    tpu.vector_store %arg9[%c0_5, %c0_6], %8 {strides = array<i32>} : memref<128x2048xf32, #tpu.memory_space<vmem>>, vector<128x128xf32>,
    %10 = vector.extract_strided_slice %1 {offsets = [0, 1], sizes = [128, 1], strides = [1, 1]} : vector<128x16xf32> to vector<128x1xf32>
    %11 = vector.broadcast %10 : vector<128x1xf32> to vector<128x128xf32>
    %12 = arith.mulf %11, %2 : vector<128x128xf32>
    %c0_7 = arith.constant 0 : index
    %c128 = arith.constant 128 : index
    %13 = vector.load %arg9[%c0_7, %c128] : memref<128x2048xf32, #tpu.memory_space<vmem>>, vector<128x128xf32>
    tpu.vector_store %arg9[%c0_7, %c128], %12 {strides = array<i32>} : memref<128x2048xf32, #tpu.memory_space<vmem>>, vector<128x128xf32>,
    %14 = vector.extract_strided_slice %1 {offsets = [0, 2], sizes = [128, 1], strides = [1, 1]} : vector<128x16xf32> to vector<128x1xf32>
    %15 = vector.broadcast %14 : vector<128x1xf32> to vector<128x128xf32>
    %16 = arith.mulf %15, %2 : vector<128x128xf32>
    %c0_8 = arith.constant 0 : index
    %c256 = arith.constant 256 : index
    %17 = vector.load %arg9[%c0_8, %c256] : memref<128x2048xf32, #tpu.memory_space<vmem>>, vector<128x128xf32>
    tpu.vector_store %arg9[%c0_8, %c256], %16 {strides = array<i32>} : memref<128x2048xf32, #tpu.memory_space<vmem>>, vector<128x128xf32>,
    %18 = vector.extract_strided_slice %1 {offsets = [0, 3], sizes = [128, 1], strides = [1, 1]} : vector<128x16xf32> to vector<128x1xf32>
    %19 = vector.broadcast %18 : vector<128x1xf32> to vector<128x128xf32>
    %20 = arith.mulf %19, %2 : vector<128x128xf32>
    %c0_9 = arith.constant 0 : index
    %c384 = arith.constant 384 : index
    %21 = vector.load %arg9[%c0_9, %c384] : memref<128x2048xf32, #tpu.memory_space<vmem>>, vector<128x128xf32>
    tpu.vector_store %arg9[%c0_9, %c384], %20 {strides = array<i32>} : memref<128x2048xf32, #tpu.memory_space<vmem>>, vector<128x128xf32>,
    %22 = vector.extract_strided_slice %1 {offsets = [0, 4], sizes = [128, 1], strides = [1, 1]} : vector<128x16xf32> to vector<128x1xf32>
    %23 = vector.broadcast %22 : vector<128x1xf32> to vector<128x128xf32>
    %24 = arith.mulf %23, %2 : vector<128x128xf32>
    %c0_10 = arith.constant 0 : index
    %c512 = arith.constant 512 : index
    %25 = vector.load %arg9[%c0_10, %c512] : memref<128x2048xf32, #tpu.memory_space<vmem>>, vector<128x128xf32>
    tpu.vector_store %arg9[%c0_10, %c512], %24 {strides = array<i32>} : memref<128x2048xf32, #tpu.memory_space<vmem>>, vector<128x128xf32>,
    %26 = vector.extract_strided_slice %1 {offsets = [0, 5], sizes = [128, 1], strides = [1, 1]} : vector<128x16xf32> to vector<128x1xf32>
    %27 = vector.broadcast %26 : vector<128x1xf32> to vector<128x128xf32>
    %28 = arith.mulf %27, %2 : vector<128x128xf32>
    %c0_11 = arith.constant 0 : index
    %c640 = arith.constant 640 : index
    %29 = vector.load %arg9[%c0_11, %c640] : memref<128x2048xf32, #tpu.memory_space<vmem>>, vector<128x128xf32>
    tpu.vector_store %arg9[%c0_11, %c640], %28 {strides = array<i32>} : memref<128x2048xf32, #tpu.memory_space<vmem>>, vector<128x128xf32>,
    %30 = vector.extract_strided_slice %1 {offsets = [0, 6], sizes = [128, 1], strides = [1, 1]} : vector<128x16xf32> to vector<128x1xf32>
    %31 = vector.broadcast %30 : vector<128x1xf32> to vector<128x128xf32>
    %32 = arith.mulf %31, %2 : vector<128x128xf32>
    %c0_12 = arith.constant 0 : index
    %c768 = arith.constant 768 : index
    %33 = vector.load %arg9[%c0_12, %c768] : memref<128x2048xf32, #tpu.memory_space<vmem>>, vector<128x128xf32>
    tpu.vector_store %arg9[%c0_12, %c768], %32 {strides = array<i32>} : memref<128x2048xf32, #tpu.memory_space<vmem>>, vector<128x128xf32>,
    %34 = vector.extract_strided_slice %1 {offsets = [0, 7], sizes = [128, 1], strides = [1, 1]} : vector<128x16xf32> to vector<128x1xf32>
    %35 = vector.broadcast %34 : vector<128x1xf32> to vector<128x128xf32>
    %36 = arith.mulf %35, %2 : vector<128x128xf32>
    %c0_13 = arith.constant 0 : index
    %c896 = arith.constant 896 : index
    %37 = vector.load %arg9[%c0_13, %c896] : memref<128x2048xf32, #tpu.memory_space<vmem>>, vector<128x128xf32>
    tpu.vector_store %arg9[%c0_13, %c896], %36 {strides = array<i32>} : memref<128x2048xf32, #tpu.memory_space<vmem>>, vector<128x128xf32>,
    %38 = vector.extract_strided_slice %1 {offsets = [0, 8], sizes = [128, 1], strides = [1, 1]} : vector<128x16xf32> to vector<128x1xf32>
    %39 = vector.broadcast %38 : vector<128x1xf32> to vector<128x128xf32>
    %40 = arith.mulf %39, %2 : vector<128x128xf32>
    %c0_14 = arith.constant 0 : index
    %c1024 = arith.constant 1024 : index
    %41 = vector.load %arg9[%c0_14, %c1024] : memref<128x2048xf32, #tpu.memory_space<vmem>>, vector<128x128xf32>
    tpu.vector_store %arg9[%c0_14, %c1024], %40 {strides = array<i32>} : memref<128x2048xf32, #tpu.memory_space<vmem>>, vector<128x128xf32>,
    %42 = vector.extract_strided_slice %1 {offsets = [0, 9], sizes = [128, 1], strides = [1, 1]} : vector<128x16xf32> to vector<128x1xf32>
    %43 = vector.broadcast %42 : vector<128x1xf32> to vector<128x128xf32>
    %44 = arith.mulf %43, %2 : vector<128x128xf32>
    %c0_15 = arith.constant 0 : index
    %c1152 = arith.constant 1152 : index
    %45 = vector.load %arg9[%c0_15, %c1152] : memref<128x2048xf32, #tpu.memory_space<vmem>>, vector<128x128xf32>
    tpu.vector_store %arg9[%c0_15, %c1152], %44 {strides = array<i32>} : memref<128x2048xf32, #tpu.memory_space<vmem>>, vector<128x128xf32>,
    %46 = vector.extract_strided_slice %1 {offsets = [0, 10], sizes = [128, 1], strides = [1, 1]} : vector<128x16xf32> to vector<128x1xf32>
    %47 = vector.broadcast %46 : vector<128x1xf32> to vector<128x128xf32>
    %48 = arith.mulf %47, %2 : vector<128x128xf32>
    %c0_16 = arith.constant 0 : index
    %c1280 = arith.constant 1280 : index
    %49 = vector.load %arg9[%c0_16, %c1280] : memref<128x2048xf32, #tpu.memory_space<vmem>>, vector<128x128xf32>
    tpu.vector_store %arg9[%c0_16, %c1280], %48 {strides = array<i32>} : memref<128x2048xf32, #tpu.memory_space<vmem>>, vector<128x128xf32>,
    %50 = vector.extract_strided_slice %1 {offsets = [0, 11], sizes = [128, 1], strides = [1, 1]} : vector<128x16xf32> to vector<128x1xf32>
    %51 = vector.broadcast %50 : vector<128x1xf32> to vector<128x128xf32>
    %52 = arith.mulf %51, %2 : vector<128x128xf32>
    %c0_17 = arith.constant 0 : index
    %c1408 = arith.constant 1408 : index
    %53 = vector.load %arg9[%c0_17, %c1408] : memref<128x2048xf32, #tpu.memory_space<vmem>>, vector<128x128xf32>
    tpu.vector_store %arg9[%c0_17, %c1408], %52 {strides = array<i32>} : memref<128x2048xf32, #tpu.memory_space<vmem>>, vector<128x128xf32>,
    %54 = vector.extract_strided_slice %1 {offsets = [0, 12], sizes = [128, 1], strides = [1, 1]} : vector<128x16xf32> to vector<128x1xf32>
    %55 = vector.broadcast %54 : vector<128x1xf32> to vector<128x128xf32>
    %56 = arith.mulf %55, %2 : vector<128x128xf32>
    %c0_18 = arith.constant 0 : index
    %c1536 = arith.constant 1536 : index
    %57 = vector.load %arg9[%c0_18, %c1536] : memref<128x2048xf32, #tpu.memory_space<vmem>>, vector<128x128xf32>
    tpu.vector_store %arg9[%c0_18, %c1536], %56 {strides = array<i32>} : memref<128x2048xf32, #tpu.memory_space<vmem>>, vector<128x128xf32>,
    %58 = vector.extract_strided_slice %1 {offsets = [0, 13], sizes = [128, 1], strides = [1, 1]} : vector<128x16xf32> to vector<128x1xf32>
    %59 = vector.broadcast %58 : vector<128x1xf32> to vector<128x128xf32>
    %60 = arith.mulf %59, %2 : vector<128x128xf32>
    %c0_19 = arith.constant 0 : index
    %c1664 = arith.constant 1664 : index
    %61 = vector.load %arg9[%c0_19, %c1664] : memref<128x2048xf32, #tpu.memory_space<vmem>>, vector<128x128xf32>
    tpu.vector_store %arg9[%c0_19, %c1664], %60 {strides = array<i32>} : memref<128x2048xf32, #tpu.memory_space<vmem>>, vector<128x128xf32>,
    %62 = vector.extract_strided_slice %1 {offsets = [0, 14], sizes = [128, 1], strides = [1, 1]} : vector<128x16xf32> to vector<128x1xf32>
    %63 = vector.broadcast %62 : vector<128x1xf32> to vector<128x128xf32>
    %64 = arith.mulf %63, %2 : vector<128x128xf32>
    %c0_20 = arith.constant 0 : index
    %c1792 = arith.constant 1792 : index
    %65 = vector.load %arg9[%c0_20, %c1792] : memref<128x2048xf32, #tpu.memory_space<vmem>>, vector<128x128xf32>
    tpu.vector_store %arg9[%c0_20, %c1792], %64 {strides = array<i32>} : memref<128x2048xf32, #tpu.memory_space<vmem>>, vector<128x128xf32>,
    %66 = vector.extract_strided_slice %1 {offsets = [0, 15], sizes = [128, 1], strides = [1, 1]} : vector<128x16xf32> to vector<128x1xf32>
    %67 = vector.broadcast %66 : vector<128x1xf32> to vector<128x128xf32>
    %68 = arith.mulf %67, %2 : vector<128x128xf32>
    %c0_21 = arith.constant 0 : index
    %c1920 = arith.constant 1920 : index
    %69 = vector.load %arg9[%c0_21, %c1920] : memref<128x2048xf32, #tpu.memory_space<vmem>>, vector<128x128xf32>
    tpu.vector_store %arg9[%c0_21, %c1920], %68 {strides = array<i32>} : memref<128x2048xf32, #tpu.memory_space<vmem>>, vector<128x128xf32>,
    %c0_22 = arith.constant 0 : index
    %c0_23 = arith.constant 0 : index
    %70 = vector.load %arg5[%c0_22, %c0_23] : memref<16x128xf32, #tpu.memory_space<vmem>>, vector<16x128xf32>
    %cst = arith.constant dense<0.000000e+00> : vector<128x128xf32>
    %71 = tpu.matmul %1, %70, %cst {dimension_numbers = #tpu.dot_dimension_numbers<[1], [0], [0], [1], [0, 0, 1, 1], [], []>} : vector<128x16xf32>, vector<16x128xf32>, vector<128x128xf32> -> vector<128x128xf32>
    %c0_24 = arith.constant 0 : index
    %c0_25 = arith.constant 0 : index
    %72 = vector.load %arg9[%c0_24, %c0_25] : memref<128x2048xf32, #tpu.memory_space<vmem>>, vector<128x2048xf32>
    %c0_26 = arith.constant 0 : index
    %c0_27 = arith.constant 0 : index
    %73 = vector.load %arg7[%c0_26, %c0_27] : memref<2048x128xf32, #tpu.memory_space<vmem>>, vector<2048x128xf32>
    %cst_28 = arith.constant dense<0.000000e+00> : vector<128x128xf32>
    %74 = tpu.matmul %72, %73, %cst_28 {dimension_numbers = #tpu.dot_dimension_numbers<[1], [0], [0], [1], [0, 0, 1, 1], [], []>} : vector<128x2048xf32>, vector<2048x128xf32>, vector<128x128xf32> -> vector<128x128xf32>
    %75 = arith.addf %71, %74 : vector<128x128xf32>
    %c0_29 = arith.constant 0 : index
    %c0_30 = arith.constant 0 : index
    %76 = vector.load %arg10[%c0_29, %c0_30] : memref<128x128xf32, #tpu.memory_space<vmem>>, vector<128x128xf32>
    %77 = arith.addf %76, %75 : vector<128x128xf32>
    %c0_31 = arith.constant 0 : index
    %c0_32 = arith.constant 0 : index
    %78 = vector.load %arg10[%c0_31, %c0_32] : memref<128x128xf32, #tpu.memory_space<vmem>>, vector<128x128xf32>
    tpu.vector_store %arg10[%c0_31, %c0_32], %77 {strides = array<i32>} : memref<128x128xf32, #tpu.memory_space<vmem>>, vector<128x128xf32>,
    %c0_i32_33 = arith.constant 0 : i32
    %79 = arith.cmpi eq, %arg2, %c0_i32_33 : i32
    %80 = arith.extui %79 : i1 to i32
    %c0_i32_34 = arith.constant 0 : i32
    %81 = arith.cmpi ne, %80, %c0_i32_34 : i32
    scf.if %81 {
      %c0_35 = arith.constant 0 : index
      %c0_36 = arith.constant 0 : index
      %82 = vector.load %arg10[%c0_35, %c0_36] : memref<128x128xf32, #tpu.memory_space<vmem>>, vector<128x128xf32>
      %c0_37 = arith.constant 0 : index
      %c0_38 = arith.constant 0 : index
      %83 = vector.load %arg8[%c0_37, %c0_38] : memref<128x128xf32, #tpu.memory_space<vmem>>, vector<128x128xf32>
      tpu.vector_store %arg8[%c0_37, %c0_38], %82 {strides = array<i32>} : memref<128x128xf32, #tpu.memory_space<vmem>>, vector<128x128xf32>,
    } else {
    }
    return
  }
  func.func @transform_0(%arg0: i32, %arg1: i32, %arg2: i32) -> (i32, i32, i32) {
    %c0_i32 = arith.constant 0 : i32
    %c0_i32_0 = arith.constant 0 : i32
    return %arg2, %arg1, %c0_i32 : i32, i32, i32
  }
  func.func @transform_1(%arg0: i32, %arg1: i32, %arg2: i32) -> (i32, i32) {
    %c0_i32 = arith.constant 0 : i32
    %c0_i32_0 = arith.constant 0 : i32
    return %arg1, %c0_i32 : i32, i32
  }
  func.func @transform_2(%arg0: i32, %arg1: i32, %arg2: i32) -> (i32, i32) {
    %c0_i32 = arith.constant 0 : i32
    return %arg2, %arg0 : i32, i32
  }
  func.func @transform_3(%arg0: i32, %arg1: i32, %arg2: i32) -> (i32, i32) {
    %c0_i32 = arith.constant 0 : i32
    %c0_i32_0 = arith.constant 0 : i32
    return %c0_i32, %arg0 : i32, i32
  }
  func.func @transform_4(%arg0: i32, %arg1: i32, %arg2: i32) -> (i32, i32) {
    %c0_i32 = arith.constant 0 : i32
    return %arg2, %arg0 : i32, i32
  }
  func.func @transform_5(%arg0: i32, %arg1: i32, %arg2: i32) -> (i32, i32) {
    %c0_i32 = arith.constant 0 : i32
    return %arg1, %arg0 : i32, i32
  }
}

module attributes {stable_mosaic.version = 11 : i64} {
  func.func @_quad_kernel(%arg0: i32, %arg1: i32, %arg2: i32, %arg3: memref<1x128x16xf32, #tpu.memory_space<vmem>>, %arg4: memref<128x128xf32, #tpu.memory_space<vmem>>, %arg5: memref<16x128xf32, #tpu.memory_space<vmem>>, %arg6: memref<128x128xf32, #tpu.memory_space<vmem>>, %arg7: memref<2048x128xf32, #tpu.memory_space<vmem>>, %arg8: memref<128x128xf32, #tpu.memory_space<vmem>>, %arg9: memref<128x2048xf32, #tpu.memory_space<vmem>>, %arg10: memref<128x128xf32, #tpu.memory_space<vmem>>) attributes {dimension_semantics = [#tpu.dimension_semantics<parallel>, #tpu.dimension_semantics<parallel>, #tpu.dimension_semantics<arbitrary>], iteration_bounds = array<i64: 1, 2, 1>, scalar_prefetch = 0 : i64, scratch_operands = 2 : i64, tpu.core_type = #tpu.core_type<tc>, window_params = [{transform_indices = @transform_0, window_bounds = array<i64: 1, 128, 16>}, {transform_indices = @transform_1, window_bounds = array<i64: 128, 128>}, {transform_indices = @transform_2, window_bounds = array<i64: 16, 128>}, {transform_indices = @transform_3, window_bounds = array<i64: 128, 128>}, {transform_indices = @transform_4, window_bounds = array<i64: 2048, 128>}, {transform_indices = @transform_5, window_bounds = array<i64: 128, 128>}]} {
    %c0 = arith.constant 0 : index
    %c0_0 = arith.constant 0 : index
    %c0_1 = arith.constant 0 : index
    %0 = vector.load %arg3[%c0, %c0_0, %c0_1] : memref<1x128x16xf32, #tpu.memory_space<vmem>>, vector<1x128x16xf32>
    %1 = vector.shape_cast %0 : vector<1x128x16xf32> to vector<128x16xf32>
    %c0_2 = arith.constant 0 : index
    %c0_3 = arith.constant 0 : index
    %2 = vector.load %arg4[%c0_2, %c0_3] : memref<128x128xf32, #tpu.memory_space<vmem>>, vector<128x128xf32>
    %c0_i32 = arith.constant 0 : i32
    %3 = arith.cmpi eq, %arg2, %c0_i32 : i32
    %4 = arith.extui %3 : i1 to i32
    %c0_i32_4 = arith.constant 0 : i32
    %5 = arith.cmpi ne, %4, %c0_i32_4 : i32
    scf.if %5 {
      %c0_35 = arith.constant 0 : index
      %c0_36 = arith.constant 0 : index
      %82 = vector.load %arg6[%c0_35, %c0_36] : memref<128x128xf32, #tpu.memory_space<vmem>>, vector<128x128xf32>
      %cst_37 = arith.constant dense<0.000000e+00> : vector<128x128xf32>
      %83 = tpu.matmul %2, %82, %cst_37 {dimension_numbers = #tpu.dot_dimension_numbers<[1], [0], [0], [1], [0, 0, 1, 1], [], []>} : vector<128x128xf32>, vector<128x128xf32>, vector<128x128xf32> -> vector<128x128xf32>
      %c0_38 = arith.constant 0 : index
      %c0_39 = arith.constant 0 : index
      %84 = vector.load %arg10[%c0_38, %c0_39] : memref<128x128xf32, #tpu.memory_space<vmem>>, vector<128x128xf32>
      tpu.vector_store %arg10[%c0_38, %c0_39], %83 {strides = array<i32>} : memref<128x128xf32, #tpu.memory_space<vmem>>, vector<128x128xf32>,
    } else {
    }
    %6 = vector.extract_strided_slice %1 {offsets = [0, 0], sizes = [128, 1], strides = [1, 1]} : vector<128x16xf32> to vector<128x1xf32>
    %7 = vector.broadcast %6 : vector<128x1xf32> to vector<128x128xf32>
    %8 = arith.mulf %7, %2 : vector<128x128xf32>
    %c0_5 = arith.constant 0 : index
    %c0_6 = arith.constant 0 : index
    %9 = vector.load %arg9[%c0_5, %c0_6] : memref<128x2048xf32, #tpu.memory_space<vmem>>, vector<128x128xf32>
    tpu.vector_store %arg9[%c0_5, %c0_6], %8 {strides = array<i32>} : memref<128x2048xf32, #tpu.memory_space<vmem>>, vector<128x128xf32>,
    %10 = vector.extract_strided_slice %1 {offsets = [0, 1], sizes = [128, 1], strides = [1, 1]} : vector<128x16xf32> to vector<128x1xf32>
    %11 = vector.broadcast %10 : vector<128x1xf32> to vector<128x128xf32>
    %12 = arith.mulf %11, %2 : vector<128x128xf32>
    %c0_7 = arith.constant 0 : index
    %c128 = arith.constant 128 : index
    %13 = vector.load %arg9[%c0_7, %c128] : memref<128x2048xf32, #tpu.memory_space<vmem>>, vector<128x128xf32>
    tpu.vector_store %arg9[%c0_7, %c128], %12 {strides = array<i32>} : memref<128x2048xf32, #tpu.memory_space<vmem>>, vector<128x128xf32>,
    %14 = vector.extract_strided_slice %1 {offsets = [0, 2], sizes = [128, 1], strides = [1, 1]} : vector<128x16xf32> to vector<128x1xf32>
    %15 = vector.broadcast %14 : vector<128x1xf32> to vector<128x128xf32>
    %16 = arith.mulf %15, %2 : vector<128x128xf32>
    %c0_8 = arith.constant 0 : index
    %c256 = arith.constant 256 : index
    %17 = vector.load %arg9[%c0_8, %c256] : memref<128x2048xf32, #tpu.memory_space<vmem>>, vector<128x128xf32>
    tpu.vector_store %arg9[%c0_8, %c256], %16 {strides = array<i32>} : memref<128x2048xf32, #tpu.memory_space<vmem>>, vector<128x128xf32>,
    %18 = vector.extract_strided_slice %1 {offsets = [0, 3], sizes = [128, 1], strides = [1, 1]} : vector<128x16xf32> to vector<128x1xf32>
    %19 = vector.broadcast %18 : vector<128x1xf32> to vector<128x128xf32>
    %20 = arith.mulf %19, %2 : vector<128x128xf32>
    %c0_9 = arith.constant 0 : index
    %c384 = arith.constant 384 : index
    %21 = vector.load %arg9[%c0_9, %c384] : memref<128x2048xf32, #tpu.memory_space<vmem>>, vector<128x128xf32>
    tpu.vector_store %arg9[%c0_9, %c384], %20 {strides = array<i32>} : memref<128x2048xf32, #tpu.memory_space<vmem>>, vector<128x128xf32>,
    %22 = vector.extract_strided_slice %1 {offsets = [0, 4], sizes = [128, 1], strides = [1, 1]} : vector<128x16xf32> to vector<128x1xf32>
    %23 = vector.broadcast %22 : vector<128x1xf32> to vector<128x128xf32>
    %24 = arith.mulf %23, %2 : vector<128x128xf32>
    %c0_10 = arith.constant 0 : index
    %c512 = arith.constant 512 : index
    %25 = vector.load %arg9[%c0_10, %c512] : memref<128x2048xf32, #tpu.memory_space<vmem>>, vector<128x128xf32>
    tpu.vector_store %arg9[%c0_10, %c512], %24 {strides = array<i32>} : memref<128x2048xf32, #tpu.memory_space<vmem>>, vector<128x128xf32>,
    %26 = vector.extract_strided_slice %1 {offsets = [0, 5], sizes = [128, 1], strides = [1, 1]} : vector<128x16xf32> to vector<128x1xf32>
    %27 = vector.broadcast %26 : vector<128x1xf32> to vector<128x128xf32>
    %28 = arith.mulf %27, %2 : vector<128x128xf32>
    %c0_11 = arith.constant 0 : index
    %c640 = arith.constant 640 : index
    %29 = vector.load %arg9[%c0_11, %c640] : memref<128x2048xf32, #tpu.memory_space<vmem>>, vector<128x128xf32>
    tpu.vector_store %arg9[%c0_11, %c640], %28 {strides = array<i32>} : memref<128x2048xf32, #tpu.memory_space<vmem>>, vector<128x128xf32>,
    %30 = vector.extract_strided_slice %1 {offsets = [0, 6], sizes = [128, 1], strides = [1, 1]} : vector<128x16xf32> to vector<128x1xf32>
    %31 = vector.broadcast %30 : vector<128x1xf32> to vector<128x128xf32>
    %32 = arith.mulf %31, %2 : vector<128x128xf32>
    %c0_12 = arith.constant 0 : index
    %c768 = arith.constant 768 : index
    %33 = vector.load %arg9[%c0_12, %c768] : memref<128x2048xf32, #tpu.memory_space<vmem>>, vector<128x128xf32>
    tpu.vector_store %arg9[%c0_12, %c768], %32 {strides = array<i32>} : memref<128x2048xf32, #tpu.memory_space<vmem>>, vector<128x128xf32>,
    %34 = vector.extract_strided_slice %1 {offsets = [0, 7], sizes = [128, 1], strides = [1, 1]} : vector<128x16xf32> to vector<128x1xf32>
    %35 = vector.broadcast %34 : vector<128x1xf32> to vector<128x128xf32>
    %36 = arith.mulf %35, %2 : vector<128x128xf32>
    %c0_13 = arith.constant 0 : index
    %c896 = arith.constant 896 : index
    %37 = vector.load %arg9[%c0_13, %c896] : memref<128x2048xf32, #tpu.memory_space<vmem>>, vector<128x128xf32>
    tpu.vector_store %arg9[%c0_13, %c896], %36 {strides = array<i32>} : memref<128x2048xf32, #tpu.memory_space<vmem>>, vector<128x128xf32>,
    %38 = vector.extract_strided_slice %1 {offsets = [0, 8], sizes = [128, 1], strides = [1, 1]} : vector<128x16xf32> to vector<128x1xf32>
    %39 = vector.broadcast %38 : vector<128x1xf32> to vector<128x128xf32>
    %40 = arith.mulf %39, %2 : vector<128x128xf32>
    %c0_14 = arith.constant 0 : index
    %c1024 = arith.constant 1024 : index
    %41 = vector.load %arg9[%c0_14, %c1024] : memref<128x2048xf32, #tpu.memory_space<vmem>>, vector<128x128xf32>
    tpu.vector_store %arg9[%c0_14, %c1024], %40 {strides = array<i32>} : memref<128x2048xf32, #tpu.memory_space<vmem>>, vector<128x128xf32>,
    %42 = vector.extract_strided_slice %1 {offsets = [0, 9], sizes = [128, 1], strides = [1, 1]} : vector<128x16xf32> to vector<128x1xf32>
    %43 = vector.broadcast %42 : vector<128x1xf32> to vector<128x128xf32>
    %44 = arith.mulf %43, %2 : vector<128x128xf32>
    %c0_15 = arith.constant 0 : index
    %c1152 = arith.constant 1152 : index
    %45 = vector.load %arg9[%c0_15, %c1152] : memref<128x2048xf32, #tpu.memory_space<vmem>>, vector<128x128xf32>
    tpu.vector_store %arg9[%c0_15, %c1152], %44 {strides = array<i32>} : memref<128x2048xf32, #tpu.memory_space<vmem>>, vector<128x128xf32>,
    %46 = vector.extract_strided_slice %1 {offsets = [0, 10], sizes = [128, 1], strides = [1, 1]} : vector<128x16xf32> to vector<128x1xf32>
    %47 = vector.broadcast %46 : vector<128x1xf32> to vector<128x128xf32>
    %48 = arith.mulf %47, %2 : vector<128x128xf32>
    %c0_16 = arith.constant 0 : index
    %c1280 = arith.constant 1280 : index
    %49 = vector.load %arg9[%c0_16, %c1280] : memref<128x2048xf32, #tpu.memory_space<vmem>>, vector<128x128xf32>
    tpu.vector_store %arg9[%c0_16, %c1280], %48 {strides = array<i32>} : memref<128x2048xf32, #tpu.memory_space<vmem>>, vector<128x128xf32>,
    %50 = vector.extract_strided_slice %1 {offsets = [0, 11], sizes = [128, 1], strides = [1, 1]} : vector<128x16xf32> to vector<128x1xf32>
    %51 = vector.broadcast %50 : vector<128x1xf32> to vector<128x128xf32>
    %52 = arith.mulf %51, %2 : vector<128x128xf32>
    %c0_17 = arith.constant 0 : index
    %c1408 = arith.constant 1408 : index
    %53 = vector.load %arg9[%c0_17, %c1408] : memref<128x2048xf32, #tpu.memory_space<vmem>>, vector<128x128xf32>
    tpu.vector_store %arg9[%c0_17, %c1408], %52 {strides = array<i32>} : memref<128x2048xf32, #tpu.memory_space<vmem>>, vector<128x128xf32>,
    %54 = vector.extract_strided_slice %1 {offsets = [0, 12], sizes = [128, 1], strides = [1, 1]} : vector<128x16xf32> to vector<128x1xf32>
    %55 = vector.broadcast %54 : vector<128x1xf32> to vector<128x128xf32>
    %56 = arith.mulf %55, %2 : vector<128x128xf32>
    %c0_18 = arith.constant 0 : index
    %c1536 = arith.constant 1536 : index
    %57 = vector.load %arg9[%c0_18, %c1536] : memref<128x2048xf32, #tpu.memory_space<vmem>>, vector<128x128xf32>
    tpu.vector_store %arg9[%c0_18, %c1536], %56 {strides = array<i32>} : memref<128x2048xf32, #tpu.memory_space<vmem>>, vector<128x128xf32>,
    %58 = vector.extract_strided_slice %1 {offsets = [0, 13], sizes = [128, 1], strides = [1, 1]} : vector<128x16xf32> to vector<128x1xf32>
    %59 = vector.broadcast %58 : vector<128x1xf32> to vector<128x128xf32>
    %60 = arith.mulf %59, %2 : vector<128x128xf32>
    %c0_19 = arith.constant 0 : index
    %c1664 = arith.constant 1664 : index
    %61 = vector.load %arg9[%c0_19, %c1664] : memref<128x2048xf32, #tpu.memory_space<vmem>>, vector<128x128xf32>
    tpu.vector_store %arg9[%c0_19, %c1664], %60 {strides = array<i32>} : memref<128x2048xf32, #tpu.memory_space<vmem>>, vector<128x128xf32>,
    %62 = vector.extract_strided_slice %1 {offsets = [0, 14], sizes = [128, 1], strides = [1, 1]} : vector<128x16xf32> to vector<128x1xf32>
    %63 = vector.broadcast %62 : vector<128x1xf32> to vector<128x128xf32>
    %64 = arith.mulf %63, %2 : vector<128x128xf32>
    %c0_20 = arith.constant 0 : index
    %c1792 = arith.constant 1792 : index
    %65 = vector.load %arg9[%c0_20, %c1792] : memref<128x2048xf32, #tpu.memory_space<vmem>>, vector<128x128xf32>
    tpu.vector_store %arg9[%c0_20, %c1792], %64 {strides = array<i32>} : memref<128x2048xf32, #tpu.memory_space<vmem>>, vector<128x128xf32>,
    %66 = vector.extract_strided_slice %1 {offsets = [0, 15], sizes = [128, 1], strides = [1, 1]} : vector<128x16xf32> to vector<128x1xf32>
    %67 = vector.broadcast %66 : vector<128x1xf32> to vector<128x128xf32>
    %68 = arith.mulf %67, %2 : vector<128x128xf32>
    %c0_21 = arith.constant 0 : index
    %c1920 = arith.constant 1920 : index
    %69 = vector.load %arg9[%c0_21, %c1920] : memref<128x2048xf32, #tpu.memory_space<vmem>>, vector<128x128xf32>
    tpu.vector_store %arg9[%c0_21, %c1920], %68 {strides = array<i32>} : memref<128x2048xf32, #tpu.memory_space<vmem>>, vector<128x128xf32>,
    %c0_22 = arith.constant 0 : index
    %c0_23 = arith.constant 0 : index
    %70 = vector.load %arg5[%c0_22, %c0_23] : memref<16x128xf32, #tpu.memory_space<vmem>>, vector<16x128xf32>
    %cst = arith.constant dense<0.000000e+00> : vector<128x128xf32>
    %71 = tpu.matmul %1, %70, %cst {dimension_numbers = #tpu.dot_dimension_numbers<[1], [0], [0], [1], [0, 0, 1, 1], [], []>} : vector<128x16xf32>, vector<16x128xf32>, vector<128x128xf32> -> vector<128x128xf32>
    %c0_24 = arith.constant 0 : index
    %c0_25 = arith.constant 0 : index
    %72 = vector.load %arg9[%c0_24, %c0_25] : memref<128x2048xf32, #tpu.memory_space<vmem>>, vector<128x2048xf32>
    %c0_26 = arith.constant 0 : index
    %c0_27 = arith.constant 0 : index
    %73 = vector.load %arg7[%c0_26, %c0_27] : memref<2048x128xf32, #tpu.memory_space<vmem>>, vector<2048x128xf32>
    %cst_28 = arith.constant dense<0.000000e+00> : vector<128x128xf32>
    %74 = tpu.matmul %72, %73, %cst_28 {dimension_numbers = #tpu.dot_dimension_numbers<[1], [0], [0], [1], [0, 0, 1, 1], [], []>} : vector<128x2048xf32>, vector<2048x128xf32>, vector<128x128xf32> -> vector<128x128xf32>
    %75 = arith.addf %71, %74 : vector<128x128xf32>
    %c0_29 = arith.constant 0 : index
    %c0_30 = arith.constant 0 : index
    %76 = vector.load %arg10[%c0_29, %c0_30] : memref<128x128xf32, #tpu.memory_space<vmem>>, vector<128x128xf32>
    %77 = arith.addf %76, %75 : vector<128x128xf32>
    %c0_31 = arith.constant 0 : index
    %c0_32 = arith.constant 0 : index
    %78 = vector.load %arg10[%c0_31, %c0_32] : memref<128x128xf32, #tpu.memory_space<vmem>>, vector<128x128xf32>
    tpu.vector_store %arg10[%c0_31, %c0_32], %77 {strides = array<i32>} : memref<128x128xf32, #tpu.memory_space<vmem>>, vector<128x128xf32>,
    %c0_i32_33 = arith.constant 0 : i32
    %79 = arith.cmpi eq, %arg2, %c0_i32_33 : i32
    %80 = arith.extui %79 : i1 to i32
    %c0_i32_34 = arith.constant 0 : i32
    %81 = arith.cmpi ne, %80, %c0_i32_34 : i32
    scf.if %81 {
      %c0_35 = arith.constant 0 : index
      %c0_36 = arith.constant 0 : index
      %82 = vector.load %arg10[%c0_35, %c0_36] : memref<128x128xf32, #tpu.memory_space<vmem>>, vector<128x128xf32>
      %c0_37 = arith.constant 0 : index
      %c0_38 = arith.constant 0 : index
      %83 = vector.load %arg8[%c0_37, %c0_38] : memref<128x128xf32, #tpu.memory_space<vmem>>, vector<128x128xf32>
      tpu.vector_store %arg8[%c0_37, %c0_38], %82 {strides = array<i32>} : memref<128x128xf32, #tpu.memory_space<vmem>>, vector<128x128xf32>,
    } else {
    }
    return
  }
  func.func @transform_0(%arg0: i32, %arg1: i32, %arg2: i32) -> (i32, i32, i32) {
    %c0_i32 = arith.constant 0 : i32
    %c0_i32_0 = arith.constant 0 : i32
    return %arg2, %arg1, %c0_i32 : i32, i32, i32
  }
  func.func @transform_1(%arg0: i32, %arg1: i32, %arg2: i32) -> (i32, i32) {
    %c0_i32 = arith.constant 0 : i32
    %c0_i32_0 = arith.constant 0 : i32
    return %arg1, %c0_i32 : i32, i32
  }
  func.func @transform_2(%arg0: i32, %arg1: i32, %arg2: i32) -> (i32, i32) {
    %c0_i32 = arith.constant 0 : i32
    return %arg2, %arg0 : i32, i32
  }
  func.func @transform_3(%arg0: i32, %arg1: i32, %arg2: i32) -> (i32, i32) {
    %c0_i32 = arith.constant 0 : i32
    %c0_i32_0 = arith.constant 0 : i32
    return %c0_i32, %arg0 : i32, i32
  }
  func.func @transform_4(%arg0: i32, %arg1: i32, %arg2: i32) -> (i32, i32) {
    %c0_i32 = arith.constant 0 : i32
    return %arg2, %arg0 : i32, i32
  }
  func.func @transform_5(%arg0: i32, %arg1: i32, %arg2: i32) -> (i32, i32) {
    %c0_i32 = arith.constant 0 : i32
    return %arg1, %arg0 : i32, i32
  }
}

</mosaic_0001>

<bundles_post_ra>
// kernel: tpu_custom_call.1
= control target key start
LH: loop header
LB: loop body
LE: loop exit
PB: predicated region body
PF: predicated region fallthrough
CT: control target
= control target key end

     0   :  { %10 = vsyncpa [#allocation5], 0  ;;  %s6700_s0 = inlined_call_operand.vmem [shape: f32[1,256,16], index: 0, kind: input, shape index: {}]   ;;  %s6701_s1 = inlined_call_operand.vmem [shape: f32[256,128], index: 1, kind: input, shape index: {}]   ;;  %s6702_s2 = inlined_call_operand.vmem [shape: f32[16,128], index: 2, kind: input, shape index: {}]   ;;  %s6703_s3 = inlined_call_operand.hbm [shape: f32[128,128], index: 3, kind: input, shape index: {}]   ;;  %s6704_s4 = inlined_call_operand.hbm [shape: f32[2048,128], index: 4, kind: input, shape index: {}]   ;;  %s6705_s5 = inlined_call_operand.hbm [shape: f32[256,128], index: 5, kind: output, shape index: {}]  }
   0x1   :  { %11 = vsyncpa [#allocation8], 0 }
   0x2   :  { %12 = vsyncpa [#allocation6], 0 }
   0x3   :  { %14 = vsyncpa [#allocation6 + $0x1], 0  ;;  %s4478_s18 = smov 0   ;;  %s4480_s19 = smov 0  }
   0x4   :  { %s4482_s20 = smov 0   ;;  %s4484_s21 = smov 0  }
   0x5   :  { %s4486_s22 = smov 0   ;;  %s4488_s23 = smov 0  }
   0x6 LB: > { %s3945_s24 = sadd.s32 4294967295, %s4424_s23   ;;  %s3946_s25 = sadd.s32 4294967294, %s4424_s23   ;;  %s4424_s23 = sphi %s4488_s23, %s20_s23   ;;  %s4420_s22 = sphi %s4486_s22, %s7026_s22   ;;  %s4416_s21 = sphi %s4484_s21, %s7025_s21   ;;  %s4412_s20 = sphi %s4482_s20, %s7024_s20   ;;  %s4408_s19 = sphi %s4480_s19, %s7023_s19   ;;  %s4404_s18 = sphi %s4478_s18, %s7022_s18  }
   0x7   : > { %s35_s26 = sadd.s32 1, %s4420_s22  ;;  %s184_s27 = sadd.s32 1, %s4412_s20 }
   0x8   : > { %p37_p0 = scmp.ge.s32.totalorder %s35_s26, 2  ;;  %p194_p1 = scmp.ne.s32.totalorder %s4412_s20, %s4408_s19 }
   0x9   : > { %p195_p2 = scmp.eq.s32.totalorder %s3945_s24, 1  ;;  %p200_p3 = scmp.ne.s32.totalorder %s4408_s19, %s4404_s18 }
   0xa   : > { %s7028_s26 = smov (%p37_p0, %s35_s26), 0  ;;  %p201_p5 = scmp.eq.s32.totalorder %s3946_s25, 1 }
   0xb   : > { %p4518_p4 = por %p195_p2, %p194_p1  ;;  %s179_s29 = ssub.s32 %s4420_s22, %s7028_s26 }
   0xc   : > { %p3947_p6 = scmp.ge.s32.totalorder %s4424_s23, 1  ;;  %p182_p7 = scmp.eq.s32.totalorder %s179_s29, 0 }
   0xd   : > { %p4525_p8 = por %p201_p5, %p200_p3  ;;  %p208_p9 = scmp.lt.s32.totalorder %s4424_s23, 3 }
   0xe   : > { %s4531_s6 = scalar_select %p182_p7, %s4412_s20, %s184_s27  }
   0xf   : > { %p4533_p10 = pnand %p3947_p6, %p208_p9  ;;  %p4537_p11 = scmp.eq.s32.totalorder %s3945_s24, 0 }
  0x10   : > { %s233_s11 = sshll.u32 %s6703_s3, 4  ;;  %s4426_s12 = smov [#allocation4]   ;;  %s234_s11 = int_to_ptr.hbm [resolvable:$true] %s233_s11 }
  0x11   : > { %p4024_p12 = pneg %p4533_p10  ;;  %s235_s13 = sshll.u32 %s4426_s12, 4  ;;  %s236_s13 = int_to_ptr.vmem [resolvable:$true] %s235_s13 }
  0x12   : > { %s251_s16 = sshll.u32 %s6704_s4, 4  ;;  %s4427_s17 = smov 128   ;;  %s252_s16 = int_to_ptr.hbm [resolvable:$true] %s251_s16 }
  0x13   : > { %p4025_p13 = pnand %p4537_p11, %p4024_p12  ;;  %s4428_s24 = smov 8  }
  0x14   : > { %s4429_s25 = smov [#allocation7]   ;;  %291 = sbr.rel (%p4533_p10) target bundleno = 1067 (0x42b), region = 40 }
  0x15   : > { %4027 = dma.hbm_to_vmem [thread:$0]  (!%p4025_p13), %s234_s11, 2048, %s236_s13, [#allocation5], %s4427_s17, %s4427_s17, %s4428_s24  }
  0x16   : > { %s253_s27 = sshll.u32 %s4429_s25, 4  ;;  %s254_s27 = int_to_ptr.vmem [resolvable:$true] %s253_s27 }
  0x17   : > { %4030 = dma.hbm_to_vmem [thread:$0]  (!%p4025_p13), %s252_s16, 32768, %s254_s27, [#allocation8], %s4427_s17, %s4427_s17, %s4428_s24  }
  0x19   : > { %4391 = dma.done.wait (%p4537_p11), [#allocation5], 2048  }
  0x1a   : > { %4393 = vsyncadd (%p4537_p11), [#allocation5], 4294965248 }
  0x1b   : > { %4395 = dma.done.wait (%p4537_p11), [#allocation8], 32768  }
  0x1c   : > { %4397 = vsyncadd (%p4537_p11), [#allocation8], 4294934528  ;;  %s3956_s29 = sshll.u32 %s4416_s21, 4  ;;  %v4430_v0 = vmov 0   ;;  %v420_v13 = vld [vmem:[#allocation4 + $0x78] sm:$0xff]  ;;  %v419_v14 = vld [vmem:[#allocation4 + $0x70] sm:$0xff] }
  0x1d   : > { %4112 = vset.pattern.permute.xlu2 %v4430_v0  ;;  %4111 = vset.pattern.permute.xlu1 %v4430_v0  ;;  %p345_p0 = scmp.lt.s32.totalorder %s3956_s29, 31  ;;  %v418_v18 = vld [vmem:[#allocation4 + $0x68] sm:$0xff]  ;;  %v417_v19 = vld [vmem:[#allocation4 + $0x60] sm:$0xff]  ;;  %v416_v20 = vld [vmem:[#allocation4 + $0x58] sm:$0xff]  ;;  %v4431_v23 = vmov 1   ;;  %v4432_v51 = vmov 2  }
  0x1e   : > { %4110 = vset.pattern.permute.xlu0 %v4430_v0  ;;  %3982 = vmatpush.msra.mxu2 %v420_v13  ;;  %v415_v22 = vld [vmem:[#allocation4 + $0x50] sm:$0xff]  ;;  %v414_v24 = vld [vmem:[#allocation4 + $0x48] sm:$0xff]  ;;  %v413_v25 = vld [vmem:[#allocation4 + $0x40] sm:$0xff]  ;;  %vm3608_vm0 = vcmask 130048   ;;  %s339_s24 = sand.u32 1, %s4408_s19   ;;  %s4358_s16 = scalar_lea.hbm %s6705_s5, 256 }
  0x1f   : > { %s7030_s29 = smov (!%p345_p0, %s3956_s29), 31  ;;  %421 = vmatpush.msra.mxu0 %v420_v13  ;;  %v412_v26 = vld [vmem:[#allocation4 + $0x38] sm:$0xff]  ;;  %v411_v27 = vld [vmem:[#allocation4 + $0x30] sm:$0xff]  ;;  %v410_v28 = vld [vmem:[#allocation4 + $0x28] sm:$0xff]  ;;  %s3955_s25 = sshll.u32 %s339_s24, 7 }
  0x20   : > { %s3957_s7 = sshll.u32 %s7030_s29, 3  ;;  %3983 = vmatpush.msra.mxu2 %v419_v14  ;;  %v2327_v29 = vld [vmem:[#allocation7 + $0x78] sm:$0xff]  ;;  %v409_v30 = vld [vmem:[#allocation4 + $0x20] sm:$0xff]  ;;  %v2326_v31 = vld [vmem:[#allocation7 + $0x70] sm:$0xff]  ;;  %s6560_s27 = scalar_lea.vmem [#allocation9], %s3955_s25 }
  0x21   : > { %s4570_s11 = scalar_lea.vmem %s6700_s0, %s3957_s7  ;;  %422 = vmatpush.msra.mxu0 %v419_v14  ;;  %2568 = vmatpush.msra.mxu1 %v2327_v29  ;;  %v408_v32 = vld [vmem:[#allocation4 + $0x18] sm:$0xff]  ;;  %v407_v33 = vld [vmem:[#allocation4 + $0x10] sm:$0xff]  ;;  %v2325_v34 = vld [vmem:[#allocation7 + $0x68] sm:$0xff]  ;;  %s4649_s13 = scalar_lea.vmem %s6701_s1, %s3957_s7 }
  0x22   : > { %v4573_v1 = vld [vmem:[%s4570_s11 + $0x20] sm:$0xff]  ;;  %v4576_v2 = vld [vmem:[%s4570_s11 + $0x10] sm:$0xff]  ;;  %v4585_v4 = vld [vmem:[%s4570_s11 + $0x28] sm:$0xff]  ;;  %3984 = vmatpush.msra.mxu2 %v418_v18  ;;  %3998 = vmatpush.msra.mxu3 %v2327_v29  ;;  %s3981_s29 = sshll.u32 %s4416_s21, 7  ;;  %s3790_s21 = scalar_lea.sflag [#allocation6], %s339_s24 }
  0x23   : > { %v4579_v3 = vld [vmem:[%s4570_s11] sm:$0xff]  ;;  %524 = vperm.xlu2 %4112, %v4573_v1   ;;  %514 = vperm.xlu1 %4111, %v4576_v2   ;;  %v4588_v5 = vld [vmem:[%s4570_s11 + $0x18] sm:$0xff]  ;;  %v4591_v6 = vld [vmem:[%s4570_s11 + $0x8] sm:$0xff]  ;;  %s3802_s10 = scalar_lea.hbm %s6705_s5, %s3981_s29 }
  0x24   : > { %504 = vperm.xlu0 %4110, %v4579_v3   ;;  %v4597_v7 = vld [vmem:[%s4570_s11 + $0x40] sm:$0xff]  ;;  %v4600_v8 = vld [vmem:[%s4570_s11 + $0x38] sm:$0xff]  ;;  %v4603_v9 = vld [vmem:[%s4570_s11 + $0x30] sm:$0xff]  ;;  %423 = vmatpush.msra.mxu0 %v418_v18  ;;  %s3805_s8 = sshll.u32 %s3802_s10, 4  ;;  %s3806_s8 = int_to_ptr.hbm [resolvable:$true] %s3805_s8 }
  0x25   : > { %v4609_v10 = vld [vmem:[%s4570_s11 + $0x58] sm:$0xff]  ;;  %v4612_v11 = vld [vmem:[%s4570_s11 + $0x50] sm:$0xff]  ;;  %v4615_v12 = vld [vmem:[%s4570_s11 + $0x48] sm:$0xff]  ;;  %3985 = vmatpush.msra.mxu2 %v417_v19  ;;  %2569 = vmatpush.msra.mxu1 %v2326_v31  ;;  %s4352_s12 = sshra.s32 %s3806_s8, 4  ;;  %s4353_s12 = int_to_ptr.hbm [resolvable:$true] %s4352_s12 }
  0x26   : > { %v4621_v15 = vld [vmem:[%s4570_s11 + $0x70] sm:$0xff]  ;;  %v4624_v16 = vld [vmem:[%s4570_s11 + $0x68] sm:$0xff]  ;;  %v4627_v17 = vld [vmem:[%s4570_s11 + $0x60] sm:$0xff]  ;;  %424 = vmatpush.msra.mxu0 %v417_v19  ;;  %3999 = vmatpush.msra.mxu3 %v2326_v31  ;;  %p4359_p5 = scmp.lt.s32.totalorder %s4353_s12, %s6705_s5 }
  0x27   : > { %v4633_v21 = vld [vmem:[%s4570_s11 + $0x78] sm:$0xff]  ;;  %3986 = vmatpush.msra.mxu2 %v416_v20  ;;  %2570 = vmatpush.msra.mxu1 %v2325_v34  ;;  %v406_v35 = vld [vmem:[#allocation4 + $0x8] sm:$0xff]  ;;  %v2324_v36 = vld [vmem:[#allocation7 + $0x60] sm:$0xff] }
  0x28   : > { %425 = vmatpush.msra.mxu0 %v416_v20  ;;  %4000 = vmatpush.msra.mxu3 %v2325_v34  ;;  %v405_v37 = vld [vmem:[#allocation4] sm:$0xff]  ;;  %v2323_v38 = vld [vmem:[#allocation7 + $0x58] sm:$0xff]  ;;  %v2322_v40 = vld [vmem:[#allocation7 + $0x50] sm:$0xff] }
  0x29   : > { %3987 = vmatpush.msra.mxu2 %v415_v22  ;;  %2571 = vmatpush.msra.mxu1 %v2324_v36  ;;  %v4652_v39 = vld [vmem:[%s4649_s13 + $0x40] sm:$0xff]  ;;  %v2321_v41 = vld [vmem:[#allocation7 + $0x48] sm:$0xff]  ;;  %v2319_v43 = vld [vmem:[#allocation7 + $0x38] sm:$0xff] }
  0x2a   : > { %426 = vmatpush.msra.mxu0 %v415_v22  ;;  %4001 = vmatpush.msra.mxu3 %v2324_v36  ;;  %v2320_v42 = vld [vmem:[#allocation7 + $0x40] sm:$0xff]  ;;  %v4659_v44 = vld [vmem:[%s4649_s13 + $0x48] sm:$0xff]  ;;  %v2318_v45 = vld [vmem:[#allocation7 + $0x30] sm:$0xff] }
  0x2b   : > { %529 = vperm.xlu2 %4112, %v4585_v4   ;;  %519 = vperm.xlu1 %4111, %v4588_v5   ;;  %v2317_v46 = vld [vmem:[#allocation7 + $0x28] sm:$0xff]  ;;  %v2316_v47 = vld [vmem:[#allocation7 + $0x20] sm:$0xff]  ;;  %v4666_v48 = vld [vmem:[%s4649_s13 + $0x50] sm:$0xff] }
  0x2c   : > { %509 = vperm.xlu0 %4110, %v4591_v6   ;;  %3988 = vmatpush.msra.mxu2 %v414_v24  ;;  %v2315_v49 = vld [vmem:[#allocation7 + $0x18] sm:$0xff]  ;;  %v2314_v50 = vld [vmem:[#allocation7 + $0x10] sm:$0xff]  ;;  %v2313_v52 = vld [vmem:[#allocation7 + $0x8] sm:$0xff] }
  0x2d   : > { %427 = vmatpush.msra.mxu0 %v414_v24  ;;  %2572 = vmatpush.msra.mxu1 %v2323_v38  ;;  %v4673_v53 = vld [vmem:[%s4649_s13] sm:$0xff]  ;;  %v4677_v55 = vld [vmem:[%s4649_s13 + $0x58] sm:$0xff]  ;;  %v4686_v57 = vld [vmem:[%s4649_s13 + $0x8] sm:$0xff] }
  0x2e   : > { %3989 = vmatpush.msra.mxu2 %v413_v25  ;;  %4002 = vmatpush.msra.mxu3 %v2323_v38  ;;  %v2312_v54 = vld [vmem:[#allocation7] sm:$0xff]  ;;  %v2343_v59 = vld [vmem:[#allocation7 + $0xf8] sm:$0xff]  ;;  %v2342_v60 = vld [vmem:[#allocation7 + $0xf0] sm:$0xff] }
  0x2f   : > { %428 = vmatpush.msra.mxu0 %v413_v25  ;;  %2573 = vmatpush.msra.mxu1 %v2322_v40  ;;  %v4690_v58 = vld [vmem:[%s4649_s13 + $0x60] sm:$0xff]  ;;  %v2341_v62 = vld [vmem:[#allocation7 + $0xe8] sm:$0xff]  ;;  %v4699_v63 = vld [vmem:[%s4649_s13 + $0x10] sm:$0xff] }
  0x30   : > { %3990 = vmatpush.msra.mxu2 %v412_v26  ;;  %4003 = vmatpush.msra.mxu3 %v2322_v40  ;;  %v2340_v0 = vld [vmem:[#allocation7 + $0xe0] sm:$0xff]  ;;  %v4703_v13 = vld [vmem:[%s4649_s13 + $0x68] sm:$0xff]  ;;  %v2339_v14 = vld [vmem:[#allocation7 + $0xd8] sm:$0xff] }
  0x31   : > { %429 = vmatpush.msra.mxu0 %v412_v26  ;;  %2574 = vmatpush.msra.mxu1 %v2321_v41  ;;  %v2338_v18 = vld [vmem:[#allocation7 + $0xd0] sm:$0xff]  ;;  %v2337_v22 = vld [vmem:[#allocation7 + $0xc8] sm:$0xff]  ;;  %v2336_v24 = vld [vmem:[#allocation7 + $0xc0] sm:$0xff] }
  0x32   : > { %3991 = vmatpush.msra.mxu2 %v411_v27  ;;  %4004 = vmatpush.msra.mxu3 %v2321_v41  ;;  %v2335_v25 = vld [vmem:[#allocation7 + $0xb8] sm:$0xff]  ;;  %v4715_v26 = vld [vmem:[%s4649_s13 + $0x70] sm:$0xff]  ;;  %v2333_v31 = vld [vmem:[#allocation7 + $0xa8] sm:$0xff]  ;;  %v4433_v41 = vmov 3  }
  0x33   : > { %544 = vperm.xlu2 %4112, %v4597_v7   ;;  %539 = vperm.xlu1 %4111, %v4600_v8   ;;  %v2332_v34 = vld [vmem:[#allocation7 + $0xa0] sm:$0xff]  ;;  %v2331_v36 = vld [vmem:[#allocation7 + $0x98] sm:$0xff] }
  0x34   : > { %534 = vperm.xlu0 %4110, %v4603_v9   ;;  %3992 = vmatpush.msra.mxu2 %v410_v28 }
  0x35   : > { %430 = vmatpush.msra.mxu0 %v411_v27  ;;  %2575 = vmatpush.msra.mxu1 %v2320_v42  ;;  %v2334_v27 = vld [vmem:[#allocation7 + $0xb0] sm:$0xff] }
  0x36   : > { %3993 = vmatpush.msra.mxu2 %v409_v30  ;;  %4005 = vmatpush.msra.mxu3 %v2320_v42 }
  0x37   : > { %431 = vmatpush.msra.mxu0 %v410_v28  ;;  %2576 = vmatpush.msra.mxu1 %v2319_v43 }
  0x38   : > { %3994 = vmatpush.msra.mxu2 %v408_v32  ;;  %4006 = vmatpush.msra.mxu3 %v2319_v43  ;;  %v2329_v43 = vld [vmem:[#allocation7 + $0x88] sm:$0xff] }
  0x39   : > { %432 = vmatpush.msra.mxu0 %v409_v30  ;;  %2577 = vmatpush.msra.mxu1 %v2318_v45 }
  0x3a   : > { %3995 = vmatpush.msra.mxu2 %v407_v33  ;;  %4007 = vmatpush.msra.mxu3 %v2318_v45 }
  0x3b   : > { %559 = vperm.xlu2 %4112, %v4609_v10   ;;  %554 = vperm.xlu1 %4111, %v4612_v11  }
  0x3c   : > { %549 = vperm.xlu0 %4110, %v4615_v12   ;;  %3996 = vmatpush.msra.mxu2 %v406_v35 }
  0x3d   : > { %433 = vmatpush.msra.mxu0 %v408_v32  ;;  %2578 = vmatpush.msra.mxu1 %v2317_v46  ;;  %v4724_v32 = vld [vmem:[%s4649_s13 + $0x20] sm:$0xff] }
  0x3e   : > { %3997 = vmatpush.msra.mxu2 %v405_v37  ;;  %4008 = vmatpush.msra.mxu3 %v2317_v46  ;;  %v4739_v46 = vld [vmem:[%s4649_s13 + $0x28] sm:$0xff] }
  0x3f   : > { %461 = vmatmul.f32.vlgmr.msra.gmra.mxu2 %v4652_v39  ;;  %434 = vmatpush.msra.mxu0 %v407_v33 }
  0x40   : > { %2579 = vmatpush.msra.mxu1 %v2316_v47  ;;  %4009 = vmatpush.msra.mxu3 %v2316_v47  ;;  %v2328_v47 = vld [vmem:[#allocation7 + $0x80] sm:$0xff] }
  0x41   : > { %435 = vmatpush.msra.mxu0 %v406_v35  ;;  %2633 = vmatpush.msrb.mxu2 %v2343_v59  ;;  %v4729_v35 = vld [vmem:[%s4649_s13 + $0x78] sm:$0xff] }
  0x42   : > { %2580 = vmatpush.msra.mxu1 %v2315_v49  ;;  %4010 = vmatpush.msra.mxu3 %v2315_v49  ;;  %v2359_v59 = vld [vmem:[#allocation7 + $0x178] sm:$0xff] }
  0x43   : > { %574 = vperm.xlu2 %4112, %v4621_v15   ;;  %569 = vperm.xlu1 %4111, %v4624_v16  }
  0x44   : > { %564 = vperm.xlu0 %4110, %v4627_v17   ;;  %436 = vmatpush.msra.mxu0 %v405_v37  ;;  %v2330_v37 = vld [vmem:[#allocation7 + $0x90] sm:$0xff] }
  0x45   : > { %2581 = vmatpush.msra.mxu1 %v2314_v50  ;;  %437 = vmatmul.f32.vlgmr.msra.gmra.mxu0 %v4673_v53 }
  0x46   : > { %4011 = vmatpush.msra.mxu3 %v2314_v50  ;;  %2634 = vmatpush.msrb.mxu2 %v2342_v60  ;;  %v2358_v60 = vld [vmem:[#allocation7 + $0x170] sm:$0xff] }
  0x47   : > { %464 = vmatmul.f32.gmra.mxu2 %v4659_v44  ;;  %2582 = vmatpush.msra.mxu1 %v2313_v52 }
  0x48   : > { %4012 = vmatpush.msra.mxu3 %v2313_v52  ;;  %2635 = vmatpush.msrb.mxu2 %v2341_v62 }
  0x49   : > { %2583 = vmatpush.msra.mxu1 %v2312_v54 }
  0x4a   : > { %4013 = vmatpush.msra.mxu3 %v2312_v54  ;;  %2636 = vmatpush.msrb.mxu2 %v2340_v0  ;;  %v4753_v54 = vld [vmem:[%s4649_s13 + $0x30] sm:$0xff] }
  0x4b   : > { %4114 = vset.pattern.permute.xlu2 %v4431_v23  ;;  %4113 = vset.pattern.permute.xlu1 %v4431_v23 }
  0x4c   : > { %579 = vperm.xlu0 %4110, %v4633_v21   ;;  %619 = vperm.xlu2 %4114, %v4591_v6  }
  0x4d   : > { %615 = vperm.xlu1 %4113, %v4579_v3   ;;  %440 = vmatmul.f32.gmra.mxu0 %v4686_v57 }
  0x4e   : > { %2637 = vmatpush.msrb.mxu2 %v2339_v14  ;;  %2698 = vmatpush.msrb.mxu3 %v2359_v59 }
  0x4f   : > { %467 = vmatmul.f32.gmra.mxu2 %v4666_v48 }
  0x50   : > { %2638 = vmatpush.msrb.mxu2 %v2338_v18  ;;  %2699 = vmatpush.msrb.mxu3 %v2358_v60  ;;  %v2348_v60 = vld [vmem:[#allocation7 + $0x120] sm:$0xff] }
  0x52   : > { %2639 = vmatpush.msrb.mxu2 %v2337_v22  ;;  %v4764_v22 = vld [vmem:[%s4649_s13 + $0x38] sm:$0xff] }
  0x54   : > { %4115 = vset.pattern.permute.xlu0 %v4431_v23  ;;  %631 = vperm.xlu2 %4114, %v4573_v1   ;;  %v4711_v23 = vld [vmem:[%s4649_s13 + $0x18] sm:$0xff] }
  0x55   : > { %627 = vperm.xlu1 %4113, %v4588_v5   ;;  %623 = vperm.xlu0 %4115, %v4576_v2  }
  0x56   : > { %443 = vmatmul.f32.gmra.mxu0 %v4699_v63  ;;  %2640 = vmatpush.msrb.mxu2 %v2336_v24  ;;  %v2356_v24 = vld [vmem:[#allocation7 + $0x160] sm:$0xff] }
  0x57   : > { %470 = vmatmul.f32.gmra.mxu2 %v4677_v55 }
  0x58   : > { %2641 = vmatpush.msrb.mxu2 %v2335_v25  ;;  %v2355_v25 = vld [vmem:[#allocation7 + $0x158] sm:$0xff] }
  0x5a   : > { %2642 = vmatpush.msrb.mxu2 %v2334_v27  ;;  %v2354_v27 = vld [vmem:[#allocation7 + $0x150] sm:$0xff] }
  0x5c   : > { %639 = vperm.xlu2 %4114, %v4603_v9   ;;  %2643 = vmatpush.msrb.mxu2 %v2333_v31 }
  0x5d   : > { %635 = vperm.xlu1 %4113, %v4585_v4   ;;  %643 = vperm.xlu0 %4115, %v4600_v8  }
  0x5e   : > { %446 = vmatmul.f32.gmra.mxu0 %v4711_v23  ;;  %2644 = vmatpush.msrb.mxu2 %v2332_v34 }
  0x5f   : > { %473 = vmatmul.f32.gmra.mxu2 %v4690_v58 }
  0x60   : > { %2645 = vmatpush.msrb.mxu2 %v2331_v36  ;;  %v2353_v36 = vld [vmem:[#allocation7 + $0x148] sm:$0xff] }
  0x62   : > { %2646 = vmatpush.msrb.mxu2 %v2330_v37  ;;  %v2352_v37 = vld [vmem:[#allocation7 + $0x140] sm:$0xff] }
  0x64   : > { %651 = vperm.xlu2 %4114, %v4615_v12   ;;  %2647 = vmatpush.msrb.mxu2 %v2329_v43 }
  0x65   : > { %647 = vperm.xlu1 %4113, %v4597_v7   ;;  %655 = vperm.xlu0 %4115, %v4612_v11  }
  0x66   : > { %449 = vmatmul.f32.gmra.mxu0 %v4724_v32  ;;  %2648 = vmatpush.msrb.mxu2 %v2328_v47 }
  0x67   : > { %476 = vmatmul.f32.gmra.mxu2 %v4703_v13 }
  0x6c   : > { %663 = vperm.xlu2 %4114, %v4627_v17  }
  0x6d   : > { %659 = vperm.xlu1 %4113, %v4609_v10   ;;  %667 = vperm.xlu0 %4115, %v4624_v16  }
  0x6e   : > { %452 = vmatmul.f32.gmra.mxu0 %v4739_v46 }
  0x6f   : > { %479 = vmatmul.f32.gmra.mxu2 %v4715_v26 }
  0x74   : > { %675 = vperm.xlu2 %4114, %v4633_v21  }
  0x75   : > { %671 = vperm.xlu1 %4113, %v4621_v15   ;;  %4116 = vset.pattern.permute.xlu0 %v4432_v51 }
  0x76   : > { %711 = vperm.xlu0 %4116, %v4579_v3   ;;  %455 = vmatmul.f32.gmra.mxu0 %v4753_v54 }
  0x77   : > { %482 = vmatmul.f32.gmra.mxu2 %v4729_v35 }
  0x7c   : > { %4118 = vset.pattern.permute.xlu2 %v4432_v51 }
  0x7d   : > { %4117 = vset.pattern.permute.xlu1 %v4432_v51  ;;  %v4680_v56 = vpop.permute.xlu2 %524  ;;  %719 = vperm.xlu2 %4118, %v4576_v2  }
  0x7e   : > { %715 = vperm.xlu1 %4117, %v4591_v6   ;;  %731 = vperm.xlu0 %4116, %v4585_v4  }
  0x7f   : > { %458 = vmatmul.f32.gmra.mxu0 %v4764_v22 }
  0x85   : > { %v4693_v61 = vpop.permute.xlu2 %529  ;;  %727 = vperm.xlu2 %4118, %v4573_v1  }
  0x86   : > { %723 = vperm.xlu1 %4117, %v4588_v5   ;;  %743 = vperm.xlu0 %4116, %v4597_v7  }
  0x8d   : > { %v545_v19 = vpop.permute.xlu2 %544  ;;  %739 = vperm.xlu2 %4118, %v4600_v8  }
  0x8e   : > { %735 = vperm.xlu1 %4117, %v4603_v9   ;;  %755 = vperm.xlu0 %4116, %v4609_v10   ;;  %v590_v20 = vmul.f32 %v545_v19, %v4652_v39 }
  0x90   : > { %2608 = vmatmul.f32.vlgmr.msra.gmra.mxu3 %v590_v20  ;;  %v2357_v20 = vld [vmem:[#allocation7 + $0x168] sm:$0xff] }
  0x91   : > { %2700 = vmatpush.msrb.mxu3 %v2357_v20 }
  0x93   : > { %2701 = vmatpush.msrb.mxu3 %v2356_v24 }
  0x95   : > { %v4718_v28 = vpop.permute.xlu2 %559  ;;  %v515_v29 = vpop.permute.xlu1 %514  ;;  %751 = vperm.xlu2 %4118, %v4612_v11   ;;  %2702 = vmatpush.msrb.mxu3 %v2355_v25  ;;  %v4434_v25 = vmov 4  }
  0x96   : > { %747 = vperm.xlu1 %4117, %v4615_v12   ;;  %767 = vperm.xlu0 %4116, %v4621_v15   ;;  %v505_v30 = vpop.permute.xlu0 %504  ;;  %v584_v52 = vmul.f32 %v515_v29, %v4699_v63  ;;  %v593_v47 = vmul.f32 %v4718_v28, %v4677_v55 }
  0x97   : > { %v582_v33 = vmul.f32 %v505_v30, %v4673_v53  ;;  %2703 = vmatpush.msrb.mxu3 %v2354_v27 }
  0x99   : > { %2584 = vmatmul.f32.vlgmr.msra.gmra.mxu1 %v582_v33  ;;  %v586_v33 = vmul.f32 %v4680_v56, %v4724_v32  ;;  %2704 = vmatpush.msrb.mxu3 %v2353_v36  ;;  %v2372_v36 = vld [vmem:[#allocation7 + $0x1e0] sm:$0xff] }
  0x9b   : > { %2705 = vmatpush.msrb.mxu3 %v2352_v37  ;;  %v2371_v37 = vld [vmem:[#allocation7 + $0x1d8] sm:$0xff] }
  0x9d   : > { %v4732_v38 = vpop.permute.xlu2 %574  ;;  %v520_v40 = vpop.permute.xlu1 %519  ;;  %763 = vperm.xlu2 %4118, %v4624_v16  }
  0x9e   : > { %759 = vperm.xlu1 %4117, %v4627_v17   ;;  %4120 = vset.pattern.permute.xlu0 %v4433_v41  ;;  %v510_v42 = vpop.permute.xlu0 %509  ;;  %v585_v18 = vmul.f32 %v520_v40, %v4711_v23  ;;  %v2351_v40 = vld [vmem:[#allocation7 + $0x138] sm:$0xff] }
  0x9f   : > { %811 = vperm.xlu0 %4120, %v4591_v6   ;;  %v583_v45 = vmul.f32 %v510_v42, %v4686_v57  ;;  %2706 = vmatpush.msrb.mxu3 %v2351_v40  ;;  %v2370_v40 = vld [vmem:[#allocation7 + $0x1d0] sm:$0xff] }
  0xa1   : > { %2587 = vmatmul.f32.gmra.mxu1 %v583_v45  ;;  %v587_v45 = vmul.f32 %v4693_v61, %v4739_v46 }
  0xa5   : > { %v4742_v49 = vpop.permute.xlu1 %539  ;;  %4119 = vset.pattern.permute.xlu2 %v4433_v41 }
  0xa6   : > { %771 = vperm.xlu1 %4117, %v4633_v21   ;;  %v4745_v50 = vpop.permute.xlu0 %534  ;;  %v4747_v51 = vpop.permute.xlu2 %619  ;;  %807 = vperm.xlu2 %4119, %v4579_v3  }
  0xa7   : > { %831 = vperm.xlu0 %4120, %v4603_v9   ;;  %v588_v61 = vmul.f32 %v4745_v50, %v4753_v54  ;;  %v679_v50 = vmul.f32 %v4747_v51, %v4686_v57 }
  0xa9   : > { %2590 = vmatmul.f32.gmra.mxu1 %v584_v52  ;;  %v2349_v52 = vld [vmem:[#allocation7 + $0x128] sm:$0xff] }
  0xad   : > { %v555_v62 = vpop.permute.xlu1 %554 }
  0xae   : > { %4121 = vset.pattern.permute.xlu1 %v4433_v41  ;;  %v550_v0 = vpop.permute.xlu0 %549  ;;  %v4756_v14 = vpop.permute.xlu2 %631  ;;  %819 = vperm.xlu2 %4119, %v4588_v5   ;;  %v592_v34 = vmul.f32 %v555_v62, %v4666_v48  ;;  %v2350_v41 = vld [vmem:[#allocation7 + $0x130] sm:$0xff]  ;;  %v2347_v62 = vld [vmem:[#allocation7 + $0x118] sm:$0xff] }
  0xaf   : > { %815 = vperm.xlu1 %4121, %v4576_v2   ;;  %843 = vperm.xlu0 %4120, %v4615_v12   ;;  %v591_v19 = vmul.f32 %v550_v0, %v4659_v44  ;;  %v2375_v0 = vld [vmem:[#allocation7 + $0x1f8] sm:$0xff] }
  0xb0   : > { %2707 = vmatpush.msrb.mxu3 %v2350_v41  ;;  %2763 = vmatpush.msrb.mxu0 %v2375_v0  ;;  %v2366_v0 = vld [vmem:[#allocation7 + $0x1b0] sm:$0xff] }
  0xb1   : > { %2593 = vmatmul.f32.gmra.mxu1 %v585_v18  ;;  %2611 = vmatmul.f32.gmra.mxu3 %v591_v19  ;;  %v2346_v18 = vld [vmem:[#allocation7 + $0x110] sm:$0xff] }
  0xb2   : > { %2708 = vmatpush.msrb.mxu3 %v2349_v52  ;;  %v2374_v19 = vld [vmem:[#allocation7 + $0x1f0] sm:$0xff] }
  0xb3   : > { %2764 = vmatpush.msrb.mxu0 %v2374_v19 }
  0xb4   : > { %2709 = vmatpush.msrb.mxu3 %v2348_v60  ;;  %v2368_v60 = vld [vmem:[#allocation7 + $0x1c0] sm:$0xff] }
  0xb5   : > { %v4767_v29 = vpop.permute.xlu1 %569 }
  0xb6   : > { %v4769_v30 = vpop.permute.xlu2 %639  ;;  %827 = vperm.xlu2 %4119, %v4585_v4   ;;  %v565_v31 = vpop.permute.xlu0 %564  ;;  %2710 = vmatpush.msrb.mxu3 %v2347_v62  ;;  %v595_v52 = vmul.f32 %v4767_v29, %v4703_v13  ;;  %v2367_v62 = vld [vmem:[#allocation7 + $0x1b8] sm:$0xff]  ;;  %v596_v29 = vmul.f32 %v4732_v38, %v4715_v26  ;;  %v2362_v38 = vld [vmem:[#allocation7 + $0x190] sm:$0xff] }
  0xb7   : > { %823 = vperm.xlu1 %4121, %v4573_v1   ;;  %855 = vperm.xlu0 %4120, %v4627_v17   ;;  %v594_v28 = vmul.f32 %v565_v31, %v4690_v58  ;;  %v2373_v31 = vld [vmem:[#allocation7 + $0x1e8] sm:$0xff] }
  0xb8   : > { %2711 = vmatpush.msrb.mxu3 %v2346_v18  ;;  %2765 = vmatpush.msrb.mxu0 %v2373_v31 }
  0xb9   : > { %2596 = vmatmul.f32.gmra.mxu1 %v586_v33  ;;  %2614 = vmatmul.f32.gmra.mxu3 %v592_v34  ;;  %v2345_v33 = vld [vmem:[#allocation7 + $0x108] sm:$0xff]  ;;  %v2344_v34 = vld [vmem:[#allocation7 + $0x100] sm:$0xff] }
  0xba   : > { %2712 = vmatpush.msrb.mxu3 %v2345_v33  ;;  %2766 = vmatpush.msrb.mxu0 %v2372_v36  ;;  %v2361_v36 = vld [vmem:[#allocation7 + $0x188] sm:$0xff] }
  0xbc   : > { %2713 = vmatpush.msrb.mxu3 %v2344_v34  ;;  %2767 = vmatpush.msrb.mxu0 %v2371_v37  ;;  %v682_v34 = vmul.f32 %v4756_v14, %v4724_v32 }
  0xbe   : > { %v4777_v42 = vpop.permute.xlu2 %651  ;;  %839 = vperm.xlu2 %4119, %v4597_v7   ;;  %v4780_v43 = vpop.permute.xlu0 %579  ;;  %2768 = vmatpush.msrb.mxu0 %v2370_v40 }
  0xbf   : > { %835 = vperm.xlu1 %4121, %v4600_v8   ;;  %v616_v56 = vpop.permute.xlu1 %615  ;;  %867 = vperm.xlu0 %4120, %v4633_v21   ;;  %v597_v33 = vmul.f32 %v4780_v43, %v4729_v35  ;;  %v2360_v43 = vld [vmem:[#allocation7 + $0x180] sm:$0xff] }
  0xc0   : > { %v678_v59 = vmul.f32 %v616_v56, %v4673_v53 }
  0xc1   : > { %2599 = vmatmul.f32.gmra.mxu1 %v587_v45  ;;  %2617 = vmatmul.f32.gmra.mxu3 %v593_v47  ;;  %v589_v47 = vmul.f32 %v4742_v49, %v4764_v22 }
  0xc2   : > { %2649 = vmatmul.f32.vlgmr.msrb.gmra.mxu2 %v678_v59  ;;  %v2369_v59 = vld [vmem:[#allocation7 + $0x1c8] sm:$0xff] }
  0xc3   : > { %2769 = vmatpush.msrb.mxu0 %v2369_v59 }
  0xc5   : > { %2770 = vmatpush.msrb.mxu0 %v2368_v60 }
  0xc6   : > { %v4792_v20 = vpop.permute.xlu2 %663  ;;  %851 = vperm.xlu2 %4119, %v4609_v10  }
  0xc7   : > { %847 = vperm.xlu1 %4121, %v4612_v11   ;;  %v628_v24 = vpop.permute.xlu1 %627  ;;  %4124 = vset.pattern.permute.xlu0 %v4434_v25  ;;  %v624_v27 = vpop.permute.xlu0 %623 }
  0xc8   : > { %911 = vperm.xlu0 %4124, %v4576_v2   ;;  %v680_v56 = vmul.f32 %v624_v27, %v4699_v63  ;;  %2771 = vmatpush.msrb.mxu0 %v2367_v62  ;;  %v2363_v27 = vld [vmem:[#allocation7 + $0x198] sm:$0xff] }
  0xc9   : > { %2602 = vmatmul.f32.gmra.mxu1 %v588_v61  ;;  %2620 = vmatmul.f32.gmra.mxu3 %v594_v28  ;;  %v681_v61 = vmul.f32 %v628_v24, %v4711_v23  ;;  %v2365_v28 = vld [vmem:[#allocation7 + $0x1a8] sm:$0xff] }
  0xca   : > { %2652 = vmatmul.f32.gmra.mxu2 %v679_v50  ;;  %2772 = vmatpush.msrb.mxu0 %v2366_v0  ;;  %v684_v0 = vmul.f32 %v4769_v30, %v4753_v54 }
  0xcc   : > { %2773 = vmatpush.msrb.mxu0 %v2365_v28 }
  0xce   : > { %v4799_v41 = vpop.permute.xlu2 %675  ;;  %863 = vperm.xlu2 %4119, %v4621_v15  }
  0xcf   : > { %859 = vperm.xlu1 %4121, %v4624_v16   ;;  %v636_v51 = vpop.permute.xlu1 %635  ;;  %v4804_v45 = vpop.permute.xlu0 %643 }
  0xd0   : > { %931 = vperm.xlu0 %4124, %v4600_v8   ;;  %v683_v14 = vmul.f32 %v636_v51, %v4739_v46 }
  0xd1   : > { %2605 = vmatmul.f32.gmra.mxu1 %v589_v47  ;;  %2623 = vmatmul.f32.gmra.mxu3 %v595_v52 }
  0xd2   : > { %2655 = vmatmul.f32.gmra.mxu2 %v680_v56  ;;  %v4435_v56 = vmov 5  }
  0xd6   : > { %4123 = vset.pattern.permute.xlu2 %v4434_v25 }
  0xd7   : > { %4122 = vset.pattern.permute.xlu1 %v4434_v25  ;;  %v4811_v18 = vpop.permute.xlu1 %647  ;;  %v720_v49 = vpop.permute.xlu2 %719  ;;  %907 = vperm.xlu2 %4123, %v4591_v6   ;;  %v2364_v25 = vld [vmem:[#allocation7 + $0x1a0] sm:$0xff] }
  0xd8   : > { %903 = vperm.xlu1 %4122, %v4579_v3   ;;  %943 = vperm.xlu0 %4124, %v4612_v11   ;;  %v4818_v19 = vpop.permute.xlu0 %655  ;;  %v776_v30 = vmul.f32 %v720_v49, %v4699_v63 }
  0xd9   : > { %2626 = vmatmul.f32.gmra.mxu3 %v596_v29  ;;  %2774 = vmatpush.msrb.mxu0 %v2364_v25  ;;  %v686_v25 = vmul.f32 %v4811_v18, %v4652_v39  ;;  %v687_v18 = vmul.f32 %v4777_v42, %v4659_v44 }
  0xda   : > { %2658 = vmatmul.f32.gmra.mxu2 %v681_v61 }
  0xdb   : > { %2775 = vmatpush.msrb.mxu0 %v2363_v27 }
  0xdd   : > { %2776 = vmatpush.msrb.mxu0 %v2362_v38 }
  0xdf   : > { %v4823_v50 = vpop.permute.xlu1 %659  ;;  %v4825_v31 = vpop.permute.xlu2 %727  ;;  %919 = vperm.xlu2 %4123, %v4573_v1   ;;  %2777 = vmatpush.msrb.mxu0 %v2361_v36  ;;  %v2390_v36 = vld [vmem:[#allocation7 + $0x270] sm:$0xff] }
  0xe0   : > { %915 = vperm.xlu1 %4122, %v4588_v5   ;;  %955 = vperm.xlu0 %4124, %v4624_v16   ;;  %v4830_v24 = vpop.permute.xlu0 %667 }
  0xe1   : > { %2629 = vmatmul.f32.gmra.mxu3 %v597_v33  ;;  %2778 = vmatpush.msrb.mxu0 %v2360_v43 }
  0xe2   : > { %2661 = vmatmul.f32.gmra.mxu2 %v682_v34  ;;  %v2391_v34 = vld [vmem:[#allocation7 + $0x278] sm:$0xff] }
  0xe3   : > { %2828 = vmatpush.msrb.mxu1 %v2391_v34  ;;  %v2379_v34 = vld [vmem:[#allocation7 + $0x218] sm:$0xff] }
  0xe5   : > { %2829 = vmatpush.msrb.mxu1 %v2390_v36 }
  0xe7   : > { %v4834_v37 = vpop.permute.xlu1 %671  ;;  %v4836_v40 = vpop.permute.xlu2 %739  ;;  %927 = vperm.xlu2 %4123, %v4603_v9  }
  0xe8   : > { %923 = vperm.xlu1 %4122, %v4585_v4   ;;  %4125 = vset.pattern.permute.xlu0 %v4435_v56  ;;  %v712_v47 = vpop.permute.xlu0 %711 }
  0xe9   : > { %v774_v52 = vmul.f32 %v712_v47, %v4673_v53  ;;  %999 = vperm.xlu0 %4125, %v4579_v3   ;;  %v685_v3 = vmul.f32 %v4804_v45, %v4764_v22  ;;  %v2389_v47 = vld [vmem:[#allocation7 + $0x268] sm:$0xff] }
  0xea   : > { %2664 = vmatmul.f32.gmra.mxu2 %v683_v14  ;;  %2830 = vmatpush.msrb.mxu1 %v2389_v47  ;;  %v2388_v14 = vld [vmem:[#allocation7 + $0x260] sm:$0xff] }
  0xeb   : > { %2714 = vmatmul.f32.vlgmr.msrb.gmra.mxu3 %v774_v52  ;;  %v2386_v52 = vld [vmem:[#allocation7 + $0x250] sm:$0xff] }
  0xec   : > { %2831 = vmatpush.msrb.mxu1 %v2388_v14  ;;  %v2400_v14 = vld [vmem:[#allocation7 + $0x2c0] sm:$0xff] }
  0xef   : > { %v4843_v59 = vpop.permute.xlu2 %751  ;;  %939 = vperm.xlu2 %4123, %v4615_v12  }
  0xf0   : > { %935 = vperm.xlu1 %4122, %v4597_v7   ;;  %v716_v60 = vpop.permute.xlu1 %715  ;;  %v732_v62 = vpop.permute.xlu0 %731 }
  0xf1   : > { %v775_v29 = vmul.f32 %v716_v60, %v4686_v57  ;;  %1019 = vperm.xlu0 %4125, %v4585_v4   ;;  %v779_v43 = vmul.f32 %v732_v62, %v4739_v46  ;;  %v689_v62 = vmul.f32 %v4823_v50, %v4677_v55 }
  0xf2   : > { %2667 = vmatmul.f32.gmra.mxu2 %v684_v0 }
  0xf3   : > { %2717 = vmatmul.f32.gmra.mxu3 %v775_v29  ;;  %v2385_v29 = vld [vmem:[#allocation7 + $0x248] sm:$0xff] }
  0xf7   : > { %v4853_v51 = vpop.permute.xlu2 %763  ;;  %951 = vperm.xlu2 %4123, %v4627_v17  }
  0xf8   : > { %947 = vperm.xlu1 %4122, %v4609_v10   ;;  %v724_v61 = vpop.permute.xlu1 %723  ;;  %v4857_v28 = vpop.permute.xlu0 %743 }
  0xf9   : > { %1031 = vperm.xlu0 %4125, %v4597_v7   ;;  %v777_v38 = vmul.f32 %v724_v61, %v4711_v23  ;;  %v2407_v61 = vld [vmem:[#allocation7 + $0x2f8] sm:$0xff] }
  0xfa   : > { %2670 = vmatmul.f32.gmra.mxu2 %v685_v3  ;;  %v2384_v3 = vld [vmem:[#allocation7 + $0x240] sm:$0xff] }
  0xfb   : > { %2720 = vmatmul.f32.gmra.mxu3 %v776_v30  ;;  %v2382_v30 = vld [vmem:[#allocation7 + $0x230] sm:$0xff]  ;;  %2893 = vmatpush.msra.mxu2 %v2407_v61  ;;  %v2397_v61 = vld [vmem:[#allocation7 + $0x2a8] sm:$0xff] }
  0xff   : > { %963 = vperm.xlu2 %4123, %v4633_v21  }
 0x100   : > { %959 = vperm.xlu1 %4122, %v4621_v15   ;;  %v736_v4 = vpop.permute.xlu1 %735  ;;  %v808_v45 = vpop.permute.xlu2 %807 }
 0x101   : > { %v870_v27 = vmul.f32 %v808_v45, %v4673_v53  ;;  %v4866_v33 = vpop.permute.xlu0 %755  ;;  %1043 = vperm.xlu0 %4125, %v4609_v10   ;;  %v778_v10 = vmul.f32 %v4825_v31, %v4724_v32  ;;  %v4436_v31 = vmov 6   ;;  %v2406_v45 = vld [vmem:[#allocation7 + $0x2f0] sm:$0xff] }
 0x102   : > { %2673 = vmatmul.f32.gmra.mxu2 %v686_v25  ;;  %v781_v25 = vmul.f32 %v4836_v40, %v4764_v22  ;;  %v2403_v40 = vld [vmem:[#allocation7 + $0x2d8] sm:$0xff] }
 0x103   : > { %2723 = vmatmul.f32.gmra.mxu3 %v777_v38  ;;  %2779 = vmatmul.f32.vlgmr.msrb.gmra.mxu0 %v870_v27  ;;  %v2381_v38 = vld [vmem:[#allocation7 + $0x228] sm:$0xff] }
 0x104   : > { %2894 = vmatpush.msra.mxu2 %v2406_v45 }
 0x107   : > { %4127 = vset.pattern.permute.xlu2 %v4435_v56 }
 0x108   : > { %4126 = vset.pattern.permute.xlu1 %v4435_v56  ;;  %v4870_v7 = vpop.permute.xlu1 %747  ;;  %1007 = vperm.xlu2 %4127, %v4576_v2   ;;  %v4873_v21 = vpop.permute.xlu2 %819  ;;  %v688_v2 = vmul.f32 %v4818_v19, %v4666_v48 }
 0x109   : > { %1003 = vperm.xlu1 %4126, %v4591_v6   ;;  %v4878_v49 = vpop.permute.xlu0 %767  ;;  %1055 = vperm.xlu0 %4125, %v4621_v15  }
 0x10a   : > { %2676 = vmatmul.f32.gmra.mxu2 %v687_v18 }
 0x10b   : > { %2726 = vmatmul.f32.gmra.mxu3 %v778_v10  ;;  %v2404_v10 = vld [vmem:[#allocation7 + $0x2e0] sm:$0xff] }
 0x110   : > { %v4886_v42 = vpop.permute.xlu1 %759  ;;  %1015 = vperm.xlu2 %4127, %v4573_v1   ;;  %v4889_v56 = vpop.permute.xlu2 %827  ;;  %v2387_v1 = vld [vmem:[#allocation7 + $0x258] sm:$0xff] }
 0x111   : > { %1011 = vperm.xlu1 %4126, %v4588_v5   ;;  %v812_v15 = vpop.permute.xlu0 %811  ;;  %4129 = vset.pattern.permute.xlu0 %v4436_v31 }
 0x112   : > { %2679 = vmatmul.f32.gmra.mxu2 %v688_v2  ;;  %v871_v19 = vmul.f32 %v812_v15, %v4686_v57  ;;  %1099 = vperm.xlu0 %4129, %v4591_v6   ;;  %v780_v6 = vmul.f32 %v736_v4, %v4753_v54  ;;  %v690_v4 = vmul.f32 %v4792_v20, %v4690_v58  ;;  %v2380_v20 = vld [vmem:[#allocation7 + $0x220] sm:$0xff] }
 0x113   : > { %2729 = vmatmul.f32.gmra.mxu3 %v779_v43  ;;  %2832 = vmatpush.msrb.mxu1 %v2387_v1  ;;  %v782_v2 = vmul.f32 %v4857_v28, %v4652_v39  ;;  %v2378_v43 = vld [vmem:[#allocation7 + $0x210] sm:$0xff]  ;;  %v873_v39 = vmul.f32 %v4873_v21, %v4711_v23  ;;  %v2376_v28 = vld [vmem:[#allocation7 + $0x200] sm:$0xff]  ;;  %v692_v21 = vmul.f32 %v4834_v37, %v4715_v26  ;;  %v4936_v1 = vld [vmem:[%s4570_s11 + $0x78] sm:$0xff] }
 0x114   : > { %2782 = vmatmul.f32.gmra.mxu0 %v871_v19  ;;  %v2402_v19 = vld [vmem:[#allocation7 + $0x2d0] sm:$0xff] }
 0x115   : > { %2833 = vmatpush.msrb.mxu1 %v2386_v52 }
 0x117   : > { %2834 = vmatpush.msrb.mxu1 %v2385_v29  ;;  %v783_v29 = vmul.f32 %v4870_v7, %v4659_v44  ;;  %v693_v44 = vmul.f32 %v4799_v41, %v4729_v35  ;;  %v875_v41 = vmul.f32 %v4889_v56, %v4739_v46 }
 0x118   : > { %v4895_v60 = vpop.permute.xlu1 %771  ;;  %1027 = vperm.xlu2 %4127, %v4600_v8   ;;  %v4898_v5 = vpop.permute.xlu2 %839  ;;  %v2383_v8 = vld [vmem:[#allocation7 + $0x238] sm:$0xff] }
 0x119   : > { %1023 = vperm.xlu1 %4126, %v4603_v9   ;;  %v4904_v0 = vpop.permute.xlu0 %831  ;;  %2835 = vmatpush.msrb.mxu1 %v2384_v3 }
 0x11a   : > { %2682 = vmatmul.f32.gmra.mxu2 %v689_v62  ;;  %1119 = vperm.xlu0 %4129, %v4603_v9   ;;  %v4942_v62 = vld [vmem:[%s4570_s11] sm:$0xff]  ;;  %v876_v56 = vmul.f32 %v4904_v0, %v4753_v54  ;;  %v4999_v0 = vld [vmem:[%s4570_s11 + $0x38] sm:$0xff] }
 0x11b   : > { %2732 = vmatmul.f32.gmra.mxu3 %v780_v6  ;;  %2836 = vmatpush.msrb.mxu1 %v2383_v8  ;;  %v2398_v8 = vld [vmem:[#allocation7 + $0x2b0] sm:$0xff] }
 0x11d   : > { %2837 = vmatpush.msrb.mxu1 %v2382_v30  ;;  %v4953_v30 = vpop.f32.mrf.mxu2 }
 0x11e   : > { %6726 = vst [vmem:[#allocation13_spill] sm:$0xff] %v4953_v30 }
 0x11f   : > { %2838 = vmatpush.msrb.mxu1 %v2381_v38 }
 0x120   : > { %1039 = vperm.xlu2 %4127, %v4612_v11   ;;  %v4908_v50 = vpop.permute.xlu2 %851  ;;  %v2405_v11 = vld [vmem:[#allocation7 + $0x2e8] sm:$0xff] }
 0x121   : > { %1035 = vperm.xlu1 %4126, %v4615_v12   ;;  %v816_v9 = vpop.permute.xlu1 %815  ;;  %v4915_v27 = vpop.permute.xlu0 %843  ;;  %2895 = vmatpush.msra.mxu2 %v2405_v11 }
 0x122   : > { %2685 = vmatmul.f32.gmra.mxu2 %v690_v4  ;;  %v872_v18 = vmul.f32 %v816_v9, %v4699_v63  ;;  %1131 = vperm.xlu0 %4129, %v4615_v12   ;;  %v691_v12 = vmul.f32 %v4830_v24, %v4703_v13  ;;  %v2401_v24 = vld [vmem:[#allocation7 + $0x2c8] sm:$0xff]  ;;  %v4961_v4 = vld [vmem:[%s4570_s11 + $0x18] sm:$0xff]  ;;  %v784_v9 = vmul.f32 %v4843_v59, %v4666_v48  ;;  %v2394_v59 = vld [vmem:[#allocation7 + $0x290] sm:$0xff] }
 0x123   : > { %2735 = vmatmul.f32.gmra.mxu3 %v781_v25  ;;  %2839 = vmatpush.msrb.mxu1 %v2380_v20  ;;  %v4969_v25 = vld [vmem:[%s4570_s11 + $0x10] sm:$0xff]  ;;  %v2395_v48 = vld [vmem:[#allocation7 + $0x298] sm:$0xff]  ;;  %v785_v20 = vmul.f32 %v4866_v33, %v4677_v55  ;;  %v2392_v33 = vld [vmem:[#allocation7 + $0x280] sm:$0xff] }
 0x124   : > { %2785 = vmatmul.f32.gmra.mxu0 %v872_v18  ;;  %2896 = vmatpush.msra.mxu2 %v2404_v10  ;;  %v4437_v18 = vmov 7   ;;  %v2393_v10 = vld [vmem:[#allocation7 + $0x288] sm:$0xff] }
 0x125   : > { %2840 = vmatpush.msrb.mxu1 %v2379_v34  ;;  %v4978_v11 = vpop.f32.mrf.mxu2 }
 0x126   : > { %2897 = vmatpush.msra.mxu2 %v2403_v40  ;;  %6727 = vst [vmem:[#allocation14_spill] sm:$0xff] %v4978_v11  ;;  %v4987_v40 = vld [vmem:[%s4570_s11 + $0x28] sm:$0xff]  ;;  %v6708_v11 = vmov 9  }
 0x127   : > { %2841 = vmatpush.msrb.mxu1 %v2378_v43 }
 0x128   : > { %1051 = vperm.xlu2 %4127, %v4624_v16   ;;  %v4922_v36 = vpop.permute.xlu2 %863  ;;  %v2377_v16 = vld [vmem:[#allocation7 + $0x208] sm:$0xff]  ;;  %2898 = vmatpush.msra.mxu2 %v2402_v19 }
 0x129   : > { %1047 = vperm.xlu1 %4126, %v4627_v17   ;;  %v824_v15 = vpop.permute.xlu1 %823  ;;  %v4927_v47 = vpop.permute.xlu0 %855  ;;  %2842 = vmatpush.msrb.mxu1 %v2377_v16 }
 0x12a   : > { %2688 = vmatmul.f32.gmra.mxu2 %v691_v12  ;;  %1143 = vperm.xlu0 %4129, %v4627_v17   ;;  %v2399_v17 = vld [vmem:[#allocation7 + $0x2b8] sm:$0xff]  ;;  %v874_v3 = vmul.f32 %v824_v15, %v4724_v32  ;;  %v4993_v12 = vld [vmem:[%s4570_s11 + $0x20] sm:$0xff] }
 0x12b   : > { %2738 = vmatmul.f32.gmra.mxu3 %v782_v2  ;;  %2899 = vmatpush.msra.mxu2 %v2401_v24  ;;  %v5005_v15 = vld [vmem:[%s4570_s11 + $0x40] sm:$0xff] }
 0x12c   : > { %2788 = vmatmul.f32.gmra.mxu0 %v873_v39  ;;  %2843 = vmatpush.msrb.mxu1 %v2376_v28  ;;  %v786_v39 = vmul.f32 %v4886_v42, %v4690_v58  ;;  %v2422_v58 = vld [vmem:[#allocation7 + $0x370] sm:$0xff]  ;;  %v5023_v42 = vld [vmem:[%s4570_s11 + $0x58] sm:$0xff] }
 0x12d   : > { %2900 = vmatpush.msra.mxu2 %v2400_v14  ;;  %v5002_v43 = vpop.f32.mrf.mxu2 }
 0x12e   : > { %6728 = vst [vmem:[#allocation15_spill] sm:$0xff] %v5002_v43 }
 0x12f   : > { %2901 = vmatpush.msra.mxu2 %v2399_v17  ;;  %v2423_v17 = vld [vmem:[#allocation7 + $0x378] sm:$0xff] }
 0x130   : > { %4128 = vset.pattern.permute.xlu2 %v4436_v31  ;;  %2958 = vmatpush.msra.mxu3 %v2423_v17 }
 0x131   : > { %1059 = vperm.xlu1 %4126, %v4936_v1   ;;  %v4939_v52 = vpop.permute.xlu1 %835  ;;  %1095 = vperm.xlu2 %4128, %v4942_v62   ;;  %v4945_v6 = vpop.permute.xlu2 %907 }
 0x132   : > { %2691 = vmatmul.f32.gmra.mxu2 %v692_v21  ;;  %v4949_v37 = vpop.permute.xlu0 %867  ;;  %1155 = vperm.xlu0 %4129, %v4936_v1   ;;  %v877_v28 = vmul.f32 %v4939_v52, %v4764_v22  ;;  %v5019_v21 = vld [vmem:[%s4570_s11 + $0x50] sm:$0xff]  ;;  %v787_v52 = vmul.f32 %v4853_v51, %v4703_v13  ;;  %v2421_v13 = vld [vmem:[#allocation7 + $0x368] sm:$0xff] }
 0x133   : > { %2741 = vmatmul.f32.gmra.mxu3 %v783_v29  ;;  %2902 = vmatpush.msra.mxu2 %v2398_v8  ;;  %v5043_v51 = vld [vmem:[%s4570_s11 + $0x68] sm:$0xff] }
 0x134   : > { %2791 = vmatmul.f32.gmra.mxu0 %v874_v3  ;;  %2959 = vmatpush.msra.mxu3 %v2422_v58  ;;  %v5084_v58 = vld [vmem:[%s4649_s13 + $0x50] sm:$0xff] }
 0x135   : > { %2903 = vmatpush.msra.mxu2 %v2397_v61  ;;  %v5034_v61 = vld [vmem:[%s4649_s13 + $0x40] sm:$0xff] }
 0x136   : > { %2960 = vmatpush.msra.mxu3 %v2421_v13 }
 0x139   : > { %4130 = vset.pattern.permute.xlu1 %v4436_v31  ;;  %v4958_v7 = vpop.permute.xlu1 %847  ;;  %1107 = vperm.xlu2 %4128, %v4961_v4   ;;  %v4964_v45 = vpop.permute.xlu2 %919  ;;  %v2396_v31 = vld [vmem:[#allocation7 + $0x2a0] sm:$0xff] }
 0x13a   : > { %1103 = vperm.xlu1 %4130, %v4969_v25   ;;  %2694 = vmatmul.f32.gmra.mxu2 %v693_v44  ;;  %v4972_v38 = vpop.permute.xlu0 %911  ;;  %v878_v44 = vmul.f32 %v5034_v61, %v4898_v5  ;;  %v5047_v5 = vld [vmem:[%s4649_s13 + $0x48] sm:$0xff] }
 0x13b   : > { %2744 = vmatmul.f32.gmra.mxu3 %v784_v9  ;;  %4133 = vset.pattern.permute.xlu0 %v4437_v18  ;;  %v5038_v9 = vpop.f32.mrf.mxu2 }
 0x13c   : > { %2794 = vmatmul.f32.gmra.mxu0 %v875_v41  ;;  %1199 = vperm.xlu0 %4133, %v4969_v25   ;;  %6729 = vst [vmem:[#allocation16_spill] sm:$0xff] %v5038_v9  ;;  %v967_v41 = vmul.f32 %v4945_v6, %v4686_v57  ;;  %v788_v6 = vmul.f32 %v4878_v49, %v4715_v26  ;;  %v5069_v26 = vpop.f32.mrf.mxu3  ;;  %v2416_v49 = vld [vmem:[#allocation7 + $0x340] sm:$0xff] }
 0x13d   : > { %2904 = vmatpush.msra.mxu2 %v2396_v31  ;;  %v2420_v31 = vld [vmem:[#allocation7 + $0x360] sm:$0xff]  ;;  %6731 = vst [vmem:[#allocation18_spill] sm:$0xff] %v5069_v26 }
 0x13e   : > { %2961 = vmatpush.msra.mxu3 %v2420_v31  ;;  %v2412_v31 = vld [vmem:[#allocation7 + $0x320] sm:$0xff] }
 0x13f   : > { %2905 = vmatpush.msra.mxu2 %v2395_v48  ;;  %v2419_v48 = vld [vmem:[#allocation7 + $0x358] sm:$0xff]  ;;  %v5204_v9 = vld [vmem:[%s4649_s13] sm:$0xff] }
 0x140   : > { %2962 = vmatpush.msra.mxu3 %v2419_v48 }
 0x141   : > { %v4984_v34 = vpop.permute.xlu1 %859  ;;  %1115 = vperm.xlu2 %4128, %v4987_v40   ;;  %v4990_v2 = vpop.permute.xlu2 %927  ;;  %2906 = vmatpush.msra.mxu2 %v2394_v59  ;;  %v879_v59 = vmul.f32 %v5047_v5, %v4915_v27  ;;  %v2418_v27 = vld [vmem:[#allocation7 + $0x350] sm:$0xff] }
 0x142   : > { %1111 = vperm.xlu1 %4130, %v4993_v12   ;;  %v4996_v55 = vpop.permute.xlu0 %931  ;;  %2963 = vmatpush.msra.mxu3 %v2418_v27  ;;  %v2410_v27 = vld [vmem:[#allocation7 + $0x310] sm:$0xff] }
 0x143   : > { %2747 = vmatmul.f32.gmra.mxu3 %v785_v20  ;;  %2907 = vmatpush.msra.mxu2 %v2393_v10  ;;  %v5052_v20 = vld [vmem:[%s4570_s11 + $0x70] sm:$0xff] }
 0x144   : > { %2797 = vmatmul.f32.gmra.mxu0 %v876_v56  ;;  %1219 = vperm.xlu0 %4133, %v4999_v0   ;;  %v968_v56 = vmul.f32 %v4972_v38, %v4699_v63  ;;  %v2417_v63 = vld [vmem:[#allocation7 + $0x348] sm:$0xff] }
 0x145   : > { %2908 = vmatpush.msra.mxu2 %v2392_v33  ;;  %2964 = vmatpush.msra.mxu3 %v2417_v63 }
 0x147   : > { %2965 = vmatpush.msra.mxu3 %v2416_v49 }
 0x149   : > { %1127 = vperm.xlu2 %4128, %v5005_v15   ;;  %v5008_v19 = vpop.permute.xlu2 %939 }
 0x14a   : > { %1123 = vperm.xlu1 %4130, %v4999_v0   ;;  %v904_v16 = vpop.permute.xlu1 %903  ;;  %v5013_v24 = vpop.permute.xlu0 %943 }
 0x14b   : > { %v966_v14 = vmul.f32 %v904_v16, %v4673_v53  ;;  %2750 = vmatmul.f32.gmra.mxu3 %v786_v39  ;;  %v6706_v16 = vmov 8  }
 0x14c   : > { %2800 = vmatmul.f32.gmra.mxu0 %v877_v28  ;;  %1231 = vperm.xlu0 %4133, %v5019_v21   ;;  %v5066_v28 = vpop.f32.mrf.mxu2 }
 0x14d   : > { %2844 = vmatmul.f32.vlgmr.msrb.gmra.mxu1 %v966_v14  ;;  %6730 = vst [vmem:[#allocation17_spill] sm:$0xff] %v5066_v28  ;;  %v5078_v14 = vld [vmem:[%s4570_s11 + $0x8] sm:$0xff]  ;;  %v5200_v28 = vld [vmem:[%s4649_s13 + $0x18] sm:$0xff] }
 0x151   : > { %1139 = vperm.xlu2 %4128, %v5023_v42   ;;  %v5026_v29 = vpop.permute.xlu2 %951 }
 0x152   : > { %1135 = vperm.xlu1 %4130, %v5019_v21   ;;  %v916_v3 = vpop.permute.xlu1 %915  ;;  %v5031_v8 = vpop.permute.xlu0 %955 }
 0x153   : > { %2753 = vmatmul.f32.gmra.mxu3 %v787_v52  ;;  %v880_v52 = vmul.f32 %v5084_v58, %v4958_v7  ;;  %v2413_v7 = vld [vmem:[#allocation7 + $0x328] sm:$0xff] }
 0x154   : > { %2803 = vmatmul.f32.gmra.mxu0 %v878_v44  ;;  %1243 = vperm.xlu0 %4133, %v5043_v51   ;;  %v2414_v44 = vld [vmem:[#allocation7 + $0x330] sm:$0xff]  ;;  %v5095_v13 = vpop.f32.mrf.mxu2 }
 0x155   : > { %2847 = vmatmul.f32.gmra.mxu1 %v967_v41  ;;  %v5093_v41 = vpop.f32.mrf.mxu3  ;;  %6733 = vst [vmem:[#allocation20_spill] sm:$0xff] %v5095_v13  ;;  %v2439_v13 = vld [vmem:[#allocation7 + $0x3f8] sm:$0xff] }
 0x156   : > { %6732 = vst [vmem:[#allocation19_spill] sm:$0xff] %v5093_v41  ;;  %3023 = vmatpush.msra.mxu0 %v2439_v13  ;;  %v2455_v13 = vld [vmem:[#allocation7 + $0x478] sm:$0xff]  ;;  %v2430_v41 = vld [vmem:[#allocation7 + $0x3b0] sm:$0xff] }
 0x157   : > { %3088 = vmatpush.msra.mxu1 %v2455_v13 }
 0x159   : > { %1151 = vperm.xlu2 %4128, %v5052_v20   ;;  %v5055_v57 = vpop.permute.xlu2 %963 }
 0x15a   : > { %1147 = vperm.xlu1 %4130, %v5043_v51   ;;  %v5062_v10 = vpop.permute.xlu1 %923 }
 0x15b   : > { %2756 = vmatmul.f32.gmra.mxu3 %v788_v6  ;;  %v1000_v33 = vpop.permute.xlu0 %999  ;;  %v970_v6 = vmul.f32 %v4964_v45, %v4724_v32  ;;  %v5120_v45 = vld [vmem:[%s4570_s11 + $0x30] sm:$0xff] }
 0x15c   : > { %v1062_v39 = vmul.f32 %v1000_v33, %v4673_v53  ;;  %2806 = vmatmul.f32.gmra.mxu0 %v879_v59  ;;  %4134 = vset.pattern.permute.xlu0 %v6706_v16  ;;  %v789_v53 = vmul.f32 %v4895_v60, %v4729_v35  ;;  %v969_v35 = vmul.f32 %v916_v3, %v4711_v23  ;;  %v5103_v3 = vld [vmem:[%s4649_s13 + $0x58] sm:$0xff]  ;;  %v5115_v63 = vpop.f32.mrf.mxu2 }
 0x15d   : > { %2850 = vmatmul.f32.gmra.mxu1 %v968_v56  ;;  %1287 = vperm.xlu0 %4134, %v4942_v62   ;;  %v881_v59 = vmul.f32 %v5103_v3, %v4908_v50  ;;  %v2411_v33 = vld [vmem:[#allocation7 + $0x318] sm:$0xff]  ;;  %v5113_v50 = vpop.f32.mrf.mxu3  ;;  %6735 = vst [vmem:[#allocation22_spill] sm:$0xff] %v5115_v63 }
 0x15e   : > { %2909 = vmatmul.f32.vlgmr.msra.gmra.mxu2 %v1062_v39  ;;  %v2409_v39 = vld [vmem:[#allocation7 + $0x308] sm:$0xff]  ;;  %6734 = vst [vmem:[#allocation21_spill] sm:$0xff] %v5113_v50  ;;  %v2448_v50 = vld [vmem:[#allocation7 + $0x440] sm:$0xff] }
 0x161   : > { %4132 = vset.pattern.permute.xlu2 %v4437_v18 }
 0x162   : > { %4131 = vset.pattern.permute.xlu1 %v4437_v18  ;;  %v5075_v38 = vpop.permute.xlu1 %935  ;;  %1195 = vperm.xlu2 %4132, %v5078_v14   ;;  %v5081_v17 = vpop.permute.xlu2 %1007  ;;  %v2415_v18 = vld [vmem:[#allocation7 + $0x338] sm:$0xff] }
 0x163   : > { %1191 = vperm.xlu1 %4131, %v4942_v62   ;;  %2759 = vmatmul.f32.gmra.mxu3 %v789_v53  ;;  %v5090_v60 = vpop.permute.xlu0 %1019  ;;  %v2408_v53 = vld [vmem:[#allocation7 + $0x300] sm:$0xff] }
 0x164   : > { %2809 = vmatmul.f32.gmra.mxu0 %v880_v52  ;;  %2966 = vmatpush.msra.mxu3 %v2415_v18  ;;  %v5126_v52 = vld [vmem:[%s4649_s13 + $0x60] sm:$0xff]  ;;  %v971_v18 = vmul.f32 %v5062_v10, %v4739_v46 }
 0x165   : > { %2853 = vmatmul.f32.gmra.mxu1 %v969_v35  ;;  %1307 = vperm.xlu0 %4134, %v4987_v40   ;;  %v882_v35 = vmul.f32 %v5126_v52, %v4927_v47 }
 0x166   : > { %2967 = vmatpush.msra.mxu3 %v2414_v44 }
 0x168   : > { %2968 = vmatpush.msra.mxu3 %v2413_v7  ;;  %v5136_v7 = vpop.f32.mrf.mxu3 }
 0x169   : > { %6736 = vst [vmem:[#allocation23_spill] sm:$0xff] %v5136_v7 }
 0x16a   : > { %v5097_v48 = vpop.permute.xlu1 %947  ;;  %1207 = vperm.xlu2 %4132, %v4993_v12   ;;  %v5100_v23 = vpop.permute.xlu2 %1015  ;;  %2969 = vmatpush.msra.mxu3 %v2412_v31  ;;  %v5139_v31 = vld [vmem:[%s4570_s11 + $0x48] sm:$0xff] }
 0x16b   : > { %1203 = vperm.xlu1 %4131, %v4961_v4   ;;  %v5110_v56 = vpop.permute.xlu0 %1031 }
 0x16c   : > { %2812 = vmatmul.f32.gmra.mxu0 %v881_v59  ;;  %2970 = vmatpush.msra.mxu3 %v2411_v33  ;;  %v5145_v59 = vld [vmem:[%s4649_s13 + $0x68] sm:$0xff] }
 0x16d   : > { %2856 = vmatmul.f32.gmra.mxu1 %v970_v6  ;;  %1319 = vperm.xlu0 %4134, %v5005_v15   ;;  %v883_v46 = vmul.f32 %v5145_v59, %v4984_v34  ;;  %v972_v6 = vmul.f32 %v4990_v2, %v4753_v54  ;;  %v973_v34 = vmul.f32 %v4996_v55, %v4764_v22  ;;  %v5166_v54 = vld [vmem:[%s4570_s11 + $0x60] sm:$0xff] }
 0x16e   : > { %2971 = vmatpush.msra.mxu3 %v2410_v27  ;;  %v5154_v27 = vpop.f32.mrf.mxu2 }
 0x16f   : > { %6737 = vst [vmem:[#allocation24_spill] sm:$0xff] %v5154_v27 }
 0x170   : > { %2972 = vmatpush.msra.mxu3 %v2409_v39  ;;  %v5156_v39 = vpop.f32.mrf.mxu0 }
 0x171   : > { %6738 = vst [vmem:[#allocation25_spill] sm:$0xff] %v5156_v39 }
 0x172   : > { %v5117_v32 = vpop.permute.xlu1 %959  ;;  %1215 = vperm.xlu2 %4132, %v5120_v45   ;;  %v5123_v49 = vpop.permute.xlu2 %1027  ;;  %2973 = vmatpush.msra.mxu3 %v2408_v53  ;;  %v5159_v53 = vld [vmem:[%s4649_s13 + $0x8] sm:$0xff] }
 0x173   : > { %1211 = vperm.xlu1 %4131, %v4987_v40   ;;  %v5133_v44 = vpop.permute.xlu0 %1043 }
 0x174   : > { %2815 = vmatmul.f32.gmra.mxu0 %v882_v35 }
 0x175   : > { %2859 = vmatmul.f32.gmra.mxu1 %v971_v18  ;;  %1331 = vperm.xlu0 %4134, %v5023_v42   ;;  %v5172_v18 = vld [vmem:[%s4649_s13 + $0x70] sm:$0xff] }
 0x176   : > { %v5184_v16 = vpop.f32.mrf.mxu2 }
 0x177   : > { %6740 = vst [vmem:[#allocation27_spill] sm:$0xff] %v5184_v16  ;;  %v2437_v16 = vld [vmem:[#allocation7 + $0x3e8] sm:$0xff] }
 0x178   : > { %v5186_v27 = vpop.f32.mrf.mxu0 }
 0x179   : > { %6741 = vst [vmem:[#allocation28_spill] sm:$0xff] %v5186_v27  ;;  %v2438_v27 = vld [vmem:[#allocation7 + $0x3f0] sm:$0xff] }
 0x17a   : > { %1227 = vperm.xlu2 %4132, %v5139_v31   ;;  %v5142_v47 = vpop.permute.xlu2 %1039  ;;  %3024 = vmatpush.msra.mxu0 %v2438_v27  ;;  %v976_v27 = vmul.f32 %v5084_v58, %v5013_v24 }
 0x17b   : > { %1223 = vperm.xlu1 %4131, %v5005_v15   ;;  %v1004_v10 = vpop.permute.xlu1 %1003  ;;  %v5152_v33 = vpop.permute.xlu0 %1055 }
 0x17c   : > { %v1063_v35 = vmul.f32 %v5159_v53, %v1004_v10  ;;  %2818 = vmatmul.f32.gmra.mxu0 %v883_v46  ;;  %v884_v10 = vmul.f32 %v5172_v18, %v4922_v36  ;;  %v5190_v36 = vld [vmem:[%s4649_s13 + $0x78] sm:$0xff] }
 0x17d   : > { %2862 = vmatmul.f32.gmra.mxu1 %v972_v6  ;;  %1343 = vperm.xlu0 %4134, %v5052_v20   ;;  %v5177_v6 = vpop.f32.mrf.mxu3  ;;  %v885_v63 = vmul.f32 %v5190_v36, %v4949_v37 }
 0x17e   : > { %2912 = vmatmul.f32.gmra.mxu2 %v1063_v35  ;;  %6739 = vst [vmem:[#allocation26_spill] sm:$0xff] %v5177_v6  ;;  %v5180_v35 = vld [vmem:[%s4649_s13 + $0x10] sm:$0xff]  ;;  %3025 = vmatpush.msra.mxu0 %v2437_v16  ;;  %v5260_v16 = vpop.f32.mrf.mxu1 }
 0x17f   : > { %v1064_v22 = vmul.f32 %v5180_v35, %v5081_v17  ;;  %6750 = vst [vmem:[#allocation36_spill] sm:$0xff] %v5260_v16  ;;  %v2450_v16 = vld [vmem:[#allocation7 + $0x450] sm:$0xff] }
 0x180   : > { %v5215_v30 = vpop.f32.mrf.mxu0 }
 0x181   : > { %6744 = vst [vmem:[#allocation31_spill] sm:$0xff] %v5215_v30 }
 0x182   : > { %1239 = vperm.xlu2 %4132, %v5166_v54   ;;  %v5169_v2 = vpop.permute.xlu2 %1051 }
 0x183   : > { %1235 = vperm.xlu1 %4131, %v5023_v42   ;;  %v1012_v46 = vpop.permute.xlu1 %1011 }
 0x184   : > { %2821 = vmatmul.f32.gmra.mxu0 %v884_v10  ;;  %v1100_v55 = vpop.permute.xlu0 %1099 }
 0x185   : > { %2865 = vmatmul.f32.gmra.mxu1 %v973_v34  ;;  %v974_v34 = vmul.f32 %v5034_v61, %v5075_v38  ;;  %4138 = vset.pattern.permute.xlu0 %v6708_v11  ;;  %v5211_v38 = vpop.f32.mrf.mxu3 }
 0x186   : > { %2915 = vmatmul.f32.gmra.mxu2 %v1064_v22  ;;  %v1065_v22 = vmul.f32 %v5200_v28, %v1012_v46  ;;  %1387 = vperm.xlu0 %4138, %v5078_v14   ;;  %6742 = vst [vmem:[#allocation29_spill] sm:$0xff] %v5211_v38  ;;  %v5213_v46 = vpop.f32.mrf.mxu2  ;;  %v2451_v38 = vld [vmem:[#allocation7 + $0x458] sm:$0xff] }
 0x187   : > { %6743 = vst [vmem:[#allocation30_spill] sm:$0xff] %v5213_v46  ;;  %v5243_v46 = vld [vmem:[%s4649_s13 + $0x28] sm:$0xff] }
 0x188   : > { %v5240_v39 = vpop.f32.mrf.mxu0 }
 0x189   : > { %6748 = vst [vmem:[#allocation34_spill] sm:$0xff] %v5240_v39  ;;  %v2435_v39 = vld [vmem:[#allocation7 + $0x3d8] sm:$0xff] }
 0x18a   : > { %1251 = vperm.xlu2 %4132, %v4936_v1  }
 0x18b   : > { %1247 = vperm.xlu1 %4131, %v5052_v20   ;;  %v5195_v17 = vpop.permute.xlu1 %1023  ;;  %v1096_v10 = vpop.permute.xlu2 %1095 }
 0x18c   : > { %v1158_v43 = vmul.f32 %v5204_v9, %v1096_v10  ;;  %2824 = vmatmul.f32.gmra.mxu0 %v885_v63  ;;  %v5207_v37 = vpop.permute.xlu0 %1119  ;;  %v1159_v63 = vmul.f32 %v5159_v53, %v1100_v55  ;;  %v6745_v10 = vmov 8  }
 0x18d   : > { %2868 = vmatmul.f32.gmra.mxu1 %v974_v34  ;;  %v5236_v30 = vpop.f32.mrf.mxu3 }
 0x18e   : > { %2918 = vmatmul.f32.gmra.mxu2 %v1065_v22  ;;  %2974 = vmatmul.f32.vlgmr.msra.gmra.mxu3 %v1158_v43  ;;  %v975_v43 = vmul.f32 %v5047_v5, %v5008_v19  ;;  %v5228_v22 = vld [vmem:[%s4649_s13 + $0x20] sm:$0xff]  ;;  %6746 = vst [vmem:[#allocation32_spill] sm:$0xff] %v5236_v30  ;;  %v5238_v19 = vpop.f32.mrf.mxu2  ;;  %v2434_v30 = vld [vmem:[#allocation7 + $0x3d0] sm:$0xff] }
 0x18f   : > { %v1066_v55 = vmul.f32 %v5228_v22, %v5100_v23  ;;  %1407 = vperm.xlu0 %4138, %v5120_v45   ;;  %6747 = vst [vmem:[#allocation33_spill] sm:$0xff] %v5238_v19  ;;  %v1067_v23 = vmul.f32 %v5243_v46, %v5090_v60  ;;  %v2453_v60 = vld [vmem:[#allocation7 + $0x468] sm:$0xff]  ;;  %v2452_v19 = vld [vmem:[#allocation7 + $0x460] sm:$0xff] }
 0x190   : > { %v5279_v7 = vpop.f32.mrf.mxu0 }
 0x191   : > { %6752 = vst [vmem:[#allocation38_spill] sm:$0xff] %v5279_v7 }
 0x192   : > { %4136 = vset.pattern.permute.xlu2 %v6745_v10 }
 0x193   : > { %4135 = vset.pattern.permute.xlu1 %v6745_v10  ;;  %v5220_v34 = vpop.permute.xlu1 %1035  ;;  %1295 = vperm.xlu2 %4136, %v4969_v25   ;;  %v5223_v11 = vpop.permute.xlu2 %1107  ;;  %v2454_v10 = vld [vmem:[#allocation7 + $0x470] sm:$0xff] }
 0x194   : > { %1291 = vperm.xlu1 %4135, %v5078_v14   ;;  %v5233_v13 = vpop.permute.xlu0 %1131  ;;  %3089 = vmatpush.msra.mxu1 %v2454_v10  ;;  %v2436_v10 = vld [vmem:[#allocation7 + $0x3e0] sm:$0xff] }
 0x195   : > { %2871 = vmatmul.f32.gmra.mxu1 %v975_v43  ;;  %3026 = vmatpush.msra.mxu0 %v2436_v10  ;;  %v5258_v24 = vpop.f32.mrf.mxu3  ;;  %v2433_v10 = vld [vmem:[#allocation7 + $0x3c8] sm:$0xff] }
 0x196   : > { %2921 = vmatmul.f32.gmra.mxu2 %v1066_v55  ;;  %2977 = vmatmul.f32.gmra.mxu3 %v1159_v63  ;;  %6749 = vst [vmem:[#allocation35_spill] sm:$0xff] %v5258_v24  ;;  %v5277_v24 = vpop.f32.mrf.mxu2 }
 0x197   : > { %1419 = vperm.xlu0 %4138, %v5139_v31   ;;  %3090 = vmatpush.msra.mxu1 %v2453_v60  ;;  %v5270_v60 = vld [vmem:[%s4649_s13 + $0x30] sm:$0xff]  ;;  %6751 = vst [vmem:[#allocation37_spill] sm:$0xff] %v5277_v24 }
 0x198   : > { %3027 = vmatpush.msra.mxu0 %v2435_v39  ;;  %v1068_v39 = vmul.f32 %v5270_v60, %v5195_v17  ;;  %v2431_v17 = vld [vmem:[#allocation7 + $0x3b8] sm:$0xff]  ;;  %v5303_v26 = vpop.f32.mrf.mxu0 }
 0x199   : > { %3091 = vmatpush.msra.mxu1 %v2452_v19  ;;  %6756 = vst [vmem:[#allocation42_spill] sm:$0xff] %v5303_v26  ;;  %v6710_v26 = vmov 10  }
 0x19a   : > { %3028 = vmatpush.msra.mxu0 %v2434_v30  ;;  %v2432_v30 = vld [vmem:[#allocation7 + $0x3c0] sm:$0xff] }
 0x19b   : > { %v5249_v43 = vpop.permute.xlu1 %1047  ;;  %1303 = vperm.xlu2 %4136, %v4993_v12   ;;  %v5252_v63 = vpop.permute.xlu2 %1115  ;;  %3092 = vmatpush.msra.mxu1 %v2451_v38 }
 0x19c   : > { %1299 = vperm.xlu1 %4135, %v4961_v4   ;;  %v5255_v55 = vpop.permute.xlu0 %1143  ;;  %3029 = vmatpush.msra.mxu0 %v2433_v10  ;;  %v5289_v10 = vpop.f32.mrf.mxu1 }
 0x19d   : > { %2874 = vmatmul.f32.gmra.mxu1 %v976_v27  ;;  %v977_v27 = vmul.f32 %v5103_v3, %v5097_v48  ;;  %v2449_v48 = vld [vmem:[#allocation7 + $0x448] sm:$0xff]  ;;  %v5282_v38 = vpop.f32.mrf.mxu3  ;;  %6754 = vst [vmem:[#allocation40_spill] sm:$0xff] %v5289_v10  ;;  %v2428_v10 = vld [vmem:[#allocation7 + $0x3a0] sm:$0xff] }
 0x19e   : > { %2924 = vmatmul.f32.gmra.mxu2 %v1067_v23  ;;  %3093 = vmatpush.msra.mxu1 %v2450_v16  ;;  %6753 = vst [vmem:[#allocation39_spill] sm:$0xff] %v5282_v38  ;;  %v5292_v16 = vld [vmem:[%s4649_s13 + $0x38] sm:$0xff]  ;;  %v5301_v38 = vpop.f32.mrf.mxu2 }
 0x19f   : > { %1431 = vperm.xlu0 %4138, %v5166_v54   ;;  %3030 = vmatpush.msra.mxu0 %v2432_v30  ;;  %v1069_v30 = vmul.f32 %v5292_v16, %v5123_v49  ;;  %6755 = vst [vmem:[#allocation41_spill] sm:$0xff] %v5301_v38  ;;  %v2445_v49 = vld [vmem:[#allocation7 + $0x428] sm:$0xff] }
 0x1a0   : > { %3094 = vmatpush.msra.mxu1 %v2449_v48 }
 0x1a1   : > { %3031 = vmatpush.msra.mxu0 %v2431_v17  ;;  %v2429_v17 = vld [vmem:[#allocation7 + $0x3a8] sm:$0xff] }
 0x1a2   : > { %3095 = vmatpush.msra.mxu1 %v2448_v50 }
 0x1a3   : > { %v5262_v6 = vpop.permute.xlu1 %1059  ;;  %1315 = vperm.xlu2 %4136, %v4999_v0   ;;  %v5265_v23 = vpop.permute.xlu2 %1127  ;;  %3032 = vmatpush.msra.mxu0 %v2430_v41  ;;  %v2427_v41 = vld [vmem:[#allocation7 + $0x398] sm:$0xff] }
 0x1a4   : > { %1311 = vperm.xlu1 %4135, %v5120_v45   ;;  %v5275_v19 = vpop.permute.xlu0 %1155 }
 0x1a5   : > { %2877 = vmatmul.f32.gmra.mxu1 %v977_v27  ;;  %v978_v27 = vmul.f32 %v5126_v52, %v5026_v29  ;;  %v2446_v29 = vld [vmem:[#allocation7 + $0x430] sm:$0xff]  ;;  %3033 = vmatpush.msra.mxu0 %v2429_v17  ;;  %v5312_v17 = vpop.f32.mrf.mxu3 }
 0x1a6   : > { %2927 = vmatmul.f32.gmra.mxu2 %v1068_v39  ;;  %v2447_v39 = vld [vmem:[#allocation7 + $0x438] sm:$0xff]  ;;  %6757 = vst [vmem:[#allocation43_spill] sm:$0xff] %v5312_v17  ;;  %v2424_v17 = vld [vmem:[#allocation7 + $0x380] sm:$0xff] }
 0x1a7   : > { %1443 = vperm.xlu0 %4138, %v4936_v1   ;;  %3096 = vmatpush.msra.mxu1 %v2447_v39  ;;  %v979_v39 = vmul.f32 %v5145_v59, %v5031_v8 }
 0x1a8   : > { %3034 = vmatpush.msra.mxu0 %v2428_v10 }
 0x1a9   : > { %3097 = vmatpush.msra.mxu1 %v2446_v29  ;;  %v2425_v29 = vld [vmem:[#allocation7 + $0x388] sm:$0xff] }
 0x1aa   : > { %3035 = vmatpush.msra.mxu0 %v2427_v41  ;;  %v2442_v41 = vld [vmem:[#allocation7 + $0x410] sm:$0xff] }
 0x1ab   : > { %1327 = vperm.xlu2 %4136, %v5019_v21   ;;  %v5285_v7 = vpop.permute.xlu2 %1139  ;;  %3098 = vmatpush.msra.mxu1 %v2445_v49  ;;  %v5317_v49 = vpop.f32.mrf.mxu1 }
 0x1ac   : > { %1323 = vperm.xlu1 %4135, %v5139_v31   ;;  %v1104_v48 = vpop.permute.xlu1 %1103  ;;  %6758 = vst [vmem:[#allocation44_spill] sm:$0xff] %v5317_v49 }
 0x1ad   : > { %v1160_v24 = vmul.f32 %v5180_v35, %v1104_v48  ;;  %2880 = vmatmul.f32.gmra.mxu1 %v978_v27  ;;  %v2444_v48 = vld [vmem:[#allocation7 + $0x420] sm:$0xff]  ;;  %v1070_v27 = vmul.f32 %v5034_v61, %v5110_v56  ;;  %v1161_v56 = vmul.f32 %v5200_v28, %v5223_v11  ;;  %v5323_v11 = vpop.f32.mrf.mxu2 }
 0x1ae   : > { %2930 = vmatmul.f32.gmra.mxu2 %v1069_v30  ;;  %v5299_v50 = vpop.permute.xlu0 %1199  ;;  %v2426_v30 = vld [vmem:[#allocation7 + $0x390] sm:$0xff]  ;;  %3099 = vmatpush.msra.mxu1 %v2444_v48  ;;  %v2441_v48 = vld [vmem:[#allocation7 + $0x408] sm:$0xff]  ;;  %6759 = vst [vmem:[#allocation45_spill] sm:$0xff] %v5323_v11  ;;  %v1074_v11 = vmul.f32 %v5126_v52, %v5249_v43  ;;  %v2471_v43 = vld [vmem:[#allocation7 + $0x4f8] sm:$0xff] }
 0x1af   : > { %2980 = vmatmul.f32.gmra.mxu3 %v1160_v24  ;;  %v2443_v24 = vld [vmem:[#allocation7 + $0x418] sm:$0xff]  ;;  %3036 = vmatpush.msra.mxu0 %v2426_v30  ;;  %v5325_v30 = vpop.f32.mrf.mxu0 }
 0x1b0   : > { %3100 = vmatpush.msra.mxu1 %v2443_v24  ;;  %4142 = vset.pattern.permute.xlu0 %v6710_v26  ;;  %6760 = vst [vmem:[#allocation46_spill] sm:$0xff] %v5325_v30  ;;  %v2440_v24 = vld [vmem:[#allocation7 + $0x400] sm:$0xff] }
 0x1b1   : > { %3037 = vmatpush.msra.mxu0 %v2425_v29  ;;  %1487 = vperm.xlu0 %4142, %v4969_v25  }
 0x1b2   : > { %3101 = vmatpush.msra.mxu1 %v2442_v41  ;;  %3153 = vmatpush.msrb.mxu2 %v2471_v43 }
 0x1b3   : > { %1339 = vperm.xlu2 %4136, %v5043_v51   ;;  %v5310_v38 = vpop.permute.xlu2 %1151  ;;  %3038 = vmatpush.msra.mxu0 %v2424_v17  ;;  %v5337_v17 = vpop.f32.mrf.mxu3 }
 0x1b4   : > { %1335 = vperm.xlu1 %4135, %v5166_v54   ;;  %v1112_v10 = vpop.permute.xlu1 %1111  ;;  %3102 = vmatpush.msra.mxu1 %v2441_v48  ;;  %6762 = vst [vmem:[#allocation47_spill] sm:$0xff] %v5337_v17  ;;  %v981_v48 = vmul.f32 %v5190_v36, %v5055_v57 }
 0x1b5   : > { %2883 = vmatmul.f32.gmra.mxu1 %v979_v39  ;;  %v980_v39 = vmul.f32 %v5172_v18, %v5117_v32  ;;  %v1162_v41 = vmul.f32 %v5228_v22, %v1112_v10  ;;  %v5341_v32 = vpop.f32.mrf.mxu1  ;;  %v1072_v10 = vmul.f32 %v5084_v58, %v5142_v47 }
 0x1b6   : > { %2933 = vmatmul.f32.gmra.mxu2 %v1070_v27  ;;  %v5319_v8 = vpop.permute.xlu0 %1219  ;;  %v6761_v27 = vmov 9   ;;  %3103 = vmatpush.msra.mxu1 %v2440_v24  ;;  %6763 = vst [vmem:[#allocation48_spill] sm:$0xff] %v5341_v32 }
 0x1b7   : > { %2983 = vmatmul.f32.gmra.mxu3 %v1161_v56  ;;  %v1071_v56 = vmul.f32 %v5047_v5, %v5220_v34  ;;  %v5346_v34 = vpop.f32.mrf.mxu0 }
 0x1b8   : > { %6765 = vst [vmem:[#allocation50_spill] sm:$0xff] %v5346_v34  ;;  %v1073_v34 = vmul.f32 %v5103_v3, %v5133_v44 }
 0x1b9   : > { %1507 = vperm.xlu0 %4142, %v4999_v0  }
 0x1bb   : > { %4137 = vset.pattern.permute.xlu2 %v6761_v27  ;;  %v5363_v57 = vpop.f32.mrf.mxu3 }
 0x1bc   : > { %1347 = vperm.xlu1 %4135, %v4936_v1   ;;  %v1124_v29 = vpop.permute.xlu1 %1123  ;;  %1383 = vperm.xlu2 %4137, %v4942_v62   ;;  %v5334_v26 = vpop.permute.xlu2 %1195  ;;  %6766 = vst [vmem:[#allocation51_spill] sm:$0xff] %v5363_v57  ;;  %v2468_v57 = vld [vmem:[#allocation7 + $0x4e0] sm:$0xff] }
 0x1bd   : > { %2886 = vmatmul.f32.gmra.mxu1 %v980_v39  ;;  %v5344_v1 = vpop.f32.mrf.mxu2  ;;  %v5366_v47 = vpop.f32.mrf.mxu1 }
 0x1be   : > { %2936 = vmatmul.f32.gmra.mxu2 %v1071_v56  ;;  %v5339_v30 = vpop.permute.xlu0 %1231  ;;  %6764 = vst [vmem:[#allocation49_spill] sm:$0xff] %v5344_v1  ;;  %v1163_v56 = vmul.f32 %v5243_v46, %v5252_v63 }
 0x1bf   : > { %2986 = vmatmul.f32.gmra.mxu3 %v1162_v41  ;;  %6767 = vst [vmem:[#allocation52_spill] sm:$0xff] %v5366_v47 }
 0x1c1   : > { %1519 = vperm.xlu0 %4142, %v5019_v21  }
 0x1c3   : > { %v5384_v44 = vpop.f32.mrf.mxu3 }
 0x1c4   : > { %4139 = vset.pattern.permute.xlu1 %v6761_v27  ;;  %v5353_v39 = vpop.permute.xlu1 %1135  ;;  %1395 = vperm.xlu2 %4137, %v4961_v4   ;;  %v5356_v24 = vpop.permute.xlu2 %1207  ;;  %v1164_v27 = vmul.f32 %v5270_v60, %v5207_v37  ;;  %6770 = vst [vmem:[#allocation55_spill] sm:$0xff] %v5384_v44  ;;  %v2470_v44 = vld [vmem:[#allocation7 + $0x4f0] sm:$0xff] }
 0x1c5   : > { %1391 = vperm.xlu1 %4139, %v4969_v25   ;;  %2889 = vmatmul.f32.gmra.mxu1 %v981_v48  ;;  %v5377_v48 = vpop.f32.mrf.mxu0  ;;  %v5386_v1 = vpop.f32.mrf.mxu1 }
 0x1c6   : > { %2939 = vmatmul.f32.gmra.mxu2 %v1072_v10  ;;  %v5361_v41 = vpop.permute.xlu0 %1243  ;;  %6768 = vst [vmem:[#allocation53_spill] sm:$0xff] %v5377_v48  ;;  %v5380_v10 = vpop.f32.mrf.mxu2 }
 0x1c7   : > { %2989 = vmatmul.f32.gmra.mxu3 %v1163_v56  ;;  %6769 = vst [vmem:[#allocation54_spill] sm:$0xff] %v5380_v10  ;;  %3154 = vmatpush.msrb.mxu2 %v2470_v44  ;;  %v1076_v44 = vmul.f32 %v5172_v18, %v5152_v33 }
 0x1c8   : > { %6771 = vst [vmem:[#allocation56_spill] sm:$0xff] %v5386_v1  ;;  %v6712_v1 = vmov 11  }
 0x1c9   : > { %1531 = vperm.xlu0 %4142, %v5043_v51  }
 0x1cc   : > { %v5372_v63 = vpop.permute.xlu1 %1147  ;;  %1403 = vperm.xlu2 %4137, %v4987_v40   ;;  %v5375_v25 = vpop.permute.xlu2 %1215 }
 0x1cd   : > { %1399 = vperm.xlu1 %4139, %v4993_v12   ;;  %v5393_v10 = vpop.f32.mrf.mxu0  ;;  %v5414_v43 = vpop.f32.mrf.mxu1  ;;  %v1171_v17 = vmul.f32 %v5145_v59, %v5372_v63  ;;  %v2503_v63 = vld [vmem:[#allocation7 + $0x5f8] sm:$0xff] }
 0x1ce   : > { %2942 = vmatmul.f32.gmra.mxu2 %v1073_v34  ;;  %6772 = vst [vmem:[#allocation57_spill] sm:$0xff] %v5393_v10  ;;  %v1165_v34 = vmul.f32 %v5292_v16, %v1124_v29  ;;  %v1075_v29 = vmul.f32 %v5145_v59, %v5169_v2  ;;  %v1255_v2 = vmul.f32 %v5159_v53, %v5334_v26  ;;  %v2486_v59 = vld [vmem:[#allocation7 + $0x570] sm:$0xff] }
 0x1cf   : > { %2992 = vmatmul.f32.gmra.mxu3 %v1164_v27  ;;  %v1288_v56 = vpop.permute.xlu0 %1287  ;;  %6775 = vst [vmem:[#allocation60_spill] sm:$0xff] %v5414_v43  ;;  %v1256_v26 = vmul.f32 %v5180_v35, %v5299_v50  ;;  %v2464_v43 = vld [vmem:[#allocation7 + $0x4c0] sm:$0xff]  ;;  %3283 = vmatpush.msrb.mxu0 %v2503_v63  ;;  %v2518_v63 = vld [vmem:[#allocation7 + $0x670] sm:$0xff] }
 0x1d0   : > { %v1350_v37 = vmul.f32 %v5204_v9, %v1288_v56 }
 0x1d1   : > { %4143 = vset.pattern.permute.xlu0 %v6712_v1  ;;  %v2469_v1 = vld [vmem:[#allocation7 + $0x4e8] sm:$0xff] }
 0x1d2   : > { %3104 = vmatmul.f32.vlgmr.msra.gmra.mxu1 %v1350_v37  ;;  %v5398_v37 = vpop.f32.mrf.mxu2  ;;  %1575 = vperm.xlu0 %4143, %v4942_v62  }
 0x1d3   : > { %3155 = vmatpush.msrb.mxu2 %v2469_v1  ;;  %v1167_v1 = vmul.f32 %v5047_v5, %v5233_v13  ;;  %v2463_v13 = vld [vmem:[#allocation7 + $0x4b8] sm:$0xff] }
 0x1d4   : > { %1415 = vperm.xlu2 %4137, %v5005_v15   ;;  %v5391_v47 = vpop.permute.xlu2 %1227 }
 0x1d5   : > { %1411 = vperm.xlu1 %4139, %v4999_v0   ;;  %v1192_v27 = vpop.permute.xlu1 %1191  ;;  %v5404_v0 = vpop.f32.mrf.mxu3  ;;  %3156 = vmatpush.msrb.mxu2 %v2468_v57 }
 0x1d6   : > { %v1254_v56 = vmul.f32 %v5204_v9, %v1192_v27  ;;  %2945 = vmatmul.f32.gmra.mxu2 %v1074_v11  ;;  %6773 = vst [vmem:[#allocation58_spill] sm:$0xff] %v5404_v0  ;;  %v1166_v27 = vmul.f32 %v5034_v61, %v5265_v23  ;;  %v2467_v23 = vld [vmem:[#allocation7 + $0x4d8] sm:$0xff] }
 0x1d7   : > { %2995 = vmatmul.f32.gmra.mxu3 %v1165_v34  ;;  %v5409_v34 = vpop.f32.mrf.mxu0  ;;  %v5418_v0 = vpop.permute.xlu0 %1307  ;;  %3157 = vmatpush.msrb.mxu2 %v2467_v23 }
 0x1d8   : > { %3039 = vmatmul.f32.vlgmr.msra.gmra.mxu0 %v1254_v56  ;;  %6774 = vst [vmem:[#allocation59_spill] sm:$0xff] %v5409_v34  ;;  %v5440_v23 = vpop.f32.mrf.mxu1  ;;  %v2459_v34 = vld [vmem:[#allocation7 + $0x498] sm:$0xff] }
 0x1d9   : > { %6778 = vst [vmem:[#allocation63_spill] sm:$0xff] %v5440_v23 }
 0x1da   : > { %v5420_v32 = vpop.f32.mrf.mxu2 }
 0x1dc   : > { %1427 = vperm.xlu2 %4137, %v5023_v42   ;;  %v5407_v11 = vpop.permute.xlu2 %1239 }
 0x1dd   : > { %1423 = vperm.xlu1 %4139, %v5019_v21   ;;  %v1204_v56 = vpop.permute.xlu1 %1203  ;;  %v2466_v21 = vld [vmem:[#allocation7 + $0x4d0] sm:$0xff] }
 0x1de   : > { %2948 = vmatmul.f32.gmra.mxu2 %v1075_v29 }
 0x1df   : > { %2998 = vmatmul.f32.gmra.mxu3 %v1166_v27  ;;  %3158 = vmatpush.msrb.mxu2 %v2466_v21  ;;  %v5434_v27 = vpop.f32.mrf.mxu3  ;;  %v5436_v33 = vpop.f32.mrf.mxu0  ;;  %v1077_v21 = vmul.f32 %v5190_v36, %v5262_v6  ;;  %v2461_v6 = vld [vmem:[#allocation7 + $0x4a8] sm:$0xff] }
 0x1e0   : > { %3042 = vmatmul.f32.gmra.mxu0 %v1255_v2  ;;  %6776 = vst [vmem:[#allocation61_spill] sm:$0xff] %v5434_v27  ;;  %v2465_v2 = vld [vmem:[#allocation7 + $0x4c8] sm:$0xff]  ;;  %v5438_v50 = vpop.permute.xlu0 %1319  ;;  %v2462_v27 = vld [vmem:[#allocation7 + $0x4b0] sm:$0xff] }
 0x1e1   : > { %6777 = vst [vmem:[#allocation62_spill] sm:$0xff] %v5436_v33  ;;  %3159 = vmatpush.msrb.mxu2 %v2465_v2 }
 0x1e3   : > { %3160 = vmatpush.msrb.mxu2 %v2464_v43 }
 0x1e4   : > { %1439 = vperm.xlu2 %4137, %v5052_v20   ;;  %v5427_v29 = vpop.permute.xlu2 %1251 }
 0x1e5   : > { %1435 = vperm.xlu1 %4139, %v5043_v51   ;;  %v5432_v57 = vpop.permute.xlu1 %1211  ;;  %3161 = vmatpush.msrb.mxu2 %v2463_v13  ;;  %v5442_v51 = vpop.f32.mrf.mxu2 }
 0x1e6   : > { %2951 = vmatmul.f32.gmra.mxu2 %v1076_v44  ;;  %6779 = vst [vmem:[#allocation64_spill] sm:$0xff] %v5442_v51  ;;  %v6780_v44 = vmov 10  }
 0x1e7   : > { %3001 = vmatmul.f32.gmra.mxu3 %v1167_v1  ;;  %v1168_v1 = vmul.f32 %v5084_v58, %v5353_v39  ;;  %3162 = vmatpush.msrb.mxu2 %v2462_v27  ;;  %v5459_v23 = vpop.f32.mrf.mxu3  ;;  %v5461_v39 = vpop.f32.mrf.mxu1 }
 0x1e8   : > { %3045 = vmatmul.f32.gmra.mxu0 %v1256_v26  ;;  %v1257_v26 = vmul.f32 %v5200_v28, %v1204_v56  ;;  %v5457_v13 = vpop.permute.xlu0 %1331  ;;  %6781 = vst [vmem:[#allocation65_spill] sm:$0xff] %v5459_v23  ;;  %v5463_v33 = vpop.f32.mrf.mxu0  ;;  %v2458_v56 = vld [vmem:[#allocation7 + $0x490] sm:$0xff] }
 0x1e9   : > { %6782 = vst [vmem:[#allocation66_spill] sm:$0xff] %v5461_v39  ;;  %3163 = vmatpush.msrb.mxu2 %v2461_v6 }
 0x1ea   : > { %6783 = vst [vmem:[#allocation67_spill] sm:$0xff] %v5463_v33 }
 0x1ec   : > { %4141 = vset.pattern.permute.xlu2 %v6780_v44 }
 0x1ed   : > { %4140 = vset.pattern.permute.xlu1 %v6780_v44  ;;  %v5450_v2 = vpop.permute.xlu1 %1223  ;;  %1483 = vperm.xlu2 %4141, %v5078_v14   ;;  %v5453_v43 = vpop.permute.xlu2 %1295  ;;  %v2460_v44 = vld [vmem:[#allocation7 + $0x4a0] sm:$0xff] }
 0x1ee   : > { %1479 = vperm.xlu1 %4140, %v4942_v62   ;;  %2954 = vmatmul.f32.gmra.mxu2 %v1077_v21  ;;  %v1169_v62 = vmul.f32 %v5103_v3, %v5285_v7  ;;  %v5475_v6 = vpop.f32.mrf.mxu2  ;;  %v2456_v7 = vld [vmem:[#allocation7 + $0x480] sm:$0xff] }
 0x1ef   : > { %3004 = vmatmul.f32.gmra.mxu3 %v1168_v1  ;;  %3164 = vmatpush.msrb.mxu2 %v2460_v44  ;;  %v1258_v1 = vmul.f32 %v5228_v22, %v5356_v24  ;;  %6784 = vst [vmem:[#allocation68_spill] sm:$0xff] %v5475_v6  ;;  %v5479_v23 = vpop.f32.mrf.mxu3 }
 0x1f0   : > { %3048 = vmatmul.f32.gmra.mxu0 %v1257_v26  ;;  %v2457_v26 = vld [vmem:[#allocation7 + $0x488] sm:$0xff]  ;;  %v5477_v44 = vpop.permute.xlu0 %1343 }
 0x1f1   : > { %3165 = vmatpush.msrb.mxu2 %v2459_v34  ;;  %v5483_v34 = vpop.f32.mrf.mxu0 }
 0x1f2   : > { %6786 = vst [vmem:[#allocation70_spill] sm:$0xff] %v5483_v34 }
 0x1f3   : > { %3166 = vmatpush.msrb.mxu2 %v2458_v56 }
 0x1f5   : > { %v5467_v21 = vpop.permute.xlu1 %1235  ;;  %1495 = vperm.xlu2 %4141, %v4993_v12   ;;  %v5470_v27 = vpop.permute.xlu2 %1303  ;;  %3167 = vmatpush.msrb.mxu2 %v2457_v26 }
 0x1f6   : > { %1491 = vperm.xlu1 %4140, %v4961_v4   ;;  %v5481_v12 = vpop.f32.mrf.mxu1  ;;  %v1170_v4 = vmul.f32 %v5126_v52, %v5255_v55  ;;  %v5497_v26 = vpop.f32.mrf.mxu2 }
 0x1f7   : > { %3007 = vmatmul.f32.gmra.mxu3 %v1169_v62  ;;  %6785 = vst [vmem:[#allocation69_spill] sm:$0xff] %v5481_v12  ;;  %3168 = vmatpush.msrb.mxu2 %v2456_v7  ;;  %v1259_v62 = vmul.f32 %v5243_v46, %v5432_v57  ;;  %v2487_v7 = vld [vmem:[#allocation7 + $0x578] sm:$0xff]  ;;  %v5499_v34 = vpop.f32.mrf.mxu3  ;;  %v1260_v57 = vmul.f32 %v5270_v60, %v5375_v25 }
 0x1f8   : > { %3051 = vmatmul.f32.gmra.mxu0 %v1258_v1  ;;  %v5495_v1 = vpop.permute.xlu0 %1387  ;;  %6787 = vst [vmem:[#allocation71_spill] sm:$0xff] %v5497_v26  ;;  %3218 = vmatpush.msrb.mxu3 %v2487_v7  ;;  %v1172_v25 = vmul.f32 %v5172_v18, %v5310_v38  ;;  %v1352_v18 = vmul.f32 %v5180_v35, %v5453_v43 }
 0x1f9   : > { %6788 = vst [vmem:[#allocation72_spill] sm:$0xff] %v5499_v34  ;;  %v5503_v33 = vpop.f32.mrf.mxu0  ;;  %v1262_v43 = vmul.f32 %v5034_v61, %v5450_v2 }
 0x1fa   : > { %6790 = vst [vmem:[#allocation74_spill] sm:$0xff] %v5503_v33  ;;  %3219 = vmatpush.msrb.mxu3 %v2486_v59 }
 0x1fd   : > { %v5487_v24 = vpop.permute.xlu1 %1247  ;;  %1503 = vperm.xlu2 %4141, %v5120_v45   ;;  %v5490_v56 = vpop.permute.xlu2 %1315 }
 0x1fe   : > { %1499 = vperm.xlu1 %4140, %v4987_v40   ;;  %v5501_v55 = vpop.f32.mrf.mxu1  ;;  %v5516_v33 = vpop.f32.mrf.mxu2 }
 0x1ff   : > { %3010 = vmatmul.f32.gmra.mxu3 %v1170_v4  ;;  %6789 = vst [vmem:[#allocation73_spill] sm:$0xff] %v5501_v55  ;;  %v2519_v55 = vld [vmem:[#allocation7 + $0x678] sm:$0xff] }
 0x200   : > { %3054 = vmatmul.f32.gmra.mxu0 %v1259_v62  ;;  %6791 = vst [vmem:[#allocation75_spill] sm:$0xff] %v5516_v33  ;;  %3348 = vmatpush.msrb.mxu1 %v2519_v55  ;;  %v2485_v55 = vld [vmem:[#allocation7 + $0x568] sm:$0xff] }
 0x201   : > { %v5514_v7 = vpop.permute.xlu0 %1407  ;;  %v5530_v59 = vpop.f32.mrf.mxu0  ;;  %3220 = vmatpush.msrb.mxu3 %v2485_v55  ;;  %v5553_v55 = vld [vmem:[%s4570_s11 + $0x18] sm:$0xff] }
 0x202   : > { %6794 = vst [vmem:[#allocation78_spill] sm:$0xff] %v5530_v59  ;;  %v5541_v59 = vld [vmem:[%s4570_s11 + $0x78] sm:$0xff]  ;;  %3349 = vmatpush.msrb.mxu1 %v2518_v63  ;;  %v2501_v63 = vld [vmem:[#allocation7 + $0x5e8] sm:$0xff] }
 0x205   : > { %1515 = vperm.xlu2 %4141, %v5139_v31   ;;  %v5508_v40 = vpop.permute.xlu2 %1327 }
 0x206   : > { %1511 = vperm.xlu1 %4140, %v5005_v15   ;;  %v1292_v4 = vpop.permute.xlu1 %1291 }
 0x207   : > { %v1351_v62 = vmul.f32 %v5159_v53, %v1292_v4  ;;  %3013 = vmatmul.f32.gmra.mxu3 %v1171_v17  ;;  %v1261_v17 = vmul.f32 %v5292_v16, %v5319_v8  ;;  %v2502_v8 = vld [vmem:[#allocation7 + $0x5f0] sm:$0xff] }
 0x208   : > { %3057 = vmatmul.f32.gmra.mxu0 %v1260_v57  ;;  %v5525_v57 = vpop.f32.mrf.mxu1 }
 0x209   : > { %3107 = vmatmul.f32.gmra.mxu1 %v1351_v62  ;;  %6792 = vst [vmem:[#allocation76_spill] sm:$0xff] %v5525_v57  ;;  %v5528_v62 = vpop.f32.mrf.mxu3  ;;  %v5534_v38 = vpop.permute.xlu0 %1419  ;;  %3284 = vmatpush.msrb.mxu0 %v2502_v8 }
 0x20a   : > { %6793 = vst [vmem:[#allocation77_spill] sm:$0xff] %v5528_v62  ;;  %v5538_v57 = vpop.f32.mrf.mxu2  ;;  %v5562_v2 = vpop.f32.mrf.mxu0 }
 0x20b   : > { %6795 = vst [vmem:[#allocation79_spill] sm:$0xff] %v5538_v57  ;;  %3285 = vmatpush.msrb.mxu0 %v2501_v63  ;;  %v2479_v57 = vld [vmem:[#allocation7 + $0x538] sm:$0xff] }
 0x20d   : > { %1527 = vperm.xlu2 %4141, %v5166_v54   ;;  %v5521_v15 = vpop.permute.xlu2 %1339 }
 0x20e   : > { %1523 = vperm.xlu1 %4140, %v5023_v42   ;;  %v1300_v4 = vpop.permute.xlu1 %1299  ;;  %v1173_v42 = vmul.f32 %v5190_v36, %v5275_v19 }
 0x20f   : > { %3016 = vmatmul.f32.gmra.mxu3 %v1172_v25  ;;  %v1353_v36 = vmul.f32 %v5200_v28, %v1300_v4  ;;  %v2484_v4 = vld [vmem:[#allocation7 + $0x560] sm:$0xff] }
 0x210   : > { %3060 = vmatmul.f32.gmra.mxu0 %v1261_v17  ;;  %v5556_v8 = vpop.f32.mrf.mxu1  ;;  %3221 = vmatpush.msrb.mxu3 %v2484_v4  ;;  %v1354_v4 = vmul.f32 %v5228_v22, %v5470_v27 }
 0x211   : > { %3110 = vmatmul.f32.gmra.mxu1 %v1352_v18  ;;  %v6714_v18 = vmov 12   ;;  %6796 = vst [vmem:[#allocation80_spill] sm:$0xff] %v5556_v8  ;;  %v5558_v61 = vpop.permute.xlu0 %1431  ;;  %v2516_v8 = vld [vmem:[#allocation7 + $0x660] sm:$0xff] }
 0x212   : > { %4148 = vset.pattern.permute.xlu0 %v6714_v18  ;;  %v5594_v27 = vpop.f32.mrf.mxu0 }
 0x213   : > { %1683 = vperm.xlu0 %4148, %v5553_v55   ;;  %6802 = vst [vmem:[#allocation85_spill] sm:$0xff] %v5594_v27 }
 0x215   : > { %1539 = vperm.xlu2 %4141, %v5541_v59  }
 0x216   : > { %1535 = vperm.xlu1 %4140, %v5052_v20   ;;  %v5547_v25 = vpop.permute.xlu1 %1311  ;;  %v1384_v17 = vpop.permute.xlu2 %1383 }
 0x217   : > { %v1446_v19 = vmul.f32 %v5204_v9, %v1384_v17  ;;  %3019 = vmatmul.f32.gmra.mxu3 %v1173_v42  ;;  %v5560_v20 = vpop.f32.mrf.mxu3  ;;  %v2517_v9 = vld [vmem:[#allocation7 + $0x668] sm:$0xff]  ;;  %v6798_v42 = vmov 11   ;;  %v1263_v17 = vmul.f32 %v5047_v5, %v5391_v47 }
 0x218   : > { %3063 = vmatmul.f32.gmra.mxu0 %v1262_v43  ;;  %6797 = vst [vmem:[#allocation81_spill] sm:$0xff] %v5560_v20  ;;  %v1447_v43 = vmul.f32 %v5159_v53, %v5495_v1  ;;  %3350 = vmatpush.msrb.mxu1 %v2517_v9  ;;  %v5582_v53 = vpop.f32.mrf.mxu2  ;;  %v5585_v5 = vld [vmem:[%s4570_s11 + $0x28] sm:$0xff]  ;;  %v5590_v1 = vpop.f32.mrf.mxu1  ;;  %v2500_v9 = vld [vmem:[#allocation7 + $0x5e0] sm:$0xff]  ;;  %v5735_v20 = vld [vmem:[%s4570_s11 + $0x70] sm:$0xff] }
 0x219   : > { %3113 = vmatmul.f32.gmra.mxu1 %v1353_v36  ;;  %3169 = vmatmul.f32.vlgmr.msrb.gmra.mxu2 %v1446_v19  ;;  %v5573_v36 = vld [vmem:[%s4570_s11 + $0x10] sm:$0xff]  ;;  %6799 = vst [vmem:[#allocation82_spill] sm:$0xff] %v5582_v53  ;;  %v5588_v47 = vpop.permute.xlu0 %1443 }
 0x21a   : > { %6800 = vst [vmem:[#allocation83_spill] sm:$0xff] %v5590_v1  ;;  %3286 = vmatpush.msrb.mxu0 %v2500_v9  ;;  %3351 = vmatpush.msrb.mxu1 %v2516_v8  ;;  %v5603_v1 = vld [vmem:[%s4570_s11 + $0x20] sm:$0xff]  ;;  %v2515_v8 = vld [vmem:[#allocation7 + $0x658] sm:$0xff]  ;;  %v2498_v53 = vld [vmem:[#allocation7 + $0x5d0] sm:$0xff] }
 0x21b   : > { %4149 = vset.pattern.permute.xlu0 %v6798_v42 }
 0x21c   : > { %1595 = vperm.xlu0 %4149, %v5585_v5   ;;  %3352 = vmatpush.msrb.mxu1 %v2515_v8 }
 0x21d   : > { %4145 = vset.pattern.permute.xlu2 %v6798_v42 }
 0x21e   : > { %4144 = vset.pattern.permute.xlu1 %v6798_v42  ;;  %v5570_v18 = vpop.permute.xlu1 %1323  ;;  %1583 = vperm.xlu2 %4145, %v5573_v36   ;;  %v5576_v19 = vpop.permute.xlu2 %1395 }
 0x21f   : > { %1579 = vperm.xlu1 %4144, %v5078_v14   ;;  %v5592_v63 = vpop.f32.mrf.mxu3  ;;  %v2483_v14 = vld [vmem:[#allocation7 + $0x558] sm:$0xff] }
 0x220   : > { %3066 = vmatmul.f32.gmra.mxu0 %v1263_v17  ;;  %6801 = vst [vmem:[#allocation84_spill] sm:$0xff] %v5592_v63  ;;  %3222 = vmatpush.msrb.mxu3 %v2483_v14  ;;  %v1355_v17 = vmul.f32 %v5243_v46, %v5418_v0  ;;  %v5609_v12 = vpop.f32.mrf.mxu2  ;;  %v5612_v14 = vld [vmem:[%s4570_s11 + $0x40] sm:$0xff]  ;;  %v2499_v0 = vld [vmem:[#allocation7 + $0x5d8] sm:$0xff]  ;;  %v5617_v9 = vpop.f32.mrf.mxu1 }
 0x221   : > { %3116 = vmatmul.f32.gmra.mxu1 %v1354_v4  ;;  %3172 = vmatmul.f32.gmra.mxu2 %v1447_v43  ;;  %v1264_v4 = vmul.f32 %v5084_v58, %v5339_v30  ;;  %6803 = vst [vmem:[#allocation86_spill] sm:$0xff] %v5609_v12  ;;  %v2482_v30 = vld [vmem:[#allocation7 + $0x550] sm:$0xff]  ;;  %v5621_v12 = vpop.f32.mrf.mxu0  ;;  %v2495_v63 = vld [vmem:[#allocation7 + $0x5b8] sm:$0xff] }
 0x222   : > { %6804 = vst [vmem:[#allocation87_spill] sm:$0xff] %v5617_v9  ;;  %3223 = vmatpush.msrb.mxu3 %v2482_v30  ;;  %3287 = vmatpush.msrb.mxu0 %v2499_v0  ;;  %v1356_v30 = vmul.f32 %v5270_v60, %v5547_v25  ;;  %v2481_v0 = vld [vmem:[#allocation7 + $0x548] sm:$0xff]  ;;  %v1266_v25 = vmul.f32 %v5126_v52, %v5407_v11 }
 0x223   : > { %v5615_v58 = vpop.permute.xlu0 %1487  ;;  %6806 = vst [vmem:[#allocation89_spill] sm:$0xff] %v5621_v12  ;;  %v2497_v52 = vld [vmem:[#allocation7 + $0x5c8] sm:$0xff]  ;;  %v5760_v12 = vld [vmem:[%s4649_s13] sm:$0xff] }
 0x224   : > { %1607 = vperm.xlu0 %4149, %v5612_v14   ;;  %3224 = vmatpush.msrb.mxu3 %v2481_v0  ;;  %v2477_v11 = vld [vmem:[#allocation7 + $0x528] sm:$0xff] }
 0x225   : > { %3288 = vmatpush.msrb.mxu0 %v2498_v53  ;;  %v5657_v53 = vld [vmem:[%s4570_s11] sm:$0xff] }
 0x226   : > { %v5600_v43 = vpop.permute.xlu1 %1335  ;;  %1591 = vperm.xlu2 %4145, %v5603_v1   ;;  %v5606_v49 = vpop.permute.xlu2 %1403 }
 0x227   : > { %1587 = vperm.xlu1 %4144, %v5553_v55   ;;  %v5619_v10 = vpop.f32.mrf.mxu3  ;;  %3289 = vmatpush.msrb.mxu0 %v2497_v52 }
 0x228   : > { %3069 = vmatmul.f32.gmra.mxu0 %v1264_v4  ;;  %6805 = vst [vmem:[#allocation88_spill] sm:$0xff] %v5619_v10  ;;  %v1265_v4 = vmul.f32 %v5103_v3, %v5467_v21  ;;  %v5636_v9 = vpop.f32.mrf.mxu2  ;;  %v2480_v3 = vld [vmem:[#allocation7 + $0x540] sm:$0xff]  ;;  %v5639_v21 = vld [vmem:[%s4570_s11 + $0x50] sm:$0xff]  ;;  %v1357_v10 = vmul.f32 %v5292_v16, %v5490_v56 }
 0x229   : > { %3119 = vmatmul.f32.gmra.mxu1 %v1355_v17  ;;  %v5628_v17 = vld [vmem:[%s4570_s11 + $0x38] sm:$0xff]  ;;  %6807 = vst [vmem:[#allocation90_spill] sm:$0xff] %v5636_v9  ;;  %3225 = vmatpush.msrb.mxu3 %v2480_v3  ;;  %v2514_v9 = vld [vmem:[#allocation7 + $0x650] sm:$0xff]  ;;  %v2476_v56 = vld [vmem:[#allocation7 + $0x520] sm:$0xff] }
 0x22a   : > { %3353 = vmatpush.msrb.mxu1 %v2514_v9 }
 0x22b   : > { %v5642_v8 = vpop.permute.xlu0 %1507  ;;  %3226 = vmatpush.msrb.mxu3 %v2479_v57 }
 0x22c   : > { %1615 = vperm.xlu0 %4149, %v5639_v21  }
 0x22e   : > { %v5625_v39 = vpop.permute.xlu1 %1347  ;;  %1603 = vperm.xlu2 %4145, %v5628_v17   ;;  %v5631_v48 = vpop.permute.xlu2 %1415 }
 0x22f   : > { %1599 = vperm.xlu1 %4144, %v5120_v45   ;;  %v2478_v45 = vld [vmem:[#allocation7 + $0x530] sm:$0xff]  ;;  %v5651_v3 = vpop.f32.mrf.mxu3 }
 0x230   : > { %3072 = vmatmul.f32.gmra.mxu0 %v1265_v4  ;;  %v5646_v4 = vpop.f32.mrf.mxu1  ;;  %3227 = vmatpush.msrb.mxu3 %v2478_v45  ;;  %6810 = vst [vmem:[#allocation92_spill] sm:$0xff] %v5651_v3  ;;  %v2496_v45 = vld [vmem:[#allocation7 + $0x5c0] sm:$0xff]  ;;  %v2475_v3 = vld [vmem:[#allocation7 + $0x518] sm:$0xff] }
 0x231   : > { %3122 = vmatmul.f32.gmra.mxu1 %v1356_v30  ;;  %6808 = vst [vmem:[#allocation91_spill] sm:$0xff] %v5646_v4  ;;  %v6809_v30 = vmov 12   ;;  %v5660_v4 = vpop.f32.mrf.mxu0  ;;  %3290 = vmatpush.msrb.mxu0 %v2496_v45  ;;  %v2493_v45 = vld [vmem:[#allocation7 + $0x5a8] sm:$0xff] }
 0x232   : > { %6811 = vst [vmem:[#allocation93_spill] sm:$0xff] %v5660_v4  ;;  %3228 = vmatpush.msrb.mxu3 %v2477_v11  ;;  %v5687_v11 = vld [vmem:[%s4570_s11 + $0x8] sm:$0xff]  ;;  %v2492_v4 = vld [vmem:[#allocation7 + $0x5a0] sm:$0xff] }
 0x233   : > { %v5666_v26 = vpop.permute.xlu0 %1519  ;;  %3291 = vmatpush.msrb.mxu0 %v2495_v63  ;;  %v2513_v63 = vld [vmem:[#allocation7 + $0x648] sm:$0xff] }
 0x234   : > { %1623 = vperm.xlu0 %4149, %v5166_v54   ;;  %3229 = vmatpush.msrb.mxu3 %v2476_v56 }
 0x235   : > { %3354 = vmatpush.msrb.mxu1 %v2513_v63  ;;  %v5706_v63 = vld [vmem:[%s4649_s13 + $0x48] sm:$0xff] }
 0x236   : > { %4146 = vset.pattern.permute.xlu2 %v6809_v30  ;;  %v5649_v0 = vpop.permute.xlu2 %1427  ;;  %3230 = vmatpush.msrb.mxu3 %v2475_v3  ;;  %v2474_v3 = vld [vmem:[#allocation7 + $0x510] sm:$0xff]  ;;  %v1455_v51 = vmul.f32 %v5706_v63, %v5534_v38  ;;  %v2504_v38 = vld [vmem:[#allocation7 + $0x600] sm:$0xff] }
 0x237   : > { %1611 = vperm.xlu1 %4144, %v5139_v31   ;;  %v1392_v57 = vpop.permute.xlu1 %1391  ;;  %1671 = vperm.xlu2 %4146, %v5657_v53   ;;  %v5663_v31 = vpop.f32.mrf.mxu2 }
 0x238   : > { %v1448_v33 = vmul.f32 %v5180_v35, %v1392_v57  ;;  %3075 = vmatmul.f32.gmra.mxu0 %v1266_v25  ;;  %6812 = vst [vmem:[#allocation94_spill] sm:$0xff] %v5663_v31  ;;  %v5669_v35 = vld [vmem:[%s4649_s13 + $0x68] sm:$0xff]  ;;  %v5676_v25 = vld [vmem:[%s4649_s13 + $0x40] sm:$0xff]  ;;  %v5682_v52 = vpop.f32.mrf.mxu1  ;;  %3231 = vmatpush.msrb.mxu3 %v2474_v3 }
 0x239   : > { %3125 = vmatmul.f32.gmra.mxu1 %v1357_v10  ;;  %v1267_v10 = vmul.f32 %v5669_v35, %v5361_v41  ;;  %v1358_v57 = vmul.f32 %v5676_v25, %v5438_v50  ;;  %v1449_v41 = vmul.f32 %v5200_v28, %v5576_v19  ;;  %v5690_v50 = vpop.f32.mrf.mxu3  ;;  %v5692_v56 = vpop.f32.mrf.mxu0  ;;  %v2473_v31 = vld [vmem:[#allocation7 + $0x508] sm:$0xff]  ;;  %v2472_v19 = vld [vmem:[#allocation7 + $0x500] sm:$0xff] }
 0x23a   : > { %3175 = vmatmul.f32.gmra.mxu2 %v1448_v33  ;;  %v2494_v33 = vld [vmem:[#allocation7 + $0x5b0] sm:$0xff]  ;;  %6813 = vst [vmem:[#allocation95_spill] sm:$0xff] %v5690_v50  ;;  %3232 = vmatpush.msrb.mxu3 %v2473_v31  ;;  %v2491_v31 = vld [vmem:[#allocation7 + $0x598] sm:$0xff] }
 0x23b   : > { %3292 = vmatpush.msrb.mxu0 %v2494_v33  ;;  %6814 = vst [vmem:[#allocation96_spill] sm:$0xff] %v5692_v56  ;;  %v5720_v50 = vld [vmem:[%s4570_s11 + $0x58] sm:$0xff] }
 0x23c   : > { %4153 = vset.pattern.permute.xlu0 %v6809_v30  ;;  %3233 = vmatpush.msrb.mxu3 %v2472_v19 }
 0x23d   : > { %3293 = vmatpush.msrb.mxu0 %v2493_v45  ;;  %1711 = vperm.xlu0 %4153, %v5639_v21  }
 0x23e   : > { %v5673_v9 = vpop.permute.xlu2 %1439 }
 0x23f   : > { %4147 = vset.pattern.permute.xlu1 %v6809_v30  ;;  %v1400_v54 = vpop.permute.xlu1 %1399  ;;  %1679 = vperm.xlu2 %4146, %v5573_v36   ;;  %v5694_v28 = vpop.f32.mrf.mxu2 }
 0x240   : > { %1675 = vperm.xlu1 %4147, %v5687_v11   ;;  %3078 = vmatmul.f32.gmra.mxu0 %v1267_v10  ;;  %6815 = vst [vmem:[#allocation97_spill] sm:$0xff] %v5694_v28  ;;  %v5698_v10 = vld [vmem:[%s4649_s13 + $0x70] sm:$0xff]  ;;  %v1450_v45 = vmul.f32 %v5228_v22, %v1400_v54  ;;  %v5723_v56 = vpop.f32.mrf.mxu1  ;;  %v2489_v22 = vld [vmem:[#allocation7 + $0x588] sm:$0xff]  ;;  %v2511_v54 = vld [vmem:[#allocation7 + $0x638] sm:$0xff] }
 0x241   : > { %3128 = vmatmul.f32.gmra.mxu1 %v1358_v57  ;;  %3294 = vmatpush.msrb.mxu0 %v2492_v4  ;;  %v1268_v33 = vmul.f32 %v5698_v10, %v5487_v24  ;;  %v5702_v57 = vpop.permute.xlu0 %1531  ;;  %v2512_v24 = vld [vmem:[#allocation7 + $0x640] sm:$0xff]  ;;  %v5717_v28 = vpop.f32.mrf.mxu3  ;;  %6817 = vst [vmem:[#allocation99_spill] sm:$0xff] %v5723_v56 }
 0x242   : > { %3178 = vmatmul.f32.gmra.mxu2 %v1449_v41  ;;  %v1359_v41 = vmul.f32 %v5706_v63, %v5570_v18  ;;  %6816 = vst [vmem:[#allocation98_spill] sm:$0xff] %v5717_v28  ;;  %v2490_v18 = vld [vmem:[#allocation7 + $0x590] sm:$0xff]  ;;  %3355 = vmatpush.msrb.mxu1 %v2512_v24  ;;  %v5725_v19 = vpop.f32.mrf.mxu0 }
 0x243   : > { %3295 = vmatpush.msrb.mxu0 %v2491_v31  ;;  %6818 = vst [vmem:[#allocation100_spill] sm:$0xff] %v5725_v19  ;;  %v5739_v31 = vld [vmem:[%s4649_s13 + $0x50] sm:$0xff] }
 0x244   : > { %3356 = vmatpush.msrb.mxu1 %v2511_v54  ;;  %v2488_v54 = vld [vmem:[#allocation7 + $0x580] sm:$0xff]  ;;  %v2510_v19 = vld [vmem:[#allocation7 + $0x630] sm:$0xff] }
 0x245   : > { %3296 = vmatpush.msrb.mxu0 %v2490_v18  ;;  %1727 = vperm.xlu0 %4153, %v5735_v20   ;;  %v5746_v18 = vld [vmem:[%s4570_s11 + $0x30] sm:$0xff] }
 0x246   : > { %3357 = vmatpush.msrb.mxu1 %v2510_v19 }
 0x247   : > { %v5710_v3 = vpop.permute.xlu1 %1411  ;;  %1687 = vperm.xlu2 %4146, %v5603_v1   ;;  %v5713_v4 = vpop.permute.xlu2 %1483  ;;  %3297 = vmatpush.msrb.mxu0 %v2489_v22  ;;  %v1451_v22 = vmul.f32 %v5243_v46, %v5606_v49 }
 0x248   : > { %4150 = vset.pattern.permute.xlu1 %v6798_v42  ;;  %3081 = vmatmul.f32.gmra.mxu0 %v1268_v33  ;;  %v5728_v33 = vld [vmem:[%s4649_s13 + $0x78] sm:$0xff]  ;;  %v5757_v6 = vpop.f32.mrf.mxu1 }
 0x249   : > { %1619 = vperm.xlu1 %4150, %v5720_v50   ;;  %3131 = vmatmul.f32.gmra.mxu1 %v1359_v41  ;;  %v1269_v28 = vmul.f32 %v5728_v33, %v5427_v29  ;;  %v5732_v41 = vpop.f32.mrf.mxu2  ;;  %6821 = vst [vmem:[#allocation103_spill] sm:$0xff] %v5757_v6  ;;  %v6718_v6 = vmov 13  }
 0x24a   : > { %3181 = vmatmul.f32.gmra.mxu2 %v1450_v45  ;;  %6819 = vst [vmem:[#allocation101_spill] sm:$0xff] %v5732_v41  ;;  %v1360_v45 = vmul.f32 %v5739_v31, %v5508_v40  ;;  %v1576_v41 = vpop.permute.xlu0 %1575  ;;  %v5755_v40 = vpop.f32.mrf.mxu3  ;;  %3298 = vmatpush.msrb.mxu0 %v2488_v54 }
 0x24b   : > { %6820 = vst [vmem:[#allocation102_spill] sm:$0xff] %v5755_v40  ;;  %v1638_v46 = vmul.f32 %v5760_v12, %v1576_v41  ;;  %v5763_v49 = vpop.f32.mrf.mxu0 }
 0x24c   : > { %6822 = vst [vmem:[#allocation104_spill] sm:$0xff] %v5763_v49 }
 0x24f   : > { %v5743_v24 = vpop.permute.xlu1 %1423  ;;  %1695 = vperm.xlu2 %4146, %v5746_v18   ;;  %v5749_v29 = vpop.permute.xlu2 %1495 }
 0x250   : > { %3084 = vmatmul.f32.gmra.mxu0 %v1269_v28  ;;  %v1452_v28 = vmul.f32 %v5270_v60, %v5514_v7  ;;  %v2509_v7 = vld [vmem:[#allocation7 + $0x628] sm:$0xff]  ;;  %v5783_v19 = vpop.f32.mrf.mxu1 }
 0x251   : > { %4151 = vset.pattern.permute.xlu1 %v6809_v30  ;;  %3134 = vmatmul.f32.gmra.mxu1 %v1360_v45  ;;  %v5768_v45 = vld [vmem:[%s4649_s13 + $0x58] sm:$0xff]  ;;  %v5777_v41 = vpop.f32.mrf.mxu2  ;;  %6825 = vst [vmem:[#allocation107_spill] sm:$0xff] %v5783_v19  ;;  %v5804_v19 = vld [vmem:[%s4570_s11 + $0x48] sm:$0xff] }
 0x252   : > { %1691 = vperm.xlu1 %4151, %v5585_v5   ;;  %3184 = vmatmul.f32.gmra.mxu2 %v1451_v22  ;;  %v1361_v22 = vmul.f32 %v5768_v45, %v5457_v13  ;;  %6823 = vst [vmem:[#allocation105_spill] sm:$0xff] %v5777_v41  ;;  %v5780_v60 = vpop.f32.mrf.mxu3  ;;  %v6716_v13 = vmov 14  }
 0x253   : > { %6824 = vst [vmem:[#allocation106_spill] sm:$0xff] %v5780_v60  ;;  %3358 = vmatpush.msrb.mxu1 %v2509_v7  ;;  %4158 = vset.pattern.permute.xlu0 %v6716_v13  ;;  %v5797_v60 = vld [vmem:[%s4570_s11 + $0x68] sm:$0xff]  ;;  %v5800_v13 = vpop.f32.mrf.mxu0 }
 0x254   : > { %1863 = vperm.xlu0 %4158, %v5657_v53   ;;  %6826 = vst [vmem:[#allocation108_spill] sm:$0xff] %v5800_v13 }
 0x257   : > { %v5772_v54 = vpop.permute.xlu1 %1435  ;;  %1703 = vperm.xlu2 %4146, %v5612_v14   ;;  %v5775_v40 = vpop.permute.xlu2 %1503 }
 0x258   : > { %3299 = vmatmul.f32.vlgmr.msrb.gmra.mxu0 %v1638_v46  ;;  %v5787_v46 = vld [vmem:[%s4649_s13 + $0x60] sm:$0xff]  ;;  %v5817_v13 = vpop.f32.mrf.mxu1 }
 0x259   : > { %3137 = vmatmul.f32.gmra.mxu1 %v1361_v22  ;;  %v1362_v22 = vmul.f32 %v5787_v46, %v5600_v43  ;;  %v5807_v43 = vpop.f32.mrf.mxu2  ;;  %6829 = vst [vmem:[#allocation111_spill] sm:$0xff] %v5817_v13  ;;  %v1364_v13 = vmul.f32 %v5698_v10, %v5477_v44  ;;  %v2505_v44 = vld [vmem:[#allocation7 + $0x608] sm:$0xff] }
 0x25a   : > { %1699 = vperm.xlu1 %4151, %v5628_v17   ;;  %3187 = vmatmul.f32.gmra.mxu2 %v1452_v28  ;;  %v1453_v28 = vmul.f32 %v5292_v16, %v5710_v3  ;;  %6827 = vst [vmem:[#allocation109_spill] sm:$0xff] %v5807_v43  ;;  %v5809_v16 = vpop.f32.mrf.mxu3  ;;  %v2508_v3 = vld [vmem:[#allocation7 + $0x620] sm:$0xff]  ;;  %v5823_v43 = vld [vmem:[%s4649_s13 + $0x8] sm:$0xff] }
 0x25b   : > { %6828 = vst [vmem:[#allocation110_spill] sm:$0xff] %v5809_v16  ;;  %3359 = vmatpush.msrb.mxu1 %v2508_v3  ;;  %v5830_v3 = vld [vmem:[%s4570_s11 + $0x60] sm:$0xff]  ;;  %v2507_v16 = vld [vmem:[#allocation7 + $0x618] sm:$0xff] }
 0x25c   : > { %4163 = vset.pattern.permute.xlu0 %v6718_v6  ;;  %v1543_v6 = vmul.f32 %v5823_v43, %v5713_v4  ;;  %v5841_v4 = vld [vmem:[%s4649_s13 + $0x10] sm:$0xff] }
 0x25d   : > { %1775 = vperm.xlu0 %4163, %v5573_v36   ;;  %3360 = vmatpush.msrb.mxu1 %v2507_v16 }
 0x25f   : > { %v5791_v41 = vpop.permute.xlu2 %1515  ;;  %4152 = vset.pattern.permute.xlu2 %v6798_v42 }
 0x260   : > { %v1480_v7 = vpop.permute.xlu1 %1479  ;;  %1627 = vperm.xlu2 %4152, %v5797_v60   ;;  %v5850_v16 = vpop.f32.mrf.mxu1 }
 0x261   : > { %v1542_v49 = vmul.f32 %v5760_v12, %v1480_v7  ;;  %3140 = vmatmul.f32.gmra.mxu1 %v1362_v22  ;;  %v1363_v7 = vmul.f32 %v5669_v35, %v5521_v15  ;;  %v5827_v15 = vpop.f32.mrf.mxu0  ;;  %6833 = vst [vmem:[#allocation115_spill] sm:$0xff] %v5850_v16 }
 0x262   : > { %1707 = vperm.xlu1 %4151, %v5804_v19   ;;  %3190 = vmatmul.f32.gmra.mxu2 %v1453_v28  ;;  %6830 = vst [vmem:[#allocation112_spill] sm:$0xff] %v5827_v15  ;;  %v5838_v62 = vpop.f32.mrf.mxu3  ;;  %v2506_v15 = vld [vmem:[#allocation7 + $0x610] sm:$0xff] }
 0x263   : > { %3234 = vmatmul.f32.vlgmr.msrb.gmra.mxu3 %v1542_v49  ;;  %v1454_v49 = vmul.f32 %v5676_v25, %v5631_v48  ;;  %v5834_v48 = vpop.f32.mrf.mxu2  ;;  %6832 = vst [vmem:[#allocation114_spill] sm:$0xff] %v5838_v62  ;;  %3361 = vmatpush.msrb.mxu1 %v2506_v15  ;;  %v1456_v15 = vmul.f32 %v5739_v31, %v5743_v24 }
 0x264   : > { %6831 = vst [vmem:[#allocation113_spill] sm:$0xff] %v5834_v48 }
 0x265   : > { %3362 = vmatpush.msrb.mxu1 %v2505_v44 }
 0x267   : > { %v5814_v22 = vpop.permute.xlu2 %1527  ;;  %3363 = vmatpush.msrb.mxu1 %v2504_v38 }
 0x268   : > { %v1492_v28 = vpop.permute.xlu1 %1491  ;;  %4154 = vset.pattern.permute.xlu2 %v6809_v30  ;;  %v5875_v24 = vpop.f32.mrf.mxu1 }
 0x269   : > { %3143 = vmatmul.f32.gmra.mxu1 %v1363_v7  ;;  %1719 = vperm.xlu2 %4154, %v5830_v3   ;;  %v1544_v7 = vmul.f32 %v5841_v4, %v5615_v58  ;;  %v5853_v48 = vpop.f32.mrf.mxu0  ;;  %v1365_v58 = vmul.f32 %v5728_v33, %v5625_v39  ;;  %v6836_v39 = vmov 13   ;;  %6837 = vst [vmem:[#allocation118_spill] sm:$0xff] %v5875_v24  ;;  %v6720_v24 = vmov 15  }
 0x26a   : > { %1715 = vperm.xlu1 %4151, %v5720_v50   ;;  %3193 = vmatmul.f32.gmra.mxu2 %v1454_v49  ;;  %6834 = vst [vmem:[#allocation116_spill] sm:$0xff] %v5853_v48  ;;  %v5871_v44 = vpop.f32.mrf.mxu3 }
 0x26b   : > { %3237 = vmatmul.f32.gmra.mxu3 %v1543_v6  ;;  %6835 = vst [vmem:[#allocation117_spill] sm:$0xff] %v5871_v44  ;;  %v5887_v44 = vld [vmem:[%s4649_s13 + $0x20] sm:$0xff]  ;;  %4166 = vset.pattern.permute.xlu0 %v6720_v24 }
 0x26c   : > { %1967 = vperm.xlu0 %4166, %v5573_v36  }
 0x26f   : > { %v5847_v49 = vpop.permute.xlu2 %1539 }
 0x270   : > { %v1500_v6 = vpop.permute.xlu1 %1499 }
 0x271   : > { %3146 = vmatmul.f32.gmra.mxu1 %v1364_v13  ;;  %1723 = vperm.xlu2 %4154, %v5797_v60   ;;  %v5858_v13 = vpop.f32.mrf.mxu2  ;;  %v5878_v38 = vpop.f32.mrf.mxu0 }
 0x272   : > { %4155 = vset.pattern.permute.xlu1 %v6798_v42  ;;  %3196 = vmatmul.f32.gmra.mxu2 %v1455_v51  ;;  %v5867_v51 = vld [vmem:[%s4649_s13 + $0x18] sm:$0xff]  ;;  %6838 = vst [vmem:[#allocation119_spill] sm:$0xff] %v5878_v38  ;;  %v5895_v38 = vpop.f32.mrf.mxu3 }
 0x273   : > { %1631 = vperm.xlu1 %4155, %v5735_v20   ;;  %3240 = vmatmul.f32.gmra.mxu3 %v1544_v7  ;;  %v1545_v7 = vmul.f32 %v5867_v51, %v1492_v28  ;;  %v1457_v28 = vmul.f32 %v5768_v45, %v5649_v0  ;;  %v2551_v0 = vld [vmem:[#allocation7 + $0x778] sm:$0xff]  ;;  %6840 = vst [vmem:[#allocation121_spill] sm:$0xff] %v5895_v38 }
 0x274   : > { %3478 = vmatpush.msra.mxu3 %v2551_v0  ;;  %v2534_v0 = vld [vmem:[#allocation7 + $0x6f0] sm:$0xff] }
 0x278   : > { %v5862_v62 = vpop.permute.xlu1 %1511  ;;  %v5864_v16 = vpop.permute.xlu2 %1583 }
 0x279   : > { %3149 = vmatmul.f32.gmra.mxu1 %v1365_v58  ;;  %4157 = vset.pattern.permute.xlu2 %v6798_v42  ;;  %v5891_v48 = vpop.f32.mrf.mxu2 }
 0x27a   : > { %3199 = vmatmul.f32.gmra.mxu2 %v1456_v15  ;;  %1635 = vperm.xlu2 %4157, %v5541_v59   ;;  %v1546_v15 = vmul.f32 %v5887_v44, %v5749_v29  ;;  %6839 = vst [vmem:[#allocation120_spill] sm:$0xff] %v5891_v48  ;;  %v5899_v29 = vpop.f32.mrf.mxu1  ;;  %v5922_v34 = vpop.f32.mrf.mxu3 }
 0x27b   : > { %4156 = vset.pattern.permute.xlu1 %v6836_v39  ;;  %3243 = vmatmul.f32.gmra.mxu3 %v1545_v7  ;;  %v2535_v7 = vld [vmem:[#allocation7 + $0x6f8] sm:$0xff]  ;;  %6841 = vst [vmem:[#allocation122_spill] sm:$0xff] %v5899_v29  ;;  %v2550_v29 = vld [vmem:[#allocation7 + $0x770] sm:$0xff] }
 0x27c   : > { %1767 = vperm.xlu1 %4156, %v5657_v53   ;;  %3413 = vmatpush.msra.mxu2 %v2535_v7  ;;  %6846 = vst [vmem:[#allocation126_spill] sm:$0xff] %v5922_v34 }
 0x27d   : > { %3479 = vmatpush.msra.mxu3 %v2550_v29  ;;  %v2533_v29 = vld [vmem:[#allocation7 + $0x6e8] sm:$0xff] }
 0x27e   : > { %3414 = vmatpush.msra.mxu2 %v2534_v0 }
 0x280   : > { %v5882_v58 = vpop.permute.xlu1 %1523  ;;  %v5884_v42 = vpop.permute.xlu2 %1591  ;;  %3415 = vmatpush.msra.mxu2 %v2533_v29  ;;  %v1460_v29 = vmul.f32 %v5698_v10, %v5673_v9  ;;  %v2548_v9 = vld [vmem:[#allocation7 + $0x760] sm:$0xff] }
 0x281   : > { %v5916_v56 = vpop.f32.mrf.mxu2 }
 0x282   : > { %3202 = vmatmul.f32.gmra.mxu2 %v1457_v28  ;;  %4160 = vset.pattern.permute.xlu2 %v6836_v39  ;;  %v5902_v28 = vpop.f32.mrf.mxu0  ;;  %6843 = vst [vmem:[#allocation124_spill] sm:$0xff] %v5916_v56  ;;  %v5920_v27 = vpop.f32.mrf.mxu1 }
 0x283   : > { %3246 = vmatmul.f32.gmra.mxu3 %v1546_v15  ;;  %1771 = vperm.xlu2 %4160, %v5687_v11   ;;  %6842 = vst [vmem:[#allocation123_spill] sm:$0xff] %v5902_v28  ;;  %v1458_v15 = vmul.f32 %v5787_v46, %v5558_v61  ;;  %v2567_v28 = vld [vmem:[#allocation7 + $0x7f8] sm:$0xff]  ;;  %v6844_v61 = vmov 14  }
 0x284   : > { %4159 = vset.pattern.permute.xlu1 %v6809_v30  ;;  %v5912_v30 = vld [vmem:[%s4649_s13 + $0x28] sm:$0xff]  ;;  %6845 = vst [vmem:[#allocation125_spill] sm:$0xff] %v5920_v27  ;;  %3543 = vmatpush.msra.mxu0 %v2567_v28  ;;  %v2566_v27 = vld [vmem:[#allocation7 + $0x7f0] sm:$0xff] }
 0x285   : > { %1731 = vperm.xlu1 %4159, %v5541_v59   ;;  %v1547_v7 = vmul.f32 %v5912_v30, %v1500_v6  ;;  %v2055_v6 = vld [vmem:[%s6702_s2 + $0x8] sm:$0xff]  ;;  %4169 = vset.pattern.permute.xlu0 %v6844_v61 }
 0x286   : > { %3655 = vmatpush.msra.mxu1 %v2055_v6  ;;  %1883 = vperm.xlu0 %4169, %v5585_v5  }
 0x287   : > { %3544 = vmatpush.msra.mxu0 %v2566_v27  ;;  %v5962_v27 = vpop.permute.xlu0 %1683 }
 0x288   : > { %v5907_v48 = vpop.permute.xlu1 %1535  ;;  %v5909_v38 = vpop.permute.xlu2 %1603 }
 0x28a   : > { %3205 = vmatmul.f32.gmra.mxu2 %v1458_v15  ;;  %v5933_v15 = vld [vmem:[%s4649_s13 + $0x30] sm:$0xff]  ;;  %v5944_v56 = vpop.f32.mrf.mxu1 }
 0x28b   : > { %3249 = vmatmul.f32.gmra.mxu3 %v1547_v7  ;;  %4162 = vset.pattern.permute.xlu2 %v6720_v24  ;;  %v1548_v7 = vmul.f32 %v5933_v15, %v5775_v40  ;;  %v5937_v24 = vpop.f32.mrf.mxu0  ;;  %v5942_v40 = vpop.f32.mrf.mxu2  ;;  %6849 = vst [vmem:[#allocation129_spill] sm:$0xff] %v5944_v56 }
 0x28c   : > { %1959 = vperm.xlu2 %4162, %v5657_v53   ;;  %v1459_v53 = vmul.f32 %v5669_v35, %v5772_v54  ;;  %6847 = vst [vmem:[#allocation127_spill] sm:$0xff] %v5937_v24  ;;  %v2549_v54 = vld [vmem:[#allocation7 + $0x768] sm:$0xff] }
 0x28d   : > { %4161 = vset.pattern.permute.xlu1 %v6844_v61  ;;  %3480 = vmatpush.msra.mxu3 %v2549_v54  ;;  %6848 = vst [vmem:[#allocation128_spill] sm:$0xff] %v5942_v40 }
 0x28e   : > { %1867 = vperm.xlu1 %4161, %v5687_v11   ;;  %4172 = vset.pattern.permute.xlu0 %v6836_v39 }
 0x28f   : > { %1795 = vperm.xlu0 %4172, %v5628_v17   ;;  %3481 = vmatpush.msra.mxu3 %v2548_v9  ;;  %v2531_v9 = vld [vmem:[#allocation7 + $0x6d8] sm:$0xff] }
 0x291   : > { %v1580_v0 = vpop.permute.xlu1 %1579  ;;  %v1672_v28 = vpop.permute.xlu2 %1671 }
 0x292   : > { %v1639_v6 = vmul.f32 %v5823_v43, %v1580_v0  ;;  %v1734_v34 = vmul.f32 %v5760_v12, %v1672_v28  ;;  %3208 = vmatmul.f32.gmra.mxu2 %v1459_v53  ;;  %v5949_v53 = vpop.f32.mrf.mxu3  ;;  %v5953_v0 = vld [vmem:[%s4649_s13 + $0x38] sm:$0xff] }
 0x293   : > { %3252 = vmatmul.f32.gmra.mxu3 %v1548_v7  ;;  %v2532_v7 = vld [vmem:[#allocation7 + $0x6e0] sm:$0xff]  ;;  %v5964_v54 = vpop.f32.mrf.mxu0 }
 0x294   : > { %3302 = vmatmul.f32.gmra.mxu0 %v1639_v6  ;;  %3364 = vmatmul.f32.vlgmr.msrb.gmra.mxu1 %v1734_v34  ;;  %v1549_v34 = vmul.f32 %v5953_v0, %v5642_v8  ;;  %v2565_v6 = vld [vmem:[#allocation7 + $0x7e8] sm:$0xff]  ;;  %6850 = vst [vmem:[#allocation130_spill] sm:$0xff] %v5964_v54  ;;  %v1461_v8 = vmul.f32 %v5728_v33, %v5588_v47  ;;  %v2547_v47 = vld [vmem:[#allocation7 + $0x758] sm:$0xff] }
 0x295   : > { %1963 = vperm.xlu2 %4162, %v5687_v11   ;;  %3416 = vmatpush.msra.mxu2 %v2532_v7  ;;  %v1550_v7 = vmul.f32 %v5676_v25, %v5862_v62  ;;  %v1596_v62 = vpop.permute.xlu0 %1595 }
 0x296   : > { %1871 = vperm.xlu1 %4161, %v5573_v36   ;;  %v1640_v36 = vmul.f32 %v5841_v4, %v5864_v16  ;;  %3545 = vmatpush.msra.mxu0 %v2565_v6  ;;  %v5972_v16 = vpop.f32.mrf.mxu2  ;;  %v6853_v6 = vmov 15  }
 0x297   : > { %6851 = vst [vmem:[#allocation131_spill] sm:$0xff] %v5972_v16  ;;  %4175 = vset.pattern.permute.xlu0 %v6853_v6  ;;  %3417 = vmatpush.msra.mxu2 %v2531_v9 }
 0x298   : > { %1987 = vperm.xlu0 %4175, %v5628_v17   ;;  %3482 = vmatpush.msra.mxu3 %v2547_v47  ;;  %v2546_v47 = vld [vmem:[#allocation7 + $0x750] sm:$0xff] }
 0x299   : > { %v1588_v11 = vpop.permute.xlu1 %1587  ;;  %v5957_v28 = vpop.permute.xlu2 %1679 }
 0x29a   : > { %3211 = vmatmul.f32.gmra.mxu2 %v1460_v29  ;;  %v5974_v29 = vpop.f32.mrf.mxu1  ;;  %v5983_v54 = vpop.f32.mrf.mxu3  ;;  %v1641_v24 = vmul.f32 %v5867_v51, %v1588_v11  ;;  %v1551_v11 = vmul.f32 %v5706_v63, %v5791_v41  ;;  %3483 = vmatpush.msra.mxu3 %v2546_v47 }
 0x29b   : > { %3255 = vmatmul.f32.gmra.mxu3 %v1549_v34  ;;  %6852 = vst [vmem:[#allocation132_spill] sm:$0xff] %v5974_v29  ;;  %v2564_v29 = vld [vmem:[#allocation7 + $0x7e0] sm:$0xff]  ;;  %v5987_v56 = vpop.f32.mrf.mxu0 }
 0x29c   : > { %3305 = vmatmul.f32.gmra.mxu0 %v1640_v36  ;;  %6854 = vst [vmem:[#allocation133_spill] sm:$0xff] %v5987_v56  ;;  %v2563_v56 = vld [vmem:[#allocation7 + $0x7d8] sm:$0xff] }
 0x29d   : > { %4165 = vset.pattern.permute.xlu2 %v6844_v61  ;;  %3546 = vmatpush.msra.mxu0 %v2564_v29  ;;  %v6007_v40 = vpop.permute.xlu0 %1607 }
 0x29e   : > { %4164 = vset.pattern.permute.xlu1 %v6836_v39  ;;  %1875 = vperm.xlu2 %4165, %v5553_v55   ;;  %v6002_v29 = vpop.f32.mrf.mxu2 }
 0x29f   : > { %1779 = vperm.xlu1 %4164, %v5553_v55   ;;  %6856 = vst [vmem:[#allocation135_spill] sm:$0xff] %v6002_v29  ;;  %3547 = vmatpush.msra.mxu0 %v2563_v56  ;;  %v2545_v29 = vld [vmem:[#allocation7 + $0x748] sm:$0xff] }
 0x2a0   : > { %4178 = vset.pattern.permute.xlu0 %v6844_v61  ;;  %3484 = vmatpush.msra.mxu3 %v2545_v29 }
 0x2a1   : > { %v5978_v34 = vpop.permute.xlu1 %1599  ;;  %v5980_v36 = vpop.permute.xlu2 %1687  ;;  %1903 = vperm.xlu0 %4178, %v5639_v21  }
 0x2a2   : > { %3214 = vmatmul.f32.gmra.mxu2 %v1461_v8  ;;  %v5999_v9 = vpop.f32.mrf.mxu1  ;;  %v6005_v41 = vpop.f32.mrf.mxu3 }
 0x2a3   : > { %3258 = vmatmul.f32.gmra.mxu3 %v1550_v7  ;;  %v2530_v7 = vld [vmem:[#allocation7 + $0x6d0] sm:$0xff]  ;;  %6855 = vst [vmem:[#allocation134_spill] sm:$0xff] %v5999_v9 }
 0x2a4   : > { %3308 = vmatmul.f32.gmra.mxu0 %v1641_v24  ;;  %v1642_v24 = vmul.f32 %v5887_v44, %v5884_v42  ;;  %3418 = vmatpush.msra.mxu2 %v2530_v7  ;;  %6857 = vst [vmem:[#allocation136_spill] sm:$0xff] %v6005_v41  ;;  %v6012_v42 = vpop.f32.mrf.mxu0  ;;  %v1552_v7 = vmul.f32 %v5739_v31, %v5666_v26  ;;  %v2562_v41 = vld [vmem:[#allocation7 + $0x7d0] sm:$0xff] }
 0x2a5   : > { %6858 = vst [vmem:[#allocation137_spill] sm:$0xff] %v6012_v42  ;;  %3548 = vmatpush.msra.mxu0 %v2562_v41  ;;  %v1644_v41 = vmul.f32 %v5933_v15, %v5978_v34  ;;  %v2527_v34 = vld [vmem:[#allocation7 + $0x6b8] sm:$0xff] }
 0x2a6   : > { %1879 = vperm.xlu2 %4165, %v5603_v1  }
 0x2a7   : > { %1783 = vperm.xlu1 %4164, %v5603_v1  }
 0x2a9   : > { %v5993_v8 = vpop.permute.xlu1 %1611  ;;  %v5995_v16 = vpop.permute.xlu2 %1695  ;;  %4181 = vset.pattern.permute.xlu0 %v6836_v39 }
 0x2aa   : > { %v6022_v42 = vpop.f32.mrf.mxu1  ;;  %v6026_v26 = vpop.f32.mrf.mxu3  ;;  %1815 = vperm.xlu0 %4181, %v5830_v3  }
 0x2ab   : > { %3261 = vmatmul.f32.gmra.mxu3 %v1551_v11  ;;  %v1643_v11 = vmul.f32 %v5912_v30, %v1596_v62  ;;  %6859 = vst [vmem:[#allocation138_spill] sm:$0xff] %v6022_v42  ;;  %v6028_v62 = vpop.permute.xlu0 %1615  ;;  %v2544_v42 = vld [vmem:[#allocation7 + $0x740] sm:$0xff] }
 0x2ac   : > { %3311 = vmatmul.f32.gmra.mxu0 %v1642_v24  ;;  %v2529_v24 = vld [vmem:[#allocation7 + $0x6c8] sm:$0xff]  ;;  %6861 = vst [vmem:[#allocation140_spill] sm:$0xff] %v6026_v26  ;;  %v6035_v29 = vpop.f32.mrf.mxu0  ;;  %3485 = vmatpush.msra.mxu3 %v2544_v42  ;;  %v1554_v42 = vmul.f32 %v5787_v46, %v5814_v22 }
 0x2ad   : > { %3419 = vmatpush.msra.mxu2 %v2529_v24  ;;  %v2525_v22 = vld [vmem:[#allocation7 + $0x6a8] sm:$0xff] }
 0x2ae   : > { %4168 = vset.pattern.permute.xlu2 %v6836_v39 }
 0x2af   : > { %4167 = vset.pattern.permute.xlu1 %v6853_v6  ;;  %1787 = vperm.xlu2 %4168, %v5585_v5  }
 0x2b0   : > { %1971 = vperm.xlu1 %4167, %v5553_v55   ;;  %v6024_v55 = vpop.f32.mrf.mxu2 }
 0x2b1   : > { %v6018_v9 = vpop.permute.xlu2 %1703  ;;  %6860 = vst [vmem:[#allocation139_spill] sm:$0xff] %v6024_v55  ;;  %v2561_v55 = vld [vmem:[#allocation7 + $0x7c8] sm:$0xff] }
 0x2b2   : > { %v1676_v47 = vpop.permute.xlu1 %1675  ;;  %3549 = vmatpush.msra.mxu0 %v2561_v55  ;;  %4184 = vset.pattern.permute.xlu0 %v6853_v6  ;;  %v1737_v55 = vmul.f32 %v5867_v51, %v5962_v27  ;;  %v2542_v27 = vld [vmem:[#allocation7 + $0x730] sm:$0xff] }
 0x2b3   : > { %v1735_v56 = vmul.f32 %v5823_v43, %v1676_v47  ;;  %3264 = vmatmul.f32.gmra.mxu3 %v1552_v7  ;;  %v2528_v7 = vld [vmem:[#allocation7 + $0x6c0] sm:$0xff]  ;;  %v1736_v47 = vmul.f32 %v5841_v4, %v5957_v28  ;;  %2007 = vperm.xlu0 %4184, %v5830_v3   ;;  %v6052_v28 = vpop.f32.mrf.mxu3 }
 0x2b4   : > { %3314 = vmatmul.f32.gmra.mxu0 %v1643_v11  ;;  %3420 = vmatpush.msra.mxu2 %v2528_v7  ;;  %v1553_v11 = vmul.f32 %v5768_v45, %v5882_v58  ;;  %6864 = vst [vmem:[#allocation143_spill] sm:$0xff] %v6052_v28  ;;  %v6055_v7 = vpop.permute.xlu0 %1623  ;;  %v6067_v28 = vpop.f32.mrf.mxu0 }
 0x2b5   : > { %3367 = vmatmul.f32.gmra.mxu1 %v1735_v56  ;;  %6865 = vst [vmem:[#allocation144_spill] sm:$0xff] %v6067_v28  ;;  %v1646_v28 = vmul.f32 %v5676_v25, %v6007_v40  ;;  %v1738_v40 = vmul.f32 %v5887_v44, %v5980_v36  ;;  %v2521_v36 = vld [vmem:[#allocation7 + $0x688] sm:$0xff] }
 0x2b6   : > { %3421 = vmatpush.msra.mxu2 %v2527_v34 }
 0x2b7   : > { %1791 = vperm.xlu2 %4168, %v5746_v18  }
 0x2b8   : > { %1975 = vperm.xlu1 %4167, %v5603_v1   ;;  %v6045_v1 = vpop.f32.mrf.mxu1  ;;  %v6048_v58 = vpop.f32.mrf.mxu2 }
 0x2b9   : > { %6862 = vst [vmem:[#allocation141_spill] sm:$0xff] %v6045_v1  ;;  %v2560_v1 = vld [vmem:[#allocation7 + $0x7c0] sm:$0xff] }
 0x2ba   : > { %v6039_v24 = vpop.permute.xlu2 %1627  ;;  %6863 = vst [vmem:[#allocation142_spill] sm:$0xff] %v6048_v58  ;;  %v2526_v58 = vld [vmem:[#allocation7 + $0x6b0] sm:$0xff]  ;;  %3550 = vmatpush.msra.mxu0 %v2560_v1  ;;  %v1555_v1 = vmul.f32 %v5669_v35, %v5702_v57 }
 0x2bb   : > { %3267 = vmatmul.f32.gmra.mxu3 %v1553_v11  ;;  %v6043_v56 = vpop.permute.xlu1 %1619  ;;  %v1645_v11 = vmul.f32 %v5953_v0, %v5909_v38  ;;  %3422 = vmatpush.msra.mxu2 %v2526_v58  ;;  %v2524_v38 = vld [vmem:[#allocation7 + $0x6a0] sm:$0xff]  ;;  %v2523_v58 = vld [vmem:[#allocation7 + $0x698] sm:$0xff] }
 0x2bc   : > { %3317 = vmatmul.f32.gmra.mxu0 %v1644_v41  ;;  %4187 = vset.pattern.permute.xlu0 %v6844_v61  ;;  %v6091_v57 = vpop.f32.mrf.mxu0 }
 0x2bd   : > { %3370 = vmatmul.f32.gmra.mxu1 %v1736_v47  ;;  %v2543_v47 = vld [vmem:[#allocation7 + $0x738] sm:$0xff]  ;;  %3423 = vmatpush.msra.mxu2 %v2525_v22 }
 0x2be   : > { %3486 = vmatpush.msra.mxu3 %v2543_v47  ;;  %v2540_v47 = vld [vmem:[#allocation7 + $0x720] sm:$0xff]  ;;  %1923 = vperm.xlu0 %4187, %v5541_v59   ;;  %v2559_v22 = vld [vmem:[#allocation7 + $0x7b8] sm:$0xff] }
 0x2bf   : > { %4171 = vset.pattern.permute.xlu2 %v6853_v6  ;;  %3424 = vmatpush.msra.mxu2 %v2524_v38  ;;  %v2054_v59 = vld [vmem:[%s6702_s2] sm:$0xff]  ;;  %v2538_v38 = vld [vmem:[#allocation7 + $0x710] sm:$0xff] }
 0x2c0   : > { %4170 = vset.pattern.permute.xlu1 %v6844_v61  ;;  %1979 = vperm.xlu2 %4171, %v5585_v5   ;;  %v6069_v34 = vpop.f32.mrf.mxu2  ;;  %v6072_v26 = vpop.f32.mrf.mxu1 }
 0x2c1   : > { %1887 = vperm.xlu1 %4170, %v5746_v18   ;;  %3487 = vmatpush.msra.mxu3 %v2542_v27  ;;  %6866 = vst [vmem:[#allocation145_spill] sm:$0xff] %v6069_v34  ;;  %v2522_v27 = vld [vmem:[#allocation7 + $0x690] sm:$0xff]  ;;  %v2553_v34 = vld [vmem:[#allocation7 + $0x788] sm:$0xff] }
 0x2c2   : > { %6867 = vst [vmem:[#allocation146_spill] sm:$0xff] %v6072_v26  ;;  %3425 = vmatpush.msra.mxu2 %v2523_v58  ;;  %3551 = vmatpush.msra.mxu0 %v2559_v22  ;;  %v2537_v58 = vld [vmem:[#allocation7 + $0x708] sm:$0xff] }
 0x2c3   : > { %3270 = vmatmul.f32.gmra.mxu3 %v1554_v42  ;;  %v6065_v41 = vpop.permute.xlu2 %1719  ;;  %v2541_v42 = vld [vmem:[#allocation7 + $0x728] sm:$0xff]  ;;  %3656 = vmatpush.msra.mxu1 %v2054_v59 }
 0x2c4   : > { %v1692_v5 = vpop.permute.xlu1 %1691  ;;  %3320 = vmatmul.f32.gmra.mxu0 %v1645_v11  ;;  %v6077_v11 = vpop.permute.xlu0 %1711  ;;  %3488 = vmatpush.msra.mxu3 %v2541_v42  ;;  %v1556_v42 = vmul.f32 %v5698_v10, %v5907_v48  ;;  %v2536_v48 = vld [vmem:[#allocation7 + $0x700] sm:$0xff] }
 0x2c5   : > { %3373 = vmatmul.f32.gmra.mxu1 %v1737_v55  ;;  %v6082_v55 = vpop.f32.mrf.mxu3  ;;  %3426 = vmatpush.msra.mxu2 %v2522_v27  ;;  %v1739_v27 = vmul.f32 %v5912_v30, %v1692_v5  ;;  %v1557_v5 = vmul.f32 %v5728_v33, %v5847_v49 }
 0x2c6   : > { %3489 = vmatpush.msra.mxu3 %v2540_v47  ;;  %v1647_v47 = vmul.f32 %v5706_v63, %v5993_v8  ;;  %4189 = vset.pattern.permute.xlu0 %v6853_v6 }
 0x2c7   : > { %3427 = vmatpush.msra.mxu2 %v2521_v36 }
 0x2c8   : > { %1983 = vperm.xlu2 %4171, %v5746_v18  }
 0x2c9   : > { %1891 = vperm.xlu1 %4170, %v5628_v17   ;;  %v2539_v17 = vld [vmem:[#allocation7 + $0x718] sm:$0xff] }
 0x2ca   : > { %3490 = vmatpush.msra.mxu3 %v2539_v17  ;;  %v2558_v17 = vld [vmem:[#allocation7 + $0x7b0] sm:$0xff] }
 0x2cb   : > { %3273 = vmatmul.f32.gmra.mxu3 %v1555_v1  ;;  %v6087_v18 = vpop.permute.xlu2 %1723  ;;  %v6099_v1 = vpop.f32.mrf.mxu2  ;;  %3552 = vmatpush.msra.mxu0 %v2558_v17 }
 0x2cc   : > { %v6089_v26 = vpop.permute.xlu1 %1699  ;;  %3323 = vmatmul.f32.gmra.mxu0 %v1646_v28  ;;  %v2520_v28 = vld [vmem:[#allocation7 + $0x680] sm:$0xff]  ;;  %6868 = vst [vmem:[#allocation147_spill] sm:$0xff] %v6099_v1  ;;  %v6108_v22 = vpop.permute.xlu0 %1727  ;;  %3491 = vmatpush.msra.mxu3 %v2538_v38  ;;  %v2557_v38 = vld [vmem:[#allocation7 + $0x7a8] sm:$0xff] }
 0x2cd   : > { %3376 = vmatmul.f32.gmra.mxu1 %v1738_v40  ;;  %v6105_v40 = vpop.f32.mrf.mxu1  ;;  %3428 = vmatpush.msra.mxu2 %v2520_v28  ;;  %v6111_v59 = vpop.f32.mrf.mxu3 }
 0x2ce   : > { %6869 = vst [vmem:[#allocation148_spill] sm:$0xff] %v6105_v40  ;;  %3492 = vmatpush.msra.mxu3 %v2537_v58  ;;  %3553 = vmatpush.msra.mxu0 %v2557_v38  ;;  %v1740_v58 = vmul.f32 %v5933_v15, %v5995_v16  ;;  %v1649_v16 = vmul.f32 %v5768_v45, %v6043_v56  ;;  %v2555_v56 = vld [vmem:[#allocation7 + $0x798] sm:$0xff] }
 0x2d0   : > { %4174 = vset.pattern.permute.xlu2 %v6844_v61  ;;  %3493 = vmatpush.msra.mxu3 %v2536_v48 }
 0x2d1   : > { %4173 = vset.pattern.permute.xlu1 %v6836_v39  ;;  %1895 = vperm.xlu2 %4174, %v5612_v14  }
 0x2d2   : > { %1799 = vperm.xlu1 %4173, %v5612_v14   ;;  %v6118_v14 = vpop.f32.mrf.mxu0 }
 0x2d3   : > { %3276 = vmatmul.f32.gmra.mxu3 %v1556_v42  ;;  %v6123_v28 = vpop.f32.mrf.mxu2  ;;  %v1648_v42 = vmul.f32 %v5739_v31, %v6028_v62 }
 0x2d4   : > { %v6113_v36 = vpop.permute.xlu1 %1707  ;;  %3326 = vmatmul.f32.gmra.mxu0 %v1647_v47  ;;  %v6115_v8 = vpop.permute.xlu2 %1635  ;;  %6870 = vst [vmem:[#allocation149_spill] sm:$0xff] %v6123_v28 }
 0x2d5   : > { %3379 = vmatmul.f32.gmra.mxu1 %v1739_v27  ;;  %v6130_v47 = vpop.f32.mrf.mxu1  ;;  %v1864_v49 = vpop.permute.xlu0 %1863 }
 0x2d6   : > { %v6134_v48 = vpop.f32.mrf.mxu3  ;;  %v1926_v17 = vmul.f32 %v5760_v12, %v1864_v49 }
 0x2d9   : > { %1899 = vperm.xlu2 %4174, %v5804_v19  }
 0x2da   : > { %1803 = vperm.xlu1 %4173, %v5804_v19   ;;  %v6138_v38 = vpop.f32.mrf.mxu0 }
 0x2db   : > { %3279 = vmatmul.f32.gmra.mxu3 %v1557_v5  ;;  %v1741_v5 = vmul.f32 %v5953_v0, %v6089_v26  ;;  %v6150_v49 = vpop.f32.mrf.mxu2  ;;  %v2554_v26 = vld [vmem:[#allocation7 + $0x790] sm:$0xff] }
 0x2dc   : > { %3329 = vmatmul.f32.gmra.mxu0 %v1648_v42  ;;  %v6132_v27 = vpop.permute.xlu1 %1715  ;;  %v6147_v42 = vld [vmem:[%s4570_s11 + $0x40] sm:$0xff]  ;;  %6871 = vst [vmem:[#allocation150_spill] sm:$0xff] %v6150_v49 }
 0x2dd   : > { %3382 = vmatmul.f32.gmra.mxu1 %v1740_v58  ;;  %v1772_v62 = vpop.permute.xlu2 %1771  ;;  %v2556_v58 = vld [vmem:[#allocation7 + $0x7a0] sm:$0xff]  ;;  %v6152_v28 = vpop.f32.mrf.mxu1 }
 0x2de   : > { %3554 = vmatpush.msra.mxu0 %v2556_v58 }
 0x2e0   : > { %3555 = vmatpush.msra.mxu0 %v2555_v56 }
 0x2e1   : > { %4177 = vset.pattern.permute.xlu2 %v6836_v39 }
 0x2e2   : > { %4176 = vset.pattern.permute.xlu1 %v6853_v6  ;;  %1807 = vperm.xlu2 %4177, %v5639_v21   ;;  %v6164_v58 = vpop.f32.mrf.mxu0 }
 0x2e3   : > { %1991 = vperm.xlu1 %4176, %v6147_v42   ;;  %3494 = vmatmul.f32.vlgmr.msra.gmra.mxu3 %v1926_v17  ;;  %v1650_v17 = vmul.f32 %v5787_v46, %v6055_v7  ;;  %v6166_v56 = vpop.f32.mrf.mxu2 }
 0x2e4   : > { %3332 = vmatmul.f32.gmra.mxu0 %v1649_v16  ;;  %v1742_v16 = vmul.f32 %v5676_v25, %v6018_v9  ;;  %6873 = vst [vmem:[#allocation152_spill] sm:$0xff] %v6166_v56  ;;  %v1743_v9 = vmul.f32 %v5706_v63, %v6113_v36  ;;  %v1744_v36 = vmul.f32 %v5739_v31, %v6077_v11 }
 0x2e5   : > { %3385 = vmatmul.f32.gmra.mxu1 %v1741_v5  ;;  %v1632_v40 = vpop.permute.xlu1 %1631  ;;  %3556 = vmatpush.msra.mxu0 %v2554_v26  ;;  %v2552_v5 = vld [vmem:[#allocation7 + $0x780] sm:$0xff]  ;;  %v6173_v25 = vpop.f32.mrf.mxu1 }
 0x2e6   : > { %v6154_v1 = vpop.f32.mrf.mxu3  ;;  %v6156_v21 = vpop.permute.xlu2 %1959 }
 0x2e7   : > { %6872 = vst [vmem:[#allocation151_spill] sm:$0xff] %v6154_v1  ;;  %3557 = vmatpush.msra.mxu0 %v2553_v34  ;;  %v6182_v34 = vld [vmem:[%s4570_s11 + $0x50] sm:$0xff] }
 0x2e9   : > { %3558 = vmatpush.msra.mxu0 %v2552_v5 }
 0x2ea   : > { %1811 = vperm.xlu2 %4177, %v5720_v50  }
 0x2eb   : > { %1995 = vperm.xlu1 %4176, %v5804_v19   ;;  %v1651_v19 = vmul.f32 %v5669_v35, %v6039_v24  ;;  %v6193_v63 = vpop.f32.mrf.mxu2 }
 0x2ec   : > { %3335 = vmatmul.f32.gmra.mxu0 %v1650_v17  ;;  %v1831_v17 = vmul.f32 %v5823_v43, %v1772_v62  ;;  %6874 = vst [vmem:[#allocation153_spill] sm:$0xff] %v6193_v63 }
 0x2ed   : > { %3388 = vmatmul.f32.gmra.mxu1 %v1742_v16  ;;  %v6187_v16 = vpop.f32.mrf.mxu0 }
 0x2ee   : > { %v1768_v26 = vpop.permute.xlu1 %1767  ;;  %v6169_v49 = vpop.f32.mrf.mxu3 }
 0x2ef   : > { %v1830_v7 = vmul.f32 %v5760_v12, %v1768_v26  ;;  %v6171_v1 = vpop.permute.xlu2 %1963  ;;  %v6197_v26 = vpop.f32.mrf.mxu1 }
 0x2f1   : > { %3429 = vmatmul.f32.vlgmr.msra.gmra.mxu2 %v1830_v7  ;;  %v1652_v7 = vmul.f32 %v5698_v10, %v1632_v40  ;;  %v1653_v10 = vmul.f32 %v5728_v33, %v6115_v8  ;;  %v2022_v33 = vmul.f32 %v5760_v12, %v6156_v21 }
 0x2f2   : > { %4180 = vset.pattern.permute.xlu2 %v6853_v6 }
 0x2f3   : > { %4179 = vset.pattern.permute.xlu1 %v6844_v61  ;;  %1999 = vperm.xlu2 %4180, %v6182_v34  }
 0x2f4   : > { %1907 = vperm.xlu1 %4179, %v5720_v50   ;;  %3338 = vmatmul.f32.gmra.mxu0 %v1651_v19  ;;  %v1776_v19 = vpop.permute.xlu0 %1775 }
 0x2f5   : > { %3391 = vmatmul.f32.gmra.mxu1 %v1743_v9  ;;  %v1832_v62 = vmul.f32 %v5841_v4, %v1776_v19  ;;  %v6205_v56 = vpop.f32.mrf.mxu0 }
 0x2f6   : > { %v6189_v35 = vpop.f32.mrf.mxu3 }
 0x2f7   : > { %v6191_v24 = vpop.permute.xlu1 %1731  ;;  %v6215_v40 = vpop.f32.mrf.mxu1 }
 0x2f8   : > { %v1876_v5 = vpop.permute.xlu2 %1875 }
 0x2f9   : > { %3432 = vmatmul.f32.gmra.mxu2 %v1831_v17  ;;  %v1929_v21 = vmul.f32 %v5867_v51, %v1876_v5 }
 0x2fb   : > { %2003 = vperm.xlu2 %4180, %v5720_v50   ;;  %v1745_v50 = vmul.f32 %v5768_v45, %v6132_v27  ;;  %v1746_v27 = vmul.f32 %v5787_v46, %v6065_v41  ;;  %v2023_v46 = vmul.f32 %v5823_v43, %v6171_v1 }
 0x2fc   : > { %1911 = vperm.xlu1 %4179, %v5830_v3   ;;  %3341 = vmatmul.f32.gmra.mxu0 %v1652_v7  ;;  %v6212_v3 = vpop.f32.mrf.mxu2 }
 0x2fd   : > { %3394 = vmatmul.f32.gmra.mxu1 %v1744_v36  ;;  %v6224_v8 = vpop.f32.mrf.mxu0 }
 0x2fe   : > { %v6203_v9 = vpop.f32.mrf.mxu3 }
 0x2ff   : > { %v6232_v7 = vpop.f32.mrf.mxu1 }
 0x300   : > { %v1868_v63 = vpop.permute.xlu1 %1867  ;;  %v1880_v11 = vpop.permute.xlu2 %1879 }
 0x301   : > { %v1927_v31 = vmul.f32 %v5823_v43, %v1868_v63  ;;  %3435 = vmatmul.f32.gmra.mxu2 %v1832_v62 }
 0x303   : > { %3497 = vmatmul.f32.gmra.mxu3 %v1927_v31  ;;  %4183 = vset.pattern.permute.xlu2 %v6844_v61  ;;  %v6244_v31 = vld [vmem:[%s4649_s13 + $0x68] sm:$0xff] }
 0x304   : > { %4182 = vset.pattern.permute.xlu1 %v6836_v39  ;;  %3344 = vmatmul.f32.gmra.mxu0 %v1653_v10  ;;  %v6229_v36 = vpop.f32.mrf.mxu2  ;;  %v1747_v10 = vmul.f32 %v6244_v31, %v6087_v18  ;;  %v1930_v18 = vmul.f32 %v5887_v44, %v1880_v11 }
 0x305   : > { %1819 = vperm.xlu1 %4182, %v5797_v60   ;;  %3397 = vmatmul.f32.gmra.mxu1 %v1745_v50  ;;  %6875 = vst [vmem:[#allocation154_spill] sm:$0xff] %v6229_v36  ;;  %v6876_v50 = vld [vmem:[#allocation18_spill] sm:$0xff]  ;;  %v6886_v36 = vld [vmem:[#allocation77_spill] sm:$0xff] }
 0x306   : > { %1915 = vperm.xlu2 %4183, %v5797_v60   ;;  %v6220_v17 = vpop.f32.mrf.mxu3  ;;  %v2675_v43 = vadd.f32 %v5398_v37, %v6876_v50 }
 0x308   : > { %v1872_v45 = vpop.permute.xlu1 %1871 }
 0x309   : > { %v1928_v61 = vmul.f32 %v5841_v4, %v1872_v45  ;;  %v1788_v63 = vpop.permute.xlu2 %1787  ;;  %v6257_v45 = vld [vmem:[%s4570_s11 + $0x78] sm:$0xff] }
 0x30b   : > { %3500 = vmatmul.f32.gmra.mxu3 %v1928_v61  ;;  %v2740_v61 = vadd.f32 %v5479_v23, %v2675_v43 }
 0x30c   : > { %3559 = vmatmul.f32.vlgmr.msra.gmra.mxu0 %v2022_v33  ;;  %v3194_v1 = vpop.f32.mrf.mxu2 }
 0x30d   : > { %1823 = vperm.xlu1 %4182, %v5735_v20   ;;  %3400 = vmatmul.f32.gmra.mxu1 %v1746_v27  ;;  %v6261_v27 = vpop.f32.mrf.mxu1 }
 0x30e   : > { %1919 = vperm.xlu2 %4183, %v5735_v20   ;;  %v6235_v12 = vpop.f32.mrf.mxu3  ;;  %v1968_v20 = vpop.permute.xlu0 %1967 }
 0x30f   : > { %v2024_v37 = vmul.f32 %v5841_v4, %v1968_v20  ;;  %v6878_v4 = vld [vmem:[#allocation19_spill] sm:$0xff] }
 0x311   : > { %v1780_v19 = vpop.permute.xlu1 %1779  ;;  %v6238_v62 = vpop.f32.mrf.mxu0 }
 0x312   : > { %v1833_v41 = vmul.f32 %v5867_v51, %v1780_v19  ;;  %v1792_v5 = vpop.permute.xlu2 %1791 }
 0x313   : > { %3503 = vmatmul.f32.gmra.mxu3 %v1929_v21 }
 0x314   : > { %3438 = vmatmul.f32.gmra.mxu2 %v1833_v41  ;;  %3562 = vmatmul.f32.gmra.mxu0 %v2023_v46  ;;  %v6269_v46 = vld [vmem:[%s4649_s13 + $0x70] sm:$0xff] }
 0x315   : > { %4185 = vset.pattern.permute.xlu1 %v6853_v6  ;;  %3403 = vmatmul.f32.gmra.mxu1 %v1747_v10  ;;  %v1748_v11 = vmul.f32 %v6269_v46, %v6108_v22  ;;  %v2678_v10 = vadd.f32 %v5420_v32, %v6878_v4  ;;  %v1835_v32 = vmul.f32 %v5912_v30, %v1788_v63  ;;  %v6882_v63 = vld [vmem:[#allocation99_spill] sm:$0xff] }
 0x316   : > { %2011 = vperm.xlu1 %4185, %v5797_v60   ;;  %4186 = vset.pattern.permute.xlu2 %v6836_v39  ;;  %v6253_v33 = vpop.f32.mrf.mxu3  ;;  %v2805_v39 = vadd.f32 %v5562_v2, %v2740_v61  ;;  %v1884_v41 = vpop.permute.xlu0 %1883  ;;  %v6278_v2 = vld [vmem:[%s4570_s11 + $0x70] sm:$0xff] }
 0x317   : > { %6877 = vst [vmem:[#allocation18_spill] sm:$0xff] %v6253_v33  ;;  %1827 = vperm.xlu2 %4186, %v6257_v45   ;;  %v1931_v22 = vmul.f32 %v5912_v30, %v1884_v41  ;;  %v6296_v41 = vld [vmem:[%s4649_s13 + $0x78] sm:$0xff] }
 0x318   : > { %v2870_v23 = vadd.f32 %v5682_v52, %v2805_v39  ;;  %v6880_v52 = vld [vmem:[#allocation72_spill] sm:$0xff] }
 0x319   : > { %v1784_v21 = vpop.permute.xlu1 %1783  ;;  %v6264_v60 = vpop.f32.mrf.mxu0 }
 0x31a   : > { %v1834_v19 = vmul.f32 %v5887_v44, %v1784_v21  ;;  %v2935_v20 = vadd.f32 %v5858_v13, %v2870_v23  ;;  %v1980_v43 = vpop.permute.xlu2 %1979  ;;  %v3197_v13 = vpop.f32.mrf.mxu2  ;;  %v6881_v21 = vld [vmem:[#allocation85_spill] sm:$0xff] }
 0x31b   : > { %3506 = vmatmul.f32.gmra.mxu3 %v1930_v18  ;;  %v2743_v18 = vadd.f32 %v6880_v52, %v2678_v10 }
 0x31c   : > { %3441 = vmatmul.f32.gmra.mxu2 %v1834_v19  ;;  %3565 = vmatmul.f32.gmra.mxu0 %v2024_v37  ;;  %v3000_v61 = vadd.f32 %v5949_v53, %v2935_v20  ;;  %v6883_v20 = vld [vmem:[#allocation21_spill] sm:$0xff] }
 0x31d   : > { %3406 = vmatmul.f32.gmra.mxu1 %v1748_v11  ;;  %v2808_v39 = vadd.f32 %v6881_v21, %v2743_v18  ;;  %v6293_v11 = vpop.f32.mrf.mxu1  ;;  %v6885_v18 = vld [vmem:[#allocation120_spill] sm:$0xff] }
 0x31e   : > { %2015 = vperm.xlu1 %4185, %v6278_v2   ;;  %v6281_v50 = vpop.f32.mrf.mxu3  ;;  %v3065_v19 = vadd.f32 %v6035_v29, %v3000_v61  ;;  %v6884_v29 = vld [vmem:[#allocation64_spill] sm:$0xff] }
 0x31f   : > { %6879 = vst [vmem:[#allocation19_spill] sm:$0xff] %v6281_v50  ;;  %4188 = vset.pattern.permute.xlu2 %v6853_v6  ;;  %v1749_v6 = vmul.f32 %v6296_v41, %v6191_v24  ;;  %v2873_v4 = vadd.f32 %v6882_v63, %v2808_v39  ;;  %v2681_v52 = vadd.f32 %v6884_v29, %v6883_v20  ;;  %v6887_v39 = vld [vmem:[#allocation89_spill] sm:$0xff]  ;;  %v6891_v20 = vld [vmem:[#allocation68_spill] sm:$0xff] }
 0x320   : > { %2019 = vperm.xlu2 %4188, %v6257_v45   ;;  %v3130_v10 = vadd.f32 %v6130_v47, %v3065_v19 }
 0x321   : > { %v6289_v37 = vpop.f32.mrf.mxu0  ;;  %v2938_v61 = vadd.f32 %v6885_v18, %v2873_v4  ;;  %v2746_v33 = vadd.f32 %v6886_v36, %v2681_v52  ;;  %v6892_v52 = vld [vmem:[#allocation124_spill] sm:$0xff] }
 0x322   : > { %v1972_v23 = vpop.permute.xlu1 %1971  ;;  %v3195_v21 = vadd.f32 %v3194_v1, %v3130_v10  ;;  %v3200_v63 = vpop.f32.mrf.mxu2 }
 0x323   : > { %v2025_v53 = vmul.f32 %v5867_v51, %v1972_v23  ;;  %3509 = vmatmul.f32.gmra.mxu3 %v1931_v22  ;;  %v3003_v24 = vadd.f32 %v5983_v54, %v2938_v61  ;;  %v1836_v22 = vmul.f32 %v5933_v15, %v1792_v5  ;;  %v2811_v19 = vadd.f32 %v6887_v39, %v2746_v33  ;;  %v6888_v23 = vld [vmem:[#allocation144_spill] sm:$0xff]  ;;  %v6889_v54 = vld [vmem:[#allocation103_spill] sm:$0xff]  ;;  %v4261_v5 = vld [vmem:[%s4570_s11] sm:$0xff]  ;;  %v1796_v10 = vpop.permute.xlu0 %1795 }
 0x324   : > { %3444 = vmatmul.f32.gmra.mxu2 %v1835_v32  ;;  %v1984_v32 = vpop.permute.xlu2 %1983  ;;  %v6890_v33 = vld [vmem:[#allocation23_spill] sm:$0xff] }
 0x325   : > { %3409 = vmatmul.f32.gmra.mxu1 %v1749_v6  ;;  %3568 = vmatmul.f32.gmra.mxu0 %v2025_v53  ;;  %v3068_v6 = vadd.f32 %v6888_v23, %v3003_v24  ;;  %v6315_v53 = vpop.f32.mrf.mxu1  ;;  %v2876_v4 = vadd.f32 %v6889_v54, %v2811_v19  ;;  %v2684_v29 = vadd.f32 %v6891_v20, %v6890_v33  ;;  %v6893_v24 = vld [vmem:[#allocation81_spill] sm:$0xff] }
 0x326   : > { %v3259_v50 = vpop.f32.mrf.mxu3 }
 0x327   : > { %v6308_v51 = vadd.f32 %v3259_v50, %v3195_v21  ;;  %v3133_v50 = vadd.f32 %v6152_v28, %v3068_v6  ;;  %v2941_v18 = vadd.f32 %v6892_v52, %v2876_v4  ;;  %v2749_v39 = vadd.f32 %v6893_v24, %v2684_v29  ;;  %v4262_v52 = vld [vmem:[%s4570_s11 + $0x8] sm:$0xff] }
 0x328   : > { %v1837_v28 = vmul.f32 %v5953_v0, %v1796_v10  ;;  %v2027_v6 = vmul.f32 %v5912_v30, %v1980_v43  ;;  %v6897_v30 = vld [vmem:[#allocation26_spill] sm:$0xff]  ;;  %v6898_v43 = vld [vmem:[#allocation71_spill] sm:$0xff] }
 0x329   : > { %v6311_v47 = vpop.f32.mrf.mxu0  ;;  %v3198_v61 = vadd.f32 %v3197_v13, %v3133_v50 }
 0x32a   : > { %v1976_v1 = vpop.permute.xlu1 %1975  ;;  %v3203_v10 = vpop.f32.mrf.mxu2 }
 0x32b   : > { %v2026_v36 = vmul.f32 %v5887_v44, %v1976_v1  ;;  %v6894_v44 = vld [vmem:[#allocation136_spill] sm:$0xff]  ;;  %v6895_v1 = vld [vmem:[#allocation93_spill] sm:$0xff] }
 0x32c   : > { %3447 = vmatmul.f32.gmra.mxu2 %v1836_v22  ;;  %v3006_v23 = vadd.f32 %v6894_v44, %v2941_v18  ;;  %v1896_v50 = vpop.permute.xlu2 %1895  ;;  %v2687_v18 = vadd.f32 %v6898_v43, %v6897_v30  ;;  %v4263_v30 = vld [vmem:[%s4570_s11 + $0x10] sm:$0xff] }
 0x32d   : > { %3571 = vmatmul.f32.gmra.mxu0 %v2026_v36  ;;  %3960 = vmatmul.msk.f32.vlgmr.msra.gmra.mxu1 %vm3608_vm0, %v4261_v5  ;;  %v2814_v36 = vadd.f32 %v6895_v1, %v2749_v39  ;;  %v6896_v5 = vld [vmem:[#allocation107_spill] sm:$0xff]  ;;  %v6900_v39 = vld [vmem:[#allocation84_spill] sm:$0xff] }
 0x32e   : > { %v3262_v21 = vpop.f32.mrf.mxu3  ;;  %v3071_v54 = vadd.f32 %v6091_v57, %v3006_v23  ;;  %v6899_v57 = vld [vmem:[#allocation128_spill] sm:$0xff]  ;;  %v2752_v44 = vadd.f32 %v6900_v39, %v2687_v18  ;;  %v6904_v18 = vld [vmem:[#allocation29_spill] sm:$0xff] }
 0x32f   : > { %v6327_v19 = vadd.f32 %v3262_v21, %v3198_v61  ;;  %v2879_v33 = vadd.f32 %v6896_v5, %v2814_v36  ;;  %v6902_v36 = vld [vmem:[#allocation96_spill] sm:$0xff] }
 0x330   : > { %v3136_v20 = vadd.f32 %v6173_v25, %v3071_v54  ;;  %v6901_v25 = vld [vmem:[#allocation140_spill] sm:$0xff]  ;;  %v2817_v54 = vadd.f32 %v6902_v36, %v2752_v44 }
 0x331   : > { %v6330_v22 = vpop.f32.mrf.mxu0  ;;  %v2944_v61 = vadd.f32 %v6899_v57, %v2879_v33  ;;  %v6906_v57 = vld [vmem:[#allocation131_spill] sm:$0xff] }
 0x332   : > { %v6335_v4 = vpop.f32.mrf.mxu1  ;;  %v3201_v21 = vadd.f32 %v3200_v63, %v3136_v20  ;;  %v6903_v63 = vld [vmem:[#allocation111_spill] sm:$0xff] }
 0x333   : > { %v1888_v13 = vpop.permute.xlu1 %1887  ;;  %v3009_v23 = vadd.f32 %v6901_v25, %v2944_v61  ;;  %v2882_v20 = vadd.f32 %v6903_v63, %v2817_v54  ;;  %v6908_v25 = vld [vmem:[#allocation143_spill] sm:$0xff] }
 0x334   : > { %v1932_v29 = vmul.f32 %v5933_v15, %v1888_v13  ;;  %3450 = vmatmul.f32.gmra.mxu2 %v1837_v28  ;;  %v1900_v43 = vpop.permute.xlu2 %1899 }
 0x335   : > { %3574 = vmatmul.f32.gmra.mxu0 %v2027_v6  ;;  %3961 = vmatmul.msk.f32.gmra.mxu1 %vm3608_vm0, %v4262_v52  ;;  %v2028_v6 = vmul.f32 %v5933_v15, %v1984_v32  ;;  %v3074_v13 = vadd.f32 %v6118_v14, %v3009_v23  ;;  %v6905_v15 = vld [vmem:[#allocation75_spill] sm:$0xff]  ;;  %v2947_v14 = vadd.f32 %v6906_v57, %v2882_v20  ;;  %v4264_v20 = vld [vmem:[%s4649_s13 + $0x40] sm:$0xff]  ;;  %v4265_v57 = vld [vmem:[%s4570_s11 + $0x18] sm:$0xff] }
 0x336   : > { %3512 = vmatmul.f32.gmra.mxu3 %v1932_v29  ;;  %v3265_v24 = vpop.f32.mrf.mxu3  ;;  %v2690_v32 = vadd.f32 %v6905_v15, %v6904_v18 }
 0x337   : > { %v6347_v1 = vadd.f32 %v3265_v24, %v3201_v21  ;;  %v3139_v29 = vadd.f32 %v6197_v26, %v3074_v13  ;;  %v1988_v21 = vpop.permute.xlu0 %1987  ;;  %v3206_v24 = vpop.f32.mrf.mxu2  ;;  %v6907_v26 = vld [vmem:[#allocation88_spill] sm:$0xff]  ;;  %v3012_v23 = vadd.f32 %v6908_v25, %v2947_v14 }
 0x338   : > { %v2755_v44 = vadd.f32 %v6907_v26, %v2690_v32  ;;  %v2029_v54 = vmul.f32 %v5953_v0, %v1988_v21  ;;  %v6909_v13 = vld [vmem:[#allocation100_spill] sm:$0xff]  ;;  %v6913_v21 = vld [vmem:[#allocation135_spill] sm:$0xff] }
 0x339   : > { %v6349_v28 = vpop.f32.mrf.mxu0  ;;  %v3204_v61 = vadd.f32 %v3203_v10, %v3139_v29  ;;  %v3077_v63 = vadd.f32 %v6138_v38, %v3012_v23  ;;  %v1934_v29 = vmul.f32 %v4264_v20, %v1896_v50  ;;  %v6911_v14 = vld [vmem:[#allocation32_spill] sm:$0xff] }
 0x33a   : > { %v6354_v5 = vpop.f32.mrf.mxu1 }
 0x33b   : > { %v1892_v33 = vpop.permute.xlu1 %1891  ;;  %v3142_v18 = vadd.f32 %v6215_v40, %v3077_v63 }
 0x33c   : > { %v1933_v52 = vmul.f32 %v5953_v0, %v1892_v33  ;;  %v2820_v33 = vadd.f32 %v6909_v13, %v2755_v44  ;;  %v6912_v0 = vld [vmem:[#allocation79_spill] sm:$0xff]  ;;  %v1808_v50 = vpop.permute.xlu2 %1807  ;;  %v6914_v44 = vld [vmem:[#allocation92_spill] sm:$0xff] }
 0x33d   : > { %3962 = vmatmul.msk.f32.gmra.mxu1 %vm3608_vm0, %v4263_v30  ;;  %3577 = vmatmul.f32.gmra.mxu0 %v2028_v6 }
 0x33e   : > { %3515 = vmatmul.f32.gmra.mxu3 %v1933_v52  ;;  %v3268_v39 = vpop.f32.mrf.mxu3  ;;  %v6910_v52 = vld [vmem:[#allocation115_spill] sm:$0xff] }
 0x33f   : > { %v6366_v36 = vadd.f32 %v3268_v39, %v3204_v61  ;;  %v2885_v30 = vadd.f32 %v6910_v52, %v2820_v33  ;;  %v2693_v61 = vadd.f32 %v6912_v0, %v6911_v14  ;;  %v3207_v39 = vadd.f32 %v3206_v24, %v3142_v18  ;;  %v3209_v13 = vpop.f32.mrf.mxu2  ;;  %v6915_v33 = vld [vmem:[#allocation104_spill] sm:$0xff]  ;;  %v4267_v0 = vld [vmem:[%s4570_s11 + $0x20] sm:$0xff] }
 0x341   : > { %v6368_v6 = vpop.f32.mrf.mxu0  ;;  %v2950_v38 = vadd.f32 %v6913_v21, %v2885_v30  ;;  %v2758_v40 = vadd.f32 %v6914_v44, %v2693_v61  ;;  %v6917_v61 = vld [vmem:[#allocation139_spill] sm:$0xff] }
 0x342   : > { %v6373_v10 = vpop.f32.mrf.mxu1 }
 0x343   : > { %v3015_v25 = vadd.f32 %v6082_v55, %v2950_v38  ;;  %v2823_v63 = vadd.f32 %v6915_v33, %v2758_v40  ;;  %v1904_v38 = vpop.permute.xlu0 %1903 }
 0x344   : > { %v1800_v15 = vpop.permute.xlu1 %1799 }
 0x345   : > { %v1838_v32 = vmul.f32 %v4264_v20, %v1800_v15  ;;  %3963 = vmatmul.msk.f32.gmra.mxu1 %vm3608_vm0, %v4265_v57  ;;  %3580 = vmatmul.f32.gmra.mxu0 %v2029_v54  ;;  %v3080_v52 = vadd.f32 %v6164_v58, %v3015_v25  ;;  %v6916_v15 = vld [vmem:[#allocation118_spill] sm:$0xff] }
 0x346   : > { %3518 = vmatmul.f32.gmra.mxu3 %v1934_v29  ;;  %v3271_v26 = vpop.f32.mrf.mxu3  ;;  %v4266_v29 = vld [vmem:[%s4649_s13 + $0x48] sm:$0xff] }
 0x347   : > { %3453 = vmatmul.f32.gmra.mxu2 %v1838_v32  ;;  %v6385_v23 = vadd.f32 %v3271_v26, %v3207_v39  ;;  %v1935_v18 = vmul.f32 %v4266_v29, %v1900_v43  ;;  %v2888_v32 = vadd.f32 %v6916_v15, %v2823_v63  ;;  %v3145_v57 = vadd.f32 %v6232_v7, %v3080_v52  ;;  %v1812_v7 = vpop.permute.xlu2 %1811  ;;  %v4269_v15 = vld [vmem:[%s4570_s11 + $0x28] sm:$0xff] }
 0x349   : > { %v3324_v54 = vpop.f32.mrf.mxu0  ;;  %v2953_v21 = vadd.f32 %v6917_v61, %v2888_v32  ;;  %v3210_v58 = vadd.f32 %v3209_v13, %v3145_v57  ;;  %v3212_v13 = vpop.f32.mrf.mxu2 }
 0x34a   : > { %v6390_v30 = vadd.f32 %v3324_v54, %v6308_v51  ;;  %v6392_v24 = vpop.f32.mrf.mxu1  ;;  %v4268_v54 = vld [vmem:[%s4649_s13 + $0x50] sm:$0xff] }
 0x34b   : > { %v3018_v43 = vadd.f32 %v6111_v59, %v2953_v21  ;;  %v1936_v33 = vmul.f32 %v4268_v54, %v1904_v38  ;;  %v1840_v63 = vmul.f32 %v4268_v54, %v1808_v50  ;;  %v4271_v21 = vld [vmem:[%s4570_s11 + $0x30] sm:$0xff] }
 0x34c   : > { %v1804_v55 = vpop.permute.xlu1 %1803 }
 0x34d   : > { %v1839_v14 = vmul.f32 %v4266_v29, %v1804_v55  ;;  %3964 = vmatmul.msk.f32.gmra.mxu1 %vm3608_vm0, %v4267_v0  ;;  %v3083_v44 = vadd.f32 %v6187_v16, %v3018_v43  ;;  %v4272_v43 = vld [vmem:[%s4649_s13 + $0x60] sm:$0xff] }
 0x34e   : > { %3521 = vmatmul.f32.gmra.mxu3 %v1935_v18  ;;  %v3274_v51 = vpop.f32.mrf.mxu3 }
 0x34f   : > { %3456 = vmatmul.f32.gmra.mxu2 %v1839_v14  ;;  %v6401_v39 = vadd.f32 %v3274_v51, %v3210_v58  ;;  %v3148_v52 = vadd.f32 %v6261_v27, %v3083_v44  ;;  %v4270_v27 = vld [vmem:[%s4649_s13 + $0x58] sm:$0xff]  ;;  %v2000_v0 = vpop.permute.xlu2 %1999  ;;  %v1816_v58 = vpop.permute.xlu0 %1815  ;;  %s4354_s13 = scalar_lea.hbm %s4353_s12, 128 }
 0x350   : > { %v1841_v14 = vmul.f32 %v4270_v27, %v1812_v7  ;;  %v2032_v44 = vmul.f32 %v4268_v54, %v2000_v0  ;;  %v6918_v54 = vld [vmem:[#allocation35_spill] sm:$0xff]  ;;  %p4355_p1 = scmp.ne.s32.totalorder %s4353_s12, %s4354_s13  ;;  %p4360_p6 = scmp.lt.s32.totalorder %s4358_s16, %s4354_s13 }
 0x351   : > { %v3327_v26 = vpop.f32.mrf.mxu0  ;;  %v3213_v59 = vadd.f32 %v3212_v13, %v3148_v52  ;;  %v6920_v0 = vld [vmem:[#allocation95_spill] sm:$0xff] }
 0x352   : > { %v3328_v40 = vadd.f32 %v3327_v26, %v6327_v19  ;;  %v6405_v25 = vpop.f32.mrf.mxu1  ;;  %v1842_v26 = vmul.f32 %v4272_v43, %v1816_v58  ;;  %p4356_p2 = pnand %p4355_p1, %p4518_p4  ;;  %p4361_p7 = por %p4360_p6, %p4359_p5 }
 0x354   : > { %p4357_p3 = pneg %p4356_p2 }
 0x355   : > { %v1992_v18 = vpop.permute.xlu1 %1991  ;;  %3965 = vmatmul.msk.f32.gmra.mxu1 %vm3608_vm0, %v4269_v15 }
 0x356   : > { %v2030_v32 = vmul.f32 %v4264_v20, %v1992_v18  ;;  %3524 = vmatmul.f32.gmra.mxu3 %v1936_v33  ;;  %v3277_v16 = vpop.f32.mrf.mxu3  ;;  %v4273_v33 = vld [vmem:[%s4570_s11 + $0x38] sm:$0xff]  ;;  %p4362_p9 = pnand %p4361_p7, %p4357_p3 }
 0x357   : > { %3459 = vmatmul.f32.gmra.mxu2 %v1840_v63  ;;  %v3278_v19 = vadd.f32 %v3277_v16, %v3213_v59  ;;  %v2004_v7 = vpop.permute.xlu2 %2003  ;;  %v6919_v59 = vld [vmem:[#allocation82_spill] sm:$0xff] }
 0x358   : > { %3583 = vmatmul.f32.gmra.mxu0 %v2030_v32  ;;  %v2033_v15 = vmul.f32 %v4270_v27, %v2004_v7  ;;  %v2696_v32 = vadd.f32 %v6919_v59, %v6918_v54 }
 0x359   : > { %v3330_v57 = vpop.f32.mrf.mxu0 }
 0x35a   : > { %v6412_v55 = vadd.f32 %v3330_v57, %v6347_v1  ;;  %v6414_v50 = vpop.f32.mrf.mxu1 }
 0x35d   : > { %v1996_v61 = vpop.permute.xlu1 %1995  ;;  %3966 = vmatmul.msk.f32.gmra.mxu1 %vm3608_vm0, %v4271_v21  ;;  %v2008_v21 = vpop.permute.xlu0 %2007 }
 0x35e   : > { %v2031_v20 = vmul.f32 %v4266_v29, %v1996_v61  ;;  %v2761_v61 = vadd.f32 %v6920_v0, %v2696_v32  ;;  %v3215_v32 = vpop.f32.mrf.mxu2 }
 0x35f   : > { %3462 = vmatmul.f32.gmra.mxu2 %v1841_v14 }
 0x360   : > { %3586 = vmatmul.f32.gmra.mxu0 %v2031_v20  ;;  %v1916_v14 = vpop.permute.xlu2 %1915  ;;  %v6921_v20 = vld [vmem:[#allocation108_spill] sm:$0xff] }
 0x361   : > { %v3333_v51 = vpop.f32.mrf.mxu0  ;;  %v1939_v7 = vmul.f32 %v6244_v31, %v1916_v14 }
 0x362   : > { %v6420_v38 = vadd.f32 %v3333_v51, %v6366_v36  ;;  %v6422_v1 = vpop.f32.mrf.mxu1  ;;  %v6922_v51 = vld [vmem:[#allocation122_spill] sm:$0xff] }
 0x365   : > { %3967 = vmatmul.msk.f32.gmra.mxu1 %vm3608_vm0, %v4273_v33  ;;  %v4274_v33 = vld [vmem:[%s4570_s11 + $0x48] sm:$0xff] }
 0x366   : > { %v1908_v13 = vpop.permute.xlu1 %1907 }
 0x367   : > { %v1937_v63 = vmul.f32 %v4270_v27, %v1908_v13  ;;  %3465 = vmatmul.f32.gmra.mxu2 %v1842_v26  ;;  %v6923_v13 = vld [vmem:[#allocation142_spill] sm:$0xff] }
 0x368   : > { %3589 = vmatmul.f32.gmra.mxu0 %v2032_v44  ;;  %v2034_v44 = vmul.f32 %v4272_v43, %v2008_v21 }
 0x369   : > { %v3336_v29 = vpop.f32.mrf.mxu0  ;;  %3527 = vmatmul.f32.gmra.mxu3 %v1937_v63 }
 0x36a   : > { %v6428_v52 = vadd.f32 %v3336_v29, %v6385_v23  ;;  %v3389_v36 = vpop.f32.mrf.mxu1 }
 0x36b   : > { %v6431_v18 = vadd.f32 %v3389_v36, %v6390_v30  ;;  %v2826_v30 = vadd.f32 %v6921_v20, %v2761_v61  ;;  %v1924_v20 = vpop.permute.xlu0 %1923 }
 0x36d   : > { %3968 = vmatmul.msk.f32.gmra.mxu1 %vm3608_vm0, %v6147_v42  ;;  %v2891_v26 = vadd.f32 %v6922_v51, %v2826_v30 }
 0x36e   : > { %v1912_v16 = vpop.permute.xlu1 %1911 }
 0x36f   : > { %v1938_v57 = vmul.f32 %v4272_v43, %v1912_v16  ;;  %v2956_v63 = vadd.f32 %v6923_v13, %v2891_v26  ;;  %v6924_v26 = vld [vmem:[#allocation36_spill] sm:$0xff] }
 0x370   : > { %3592 = vmatmul.f32.gmra.mxu0 %v2033_v15 }
 0x371   : > { %v3339_v23 = vpop.f32.mrf.mxu0  ;;  %3530 = vmatmul.f32.gmra.mxu3 %v1938_v57  ;;  %v3021_v36 = vadd.f32 %v6134_v48, %v2956_v63  ;;  %v3280_v48 = vpop.f32.mrf.mxu3  ;;  %v6926_v63 = vld [vmem:[#allocation39_spill] sm:$0xff] }
 0x372   : > { %v6440_v27 = vadd.f32 %v3339_v23, %v6401_v39  ;;  %v3392_v58 = vpop.f32.mrf.mxu1 }
 0x373   : > { %v6442_v42 = vadd.f32 %v3392_v58, %v3328_v40  ;;  %v1920_v40 = vpop.permute.xlu2 %1919  ;;  %v3086_v54 = vadd.f32 %v6205_v56, %v3021_v36  ;;  %v4275_v58 = vld [vmem:[%s4570_s11 + $0x58] sm:$0xff] }
 0x374   : > { %v1940_v14 = vmul.f32 %v6269_v46, %v1920_v40 }
 0x375   : > { %3969 = vmatmul.msk.f32.gmra.mxu1 %vm3608_vm0, %v4274_v33  ;;  %v3151_v57 = vadd.f32 %v6293_v11, %v3086_v54 }
 0x377   : > { %v1820_v29 = vpop.permute.xlu1 %1819  ;;  %v3216_v0 = vadd.f32 %v3215_v32, %v3151_v57  ;;  %v4276_v57 = vld [vmem:[%s4570_s11 + $0x60] sm:$0xff] }
 0x378   : > { %v1843_v15 = vmul.f32 %v6244_v31, %v1820_v29  ;;  %3595 = vmatmul.f32.gmra.mxu0 %v2034_v44  ;;  %v6925_v44 = vld [vmem:[#allocation27_spill] sm:$0xff] }
 0x379   : > { %v3342_v39 = vpop.f32.mrf.mxu0  ;;  %3533 = vmatmul.f32.gmra.mxu3 %v1939_v7  ;;  %v3281_v56 = vadd.f32 %v3280_v48, %v3216_v0  ;;  %v2651_v33 = vadd.f32 %v6925_v44, %v6924_v26  ;;  %v3430_v7 = vpop.f32.mrf.mxu2  ;;  %v6929_v48 = vld [vmem:[#allocation86_spill] sm:$0xff] }
 0x37a   : > { %v6452_v59 = vadd.f32 %v3342_v39, %v3278_v19  ;;  %v3395_v43 = vpop.f32.mrf.mxu1  ;;  %3468 = vmatmul.f32.gmra.mxu2 %v1843_v15  ;;  %v6927_v15 = vld [vmem:[#allocation53_spill] sm:$0xff]  ;;  %v4277_v44 = vld [vmem:[%s4570_s11 + $0x68] sm:$0xff]  ;;  %s3803_s11 = sshll.u32 %s6560_s27, 4  ;;  %s3804_s11 = int_to_ptr.vmem [resolvable:$true] %s3803_s11 }
 0x37b   : > { %v6455_v16 = vadd.f32 %v3395_v43, %v6412_v55  ;;  %v1828_v30 = vpop.permute.xlu2 %1827  ;;  %v2716_v29 = vadd.f32 %v6926_v63, %v2651_v33  ;;  %v6928_v43 = vld [vmem:[#allocation66_spill] sm:$0xff]  ;;  %v6935_v63 = vld [vmem:[#allocation125_spill] sm:$0xff] }
 0x37c   : > { %v1845_v51 = vmul.f32 %v6296_v41, %v1828_v30 }
 0x37d   : > { %3970 = vmatmul.msk.f32.gmra.mxu1 %vm3608_vm0, %v6182_v34  ;;  %v1941_v34 = vmul.f32 %v6296_v41, %v1924_v20  ;;  %v2781_v39 = vadd.f32 %v6927_v15, %v2716_v29 }
 0x37f   : > { %v1824_v61 = vpop.permute.xlu1 %1823  ;;  %v2846_v32 = vadd.f32 %v6928_v43, %v2781_v39 }
 0x380   : > { %v1844_v19 = vmul.f32 %v6269_v46, %v1824_v61 }
 0x381   : > { %v3345_v23 = vpop.f32.mrf.mxu0  ;;  %3536 = vmatmul.f32.gmra.mxu3 %v1940_v14  ;;  %v2911_v14 = vadd.f32 %v6929_v48, %v2846_v32 }
 0x382   : > { %v6462_v21 = vadd.f32 %v3345_v23, %v3281_v56  ;;  %v3398_v55 = vpop.f32.mrf.mxu1  ;;  %3471 = vmatmul.f32.gmra.mxu2 %v1844_v19  ;;  %v3495_v56 = vpop.f32.mrf.mxu3 }
 0x383   : > { %v6465_v11 = vadd.f32 %v3398_v55, %v6420_v38  ;;  %v6485_v23 = vpop.f32.mrf.mxu2  ;;  %v6931_v55 = vld [vmem:[#allocation112_spill] sm:$0xff] }
 0x385   : > { %3971 = vmatmul.msk.f32.gmra.mxu1 %vm3608_vm0, %v4275_v58  ;;  %v2020_v58 = vpop.permute.xlu2 %2019 }
 0x388   : > { %v2012_v13 = vpop.permute.xlu1 %2011 }
 0x389   : > { %v2035_v36 = vmul.f32 %v6244_v31, %v2012_v13  ;;  %3539 = vmatmul.f32.gmra.mxu3 %v1941_v34  ;;  %v3560_v54 = vpop.f32.mrf.mxu0  ;;  %v6930_v31 = vld [vmem:[#allocation98_spill] sm:$0xff]  ;;  %v6932_v34 = vld [vmem:[#allocation40_spill] sm:$0xff]  ;;  %v6934_v13 = vld [vmem:[#allocation43_spill] sm:$0xff] }
 0x38a   : > { %v3401_v38 = vpop.f32.mrf.mxu1  ;;  %3474 = vmatmul.f32.gmra.mxu2 %v1845_v51  ;;  %v2976_v61 = vadd.f32 %v6930_v31, %v2911_v14  ;;  %v6933_v51 = vld [vmem:[#allocation30_spill] sm:$0xff]  ;;  %v3498_v43 = vpop.f32.mrf.mxu3  ;;  %v6939_v14 = vld [vmem:[#allocation151_spill] sm:$0xff] }
 0x38b   : > { %v6477_v40 = vadd.f32 %v3401_v38, %v6428_v52  ;;  %3598 = vmatmul.f32.gmra.mxu0 %v2035_v36  ;;  %v2654_v26 = vadd.f32 %v6933_v51, %v6932_v34  ;;  %v2037_v36 = vmul.f32 %v6296_v41, %v2020_v58  ;;  %v6936_v38 = vld [vmem:[#allocation57_spill] sm:$0xff]  ;;  %v6942_v41 = vld [vmem:[#allocation90_spill] sm:$0xff]  ;;  %v6943_v58 = vld [vmem:[#allocation47_spill] sm:$0xff] }
 0x38c   : > { %v3041_v20 = vadd.f32 %v6931_v55, %v2976_v61  ;;  %v6507_v61 = vpop.f32.mrf.mxu2  ;;  %v6944_v51 = vld [vmem:[#allocation102_spill] sm:$0xff] }
 0x38d   : > { %3972 = vmatmul.msk.f32.gmra.mxu1 %vm3608_vm0, %v4276_v57  ;;  %v6938_v57 = vld [vmem:[#allocation69_spill] sm:$0xff] }
 0x38e   : > { %v3106_v29 = vadd.f32 %v6935_v63, %v3041_v20  ;;  %v6946_v63 = vld [vmem:[#allocation116_spill] sm:$0xff] }
 0x390   : > { %v2016_v0 = vpop.permute.xlu1 %2015 }
 0x391   : > { %v2036_v19 = vmul.f32 %v6269_v46, %v2016_v0  ;;  %v6495_v33 = vpop.f32.mrf.mxu0  ;;  %v2719_v46 = vadd.f32 %v6934_v13, %v2654_v26 }
 0x392   : > { %v3404_v52 = vpop.f32.mrf.mxu1 }
 0x393   : > { %v6489_v30 = vadd.f32 %v3404_v52, %v6440_v27  ;;  %3601 = vmatmul.f32.gmra.mxu0 %v2036_v19  ;;  %v2784_v15 = vadd.f32 %v6936_v38, %v2719_v46  ;;  %v6937_v27 = vld [vmem:[#allocation145_spill] sm:$0xff]  ;;  %v6940_v19 = vld [vmem:[#allocation44_spill] sm:$0xff] }
 0x394   : > { %v3171_v39 = vadd.f32 %v6937_v27, %v3106_v29  ;;  %v6941_v52 = vld [vmem:[#allocation33_spill] sm:$0xff]  ;;  %v6947_v38 = vld [vmem:[#allocation48_spill] sm:$0xff] }
 0x395   : > { %3973 = vmatmul.msk.f32.gmra.mxu1 %vm3608_vm0, %v4277_v44  ;;  %v2849_v48 = vadd.f32 %v6938_v57, %v2784_v15  ;;  %v2657_v55 = vadd.f32 %v6941_v52, %v6940_v19  ;;  %v6948_v15 = vld [vmem:[#allocation37_spill] sm:$0xff]  ;;  %v3501_v19 = vpop.f32.mrf.mxu3  ;;  %v6951_v52 = vld [vmem:[#allocation51_spill] sm:$0xff] }
 0x396   : > { %v3236_v0 = vadd.f32 %v6939_v14, %v3171_v39  ;;  %v2660_v27 = vadd.f32 %v6948_v15, %v6947_v38  ;;  %v6950_v57 = vld [vmem:[#allocation129_spill] sm:$0xff]  ;;  %v6958_v15 = vld [vmem:[#allocation52_spill] sm:$0xff] }
 0x397   : > { %v2914_v20 = vadd.f32 %v6942_v41, %v2849_v48  ;;  %v2722_v34 = vadd.f32 %v6943_v58, %v2657_v55  ;;  %v6952_v41 = vld [vmem:[#allocation94_spill] sm:$0xff] }
 0x398   : > { %v3301_v44 = vadd.f32 %v6224_v8, %v3236_v0  ;;  %v6529_v0 = vpop.f32.mrf.mxu2  ;;  %v2725_v55 = vadd.f32 %v6951_v52, %v2660_v27  ;;  %v6959_v27 = vld [vmem:[#allocation41_spill] sm:$0xff] }
 0x399   : > { %v2979_v26 = vadd.f32 %v6944_v51, %v2914_v20  ;;  %v6517_v13 = vpop.f32.mrf.mxu0  ;;  %v6953_v20 = vld [vmem:[#allocation147_spill] sm:$0xff] }
 0x39a   : > { %v3407_v32 = vpop.f32.mrf.mxu1 }
 0x39b   : > { %v6505_v31 = vadd.f32 %v3407_v32, %v6452_v59  ;;  %3604 = vmatmul.f32.gmra.mxu0 %v2037_v36  ;;  %v6945_v59 = vld [vmem:[#allocation59_spill] sm:$0xff]  ;;  %v3044_v29 = vadd.f32 %v6946_v63, %v2979_v26  ;;  %v3366_v36 = vadd.f32 %v6315_v53, %v3301_v44 }
 0x39c   : > { %v2787_v46 = vadd.f32 %v6945_v59, %v2722_v34  ;;  %v6954_v34 = vld [vmem:[#allocation62_spill] sm:$0xff]  ;;  %v6956_v59 = vld [vmem:[#allocation76_spill] sm:$0xff]  ;;  %v6957_v63 = vld [vmem:[#allocation119_spill] sm:$0xff] }
 0x39d   : > { %3974 = vmatmul.msk.f32.gmra.mxu1 %vm3608_vm0, %v6278_v2  ;;  %v6949_v2 = vld [vmem:[#allocation73_spill] sm:$0xff]  ;;  %v3109_v48 = vadd.f32 %v6950_v57, %v3044_v29  ;;  %v3431_v14 = vadd.f32 %v3430_v7, %v3366_v36  ;;  %v2790_v51 = vadd.f32 %v6954_v34, %v2725_v55  ;;  %v6955_v7 = vld [vmem:[#allocation106_spill] sm:$0xff]  ;;  %v6962_v55 = vld [vmem:[#allocation55_spill] sm:$0xff] }
 0x39e   : > { %v2852_v32 = vadd.f32 %v6949_v2, %v2787_v46  ;;  %v6965_v34 = vld [vmem:[#allocation25_spill] sm:$0xff] }
 0x39f   : > { %v3174_v58 = vadd.f32 %v6953_v20, %v3109_v48  ;;  %v2855_v46 = vadd.f32 %v6956_v59, %v2790_v51  ;;  %v6961_v48 = vld [vmem:[#allocation132_spill] sm:$0xff] }
 0x3a0   : > { %v2917_v53 = vadd.f32 %v6952_v41, %v2852_v32  ;;  %v6960_v32 = vld [vmem:[#allocation97_spill] sm:$0xff] }
 0x3a1   : > { %v3239_v44 = vadd.f32 %v6169_v49, %v3174_v58  ;;  %v2920_v57 = vadd.f32 %v6960_v32, %v2855_v46 }
 0x3a2   : > { %v3410_v39 = vpop.f32.mrf.mxu1  ;;  %v2982_v26 = vadd.f32 %v6955_v7, %v2917_v53  ;;  %v6964_v53 = vld [vmem:[#allocation149_spill] sm:$0xff]  ;;  %v3442_v7 = vpop.f32.mrf.mxu2 }
 0x3a3   : > { %v6527_v8 = vadd.f32 %v3410_v39, %v6462_v21  ;;  %v3496_v21 = vadd.f32 %v3495_v56, %v3431_v14  ;;  %v3304_v36 = vadd.f32 %v6238_v62, %v3239_v44  ;;  %v6547_v39 = vpop.f32.mrf.mxu0  ;;  %v3504_v14 = vpop.f32.mrf.mxu3  ;;  %v6963_v62 = vld [vmem:[#allocation110_spill] sm:$0xff] }
 0x3a4   : > { %v3047_v29 = vadd.f32 %v6957_v63, %v2982_v26  ;;  %v6966_v26 = vld [vmem:[#allocation67_spill] sm:$0xff]  ;;  %v6968_v63 = vld [vmem:[#allocation80_spill] sm:$0xff] }
 0x3a5   : > { %3975 = vmatmul.msk.f32.gmra.mxu1 %vm3608_vm0, %v6257_v45  ;;  %v3561_v38 = vadd.f32 %v3560_v54, %v3496_v21  ;;  %v2663_v45 = vadd.f32 %v6959_v27, %v6958_v15  ;;  %v3369_v56 = vadd.f32 %v6335_v4, %v3304_v36  ;;  %v2985_v54 = vadd.f32 %v6963_v62, %v2920_v57  ;;  %v6967_v21 = vld [vmem:[#allocation123_spill] sm:$0xff]  ;;  %v6969_v36 = vld [vmem:[#allocation134_spill] sm:$0xff]  ;;  %v6970_v27 = vld [vmem:[#allocation56_spill] sm:$0xff] }
 0x3a6   : > { %v3112_v49 = vadd.f32 %v6961_v48, %v3047_v29  ;;  %v6972_v57 = vld [vmem:[#allocation101_spill] sm:$0xff]  ;;  %v6975_v62 = vld [vmem:[#allocation114_spill] sm:$0xff] }
 0x3a7   : > { %v2728_v41 = vadd.f32 %v6962_v55, %v2663_v45  ;;  %v3434_v58 = vadd.f32 %v6485_v23, %v3369_v56  ;;  %v3050_v59 = vadd.f32 %v6967_v21, %v2985_v54  ;;  %v6971_v45 = vld [vmem:[#allocation45_spill] sm:$0xff] }
 0x3a8   : > { %v3177_v20 = vadd.f32 %v6964_v53, %v3112_v49 }
 0x3a9   : > { %v2793_v44 = vadd.f32 %v6966_v26, %v2728_v41  ;;  %v3499_v4 = vadd.f32 %v3498_v43, %v3434_v58  ;;  %v6973_v43 = vld [vmem:[#allocation150_spill] sm:$0xff]  ;;  %v6978_v26 = vld [vmem:[#allocation127_spill] sm:$0xff] }
 0x3aa   : > { %v3658_v2 = vpop.f32.mrf.mxu1  ;;  %v3242_v46 = vadd.f32 %v6189_v35, %v3177_v20  ;;  %v6976_v20 = vld [vmem:[#allocation28_spill] sm:$0xff] }
 0x3ab   : > { %v3659_v52 = vadd.f32 %v3658_v2, %v3561_v38  ;;  %v2858_v29 = vadd.f32 %v6968_v63, %v2793_v44  ;;  %v3115_v38 = vadd.f32 %v6969_v36, %v3050_v59  ;;  %v3564_v15 = vadd.f32 %v6495_v33, %v3499_v4  ;;  %v3572_v41 = vpop.f32.mrf.mxu0  ;;  %v3507_v53 = vpop.f32.mrf.mxu3  ;;  %v6980_v63 = vld [vmem:[#allocation138_spill] sm:$0xff]  ;;  %v6981_v36 = vld [vmem:[#allocation60_spill] sm:$0xff] }
 0x3ac   : > { %v3307_v23 = vadd.f32 %v6264_v60, %v3242_v46  ;;  %v2666_v2 = vadd.f32 %v6971_v45, %v6970_v27  ;;  %v3445_v59 = vpop.f32.mrf.mxu2  ;;  %v6979_v46 = vld [vmem:[#allocation83_spill] sm:$0xff]  ;;  %v6983_v27 = vld [vmem:[#allocation105_spill] sm:$0xff] }
 0x3ad   : > { %v3722_v51 = vadd.f32 %v3659_v52, %v6965_v34  ;;  %v2923_v35 = vadd.f32 %v6972_v57, %v2858_v29  ;;  %v3180_v48 = vadd.f32 %v6973_v43, %v3115_v38  ;;  %v6974_v52 = vld [vmem:[#allocation58_spill] sm:$0xff]  ;;  %v6982_v38 = vld [vmem:[#allocation49_spill] sm:$0xff] }
 0x3ae   : > { %v3372_v49 = vadd.f32 %v6354_v5, %v3307_v23  ;;  %v2731_v55 = vadd.f32 %v6974_v52, %v2666_v2  ;;  %v6977_v34 = vld [vmem:[#allocation70_spill] sm:$0xff]  ;;  %v2669_v23 = vadd.f32 %v6982_v38, %v6981_v36  ;;  %v6984_v2 = vld [vmem:[#allocation152_spill] sm:$0xff]  ;;  %v6985_v57 = vld [vmem:[#allocation61_spill] sm:$0xff] }
 0x3af   : > { %3773 = vst [vmem:[%s6560_s27] sm:$0xff] %v3722_v51  ;;  %v2988_v54 = vadd.f32 %v6975_v62, %v2923_v35  ;;  %v3245_v60 = vadd.f32 %v6203_v9, %v3180_v48  ;;  %v6986_v43 = vld [vmem:[#allocation117_spill] sm:$0xff]  ;;  %v6988_v52 = vld [vmem:[#allocation74_spill] sm:$0xff] }
 0x3b0   : > { %v3437_v33 = vadd.f32 %v6507_v61, %v3372_v49  ;;  %v2796_v51 = vadd.f32 %v6977_v34, %v2731_v55  ;;  %v2734_v35 = vadd.f32 %v6985_v57, %v2669_v23  ;;  %v6987_v49 = vld [vmem:[#allocation31_spill] sm:$0xff]  ;;  %v6989_v62 = vld [vmem:[#allocation130_spill] sm:$0xff]  ;;  %v6991_v34 = vld [vmem:[#allocation141_spill] sm:$0xff] }
 0x3b1   : > { %v3053_v44 = vadd.f32 %v6978_v26, %v2988_v54  ;;  %v3310_v21 = vadd.f32 %v6289_v37, %v3245_v60  ;;  %v6996_v36 = vld [vmem:[#allocation65_spill] sm:$0xff] }
 0x3b2   : > { %v3661_v32 = vpop.f32.mrf.mxu1  ;;  %v3502_v5 = vadd.f32 %v3501_v19, %v3437_v33  ;;  %v2861_v4 = vadd.f32 %v6979_v46, %v2796_v51  ;;  %v2799_v55 = vadd.f32 %v6988_v52, %v2734_v35  ;;  %v6997_v23 = vld [vmem:[#allocation121_spill] sm:$0xff] }
 0x3b3   : > { %v3662_v56 = vadd.f32 %v3661_v32, %v3564_v15  ;;  %v3118_v29 = vadd.f32 %v6980_v63, %v3053_v44  ;;  %v3375_v9 = vadd.f32 %v6373_v10, %v3310_v21  ;;  %v6992_v44 = vld [vmem:[#allocation63_spill] sm:$0xff]  ;;  %v6993_v21 = vld [vmem:[#allocation54_spill] sm:$0xff]  ;;  %v6994_v63 = vld [vmem:[#allocation109_spill] sm:$0xff] }
 0x3b4   : > { %v3567_v61 = vadd.f32 %v6517_v13, %v3502_v5  ;;  %v2926_v45 = vadd.f32 %v6983_v27, %v2861_v4  ;;  %v2672_v5 = vadd.f32 %v6993_v21, %v6992_v44  ;;  %v3448_v46 = vpop.f32.mrf.mxu2  ;;  %v6998_v27 = vld [vmem:[#allocation34_spill] sm:$0xff] }
 0x3b5   : > { %v3723_v58 = vadd.f32 %v3662_v56, %v6976_v20  ;;  %v3183_v37 = vadd.f32 %v6984_v2, %v3118_v29  ;;  %v3440_v19 = vadd.f32 %v6529_v0, %v3375_v9  ;;  %v3575_v56 = vpop.f32.mrf.mxu0  ;;  %v3510_v20 = vpop.f32.mrf.mxu3  ;;  %v6990_v0 = vld [vmem:[#allocation87_spill] sm:$0xff] }
 0x3b6   : > { %v2991_v48 = vadd.f32 %v6986_v43, %v2926_v45  ;;  %v2737_v38 = vadd.f32 %v6996_v36, %v2672_v5  ;;  %v6999_v45 = vld [vmem:[#allocation78_spill] sm:$0xff] }
 0x3b7   : > { %3774 = vst [vmem:[%s6560_s27 + $0x8] sm:$0xff] %v3723_v58  ;;  %v3248_v10 = vadd.f32 %v6220_v17, %v3183_v37  ;;  %v3505_v33 = vadd.f32 %v3504_v14, %v3440_v19  ;;  %v2864_v58 = vadd.f32 %v6990_v0, %v2799_v55  ;;  %v7000_v37 = vld [vmem:[#allocation133_spill] sm:$0xff] }
 0x3b8   : > { %v3056_v54 = vadd.f32 %v6989_v62, %v2991_v48  ;;  %v2802_v2 = vadd.f32 %v6999_v45, %v2737_v38  ;;  %v7003_v55 = vld [vmem:[#allocation113_spill] sm:$0xff]  ;;  %v7010_v38 = vld [vmem:[#allocation19_spill] sm:$0xff] }
 0x3b9   : > { %v3313_v60 = vadd.f32 %v6311_v47, %v3248_v10  ;;  %v3570_v17 = vadd.f32 %v6547_v39, %v3505_v33  ;;  %v2929_v29 = vadd.f32 %v6994_v63, %v2864_v58  ;;  %v6995_v47 = vld [vmem:[#allocation153_spill] sm:$0xff]  ;;  %v7002_v10 = vld [vmem:[#allocation146_spill] sm:$0xff] }
 0x3ba   : > { %v3664_v15 = vpop.f32.mrf.mxu1  ;;  %v3121_v51 = vadd.f32 %v6991_v34, %v3056_v54  ;;  %v7005_v58 = vld [vmem:[#allocation18_spill] sm:$0xff] }
 0x3bb   : > { %v3665_v32 = vadd.f32 %v3664_v15, %v3567_v61  ;;  %v3378_v26 = vadd.f32 %v6392_v24, %v3313_v60  ;;  %v2994_v15 = vadd.f32 %v6997_v23, %v2929_v29 }
 0x3bc   : > { %v3186_v14 = vadd.f32 %v6995_v47, %v3121_v51  ;;  %v7006_v51 = vld [vmem:[#allocation38_spill] sm:$0xff] }
 0x3bd   : > { %v3724_v13 = vadd.f32 %v3665_v32, %v6987_v49  ;;  %v3443_v9 = vadd.f32 %v3442_v7, %v3378_v26  ;;  %v3059_v19 = vadd.f32 %v7000_v37, %v2994_v15  ;;  %v3513_v35 = vpop.f32.mrf.mxu3  ;;  %v3578_v43 = vpop.f32.mrf.mxu0  ;;  %v7001_v7 = vld [vmem:[#allocation91_spill] sm:$0xff]  ;;  %v7009_v47 = vld [vmem:[#allocation154_spill] sm:$0xff] }
 0x3be   : > { %v3251_v24 = vadd.f32 %v6235_v12, %v3186_v14  ;;  %v2867_v48 = vadd.f32 %v7001_v7, %v2802_v2 }
 0x3bf   : > { %3775 = vst [vmem:[%s6560_s27 + $0x10] sm:$0xff] %v3724_v13  ;;  %v3508_v57 = vadd.f32 %v3507_v53, %v3443_v9  ;;  %v3124_v49 = vadd.f32 %v7002_v10, %v3059_v19  ;;  %v7004_v53 = vld [vmem:[#allocation126_spill] sm:$0xff] }
 0x3c0   : > { %v3316_v32 = vadd.f32 %v6330_v22, %v3251_v24  ;;  %v2932_v62 = vadd.f32 %v7003_v55, %v2867_v48  ;;  %v3451_v22 = vpop.f32.mrf.mxu2  ;;  %v7012_v19 = vld [vmem:[#allocation46_spill] sm:$0xff] }
 0x3c1   : > { %v3573_v12 = vadd.f32 %v3572_v41, %v3508_v57  ;;  %v3189_v54 = vadd.f32 %v6212_v3, %v3124_v49  ;;  %v7008_v41 = vld [vmem:[#allocation148_spill] sm:$0xff] }
 0x3c2   : > { %v3667_v4 = vpop.f32.mrf.mxu1  ;;  %v3381_v13 = vadd.f32 %v6405_v25, %v3316_v32  ;;  %v2997_v0 = vadd.f32 %v7004_v53, %v2932_v62 }
 0x3c3   : > { %v3668_v61 = vadd.f32 %v3667_v4, %v3570_v17  ;;  %v3254_v34 = vadd.f32 %v7005_v58, %v3189_v54  ;;  %v7007_v17 = vld [vmem:[#allocation137_spill] sm:$0xff] }
 0x3c4   : > { %v3446_v60 = vadd.f32 %v3445_v59, %v3381_v13  ;;  %v3062_v44 = vadd.f32 %v7007_v17, %v2997_v0  ;;  %v7015_v17 = vld [vmem:[#allocation14_spill] sm:$0xff] }
 0x3c5   : > { %v3725_v39 = vadd.f32 %v3668_v61, %v6998_v27  ;;  %v3319_v21 = vadd.f32 %v6349_v28, %v3254_v34  ;;  %v3516_v4 = vpop.f32.mrf.mxu3  ;;  %v3581_v63 = vpop.f32.mrf.mxu0 }
 0x3c6   : > { %v3511_v25 = vadd.f32 %v3510_v20, %v3446_v60  ;;  %v3127_v5 = vadd.f32 %v7008_v41, %v3062_v44  ;;  %v7011_v20 = vld [vmem:[#allocation42_spill] sm:$0xff]  ;;  %v7014_v60 = vld [vmem:[#allocation13_spill] sm:$0xff] }
 0x3c7   : > { %3776 = vst [vmem:[%s6560_s27 + $0x18] sm:$0xff] %v3725_v39  ;;  %v3384_v3 = vadd.f32 %v6414_v50, %v3319_v21 }
 0x3c8   : > { %v3576_v59 = vadd.f32 %v3575_v56, %v3511_v25  ;;  %v3192_v14 = vadd.f32 %v7009_v47, %v3127_v5 }
 0x3c9   : > { %v3449_v9 = vadd.f32 %v3448_v46, %v3384_v3 }
 0x3ca   : > { %v3670_v52 = vpop.f32.mrf.mxu1  ;;  %v3454_v36 = vpop.f32.mrf.mxu2  ;;  %v3257_v23 = vadd.f32 %v7010_v38, %v3192_v14 }
 0x3cb   : > { %v3671_v33 = vadd.f32 %v3670_v52, %v3573_v12  ;;  %v3514_v28 = vadd.f32 %v3513_v35, %v3449_v9  ;;  %v3455_v48 = vadd.f32 %v3454_v36, %v6431_v18 }
 0x3cc   : > { %v3322_v24 = vadd.f32 %v6368_v6, %v3257_v23 }
 0x3cd   : > { %v3726_v26 = vadd.f32 %v3671_v33, %v7006_v51  ;;  %v3579_v56 = vadd.f32 %v3578_v43, %v3514_v28  ;;  %v3519_v27 = vpop.f32.mrf.mxu3  ;;  %v7013_v43 = vld [vmem:[#allocation50_spill] sm:$0xff] }
 0x3ce   : > { %v3387_v50 = vadd.f32 %v6422_v1, %v3322_v24  ;;  %v3520_v13 = vadd.f32 %v3519_v27, %v3455_v48  ;;  %v7019_v48 = vld [vmem:[#allocation20_spill] sm:$0xff] }
 0x3cf   : > { %3777 = vst [vmem:[%s6560_s27 + $0x20] sm:$0xff] %v3726_v26 }
 0x3d0   : > { %v3452_v2 = vadd.f32 %v3451_v22, %v3387_v50 }
 0x3d2   : > { %v3673_v29 = vpop.f32.mrf.mxu1  ;;  %v3517_v37 = vadd.f32 %v3516_v4, %v3452_v2  ;;  %v3457_v57 = vpop.f32.mrf.mxu2 }
 0x3d3   : > { %v3674_v61 = vadd.f32 %v3673_v29, %v3576_v59  ;;  %v3458_v62 = vadd.f32 %v3457_v57, %v6442_v42  ;;  %v7016_v29 = vld [vmem:[#allocation15_spill] sm:$0xff] }
 0x3d4   : > { %v3582_v35 = vadd.f32 %v3581_v63, %v3517_v37 }
 0x3d5   : > { %v3727_v15 = vadd.f32 %v3674_v61, %v7011_v20  ;;  %v3584_v39 = vpop.f32.mrf.mxu0  ;;  %v3522_v10 = vpop.f32.mrf.mxu3  ;;  %v7017_v20 = vld [vmem:[#allocation16_spill] sm:$0xff] }
 0x3d6   : > { %v3585_v52 = vadd.f32 %v3584_v39, %v3520_v13  ;;  %v3523_v18 = vadd.f32 %v3522_v10, %v3458_v62 }
 0x3d7   : > { %3778 = vst [vmem:[%s6560_s27 + $0x28] sm:$0xff] %v3727_v15 }
 0x3da   : > { %v3676_v45 = vpop.f32.mrf.mxu1  ;;  %v3460_v12 = vpop.f32.mrf.mxu2 }
 0x3db   : > { %v3677_v46 = vadd.f32 %v3676_v45, %v3579_v56  ;;  %v3461_v51 = vadd.f32 %v3460_v12, %v6455_v16  ;;  %v7018_v45 = vld [vmem:[#allocation17_spill] sm:$0xff] }
 0x3dd   : > { %v3728_v32 = vadd.f32 %v3677_v46, %v7012_v19  ;;  %v3587_v1 = vpop.f32.mrf.mxu0  ;;  %v3525_v22 = vpop.f32.mrf.mxu3 }
 0x3de   : > { %v3588_v0 = vadd.f32 %v3587_v1, %v3523_v18  ;;  %v3526_v25 = vadd.f32 %v3525_v22, %v3461_v51 }
 0x3df   : > { %3779 = vst [vmem:[%s6560_s27 + $0x30] sm:$0xff] %v3728_v32 }
 0x3e2   : > { %v3679_v7 = vpop.f32.mrf.mxu1  ;;  %v3463_v58 = vpop.f32.mrf.mxu2 }
 0x3e3   : > { %v3680_v6 = vadd.f32 %v3679_v7, %v3582_v35  ;;  %v3464_v3 = vadd.f32 %v3463_v58, %v6465_v11 }
 0x3e5   : > { %v3729_v49 = vadd.f32 %v3680_v6, %v7013_v43  ;;  %v3590_v53 = vpop.f32.mrf.mxu0 }
 0x3e6   : > { %v3591_v41 = vadd.f32 %v3590_v53, %v3526_v25 }
 0x3e7   : > { %3780 = vst [vmem:[%s6560_s27 + $0x38] sm:$0xff] %v3729_v49 }
 0x3ea   : > { %v3682_v55 = vpop.f32.mrf.mxu1  ;;  %v3466_v4 = vpop.f32.mrf.mxu2 }
 0x3eb   : > { %v3683_v54 = vadd.f32 %v3682_v55, %v3585_v52  ;;  %v3467_v36 = vadd.f32 %v3466_v4, %v6477_v40  ;;  %v7020_v52 = vld [vmem:[#allocation22_spill] sm:$0xff] }
 0x3ec   : > { %v3528_v21 = vpop.f32.mrf.mxu3 }
 0x3ed   : > { %v3730_v33 = vadd.f32 %v3683_v54, %v7014_v60  ;;  %v3593_v42 = vpop.f32.mrf.mxu0  ;;  %v3529_v63 = vadd.f32 %v3528_v21, %v3464_v3 }
 0x3ef   : > { %3781 = vst [vmem:[%s6560_s27 + $0x40] sm:$0xff] %v3730_v33  ;;  %v3594_v16 = vadd.f32 %v3593_v42, %v3529_v63  ;;  %v7021_v33 = vld [vmem:[#allocation24_spill] sm:$0xff] }
 0x3f2   : > { %v3685_v34 = vpop.f32.mrf.mxu1 }
 0x3f3   : > { %v3686_v26 = vadd.f32 %v3685_v34, %v3588_v0 }
 0x3f4   : > { %v3531_v14 = vpop.f32.mrf.mxu3 }
 0x3f5   : > { %v3731_v44 = vadd.f32 %v3686_v26, %v7015_v17  ;;  %v3596_v9 = vpop.f32.mrf.mxu0  ;;  %v3532_v28 = vadd.f32 %v3531_v14, %v3467_v36 }
 0x3f7   : > { %3782 = vst [vmem:[%s6560_s27 + $0x48] sm:$0xff] %v3731_v44  ;;  %v3597_v24 = vadd.f32 %v3596_v9, %v3532_v28 }
 0x3fa   : > { %v3688_v5 = vpop.f32.mrf.mxu1 }
 0x3fb   : > { %v3689_v59 = vadd.f32 %v3688_v5, %v3591_v41 }
 0x3fc   : > { %v3534_v11 = vpop.f32.mrf.mxu3 }
 0x3fd   : > { %v3732_v47 = vadd.f32 %v3689_v59, %v7016_v29  ;;  %v3469_v23 = vpop.f32.mrf.mxu2 }
 0x3fe   : > { %v3470_v27 = vadd.f32 %v3469_v23, %v6489_v30 }
 0x3ff   : > { %3783 = vst [vmem:[%s6560_s27 + $0x50] sm:$0xff] %v3732_v47 }
 0x400   : > { %v3535_v37 = vadd.f32 %v3534_v11, %v3470_v27 }
 0x402   : > { %v3691_v61 = vpop.f32.mrf.mxu1 }
 0x403   : > { %v3692_v38 = vadd.f32 %v3691_v61, %v3594_v16 }
 0x404   : > { %v3537_v19 = vpop.f32.mrf.mxu3 }
 0x405   : > { %v3733_v15 = vadd.f32 %v3692_v38, %v7017_v20  ;;  %v3472_v46 = vpop.f32.mrf.mxu2 }
 0x406   : > { %v3473_v57 = vadd.f32 %v3472_v46, %v6505_v31 }
 0x407   : > { %3784 = vst [vmem:[%s6560_s27 + $0x58] sm:$0xff] %v3733_v15 }
 0x408   : > { %v3599_v50 = vpop.f32.mrf.mxu0  ;;  %v3538_v10 = vadd.f32 %v3537_v19, %v3473_v57 }
 0x409   : > { %v3600_v40 = vadd.f32 %v3599_v50, %v3535_v37 }
 0x40a   : > { %v3694_v56 = vpop.f32.mrf.mxu1 }
 0x40b   : > { %v3695_v39 = vadd.f32 %v3694_v56, %v3597_v24 }
 0x40c   : > { %v3540_v12 = vpop.f32.mrf.mxu3 }
 0x40d   : > { %v3734_v2 = vadd.f32 %v3695_v39, %v7018_v45  ;;  %v3475_v30 = vpop.f32.mrf.mxu2 }
 0x40e   : > { %v3476_v49 = vadd.f32 %v3475_v30, %v6527_v8 }
 0x40f   : > { %3785 = vst [vmem:[%s6560_s27 + $0x60] sm:$0xff] %v3734_v2 }
 0x410   : > { %v3602_v7 = vpop.f32.mrf.mxu0  ;;  %v3541_v62 = vadd.f32 %v3540_v12, %v3476_v49 }
 0x411   : > { %v3603_v1 = vadd.f32 %v3602_v7, %v3538_v10 }
 0x412   : > { %v3697_v32 = vpop.f32.mrf.mxu1 }
 0x413   : > { %v3698_v35 = vadd.f32 %v3697_v32, %v3600_v40 }
 0x415   : > { %v3735_v6 = vadd.f32 %v3698_v35, %v7019_v48 }
 0x417   : > { %3786 = vst [vmem:[%s6560_s27 + $0x68] sm:$0xff] %v3735_v6 }
 0x418   : > { %v3605_v55 = vpop.f32.mrf.mxu0 }
 0x419   : > { %v3606_v54 = vadd.f32 %v3605_v55, %v3541_v62 }
 0x41a   : > { %v3700_v43 = vpop.f32.mrf.mxu1 }
 0x41b   : > { %v3701_v13 = vadd.f32 %v3700_v43, %v3603_v1 }
 0x41d   : > { %v3736_v31 = vadd.f32 %v3701_v13, %v7020_v52 }
 0x41f   : > { %3787 = vst [vmem:[%s6560_s27 + $0x70] sm:$0xff] %v3736_v31 }
 0x422   : > { %v3703_v60 = vpop.f32.mrf.mxu1 }
 0x423   : > { %v3704_v8 = vadd.f32 %v3703_v60, %v3606_v54 }
 0x425   : > { %v3737_v22 = vadd.f32 %v3704_v8, %v7021_v33 }
 0x427   : > { %3788 = vst [vmem:[%s6560_s27 + $0x78] sm:$0xff] %v3737_v22 }
 0x428   : > { %4365 = shalt.err (!%p4362_p9)
}
 0x429   : > { %s4446_s24 = smov 128   ;;  %s4447_s27 = smov 8  }
 0x42a   : > { %4022 = dma.vmem_to_hbm [thread:$0]  (%p4518_p4), %s3804_s11, 2048, %s3806_s8, %s3790_s21, %s4446_s24, %s4446_s24, %s4447_s27  }
 0x42b PF: > { %p4039_p10 = scmp.ge.s32.totalorder %s4424_s23, 2  ;;  %s3820_s29 = sand.u32 1, %s4404_s18  }
 0x42c   : > { %s3821_s7 = scalar_lea.sflag [#allocation6], %s3820_s29 }
 0x42d   : > { %p4032_p11 = pnand %p4039_p10, %p4525_p8 }
 0x42f   : > { %p4033_p12 = pneg %p4032_p11 }
 0x431   : > { %4399 = dma.done.wait (%p4033_p12), %s3821_s7, 2048  }
 0x432   : > { %4401 = vsyncadd (%p4033_p12), %s3821_s7, 4294965248  ;;  %s20_s23 = sadd.s32 1, %s4424_s23   ;;  %s7022_s18 = smov %s4408_s19 }
 0x433   : > { %p17_p13 = scmp.ge.s32.totalorder %s20_s23, 4   ;;  %s7023_s19 = smov %s4412_s20 }
 0x434   : > { %s7024_s20 = smov %s4531_s6  ;;  %s7025_s21 = smov %s4420_s22 }
 0x435   : > { %s7026_s22 = smov %s7028_s26  ;;  %19 = sbr.rel (!%p17_p13) target bundleno = 6 (0x6), region = 100 }
 0x43a   :  { %3827 = vsyncpa [#allocation5], 1 }
 0x43b   :  { %3829 = vsyncpa [#allocation5 + $0x1], 1 }
 0x43c   :  { %3830 = vsyncpa [#allocation8], 1 }
 0x43d   :  { %3831 = vsyncpa [#allocation6], 1 }
 0x43e   :  { %3833 = vsyncpa [#allocation6 + $0x1], 1 }

// kernel: tpu_custom_call.1
= control target key start
LH: loop header
LB: loop body
LE: loop exit
PB: predicated region body
PF: predicated region fallthrough
CT: control target
= control target key end

     0   :  { %10 = vsyncpa [#allocation5], 0  ;;  %s6700_s0 = inlined_call_operand.vmem [shape: f32[1,256,16], index: 0, kind: input, shape index: {}]   ;;  %s6701_s1 = inlined_call_operand.vmem [shape: f32[256,128], index: 1, kind: input, shape index: {}]   ;;  %s6702_s2 = inlined_call_operand.vmem [shape: f32[16,128], index: 2, kind: input, shape index: {}]   ;;  %s6703_s3 = inlined_call_operand.hbm [shape: f32[128,128], index: 3, kind: input, shape index: {}]   ;;  %s6704_s4 = inlined_call_operand.hbm [shape: f32[2048,128], index: 4, kind: input, shape index: {}]   ;;  %s6705_s5 = inlined_call_operand.hbm [shape: f32[256,128], index: 5, kind: output, shape index: {}]  }
   0x1   :  { %11 = vsyncpa [#allocation8], 0 }
   0x2   :  { %12 = vsyncpa [#allocation6], 0 }
   0x3   :  { %14 = vsyncpa [#allocation6 + $0x1], 0  ;;  %s4478_s18 = smov 0   ;;  %s4480_s19 = smov 0  }
   0x4   :  { %s4482_s20 = smov 0   ;;  %s4484_s21 = smov 0  }
   0x5   :  { %s4486_s22 = smov 0   ;;  %s4488_s23 = smov 0  }
   0x6 LB: > { %s3945_s24 = sadd.s32 4294967295, %s4424_s23   ;;  %s3946_s25 = sadd.s32 4294967294, %s4424_s23   ;;  %s4424_s23 = sphi %s4488_s23, %s20_s23   ;;  %s4420_s22 = sphi %s4486_s22, %s7026_s22   ;;  %s4416_s21 = sphi %s4484_s21, %s7025_s21   ;;  %s4412_s20 = sphi %s4482_s20, %s7024_s20   ;;  %s4408_s19 = sphi %s4480_s19, %s7023_s19   ;;  %s4404_s18 = sphi %s4478_s18, %s7022_s18  }
   0x7   : > { %s35_s26 = sadd.s32 1, %s4420_s22  ;;  %s184_s27 = sadd.s32 1, %s4412_s20 }
   0x8   : > { %p37_p0 = scmp.ge.s32.totalorder %s35_s26, 2  ;;  %p194_p1 = scmp.ne.s32.totalorder %s4412_s20, %s4408_s19 }
   0x9   : > { %p195_p2 = scmp.eq.s32.totalorder %s3945_s24, 1  ;;  %p200_p3 = scmp.ne.s32.totalorder %s4408_s19, %s4404_s18 }
   0xa   : > { %s7028_s26 = smov (%p37_p0, %s35_s26), 0  ;;  %p201_p5 = scmp.eq.s32.totalorder %s3946_s25, 1 }
   0xb   : > { %p4518_p4 = por %p195_p2, %p194_p1  ;;  %s179_s29 = ssub.s32 %s4420_s22, %s7028_s26 }
   0xc   : > { %p3947_p6 = scmp.ge.s32.totalorder %s4424_s23, 1  ;;  %p182_p7 = scmp.eq.s32.totalorder %s179_s29, 0 }
   0xd   : > { %p4525_p8 = por %p201_p5, %p200_p3  ;;  %p208_p9 = scmp.lt.s32.totalorder %s4424_s23, 3 }
   0xe   : > { %s4531_s6 = scalar_select %p182_p7, %s4412_s20, %s184_s27  }
   0xf   : > { %p4533_p10 = pnand %p3947_p6, %p208_p9  ;;  %p4537_p11 = scmp.eq.s32.totalorder %s3945_s24, 0 }
  0x10   : > { %s233_s11 = sshll.u32 %s6703_s3, 4  ;;  %s4426_s12 = smov [#allocation4]   ;;  %s234_s11 = int_to_ptr.hbm [resolvable:$true] %s233_s11 }
  0x11   : > { %p4024_p12 = pneg %p4533_p10  ;;  %s235_s13 = sshll.u32 %s4426_s12, 4  ;;  %s236_s13 = int_to_ptr.vmem [resolvable:$true] %s235_s13 }
  0x12   : > { %s251_s16 = sshll.u32 %s6704_s4, 4  ;;  %s4427_s17 = smov 128   ;;  %s252_s16 = int_to_ptr.hbm [resolvable:$true] %s251_s16 }
  0x13   : > { %p4025_p13 = pnand %p4537_p11, %p4024_p12  ;;  %s4428_s24 = smov 8  }
  0x14   : > { %s4429_s25 = smov [#allocation7]   ;;  %291 = sbr.rel (%p4533_p10) target bundleno = 1067 (0x42b), region = 40 }
  0x15   : > { %4027 = dma.hbm_to_vmem [thread:$0]  (!%p4025_p13), %s234_s11, 2048, %s236_s13, [#allocation5], %s4427_s17, %s4427_s17, %s4428_s24  }
  0x16   : > { %s253_s27 = sshll.u32 %s4429_s25, 4  ;;  %s254_s27 = int_to_ptr.vmem [resolvable:$true] %s253_s27 }
  0x17   : > { %4030 = dma.hbm_to_vmem [thread:$0]  (!%p4025_p13), %s252_s16, 32768, %s254_s27, [#allocation8], %s4427_s17, %s4427_s17, %s4428_s24  }
  0x19   : > { %4391 = dma.done.wait (%p4537_p11), [#allocation5], 2048  }
  0x1a   : > { %4393 = vsyncadd (%p4537_p11), [#allocation5], 4294965248 }
  0x1b   : > { %4395 = dma.done.wait (%p4537_p11), [#allocation8], 32768  }
  0x1c   : > { %4397 = vsyncadd (%p4537_p11), [#allocation8], 4294934528  ;;  %s3956_s29 = sshll.u32 %s4416_s21, 4  ;;  %v4430_v0 = vmov 0   ;;  %v420_v13 = vld [vmem:[#allocation4 + $0x78] sm:$0xff]  ;;  %v419_v14 = vld [vmem:[#allocation4 + $0x70] sm:$0xff] }
  0x1d   : > { %4112 = vset.pattern.permute.xlu2 %v4430_v0  ;;  %4111 = vset.pattern.permute.xlu1 %v4430_v0  ;;  %p345_p0 = scmp.lt.s32.totalorder %s3956_s29, 31  ;;  %v418_v18 = vld [vmem:[#allocation4 + $0x68] sm:$0xff]  ;;  %v417_v19 = vld [vmem:[#allocation4 + $0x60] sm:$0xff]  ;;  %v416_v20 = vld [vmem:[#allocation4 + $0x58] sm:$0xff]  ;;  %v4431_v23 = vmov 1   ;;  %v4432_v51 = vmov 2  }
  0x1e   : > { %4110 = vset.pattern.permute.xlu0 %v4430_v0  ;;  %3982 = vmatpush.msra.mxu2 %v420_v13  ;;  %v415_v22 = vld [vmem:[#allocation4 + $0x50] sm:$0xff]  ;;  %v414_v24 = vld [vmem:[#allocation4 + $0x48] sm:$0xff]  ;;  %v413_v25 = vld [vmem:[#allocation4 + $0x40] sm:$0xff]  ;;  %vm3608_vm0 = vcmask 130048   ;;  %s339_s24 = sand.u32 1, %s4408_s19   ;;  %s4358_s16 = scalar_lea.hbm %s6705_s5, 256 }
  0x1f   : > { %s7030_s29 = smov (!%p345_p0, %s3956_s29), 31  ;;  %421 = vmatpush.msra.mxu0 %v420_v13  ;;  %v412_v26 = vld [vmem:[#allocation4 + $0x38] sm:$0xff]  ;;  %v411_v27 = vld [vmem:[#allocation4 + $0x30] sm:$0xff]  ;;  %v410_v28 = vld [vmem:[#allocation4 + $0x28] sm:$0xff]  ;;  %s3955_s25 = sshll.u32 %s339_s24, 7 }
  0x20   : > { %s3957_s7 = sshll.u32 %s7030_s29, 3  ;;  %3983 = vmatpush.msra.mxu2 %v419_v14  ;;  %v2327_v29 = vld [vmem:[#allocation7 + $0x78] sm:$0xff]  ;;  %v409_v30 = vld [vmem:[#allocation4 + $0x20] sm:$0xff]  ;;  %v2326_v31 = vld [vmem:[#allocation7 + $0x70] sm:$0xff]  ;;  %s6560_s27 = scalar_lea.vmem [#allocation9], %s3955_s25 }
  0x21   : > { %s4570_s11 = scalar_lea.vmem %s6700_s0, %s3957_s7  ;;  %422 = vmatpush.msra.mxu0 %v419_v14  ;;  %2568 = vmatpush.msra.mxu1 %v2327_v29  ;;  %v408_v32 = vld [vmem:[#allocation4 + $0x18] sm:$0xff]  ;;  %v407_v33 = vld [vmem:[#allocation4 + $0x10] sm:$0xff]  ;;  %v2325_v34 = vld [vmem:[#allocation7 + $0x68] sm:$0xff]  ;;  %s4649_s13 = scalar_lea.vmem %s6701_s1, %s3957_s7 }
  0x22   : > { %v4573_v1 = vld [vmem:[%s4570_s11 + $0x20] sm:$0xff]  ;;  %v4576_v2 = vld [vmem:[%s4570_s11 + $0x10] sm:$0xff]  ;;  %v4585_v4 = vld [vmem:[%s4570_s11 + $0x28] sm:$0xff]  ;;  %3984 = vmatpush.msra.mxu2 %v418_v18  ;;  %3998 = vmatpush.msra.mxu3 %v2327_v29  ;;  %s3981_s29 = sshll.u32 %s4416_s21, 7  ;;  %s3790_s21 = scalar_lea.sflag [#allocation6], %s339_s24 }
  0x23   : > { %v4579_v3 = vld [vmem:[%s4570_s11] sm:$0xff]  ;;  %524 = vperm.xlu2 %4112, %v4573_v1   ;;  %514 = vperm.xlu1 %4111, %v4576_v2   ;;  %v4588_v5 = vld [vmem:[%s4570_s11 + $0x18] sm:$0xff]  ;;  %v4591_v6 = vld [vmem:[%s4570_s11 + $0x8] sm:$0xff]  ;;  %s3802_s10 = scalar_lea.hbm %s6705_s5, %s3981_s29 }
  0x24   : > { %504 = vperm.xlu0 %4110, %v4579_v3   ;;  %v4597_v7 = vld [vmem:[%s4570_s11 + $0x40] sm:$0xff]  ;;  %v4600_v8 = vld [vmem:[%s4570_s11 + $0x38] sm:$0xff]  ;;  %v4603_v9 = vld [vmem:[%s4570_s11 + $0x30] sm:$0xff]  ;;  %423 = vmatpush.msra.mxu0 %v418_v18  ;;  %s3805_s8 = sshll.u32 %s3802_s10, 4  ;;  %s3806_s8 = int_to_ptr.hbm [resolvable:$true] %s3805_s8 }
  0x25   : > { %v4609_v10 = vld [vmem:[%s4570_s11 + $0x58] sm:$0xff]  ;;  %v4612_v11 = vld [vmem:[%s4570_s11 + $0x50] sm:$0xff]  ;;  %v4615_v12 = vld [vmem:[%s4570_s11 + $0x48] sm:$0xff]  ;;  %3985 = vmatpush.msra.mxu2 %v417_v19  ;;  %2569 = vmatpush.msra.mxu1 %v2326_v31  ;;  %s4352_s12 = sshra.s32 %s3806_s8, 4  ;;  %s4353_s12 = int_to_ptr.hbm [resolvable:$true] %s4352_s12 }
  0x26   : > { %v4621_v15 = vld [vmem:[%s4570_s11 + $0x70] sm:$0xff]  ;;  %v4624_v16 = vld [vmem:[%s4570_s11 + $0x68] sm:$0xff]  ;;  %v4627_v17 = vld [vmem:[%s4570_s11 + $0x60] sm:$0xff]  ;;  %424 = vmatpush.msra.mxu0 %v417_v19  ;;  %3999 = vmatpush.msra.mxu3 %v2326_v31  ;;  %p4359_p5 = scmp.lt.s32.totalorder %s4353_s12, %s6705_s5 }
  0x27   : > { %v4633_v21 = vld [vmem:[%s4570_s11 + $0x78] sm:$0xff]  ;;  %3986 = vmatpush.msra.mxu2 %v416_v20  ;;  %2570 = vmatpush.msra.mxu1 %v2325_v34  ;;  %v406_v35 = vld [vmem:[#allocation4 + $0x8] sm:$0xff]  ;;  %v2324_v36 = vld [vmem:[#allocation7 + $0x60] sm:$0xff] }
  0x28   : > { %425 = vmatpush.msra.mxu0 %v416_v20  ;;  %4000 = vmatpush.msra.mxu3 %v2325_v34  ;;  %v405_v37 = vld [vmem:[#allocation4] sm:$0xff]  ;;  %v2323_v38 = vld [vmem:[#allocation7 + $0x58] sm:$0xff]  ;;  %v2322_v40 = vld [vmem:[#allocation7 + $0x50] sm:$0xff] }
  0x29   : > { %3987 = vmatpush.msra.mxu2 %v415_v22  ;;  %2571 = vmatpush.msra.mxu1 %v2324_v36  ;;  %v4652_v39 = vld [vmem:[%s4649_s13 + $0x40] sm:$0xff]  ;;  %v2321_v41 = vld [vmem:[#allocation7 + $0x48] sm:$0xff]  ;;  %v2319_v43 = vld [vmem:[#allocation7 + $0x38] sm:$0xff] }
  0x2a   : > { %426 = vmatpush.msra.mxu0 %v415_v22  ;;  %4001 = vmatpush.msra.mxu3 %v2324_v36  ;;  %v2320_v42 = vld [vmem:[#allocation7 + $0x40] sm:$0xff]  ;;  %v4659_v44 = vld [vmem:[%s4649_s13 + $0x48] sm:$0xff]  ;;  %v2318_v45 = vld [vmem:[#allocation7 + $0x30] sm:$0xff] }
  0x2b   : > { %529 = vperm.xlu2 %4112, %v4585_v4   ;;  %519 = vperm.xlu1 %4111, %v4588_v5   ;;  %v2317_v46 = vld [vmem:[#allocation7 + $0x28] sm:$0xff]  ;;  %v2316_v47 = vld [vmem:[#allocation7 + $0x20] sm:$0xff]  ;;  %v4666_v48 = vld [vmem:[%s4649_s13 + $0x50] sm:$0xff] }
  0x2c   : > { %509 = vperm.xlu0 %4110, %v4591_v6   ;;  %3988 = vmatpush.msra.mxu2 %v414_v24  ;;  %v2315_v49 = vld [vmem:[#allocation7 + $0x18] sm:$0xff]  ;;  %v2314_v50 = vld [vmem:[#allocation7 + $0x10] sm:$0xff]  ;;  %v2313_v52 = vld [vmem:[#allocation7 + $0x8] sm:$0xff] }
  0x2d   : > { %427 = vmatpush.msra.mxu0 %v414_v24  ;;  %2572 = vmatpush.msra.mxu1 %v2323_v38  ;;  %v4673_v53 = vld [vmem:[%s4649_s13] sm:$0xff]  ;;  %v4677_v55 = vld [vmem:[%s4649_s13 + $0x58] sm:$0xff]  ;;  %v4686_v57 = vld [vmem:[%s4649_s13 + $0x8] sm:$0xff] }
  0x2e   : > { %3989 = vmatpush.msra.mxu2 %v413_v25  ;;  %4002 = vmatpush.msra.mxu3 %v2323_v38  ;;  %v2312_v54 = vld [vmem:[#allocation7] sm:$0xff]  ;;  %v2343_v59 = vld [vmem:[#allocation7 + $0xf8] sm:$0xff]  ;;  %v2342_v60 = vld [vmem:[#allocation7 + $0xf0] sm:$0xff] }
  0x2f   : > { %428 = vmatpush.msra.mxu0 %v413_v25  ;;  %2573 = vmatpush.msra.mxu1 %v2322_v40  ;;  %v4690_v58 = vld [vmem:[%s4649_s13 + $0x60] sm:$0xff]  ;;  %v2341_v62 = vld [vmem:[#allocation7 + $0xe8] sm:$0xff]  ;;  %v4699_v63 = vld [vmem:[%s4649_s13 + $0x10] sm:$0xff] }
  0x30   : > { %3990 = vmatpush.msra.mxu2 %v412_v26  ;;  %4003 = vmatpush.msra.mxu3 %v2322_v40  ;;  %v2340_v0 = vld [vmem:[#allocation7 + $0xe0] sm:$0xff]  ;;  %v4703_v13 = vld [vmem:[%s4649_s13 + $0x68] sm:$0xff]  ;;  %v2339_v14 = vld [vmem:[#allocation7 + $0xd8] sm:$0xff] }
  0x31   : > { %429 = vmatpush.msra.mxu0 %v412_v26  ;;  %2574 = vmatpush.msra.mxu1 %v2321_v41  ;;  %v2338_v18 = vld [vmem:[#allocation7 + $0xd0] sm:$0xff]  ;;  %v2337_v22 = vld [vmem:[#allocation7 + $0xc8] sm:$0xff]  ;;  %v2336_v24 = vld [vmem:[#allocation7 + $0xc0] sm:$0xff] }
  0x32   : > { %3991 = vmatpush.msra.mxu2 %v411_v27  ;;  %4004 = vmatpush.msra.mxu3 %v2321_v41  ;;  %v2335_v25 = vld [vmem:[#allocation7 + $0xb8] sm:$0xff]  ;;  %v4715_v26 = vld [vmem:[%s4649_s13 + $0x70] sm:$0xff]  ;;  %v2333_v31 = vld [vmem:[#allocation7 + $0xa8] sm:$0xff]  ;;  %v4433_v41 = vmov 3  }
  0x33   : > { %544 = vperm.xlu2 %4112, %v4597_v7   ;;  %539 = vperm.xlu1 %4111, %v4600_v8   ;;  %v2332_v34 = vld [vmem:[#allocation7 + $0xa0] sm:$0xff]  ;;  %v2331_v36 = vld [vmem:[#allocation7 + $0x98] sm:$0xff] }
  0x34   : > { %534 = vperm.xlu0 %4110, %v4603_v9   ;;  %3992 = vmatpush.msra.mxu2 %v410_v28 }
  0x35   : > { %430 = vmatpush.msra.mxu0 %v411_v27  ;;  %2575 = vmatpush.msra.mxu1 %v2320_v42  ;;  %v2334_v27 = vld [vmem:[#allocation7 + $0xb0] sm:$0xff] }
  0x36   : > { %3993 = vmatpush.msra.mxu2 %v409_v30  ;;  %4005 = vmatpush.msra.mxu3 %v2320_v42 }
  0x37   : > { %431 = vmatpush.msra.mxu0 %v410_v28  ;;  %2576 = vmatpush.msra.mxu1 %v2319_v43 }
  0x38   : > { %3994 = vmatpush.msra.mxu2 %v408_v32  ;;  %4006 = vmatpush.msra.mxu3 %v2319_v43  ;;  %v2329_v43 = vld [vmem:[#allocation7 + $0x88] sm:$0xff] }
  0x39   : > { %432 = vmatpush.msra.mxu0 %v409_v30  ;;  %2577 = vmatpush.msra.mxu1 %v2318_v45 }
  0x3a   : > { %3995 = vmatpush.msra.mxu2 %v407_v33  ;;  %4007 = vmatpush.msra.mxu3 %v2318_v45 }
  0x3b   : > { %559 = vperm.xlu2 %4112, %v4609_v10   ;;  %554 = vperm.xlu1 %4111, %v4612_v11  }
  0x3c   : > { %549 = vperm.xlu0 %4110, %v4615_v12   ;;  %3996 = vmatpush.msra.mxu2 %v406_v35 }
  0x3d   : > { %433 = vmatpush.msra.mxu0 %v408_v32  ;;  %2578 = vmatpush.msra.mxu1 %v2317_v46  ;;  %v4724_v32 = vld [vmem:[%s4649_s13 + $0x20] sm:$0xff] }
  0x3e   : > { %3997 = vmatpush.msra.mxu2 %v405_v37  ;;  %4008 = vmatpush.msra.mxu3 %v2317_v46  ;;  %v4739_v46 = vld [vmem:[%s4649_s13 + $0x28] sm:$0xff] }
  0x3f   : > { %461 = vmatmul.f32.vlgmr.msra.gmra.mxu2 %v4652_v39  ;;  %434 = vmatpush.msra.mxu0 %v407_v33 }
  0x40   : > { %2579 = vmatpush.msra.mxu1 %v2316_v47  ;;  %4009 = vmatpush.msra.mxu3 %v2316_v47  ;;  %v2328_v47 = vld [vmem:[#allocation7 + $0x80] sm:$0xff] }
  0x41   : > { %435 = vmatpush.msra.mxu0 %v406_v35  ;;  %2633 = vmatpush.msrb.mxu2 %v2343_v59  ;;  %v4729_v35 = vld [vmem:[%s4649_s13 + $0x78] sm:$0xff] }
  0x42   : > { %2580 = vmatpush.msra.mxu1 %v2315_v49  ;;  %4010 = vmatpush.msra.mxu3 %v2315_v49  ;;  %v2359_v59 = vld [vmem:[#allocation7 + $0x178] sm:$0xff] }
  0x43   : > { %574 = vperm.xlu2 %4112, %v4621_v15   ;;  %569 = vperm.xlu1 %4111, %v4624_v16  }
  0x44   : > { %564 = vperm.xlu0 %4110, %v4627_v17   ;;  %436 = vmatpush.msra.mxu0 %v405_v37  ;;  %v2330_v37 = vld [vmem:[#allocation7 + $0x90] sm:$0xff] }
  0x45   : > { %2581 = vmatpush.msra.mxu1 %v2314_v50  ;;  %437 = vmatmul.f32.vlgmr.msra.gmra.mxu0 %v4673_v53 }
  0x46   : > { %4011 = vmatpush.msra.mxu3 %v2314_v50  ;;  %2634 = vmatpush.msrb.mxu2 %v2342_v60  ;;  %v2358_v60 = vld [vmem:[#allocation7 + $0x170] sm:$0xff] }
  0x47   : > { %464 = vmatmul.f32.gmra.mxu2 %v4659_v44  ;;  %2582 = vmatpush.msra.mxu1 %v2313_v52 }
  0x48   : > { %4012 = vmatpush.msra.mxu3 %v2313_v52  ;;  %2635 = vmatpush.msrb.mxu2 %v2341_v62 }
  0x49   : > { %2583 = vmatpush.msra.mxu1 %v2312_v54 }
  0x4a   : > { %4013 = vmatpush.msra.mxu3 %v2312_v54  ;;  %2636 = vmatpush.msrb.mxu2 %v2340_v0  ;;  %v4753_v54 = vld [vmem:[%s4649_s13 + $0x30] sm:$0xff] }
  0x4b   : > { %4114 = vset.pattern.permute.xlu2 %v4431_v23  ;;  %4113 = vset.pattern.permute.xlu1 %v4431_v23 }
  0x4c   : > { %579 = vperm.xlu0 %4110, %v4633_v21   ;;  %619 = vperm.xlu2 %4114, %v4591_v6  }
  0x4d   : > { %615 = vperm.xlu1 %4113, %v4579_v3   ;;  %440 = vmatmul.f32.gmra.mxu0 %v4686_v57 }
  0x4e   : > { %2637 = vmatpush.msrb.mxu2 %v2339_v14  ;;  %2698 = vmatpush.msrb.mxu3 %v2359_v59 }
  0x4f   : > { %467 = vmatmul.f32.gmra.mxu2 %v4666_v48 }
  0x50   : > { %2638 = vmatpush.msrb.mxu2 %v2338_v18  ;;  %2699 = vmatpush.msrb.mxu3 %v2358_v60  ;;  %v2348_v60 = vld [vmem:[#allocation7 + $0x120] sm:$0xff] }
  0x52   : > { %2639 = vmatpush.msrb.mxu2 %v2337_v22  ;;  %v4764_v22 = vld [vmem:[%s4649_s13 + $0x38] sm:$0xff] }
  0x54   : > { %4115 = vset.pattern.permute.xlu0 %v4431_v23  ;;  %631 = vperm.xlu2 %4114, %v4573_v1   ;;  %v4711_v23 = vld [vmem:[%s4649_s13 + $0x18] sm:$0xff] }
  0x55   : > { %627 = vperm.xlu1 %4113, %v4588_v5   ;;  %623 = vperm.xlu0 %4115, %v4576_v2  }
  0x56   : > { %443 = vmatmul.f32.gmra.mxu0 %v4699_v63  ;;  %2640 = vmatpush.msrb.mxu2 %v2336_v24  ;;  %v2356_v24 = vld [vmem:[#allocation7 + $0x160] sm:$0xff] }
  0x57   : > { %470 = vmatmul.f32.gmra.mxu2 %v4677_v55 }
  0x58   : > { %2641 = vmatpush.msrb.mxu2 %v2335_v25  ;;  %v2355_v25 = vld [vmem:[#allocation7 + $0x158] sm:$0xff] }
  0x5a   : > { %2642 = vmatpush.msrb.mxu2 %v2334_v27  ;;  %v2354_v27 = vld [vmem:[#allocation7 + $0x150] sm:$0xff] }
  0x5c   : > { %639 = vperm.xlu2 %4114, %v4603_v9   ;;  %2643 = vmatpush.msrb.mxu2 %v2333_v31 }
  0x5d   : > { %635 = vperm.xlu1 %4113, %v4585_v4   ;;  %643 = vperm.xlu0 %4115, %v4600_v8  }
  0x5e   : > { %446 = vmatmul.f32.gmra.mxu0 %v4711_v23  ;;  %2644 = vmatpush.msrb.mxu2 %v2332_v34 }
  0x5f   : > { %473 = vmatmul.f32.gmra.mxu2 %v4690_v58 }
  0x60   : > { %2645 = vmatpush.msrb.mxu2 %v2331_v36  ;;  %v2353_v36 = vld [vmem:[#allocation7 + $0x148] sm:$0xff] }
  0x62   : > { %2646 = vmatpush.msrb.mxu2 %v2330_v37  ;;  %v2352_v37 = vld [vmem:[#allocation7 + $0x140] sm:$0xff] }
  0x64   : > { %651 = vperm.xlu2 %4114, %v4615_v12   ;;  %2647 = vmatpush.msrb.mxu2 %v2329_v43 }
  0x65   : > { %647 = vperm.xlu1 %4113, %v4597_v7   ;;  %655 = vperm.xlu0 %4115, %v4612_v11  }
  0x66   : > { %449 = vmatmul.f32.gmra.mxu0 %v4724_v32  ;;  %2648 = vmatpush.msrb.mxu2 %v2328_v47 }
  0x67   : > { %476 = vmatmul.f32.gmra.mxu2 %v4703_v13 }
  0x6c   : > { %663 = vperm.xlu2 %4114, %v4627_v17  }
  0x6d   : > { %659 = vperm.xlu1 %4113, %v4609_v10   ;;  %667 = vperm.xlu0 %4115, %v4624_v16  }
  0x6e   : > { %452 = vmatmul.f32.gmra.mxu0 %v4739_v46 }
  0x6f   : > { %479 = vmatmul.f32.gmra.mxu2 %v4715_v26 }
  0x74   : > { %675 = vperm.xlu2 %4114, %v4633_v21  }
  0x75   : > { %671 = vperm.xlu1 %4113, %v4621_v15   ;;  %4116 = vset.pattern.permute.xlu0 %v4432_v51 }
  0x76   : > { %711 = vperm.xlu0 %4116, %v4579_v3   ;;  %455 = vmatmul.f32.gmra.mxu0 %v4753_v54 }
  0x77   : > { %482 = vmatmul.f32.gmra.mxu2 %v4729_v35 }
  0x7c   : > { %4118 = vset.pattern.permute.xlu2 %v4432_v51 }
  0x7d   : > { %4117 = vset.pattern.permute.xlu1 %v4432_v51  ;;  %v4680_v56 = vpop.permute.xlu2 %524  ;;  %719 = vperm.xlu2 %4118, %v4576_v2  }
  0x7e   : > { %715 = vperm.xlu1 %4117, %v4591_v6   ;;  %731 = vperm.xlu0 %4116, %v4585_v4  }
  0x7f   : > { %458 = vmatmul.f32.gmra.mxu0 %v4764_v22 }
  0x85   : > { %v4693_v61 = vpop.permute.xlu2 %529  ;;  %727 = vperm.xlu2 %4118, %v4573_v1  }
  0x86   : > { %723 = vperm.xlu1 %4117, %v4588_v5   ;;  %743 = vperm.xlu0 %4116, %v4597_v7  }
  0x8d   : > { %v545_v19 = vpop.permute.xlu2 %544  ;;  %739 = vperm.xlu2 %4118, %v4600_v8  }
  0x8e   : > { %735 = vperm.xlu1 %4117, %v4603_v9   ;;  %755 = vperm.xlu0 %4116, %v4609_v10   ;;  %v590_v20 = vmul.f32 %v545_v19, %v4652_v39 }
  0x90   : > { %2608 = vmatmul.f32.vlgmr.msra.gmra.mxu3 %v590_v20  ;;  %v2357_v20 = vld [vmem:[#allocation7 + $0x168] sm:$0xff] }
  0x91   : > { %2700 = vmatpush.msrb.mxu3 %v2357_v20 }
  0x93   : > { %2701 = vmatpush.msrb.mxu3 %v2356_v24 }
  0x95   : > { %v4718_v28 = vpop.permute.xlu2 %559  ;;  %v515_v29 = vpop.permute.xlu1 %514  ;;  %751 = vperm.xlu2 %4118, %v4612_v11   ;;  %2702 = vmatpush.msrb.mxu3 %v2355_v25  ;;  %v4434_v25 = vmov 4  }
  0x96   : > { %747 = vperm.xlu1 %4117, %v4615_v12   ;;  %767 = vperm.xlu0 %4116, %v4621_v15   ;;  %v505_v30 = vpop.permute.xlu0 %504  ;;  %v584_v52 = vmul.f32 %v515_v29, %v4699_v63  ;;  %v593_v47 = vmul.f32 %v4718_v28, %v4677_v55 }
  0x97   : > { %v582_v33 = vmul.f32 %v505_v30, %v4673_v53  ;;  %2703 = vmatpush.msrb.mxu3 %v2354_v27 }
  0x99   : > { %2584 = vmatmul.f32.vlgmr.msra.gmra.mxu1 %v582_v33  ;;  %v586_v33 = vmul.f32 %v4680_v56, %v4724_v32  ;;  %2704 = vmatpush.msrb.mxu3 %v2353_v36  ;;  %v2372_v36 = vld [vmem:[#allocation7 + $0x1e0] sm:$0xff] }
  0x9b   : > { %2705 = vmatpush.msrb.mxu3 %v2352_v37  ;;  %v2371_v37 = vld [vmem:[#allocation7 + $0x1d8] sm:$0xff] }
  0x9d   : > { %v4732_v38 = vpop.permute.xlu2 %574  ;;  %v520_v40 = vpop.permute.xlu1 %519  ;;  %763 = vperm.xlu2 %4118, %v4624_v16  }
  0x9e   : > { %759 = vperm.xlu1 %4117, %v4627_v17   ;;  %4120 = vset.pattern.permute.xlu0 %v4433_v41  ;;  %v510_v42 = vpop.permute.xlu0 %509  ;;  %v585_v18 = vmul.f32 %v520_v40, %v4711_v23  ;;  %v2351_v40 = vld [vmem:[#allocation7 + $0x138] sm:$0xff] }
  0x9f   : > { %811 = vperm.xlu0 %4120, %v4591_v6   ;;  %v583_v45 = vmul.f32 %v510_v42, %v4686_v57  ;;  %2706 = vmatpush.msrb.mxu3 %v2351_v40  ;;  %v2370_v40 = vld [vmem:[#allocation7 + $0x1d0] sm:$0xff] }
  0xa1   : > { %2587 = vmatmul.f32.gmra.mxu1 %v583_v45  ;;  %v587_v45 = vmul.f32 %v4693_v61, %v4739_v46 }
  0xa5   : > { %v4742_v49 = vpop.permute.xlu1 %539  ;;  %4119 = vset.pattern.permute.xlu2 %v4433_v41 }
  0xa6   : > { %771 = vperm.xlu1 %4117, %v4633_v21   ;;  %v4745_v50 = vpop.permute.xlu0 %534  ;;  %v4747_v51 = vpop.permute.xlu2 %619  ;;  %807 = vperm.xlu2 %4119, %v4579_v3  }
  0xa7   : > { %831 = vperm.xlu0 %4120, %v4603_v9   ;;  %v588_v61 = vmul.f32 %v4745_v50, %v4753_v54  ;;  %v679_v50 = vmul.f32 %v4747_v51, %v4686_v57 }
  0xa9   : > { %2590 = vmatmul.f32.gmra.mxu1 %v584_v52  ;;  %v2349_v52 = vld [vmem:[#allocation7 + $0x128] sm:$0xff] }
  0xad   : > { %v555_v62 = vpop.permute.xlu1 %554 }
  0xae   : > { %4121 = vset.pattern.permute.xlu1 %v4433_v41  ;;  %v550_v0 = vpop.permute.xlu0 %549  ;;  %v4756_v14 = vpop.permute.xlu2 %631  ;;  %819 = vperm.xlu2 %4119, %v4588_v5   ;;  %v592_v34 = vmul.f32 %v555_v62, %v4666_v48  ;;  %v2350_v41 = vld [vmem:[#allocation7 + $0x130] sm:$0xff]  ;;  %v2347_v62 = vld [vmem:[#allocation7 + $0x118] sm:$0xff] }
  0xaf   : > { %815 = vperm.xlu1 %4121, %v4576_v2   ;;  %843 = vperm.xlu0 %4120, %v4615_v12   ;;  %v591_v19 = vmul.f32 %v550_v0, %v4659_v44  ;;  %v2375_v0 = vld [vmem:[#allocation7 + $0x1f8] sm:$0xff] }
  0xb0   : > { %2707 = vmatpush.msrb.mxu3 %v2350_v41  ;;  %2763 = vmatpush.msrb.mxu0 %v2375_v0  ;;  %v2366_v0 = vld [vmem:[#allocation7 + $0x1b0] sm:$0xff] }
  0xb1   : > { %2593 = vmatmul.f32.gmra.mxu1 %v585_v18  ;;  %2611 = vmatmul.f32.gmra.mxu3 %v591_v19  ;;  %v2346_v18 = vld [vmem:[#allocation7 + $0x110] sm:$0xff] }
  0xb2   : > { %2708 = vmatpush.msrb.mxu3 %v2349_v52  ;;  %v2374_v19 = vld [vmem:[#allocation7 + $0x1f0] sm:$0xff] }
  0xb3   : > { %2764 = vmatpush.msrb.mxu0 %v2374_v19 }
  0xb4   : > { %2709 = vmatpush.msrb.mxu3 %v2348_v60  ;;  %v2368_v60 = vld [vmem:[#allocation7 + $0x1c0] sm:$0xff] }
  0xb5   : > { %v4767_v29 = vpop.permute.xlu1 %569 }
  0xb6   : > { %v4769_v30 = vpop.permute.xlu2 %639  ;;  %827 = vperm.xlu2 %4119, %v4585_v4   ;;  %v565_v31 = vpop.permute.xlu0 %564  ;;  %2710 = vmatpush.msrb.mxu3 %v2347_v62  ;;  %v595_v52 = vmul.f32 %v4767_v29, %v4703_v13  ;;  %v2367_v62 = vld [vmem:[#allocation7 + $0x1b8] sm:$0xff]  ;;  %v596_v29 = vmul.f32 %v4732_v38, %v4715_v26  ;;  %v2362_v38 = vld [vmem:[#allocation7 + $0x190] sm:$0xff] }
  0xb7   : > { %823 = vperm.xlu1 %4121, %v4573_v1   ;;  %855 = vperm.xlu0 %4120, %v4627_v17   ;;  %v594_v28 = vmul.f32 %v565_v31, %v4690_v58  ;;  %v2373_v31 = vld [vmem:[#allocation7 + $0x1e8] sm:$0xff] }
  0xb8   : > { %2711 = vmatpush.msrb.mxu3 %v2346_v18  ;;  %2765 = vmatpush.msrb.mxu0 %v2373_v31 }
  0xb9   : > { %2596 = vmatmul.f32.gmra.mxu1 %v586_v33  ;;  %2614 = vmatmul.f32.gmra.mxu3 %v592_v34  ;;  %v2345_v33 = vld [vmem:[#allocation7 + $0x108] sm:$0xff]  ;;  %v2344_v34 = vld [vmem:[#allocation7 + $0x100] sm:$0xff] }
  0xba   : > { %2712 = vmatpush.msrb.mxu3 %v2345_v33  ;;  %2766 = vmatpush.msrb.mxu0 %v2372_v36  ;;  %v2361_v36 = vld [vmem:[#allocation7 + $0x188] sm:$0xff] }
  0xbc   : > { %2713 = vmatpush.msrb.mxu3 %v2344_v34  ;;  %2767 = vmatpush.msrb.mxu0 %v2371_v37  ;;  %v682_v34 = vmul.f32 %v4756_v14, %v4724_v32 }
  0xbe   : > { %v4777_v42 = vpop.permute.xlu2 %651  ;;  %839 = vperm.xlu2 %4119, %v4597_v7   ;;  %v4780_v43 = vpop.permute.xlu0 %579  ;;  %2768 = vmatpush.msrb.mxu0 %v2370_v40 }
  0xbf   : > { %835 = vperm.xlu1 %4121, %v4600_v8   ;;  %v616_v56 = vpop.permute.xlu1 %615  ;;  %867 = vperm.xlu0 %4120, %v4633_v21   ;;  %v597_v33 = vmul.f32 %v4780_v43, %v4729_v35  ;;  %v2360_v43 = vld [vmem:[#allocation7 + $0x180] sm:$0xff] }
  0xc0   : > { %v678_v59 = vmul.f32 %v616_v56, %v4673_v53 }
  0xc1   : > { %2599 = vmatmul.f32.gmra.mxu1 %v587_v45  ;;  %2617 = vmatmul.f32.gmra.mxu3 %v593_v47  ;;  %v589_v47 = vmul.f32 %v4742_v49, %v4764_v22 }
  0xc2   : > { %2649 = vmatmul.f32.vlgmr.msrb.gmra.mxu2 %v678_v59  ;;  %v2369_v59 = vld [vmem:[#allocation7 + $0x1c8] sm:$0xff] }
  0xc3   : > { %2769 = vmatpush.msrb.mxu0 %v2369_v59 }
  0xc5   : > { %2770 = vmatpush.msrb.mxu0 %v2368_v60 }
  0xc6   : > { %v4792_v20 = vpop.permute.xlu2 %663  ;;  %851 = vperm.xlu2 %4119, %v4609_v10  }
  0xc7   : > { %847 = vperm.xlu1 %4121, %v4612_v11   ;;  %v628_v24 = vpop.permute.xlu1 %627  ;;  %4124 = vset.pattern.permute.xlu0 %v4434_v25  ;;  %v624_v27 = vpop.permute.xlu0 %623 }
  0xc8   : > { %911 = vperm.xlu0 %4124, %v4576_v2   ;;  %v680_v56 = vmul.f32 %v624_v27, %v4699_v63  ;;  %2771 = vmatpush.msrb.mxu0 %v2367_v62  ;;  %v2363_v27 = vld [vmem:[#allocation7 + $0x198] sm:$0xff] }
  0xc9   : > { %2602 = vmatmul.f32.gmra.mxu1 %v588_v61  ;;  %2620 = vmatmul.f32.gmra.mxu3 %v594_v28  ;;  %v681_v61 = vmul.f32 %v628_v24, %v4711_v23  ;;  %v2365_v28 = vld [vmem:[#allocation7 + $0x1a8] sm:$0xff] }
  0xca   : > { %2652 = vmatmul.f32.gmra.mxu2 %v679_v50  ;;  %2772 = vmatpush.msrb.mxu0 %v2366_v0  ;;  %v684_v0 = vmul.f32 %v4769_v30, %v4753_v54 }
  0xcc   : > { %2773 = vmatpush.msrb.mxu0 %v2365_v28 }
  0xce   : > { %v4799_v41 = vpop.permute.xlu2 %675  ;;  %863 = vperm.xlu2 %4119, %v4621_v15  }
  0xcf   : > { %859 = vperm.xlu1 %4121, %v4624_v16   ;;  %v636_v51 = vpop.permute.xlu1 %635  ;;  %v4804_v45 = vpop.permute.xlu0 %643 }
  0xd0   : > { %931 = vperm.xlu0 %4124, %v4600_v8   ;;  %v683_v14 = vmul.f32 %v636_v51, %v4739_v46 }
  0xd1   : > { %2605 = vmatmul.f32.gmra.mxu1 %v589_v47  ;;  %2623 = vmatmul.f32.gmra.mxu3 %v595_v52 }
  0xd2   : > { %2655 = vmatmul.f32.gmra.mxu2 %v680_v56  ;;  %v4435_v56 = vmov 5  }
  0xd6   : > { %4123 = vset.pattern.permute.xlu2 %v4434_v25 }
  0xd7   : > { %4122 = vset.pattern.permute.xlu1 %v4434_v25  ;;  %v4811_v18 = vpop.permute.xlu1 %647  ;;  %v720_v49 = vpop.permute.xlu2 %719  ;;  %907 = vperm.xlu2 %4123, %v4591_v6   ;;  %v2364_v25 = vld [vmem:[#allocation7 + $0x1a0] sm:$0xff] }
  0xd8   : > { %903 = vperm.xlu1 %4122, %v4579_v3   ;;  %943 = vperm.xlu0 %4124, %v4612_v11   ;;  %v4818_v19 = vpop.permute.xlu0 %655  ;;  %v776_v30 = vmul.f32 %v720_v49, %v4699_v63 }
  0xd9   : > { %2626 = vmatmul.f32.gmra.mxu3 %v596_v29  ;;  %2774 = vmatpush.msrb.mxu0 %v2364_v25  ;;  %v686_v25 = vmul.f32 %v4811_v18, %v4652_v39  ;;  %v687_v18 = vmul.f32 %v4777_v42, %v4659_v44 }
  0xda   : > { %2658 = vmatmul.f32.gmra.mxu2 %v681_v61 }
  0xdb   : > { %2775 = vmatpush.msrb.mxu0 %v2363_v27 }
  0xdd   : > { %2776 = vmatpush.msrb.mxu0 %v2362_v38 }
  0xdf   : > { %v4823_v50 = vpop.permute.xlu1 %659  ;;  %v4825_v31 = vpop.permute.xlu2 %727  ;;  %919 = vperm.xlu2 %4123, %v4573_v1   ;;  %2777 = vmatpush.msrb.mxu0 %v2361_v36  ;;  %v2390_v36 = vld [vmem:[#allocation7 + $0x270] sm:$0xff] }
  0xe0   : > { %915 = vperm.xlu1 %4122, %v4588_v5   ;;  %955 = vperm.xlu0 %4124, %v4624_v16   ;;  %v4830_v24 = vpop.permute.xlu0 %667 }
  0xe1   : > { %2629 = vmatmul.f32.gmra.mxu3 %v597_v33  ;;  %2778 = vmatpush.msrb.mxu0 %v2360_v43 }
  0xe2   : > { %2661 = vmatmul.f32.gmra.mxu2 %v682_v34  ;;  %v2391_v34 = vld [vmem:[#allocation7 + $0x278] sm:$0xff] }
  0xe3   : > { %2828 = vmatpush.msrb.mxu1 %v2391_v34  ;;  %v2379_v34 = vld [vmem:[#allocation7 + $0x218] sm:$0xff] }
  0xe5   : > { %2829 = vmatpush.msrb.mxu1 %v2390_v36 }
  0xe7   : > { %v4834_v37 = vpop.permute.xlu1 %671  ;;  %v4836_v40 = vpop.permute.xlu2 %739  ;;  %927 = vperm.xlu2 %4123, %v4603_v9  }
  0xe8   : > { %923 = vperm.xlu1 %4122, %v4585_v4   ;;  %4125 = vset.pattern.permute.xlu0 %v4435_v56  ;;  %v712_v47 = vpop.permute.xlu0 %711 }
  0xe9   : > { %v774_v52 = vmul.f32 %v712_v47, %v4673_v53  ;;  %999 = vperm.xlu0 %4125, %v4579_v3   ;;  %v685_v3 = vmul.f32 %v4804_v45, %v4764_v22  ;;  %v2389_v47 = vld [vmem:[#allocation7 + $0x268] sm:$0xff] }
  0xea   : > { %2664 = vmatmul.f32.gmra.mxu2 %v683_v14  ;;  %2830 = vmatpush.msrb.mxu1 %v2389_v47  ;;  %v2388_v14 = vld [vmem:[#allocation7 + $0x260] sm:$0xff] }
  0xeb   : > { %2714 = vmatmul.f32.vlgmr.msrb.gmra.mxu3 %v774_v52  ;;  %v2386_v52 = vld [vmem:[#allocation7 + $0x250] sm:$0xff] }
  0xec   : > { %2831 = vmatpush.msrb.mxu1 %v2388_v14  ;;  %v2400_v14 = vld [vmem:[#allocation7 + $0x2c0] sm:$0xff] }
  0xef   : > { %v4843_v59 = vpop.permute.xlu2 %751  ;;  %939 = vperm.xlu2 %4123, %v4615_v12  }
  0xf0   : > { %935 = vperm.xlu1 %4122, %v4597_v7   ;;  %v716_v60 = vpop.permute.xlu1 %715  ;;  %v732_v62 = vpop.permute.xlu0 %731 }
  0xf1   : > { %v775_v29 = vmul.f32 %v716_v60, %v4686_v57  ;;  %1019 = vperm.xlu0 %4125, %v4585_v4   ;;  %v779_v43 = vmul.f32 %v732_v62, %v4739_v46  ;;  %v689_v62 = vmul.f32 %v4823_v50, %v4677_v55 }
  0xf2   : > { %2667 = vmatmul.f32.gmra.mxu2 %v684_v0 }
  0xf3   : > { %2717 = vmatmul.f32.gmra.mxu3 %v775_v29  ;;  %v2385_v29 = vld [vmem:[#allocation7 + $0x248] sm:$0xff] }
  0xf7   : > { %v4853_v51 = vpop.permute.xlu2 %763  ;;  %951 = vperm.xlu2 %4123, %v4627_v17  }
  0xf8   : > { %947 = vperm.xlu1 %4122, %v4609_v10   ;;  %v724_v61 = vpop.permute.xlu1 %723  ;;  %v4857_v28 = vpop.permute.xlu0 %743 }
  0xf9   : > { %1031 = vperm.xlu0 %4125, %v4597_v7   ;;  %v777_v38 = vmul.f32 %v724_v61, %v4711_v23  ;;  %v2407_v61 = vld [vmem:[#allocation7 + $0x2f8] sm:$0xff] }
  0xfa   : > { %2670 = vmatmul.f32.gmra.mxu2 %v685_v3  ;;  %v2384_v3 = vld [vmem:[#allocation7 + $0x240] sm:$0xff] }
  0xfb   : > { %2720 = vmatmul.f32.gmra.mxu3 %v776_v30  ;;  %v2382_v30 = vld [vmem:[#allocation7 + $0x230] sm:$0xff]  ;;  %2893 = vmatpush.msra.mxu2 %v2407_v61  ;;  %v2397_v61 = vld [vmem:[#allocation7 + $0x2a8] sm:$0xff] }
  0xff   : > { %963 = vperm.xlu2 %4123, %v4633_v21  }
 0x100   : > { %959 = vperm.xlu1 %4122, %v4621_v15   ;;  %v736_v4 = vpop.permute.xlu1 %735  ;;  %v808_v45 = vpop.permute.xlu2 %807 }
 0x101   : > { %v870_v27 = vmul.f32 %v808_v45, %v4673_v53  ;;  %v4866_v33 = vpop.permute.xlu0 %755  ;;  %1043 = vperm.xlu0 %4125, %v4609_v10   ;;  %v778_v10 = vmul.f32 %v4825_v31, %v4724_v32  ;;  %v4436_v31 = vmov 6   ;;  %v2406_v45 = vld [vmem:[#allocation7 + $0x2f0] sm:$0xff] }
 0x102   : > { %2673 = vmatmul.f32.gmra.mxu2 %v686_v25  ;;  %v781_v25 = vmul.f32 %v4836_v40, %v4764_v22  ;;  %v2403_v40 = vld [vmem:[#allocation7 + $0x2d8] sm:$0xff] }
 0x103   : > { %2723 = vmatmul.f32.gmra.mxu3 %v777_v38  ;;  %2779 = vmatmul.f32.vlgmr.msrb.gmra.mxu0 %v870_v27  ;;  %v2381_v38 = vld [vmem:[#allocation7 + $0x228] sm:$0xff] }
 0x104   : > { %2894 = vmatpush.msra.mxu2 %v2406_v45 }
 0x107   : > { %4127 = vset.pattern.permute.xlu2 %v4435_v56 }
 0x108   : > { %4126 = vset.pattern.permute.xlu1 %v4435_v56  ;;  %v4870_v7 = vpop.permute.xlu1 %747  ;;  %1007 = vperm.xlu2 %4127, %v4576_v2   ;;  %v4873_v21 = vpop.permute.xlu2 %819  ;;  %v688_v2 = vmul.f32 %v4818_v19, %v4666_v48 }
 0x109   : > { %1003 = vperm.xlu1 %4126, %v4591_v6   ;;  %v4878_v49 = vpop.permute.xlu0 %767  ;;  %1055 = vperm.xlu0 %4125, %v4621_v15  }
 0x10a   : > { %2676 = vmatmul.f32.gmra.mxu2 %v687_v18 }
 0x10b   : > { %2726 = vmatmul.f32.gmra.mxu3 %v778_v10  ;;  %v2404_v10 = vld [vmem:[#allocation7 + $0x2e0] sm:$0xff] }
 0x110   : > { %v4886_v42 = vpop.permute.xlu1 %759  ;;  %1015 = vperm.xlu2 %4127, %v4573_v1   ;;  %v4889_v56 = vpop.permute.xlu2 %827  ;;  %v2387_v1 = vld [vmem:[#allocation7 + $0x258] sm:$0xff] }
 0x111   : > { %1011 = vperm.xlu1 %4126, %v4588_v5   ;;  %v812_v15 = vpop.permute.xlu0 %811  ;;  %4129 = vset.pattern.permute.xlu0 %v4436_v31 }
 0x112   : > { %2679 = vmatmul.f32.gmra.mxu2 %v688_v2  ;;  %v871_v19 = vmul.f32 %v812_v15, %v4686_v57  ;;  %1099 = vperm.xlu0 %4129, %v4591_v6   ;;  %v780_v6 = vmul.f32 %v736_v4, %v4753_v54  ;;  %v690_v4 = vmul.f32 %v4792_v20, %v4690_v58  ;;  %v2380_v20 = vld [vmem:[#allocation7 + $0x220] sm:$0xff] }
 0x113   : > { %2729 = vmatmul.f32.gmra.mxu3 %v779_v43  ;;  %2832 = vmatpush.msrb.mxu1 %v2387_v1  ;;  %v782_v2 = vmul.f32 %v4857_v28, %v4652_v39  ;;  %v2378_v43 = vld [vmem:[#allocation7 + $0x210] sm:$0xff]  ;;  %v873_v39 = vmul.f32 %v4873_v21, %v4711_v23  ;;  %v2376_v28 = vld [vmem:[#allocation7 + $0x200] sm:$0xff]  ;;  %v692_v21 = vmul.f32 %v4834_v37, %v4715_v26  ;;  %v4936_v1 = vld [vmem:[%s4570_s11 + $0x78] sm:$0xff] }
 0x114   : > { %2782 = vmatmul.f32.gmra.mxu0 %v871_v19  ;;  %v2402_v19 = vld [vmem:[#allocation7 + $0x2d0] sm:$0xff] }
 0x115   : > { %2833 = vmatpush.msrb.mxu1 %v2386_v52 }
 0x117   : > { %2834 = vmatpush.msrb.mxu1 %v2385_v29  ;;  %v783_v29 = vmul.f32 %v4870_v7, %v4659_v44  ;;  %v693_v44 = vmul.f32 %v4799_v41, %v4729_v35  ;;  %v875_v41 = vmul.f32 %v4889_v56, %v4739_v46 }
 0x118   : > { %v4895_v60 = vpop.permute.xlu1 %771  ;;  %1027 = vperm.xlu2 %4127, %v4600_v8   ;;  %v4898_v5 = vpop.permute.xlu2 %839  ;;  %v2383_v8 = vld [vmem:[#allocation7 + $0x238] sm:$0xff] }
 0x119   : > { %1023 = vperm.xlu1 %4126, %v4603_v9   ;;  %v4904_v0 = vpop.permute.xlu0 %831  ;;  %2835 = vmatpush.msrb.mxu1 %v2384_v3 }
 0x11a   : > { %2682 = vmatmul.f32.gmra.mxu2 %v689_v62  ;;  %1119 = vperm.xlu0 %4129, %v4603_v9   ;;  %v4942_v62 = vld [vmem:[%s4570_s11] sm:$0xff]  ;;  %v876_v56 = vmul.f32 %v4904_v0, %v4753_v54  ;;  %v4999_v0 = vld [vmem:[%s4570_s11 + $0x38] sm:$0xff] }
 0x11b   : > { %2732 = vmatmul.f32.gmra.mxu3 %v780_v6  ;;  %2836 = vmatpush.msrb.mxu1 %v2383_v8  ;;  %v2398_v8 = vld [vmem:[#allocation7 + $0x2b0] sm:$0xff] }
 0x11d   : > { %2837 = vmatpush.msrb.mxu1 %v2382_v30  ;;  %v4953_v30 = vpop.f32.mrf.mxu2 }
 0x11e   : > { %6726 = vst [vmem:[#allocation13_spill] sm:$0xff] %v4953_v30 }
 0x11f   : > { %2838 = vmatpush.msrb.mxu1 %v2381_v38 }
 0x120   : > { %1039 = vperm.xlu2 %4127, %v4612_v11   ;;  %v4908_v50 = vpop.permute.xlu2 %851  ;;  %v2405_v11 = vld [vmem:[#allocation7 + $0x2e8] sm:$0xff] }
 0x121   : > { %1035 = vperm.xlu1 %4126, %v4615_v12   ;;  %v816_v9 = vpop.permute.xlu1 %815  ;;  %v4915_v27 = vpop.permute.xlu0 %843  ;;  %2895 = vmatpush.msra.mxu2 %v2405_v11 }
 0x122   : > { %2685 = vmatmul.f32.gmra.mxu2 %v690_v4  ;;  %v872_v18 = vmul.f32 %v816_v9, %v4699_v63  ;;  %1131 = vperm.xlu0 %4129, %v4615_v12   ;;  %v691_v12 = vmul.f32 %v4830_v24, %v4703_v13  ;;  %v2401_v24 = vld [vmem:[#allocation7 + $0x2c8] sm:$0xff]  ;;  %v4961_v4 = vld [vmem:[%s4570_s11 + $0x18] sm:$0xff]  ;;  %v784_v9 = vmul.f32 %v4843_v59, %v4666_v48  ;;  %v2394_v59 = vld [vmem:[#allocation7 + $0x290] sm:$0xff] }
 0x123   : > { %2735 = vmatmul.f32.gmra.mxu3 %v781_v25  ;;  %2839 = vmatpush.msrb.mxu1 %v2380_v20  ;;  %v4969_v25 = vld [vmem:[%s4570_s11 + $0x10] sm:$0xff]  ;;  %v2395_v48 = vld [vmem:[#allocation7 + $0x298] sm:$0xff]  ;;  %v785_v20 = vmul.f32 %v4866_v33, %v4677_v55  ;;  %v2392_v33 = vld [vmem:[#allocation7 + $0x280] sm:$0xff] }
 0x124   : > { %2785 = vmatmul.f32.gmra.mxu0 %v872_v18  ;;  %2896 = vmatpush.msra.mxu2 %v2404_v10  ;;  %v4437_v18 = vmov 7   ;;  %v2393_v10 = vld [vmem:[#allocation7 + $0x288] sm:$0xff] }
 0x125   : > { %2840 = vmatpush.msrb.mxu1 %v2379_v34  ;;  %v4978_v11 = vpop.f32.mrf.mxu2 }
 0x126   : > { %2897 = vmatpush.msra.mxu2 %v2403_v40  ;;  %6727 = vst [vmem:[#allocation14_spill] sm:$0xff] %v4978_v11  ;;  %v4987_v40 = vld [vmem:[%s4570_s11 + $0x28] sm:$0xff]  ;;  %v6708_v11 = vmov 9  }
 0x127   : > { %2841 = vmatpush.msrb.mxu1 %v2378_v43 }
 0x128   : > { %1051 = vperm.xlu2 %4127, %v4624_v16   ;;  %v4922_v36 = vpop.permute.xlu2 %863  ;;  %v2377_v16 = vld [vmem:[#allocation7 + $0x208] sm:$0xff]  ;;  %2898 = vmatpush.msra.mxu2 %v2402_v19 }
 0x129   : > { %1047 = vperm.xlu1 %4126, %v4627_v17   ;;  %v824_v15 = vpop.permute.xlu1 %823  ;;  %v4927_v47 = vpop.permute.xlu0 %855  ;;  %2842 = vmatpush.msrb.mxu1 %v2377_v16 }
 0x12a   : > { %2688 = vmatmul.f32.gmra.mxu2 %v691_v12  ;;  %1143 = vperm.xlu0 %4129, %v4627_v17   ;;  %v2399_v17 = vld [vmem:[#allocation7 + $0x2b8] sm:$0xff]  ;;  %v874_v3 = vmul.f32 %v824_v15, %v4724_v32  ;;  %v4993_v12 = vld [vmem:[%s4570_s11 + $0x20] sm:$0xff] }
 0x12b   : > { %2738 = vmatmul.f32.gmra.mxu3 %v782_v2  ;;  %2899 = vmatpush.msra.mxu2 %v2401_v24  ;;  %v5005_v15 = vld [vmem:[%s4570_s11 + $0x40] sm:$0xff] }
 0x12c   : > { %2788 = vmatmul.f32.gmra.mxu0 %v873_v39  ;;  %2843 = vmatpush.msrb.mxu1 %v2376_v28  ;;  %v786_v39 = vmul.f32 %v4886_v42, %v4690_v58  ;;  %v2422_v58 = vld [vmem:[#allocation7 + $0x370] sm:$0xff]  ;;  %v5023_v42 = vld [vmem:[%s4570_s11 + $0x58] sm:$0xff] }
 0x12d   : > { %2900 = vmatpush.msra.mxu2 %v2400_v14  ;;  %v5002_v43 = vpop.f32.mrf.mxu2 }
 0x12e   : > { %6728 = vst [vmem:[#allocation15_spill] sm:$0xff] %v5002_v43 }
 0x12f   : > { %2901 = vmatpush.msra.mxu2 %v2399_v17  ;;  %v2423_v17 = vld [vmem:[#allocation7 + $0x378] sm:$0xff] }
 0x130   : > { %4128 = vset.pattern.permute.xlu2 %v4436_v31  ;;  %2958 = vmatpush.msra.mxu3 %v2423_v17 }
 0x131   : > { %1059 = vperm.xlu1 %4126, %v4936_v1   ;;  %v4939_v52 = vpop.permute.xlu1 %835  ;;  %1095 = vperm.xlu2 %4128, %v4942_v62   ;;  %v4945_v6 = vpop.permute.xlu2 %907 }
 0x132   : > { %2691 = vmatmul.f32.gmra.mxu2 %v692_v21  ;;  %v4949_v37 = vpop.permute.xlu0 %867  ;;  %1155 = vperm.xlu0 %4129, %v4936_v1   ;;  %v877_v28 = vmul.f32 %v4939_v52, %v4764_v22  ;;  %v5019_v21 = vld [vmem:[%s4570_s11 + $0x50] sm:$0xff]  ;;  %v787_v52 = vmul.f32 %v4853_v51, %v4703_v13  ;;  %v2421_v13 = vld [vmem:[#allocation7 + $0x368] sm:$0xff] }
 0x133   : > { %2741 = vmatmul.f32.gmra.mxu3 %v783_v29  ;;  %2902 = vmatpush.msra.mxu2 %v2398_v8  ;;  %v5043_v51 = vld [vmem:[%s4570_s11 + $0x68] sm:$0xff] }
 0x134   : > { %2791 = vmatmul.f32.gmra.mxu0 %v874_v3  ;;  %2959 = vmatpush.msra.mxu3 %v2422_v58  ;;  %v5084_v58 = vld [vmem:[%s4649_s13 + $0x50] sm:$0xff] }
 0x135   : > { %2903 = vmatpush.msra.mxu2 %v2397_v61  ;;  %v5034_v61 = vld [vmem:[%s4649_s13 + $0x40] sm:$0xff] }
 0x136   : > { %2960 = vmatpush.msra.mxu3 %v2421_v13 }
 0x139   : > { %4130 = vset.pattern.permute.xlu1 %v4436_v31  ;;  %v4958_v7 = vpop.permute.xlu1 %847  ;;  %1107 = vperm.xlu2 %4128, %v4961_v4   ;;  %v4964_v45 = vpop.permute.xlu2 %919  ;;  %v2396_v31 = vld [vmem:[#allocation7 + $0x2a0] sm:$0xff] }
 0x13a   : > { %1103 = vperm.xlu1 %4130, %v4969_v25   ;;  %2694 = vmatmul.f32.gmra.mxu2 %v693_v44  ;;  %v4972_v38 = vpop.permute.xlu0 %911  ;;  %v878_v44 = vmul.f32 %v5034_v61, %v4898_v5  ;;  %v5047_v5 = vld [vmem:[%s4649_s13 + $0x48] sm:$0xff] }
 0x13b   : > { %2744 = vmatmul.f32.gmra.mxu3 %v784_v9  ;;  %4133 = vset.pattern.permute.xlu0 %v4437_v18  ;;  %v5038_v9 = vpop.f32.mrf.mxu2 }
 0x13c   : > { %2794 = vmatmul.f32.gmra.mxu0 %v875_v41  ;;  %1199 = vperm.xlu0 %4133, %v4969_v25   ;;  %6729 = vst [vmem:[#allocation16_spill] sm:$0xff] %v5038_v9  ;;  %v967_v41 = vmul.f32 %v4945_v6, %v4686_v57  ;;  %v788_v6 = vmul.f32 %v4878_v49, %v4715_v26  ;;  %v5069_v26 = vpop.f32.mrf.mxu3  ;;  %v2416_v49 = vld [vmem:[#allocation7 + $0x340] sm:$0xff] }
 0x13d   : > { %2904 = vmatpush.msra.mxu2 %v2396_v31  ;;  %v2420_v31 = vld [vmem:[#allocation7 + $0x360] sm:$0xff]  ;;  %6731 = vst [vmem:[#allocation18_spill] sm:$0xff] %v5069_v26 }
 0x13e   : > { %2961 = vmatpush.msra.mxu3 %v2420_v31  ;;  %v2412_v31 = vld [vmem:[#allocation7 + $0x320] sm:$0xff] }
 0x13f   : > { %2905 = vmatpush.msra.mxu2 %v2395_v48  ;;  %v2419_v48 = vld [vmem:[#allocation7 + $0x358] sm:$0xff]  ;;  %v5204_v9 = vld [vmem:[%s4649_s13] sm:$0xff] }
 0x140   : > { %2962 = vmatpush.msra.mxu3 %v2419_v48 }
 0x141   : > { %v4984_v34 = vpop.permute.xlu1 %859  ;;  %1115 = vperm.xlu2 %4128, %v4987_v40   ;;  %v4990_v2 = vpop.permute.xlu2 %927  ;;  %2906 = vmatpush.msra.mxu2 %v2394_v59  ;;  %v879_v59 = vmul.f32 %v5047_v5, %v4915_v27  ;;  %v2418_v27 = vld [vmem:[#allocation7 + $0x350] sm:$0xff] }
 0x142   : > { %1111 = vperm.xlu1 %4130, %v4993_v12   ;;  %v4996_v55 = vpop.permute.xlu0 %931  ;;  %2963 = vmatpush.msra.mxu3 %v2418_v27  ;;  %v2410_v27 = vld [vmem:[#allocation7 + $0x310] sm:$0xff] }
 0x143   : > { %2747 = vmatmul.f32.gmra.mxu3 %v785_v20  ;;  %2907 = vmatpush.msra.mxu2 %v2393_v10  ;;  %v5052_v20 = vld [vmem:[%s4570_s11 + $0x70] sm:$0xff] }
 0x144   : > { %2797 = vmatmul.f32.gmra.mxu0 %v876_v56  ;;  %1219 = vperm.xlu0 %4133, %v4999_v0   ;;  %v968_v56 = vmul.f32 %v4972_v38, %v4699_v63  ;;  %v2417_v63 = vld [vmem:[#allocation7 + $0x348] sm:$0xff] }
 0x145   : > { %2908 = vmatpush.msra.mxu2 %v2392_v33  ;;  %2964 = vmatpush.msra.mxu3 %v2417_v63 }
 0x147   : > { %2965 = vmatpush.msra.mxu3 %v2416_v49 }
 0x149   : > { %1127 = vperm.xlu2 %4128, %v5005_v15   ;;  %v5008_v19 = vpop.permute.xlu2 %939 }
 0x14a   : > { %1123 = vperm.xlu1 %4130, %v4999_v0   ;;  %v904_v16 = vpop.permute.xlu1 %903  ;;  %v5013_v24 = vpop.permute.xlu0 %943 }
 0x14b   : > { %v966_v14 = vmul.f32 %v904_v16, %v4673_v53  ;;  %2750 = vmatmul.f32.gmra.mxu3 %v786_v39  ;;  %v6706_v16 = vmov 8  }
 0x14c   : > { %2800 = vmatmul.f32.gmra.mxu0 %v877_v28  ;;  %1231 = vperm.xlu0 %4133, %v5019_v21   ;;  %v5066_v28 = vpop.f32.mrf.mxu2 }
 0x14d   : > { %2844 = vmatmul.f32.vlgmr.msrb.gmra.mxu1 %v966_v14  ;;  %6730 = vst [vmem:[#allocation17_spill] sm:$0xff] %v5066_v28  ;;  %v5078_v14 = vld [vmem:[%s4570_s11 + $0x8] sm:$0xff]  ;;  %v5200_v28 = vld [vmem:[%s4649_s13 + $0x18] sm:$0xff] }
 0x151   : > { %1139 = vperm.xlu2 %4128, %v5023_v42   ;;  %v5026_v29 = vpop.permute.xlu2 %951 }
 0x152   : > { %1135 = vperm.xlu1 %4130, %v5019_v21   ;;  %v916_v3 = vpop.permute.xlu1 %915  ;;  %v5031_v8 = vpop.permute.xlu0 %955 }
 0x153   : > { %2753 = vmatmul.f32.gmra.mxu3 %v787_v52  ;;  %v880_v52 = vmul.f32 %v5084_v58, %v4958_v7  ;;  %v2413_v7 = vld [vmem:[#allocation7 + $0x328] sm:$0xff] }
 0x154   : > { %2803 = vmatmul.f32.gmra.mxu0 %v878_v44  ;;  %1243 = vperm.xlu0 %4133, %v5043_v51   ;;  %v2414_v44 = vld [vmem:[#allocation7 + $0x330] sm:$0xff]  ;;  %v5095_v13 = vpop.f32.mrf.mxu2 }
 0x155   : > { %2847 = vmatmul.f32.gmra.mxu1 %v967_v41  ;;  %v5093_v41 = vpop.f32.mrf.mxu3  ;;  %6733 = vst [vmem:[#allocation20_spill] sm:$0xff] %v5095_v13  ;;  %v2439_v13 = vld [vmem:[#allocation7 + $0x3f8] sm:$0xff] }
 0x156   : > { %6732 = vst [vmem:[#allocation19_spill] sm:$0xff] %v5093_v41  ;;  %3023 = vmatpush.msra.mxu0 %v2439_v13  ;;  %v2455_v13 = vld [vmem:[#allocation7 + $0x478] sm:$0xff]  ;;  %v2430_v41 = vld [vmem:[#allocation7 + $0x3b0] sm:$0xff] }
 0x157   : > { %3088 = vmatpush.msra.mxu1 %v2455_v13 }
 0x159   : > { %1151 = vperm.xlu2 %4128, %v5052_v20   ;;  %v5055_v57 = vpop.permute.xlu2 %963 }
 0x15a   : > { %1147 = vperm.xlu1 %4130, %v5043_v51   ;;  %v5062_v10 = vpop.permute.xlu1 %923 }
 0x15b   : > { %2756 = vmatmul.f32.gmra.mxu3 %v788_v6  ;;  %v1000_v33 = vpop.permute.xlu0 %999  ;;  %v970_v6 = vmul.f32 %v4964_v45, %v4724_v32  ;;  %v5120_v45 = vld [vmem:[%s4570_s11 + $0x30] sm:$0xff] }
 0x15c   : > { %v1062_v39 = vmul.f32 %v1000_v33, %v4673_v53  ;;  %2806 = vmatmul.f32.gmra.mxu0 %v879_v59  ;;  %4134 = vset.pattern.permute.xlu0 %v6706_v16  ;;  %v789_v53 = vmul.f32 %v4895_v60, %v4729_v35  ;;  %v969_v35 = vmul.f32 %v916_v3, %v4711_v23  ;;  %v5103_v3 = vld [vmem:[%s4649_s13 + $0x58] sm:$0xff]  ;;  %v5115_v63 = vpop.f32.mrf.mxu2 }
 0x15d   : > { %2850 = vmatmul.f32.gmra.mxu1 %v968_v56  ;;  %1287 = vperm.xlu0 %4134, %v4942_v62   ;;  %v881_v59 = vmul.f32 %v5103_v3, %v4908_v50  ;;  %v2411_v33 = vld [vmem:[#allocation7 + $0x318] sm:$0xff]  ;;  %v5113_v50 = vpop.f32.mrf.mxu3  ;;  %6735 = vst [vmem:[#allocation22_spill] sm:$0xff] %v5115_v63 }
 0x15e   : > { %2909 = vmatmul.f32.vlgmr.msra.gmra.mxu2 %v1062_v39  ;;  %v2409_v39 = vld [vmem:[#allocation7 + $0x308] sm:$0xff]  ;;  %6734 = vst [vmem:[#allocation21_spill] sm:$0xff] %v5113_v50  ;;  %v2448_v50 = vld [vmem:[#allocation7 + $0x440] sm:$0xff] }
 0x161   : > { %4132 = vset.pattern.permute.xlu2 %v4437_v18 }
 0x162   : > { %4131 = vset.pattern.permute.xlu1 %v4437_v18  ;;  %v5075_v38 = vpop.permute.xlu1 %935  ;;  %1195 = vperm.xlu2 %4132, %v5078_v14   ;;  %v5081_v17 = vpop.permute.xlu2 %1007  ;;  %v2415_v18 = vld [vmem:[#allocation7 + $0x338] sm:$0xff] }
 0x163   : > { %1191 = vperm.xlu1 %4131, %v4942_v62   ;;  %2759 = vmatmul.f32.gmra.mxu3 %v789_v53  ;;  %v5090_v60 = vpop.permute.xlu0 %1019  ;;  %v2408_v53 = vld [vmem:[#allocation7 + $0x300] sm:$0xff] }
 0x164   : > { %2809 = vmatmul.f32.gmra.mxu0 %v880_v52  ;;  %2966 = vmatpush.msra.mxu3 %v2415_v18  ;;  %v5126_v52 = vld [vmem:[%s4649_s13 + $0x60] sm:$0xff]  ;;  %v971_v18 = vmul.f32 %v5062_v10, %v4739_v46 }
 0x165   : > { %2853 = vmatmul.f32.gmra.mxu1 %v969_v35  ;;  %1307 = vperm.xlu0 %4134, %v4987_v40   ;;  %v882_v35 = vmul.f32 %v5126_v52, %v4927_v47 }
 0x166   : > { %2967 = vmatpush.msra.mxu3 %v2414_v44 }
 0x168   : > { %2968 = vmatpush.msra.mxu3 %v2413_v7  ;;  %v5136_v7 = vpop.f32.mrf.mxu3 }
 0x169   : > { %6736 = vst [vmem:[#allocation23_spill] sm:$0xff] %v5136_v7 }
 0x16a   : > { %v5097_v48 = vpop.permute.xlu1 %947  ;;  %1207 = vperm.xlu2 %4132, %v4993_v12   ;;  %v5100_v23 = vpop.permute.xlu2 %1015  ;;  %2969 = vmatpush.msra.mxu3 %v2412_v31  ;;  %v5139_v31 = vld [vmem:[%s4570_s11 + $0x48] sm:$0xff] }
 0x16b   : > { %1203 = vperm.xlu1 %4131, %v4961_v4   ;;  %v5110_v56 = vpop.permute.xlu0 %1031 }
 0x16c   : > { %2812 = vmatmul.f32.gmra.mxu0 %v881_v59  ;;  %2970 = vmatpush.msra.mxu3 %v2411_v33  ;;  %v5145_v59 = vld [vmem:[%s4649_s13 + $0x68] sm:$0xff] }
 0x16d   : > { %2856 = vmatmul.f32.gmra.mxu1 %v970_v6  ;;  %1319 = vperm.xlu0 %4134, %v5005_v15   ;;  %v883_v46 = vmul.f32 %v5145_v59, %v4984_v34  ;;  %v972_v6 = vmul.f32 %v4990_v2, %v4753_v54  ;;  %v973_v34 = vmul.f32 %v4996_v55, %v4764_v22  ;;  %v5166_v54 = vld [vmem:[%s4570_s11 + $0x60] sm:$0xff] }
 0x16e   : > { %2971 = vmatpush.msra.mxu3 %v2410_v27  ;;  %v5154_v27 = vpop.f32.mrf.mxu2 }
 0x16f   : > { %6737 = vst [vmem:[#allocation24_spill] sm:$0xff] %v5154_v27 }
 0x170   : > { %2972 = vmatpush.msra.mxu3 %v2409_v39  ;;  %v5156_v39 = vpop.f32.mrf.mxu0 }
 0x171   : > { %6738 = vst [vmem:[#allocation25_spill] sm:$0xff] %v5156_v39 }
 0x172   : > { %v5117_v32 = vpop.permute.xlu1 %959  ;;  %1215 = vperm.xlu2 %4132, %v5120_v45   ;;  %v5123_v49 = vpop.permute.xlu2 %1027  ;;  %2973 = vmatpush.msra.mxu3 %v2408_v53  ;;  %v5159_v53 = vld [vmem:[%s4649_s13 + $0x8] sm:$0xff] }
 0x173   : > { %1211 = vperm.xlu1 %4131, %v4987_v40   ;;  %v5133_v44 = vpop.permute.xlu0 %1043 }
 0x174   : > { %2815 = vmatmul.f32.gmra.mxu0 %v882_v35 }
 0x175   : > { %2859 = vmatmul.f32.gmra.mxu1 %v971_v18  ;;  %1331 = vperm.xlu0 %4134, %v5023_v42   ;;  %v5172_v18 = vld [vmem:[%s4649_s13 + $0x70] sm:$0xff] }
 0x176   : > { %v5184_v16 = vpop.f32.mrf.mxu2 }
 0x177   : > { %6740 = vst [vmem:[#allocation27_spill] sm:$0xff] %v5184_v16  ;;  %v2437_v16 = vld [vmem:[#allocation7 + $0x3e8] sm:$0xff] }
 0x178   : > { %v5186_v27 = vpop.f32.mrf.mxu0 }
 0x179   : > { %6741 = vst [vmem:[#allocation28_spill] sm:$0xff] %v5186_v27  ;;  %v2438_v27 = vld [vmem:[#allocation7 + $0x3f0] sm:$0xff] }
 0x17a   : > { %1227 = vperm.xlu2 %4132, %v5139_v31   ;;  %v5142_v47 = vpop.permute.xlu2 %1039  ;;  %3024 = vmatpush.msra.mxu0 %v2438_v27  ;;  %v976_v27 = vmul.f32 %v5084_v58, %v5013_v24 }
 0x17b   : > { %1223 = vperm.xlu1 %4131, %v5005_v15   ;;  %v1004_v10 = vpop.permute.xlu1 %1003  ;;  %v5152_v33 = vpop.permute.xlu0 %1055 }
 0x17c   : > { %v1063_v35 = vmul.f32 %v5159_v53, %v1004_v10  ;;  %2818 = vmatmul.f32.gmra.mxu0 %v883_v46  ;;  %v884_v10 = vmul.f32 %v5172_v18, %v4922_v36  ;;  %v5190_v36 = vld [vmem:[%s4649_s13 + $0x78] sm:$0xff] }
 0x17d   : > { %2862 = vmatmul.f32.gmra.mxu1 %v972_v6  ;;  %1343 = vperm.xlu0 %4134, %v5052_v20   ;;  %v5177_v6 = vpop.f32.mrf.mxu3  ;;  %v885_v63 = vmul.f32 %v5190_v36, %v4949_v37 }
 0x17e   : > { %2912 = vmatmul.f32.gmra.mxu2 %v1063_v35  ;;  %6739 = vst [vmem:[#allocation26_spill] sm:$0xff] %v5177_v6  ;;  %v5180_v35 = vld [vmem:[%s4649_s13 + $0x10] sm:$0xff]  ;;  %3025 = vmatpush.msra.mxu0 %v2437_v16  ;;  %v5260_v16 = vpop.f32.mrf.mxu1 }
 0x17f   : > { %v1064_v22 = vmul.f32 %v5180_v35, %v5081_v17  ;;  %6750 = vst [vmem:[#allocation36_spill] sm:$0xff] %v5260_v16  ;;  %v2450_v16 = vld [vmem:[#allocation7 + $0x450] sm:$0xff] }
 0x180   : > { %v5215_v30 = vpop.f32.mrf.mxu0 }
 0x181   : > { %6744 = vst [vmem:[#allocation31_spill] sm:$0xff] %v5215_v30 }
 0x182   : > { %1239 = vperm.xlu2 %4132, %v5166_v54   ;;  %v5169_v2 = vpop.permute.xlu2 %1051 }
 0x183   : > { %1235 = vperm.xlu1 %4131, %v5023_v42   ;;  %v1012_v46 = vpop.permute.xlu1 %1011 }
 0x184   : > { %2821 = vmatmul.f32.gmra.mxu0 %v884_v10  ;;  %v1100_v55 = vpop.permute.xlu0 %1099 }
 0x185   : > { %2865 = vmatmul.f32.gmra.mxu1 %v973_v34  ;;  %v974_v34 = vmul.f32 %v5034_v61, %v5075_v38  ;;  %4138 = vset.pattern.permute.xlu0 %v6708_v11  ;;  %v5211_v38 = vpop.f32.mrf.mxu3 }
 0x186   : > { %2915 = vmatmul.f32.gmra.mxu2 %v1064_v22  ;;  %v1065_v22 = vmul.f32 %v5200_v28, %v1012_v46  ;;  %1387 = vperm.xlu0 %4138, %v5078_v14   ;;  %6742 = vst [vmem:[#allocation29_spill] sm:$0xff] %v5211_v38  ;;  %v5213_v46 = vpop.f32.mrf.mxu2  ;;  %v2451_v38 = vld [vmem:[#allocation7 + $0x458] sm:$0xff] }
 0x187   : > { %6743 = vst [vmem:[#allocation30_spill] sm:$0xff] %v5213_v46  ;;  %v5243_v46 = vld [vmem:[%s4649_s13 + $0x28] sm:$0xff] }
 0x188   : > { %v5240_v39 = vpop.f32.mrf.mxu0 }
 0x189   : > { %6748 = vst [vmem:[#allocation34_spill] sm:$0xff] %v5240_v39  ;;  %v2435_v39 = vld [vmem:[#allocation7 + $0x3d8] sm:$0xff] }
 0x18a   : > { %1251 = vperm.xlu2 %4132, %v4936_v1  }
 0x18b   : > { %1247 = vperm.xlu1 %4131, %v5052_v20   ;;  %v5195_v17 = vpop.permute.xlu1 %1023  ;;  %v1096_v10 = vpop.permute.xlu2 %1095 }
 0x18c   : > { %v1158_v43 = vmul.f32 %v5204_v9, %v1096_v10  ;;  %2824 = vmatmul.f32.gmra.mxu0 %v885_v63  ;;  %v5207_v37 = vpop.permute.xlu0 %1119  ;;  %v1159_v63 = vmul.f32 %v5159_v53, %v1100_v55  ;;  %v6745_v10 = vmov 8  }
 0x18d   : > { %2868 = vmatmul.f32.gmra.mxu1 %v974_v34  ;;  %v5236_v30 = vpop.f32.mrf.mxu3 }
 0x18e   : > { %2918 = vmatmul.f32.gmra.mxu2 %v1065_v22  ;;  %2974 = vmatmul.f32.vlgmr.msra.gmra.mxu3 %v1158_v43  ;;  %v975_v43 = vmul.f32 %v5047_v5, %v5008_v19  ;;  %v5228_v22 = vld [vmem:[%s4649_s13 + $0x20] sm:$0xff]  ;;  %6746 = vst [vmem:[#allocation32_spill] sm:$0xff] %v5236_v30  ;;  %v5238_v19 = vpop.f32.mrf.mxu2  ;;  %v2434_v30 = vld [vmem:[#allocation7 + $0x3d0] sm:$0xff] }
 0x18f   : > { %v1066_v55 = vmul.f32 %v5228_v22, %v5100_v23  ;;  %1407 = vperm.xlu0 %4138, %v5120_v45   ;;  %6747 = vst [vmem:[#allocation33_spill] sm:$0xff] %v5238_v19  ;;  %v1067_v23 = vmul.f32 %v5243_v46, %v5090_v60  ;;  %v2453_v60 = vld [vmem:[#allocation7 + $0x468] sm:$0xff]  ;;  %v2452_v19 = vld [vmem:[#allocation7 + $0x460] sm:$0xff] }
 0x190   : > { %v5279_v7 = vpop.f32.mrf.mxu0 }
 0x191   : > { %6752 = vst [vmem:[#allocation38_spill] sm:$0xff] %v5279_v7 }
 0x192   : > { %4136 = vset.pattern.permute.xlu2 %v6745_v10 }
 0x193   : > { %4135 = vset.pattern.permute.xlu1 %v6745_v10  ;;  %v5220_v34 = vpop.permute.xlu1 %1035  ;;  %1295 = vperm.xlu2 %4136, %v4969_v25   ;;  %v5223_v11 = vpop.permute.xlu2 %1107  ;;  %v2454_v10 = vld [vmem:[#allocation7 + $0x470] sm:$0xff] }
 0x194   : > { %1291 = vperm.xlu1 %4135, %v5078_v14   ;;  %v5233_v13 = vpop.permute.xlu0 %1131  ;;  %3089 = vmatpush.msra.mxu1 %v2454_v10  ;;  %v2436_v10 = vld [vmem:[#allocation7 + $0x3e0] sm:$0xff] }
 0x195   : > { %2871 = vmatmul.f32.gmra.mxu1 %v975_v43  ;;  %3026 = vmatpush.msra.mxu0 %v2436_v10  ;;  %v5258_v24 = vpop.f32.mrf.mxu3  ;;  %v2433_v10 = vld [vmem:[#allocation7 + $0x3c8] sm:$0xff] }
 0x196   : > { %2921 = vmatmul.f32.gmra.mxu2 %v1066_v55  ;;  %2977 = vmatmul.f32.gmra.mxu3 %v1159_v63  ;;  %6749 = vst [vmem:[#allocation35_spill] sm:$0xff] %v5258_v24  ;;  %v5277_v24 = vpop.f32.mrf.mxu2 }
 0x197   : > { %1419 = vperm.xlu0 %4138, %v5139_v31   ;;  %3090 = vmatpush.msra.mxu1 %v2453_v60  ;;  %v5270_v60 = vld [vmem:[%s4649_s13 + $0x30] sm:$0xff]  ;;  %6751 = vst [vmem:[#allocation37_spill] sm:$0xff] %v5277_v24 }
 0x198   : > { %3027 = vmatpush.msra.mxu0 %v2435_v39  ;;  %v1068_v39 = vmul.f32 %v5270_v60, %v5195_v17  ;;  %v2431_v17 = vld [vmem:[#allocation7 + $0x3b8] sm:$0xff]  ;;  %v5303_v26 = vpop.f32.mrf.mxu0 }
 0x199   : > { %3091 = vmatpush.msra.mxu1 %v2452_v19  ;;  %6756 = vst [vmem:[#allocation42_spill] sm:$0xff] %v5303_v26  ;;  %v6710_v26 = vmov 10  }
 0x19a   : > { %3028 = vmatpush.msra.mxu0 %v2434_v30  ;;  %v2432_v30 = vld [vmem:[#allocation7 + $0x3c0] sm:$0xff] }
 0x19b   : > { %v5249_v43 = vpop.permute.xlu1 %1047  ;;  %1303 = vperm.xlu2 %4136, %v4993_v12   ;;  %v5252_v63 = vpop.permute.xlu2 %1115  ;;  %3092 = vmatpush.msra.mxu1 %v2451_v38 }
 0x19c   : > { %1299 = vperm.xlu1 %4135, %v4961_v4   ;;  %v5255_v55 = vpop.permute.xlu0 %1143  ;;  %3029 = vmatpush.msra.mxu0 %v2433_v10  ;;  %v5289_v10 = vpop.f32.mrf.mxu1 }
 0x19d   : > { %2874 = vmatmul.f32.gmra.mxu1 %v976_v27  ;;  %v977_v27 = vmul.f32 %v5103_v3, %v5097_v48  ;;  %v2449_v48 = vld [vmem:[#allocation7 + $0x448] sm:$0xff]  ;;  %v5282_v38 = vpop.f32.mrf.mxu3  ;;  %6754 = vst [vmem:[#allocation40_spill] sm:$0xff] %v5289_v10  ;;  %v2428_v10 = vld [vmem:[#allocation7 + $0x3a0] sm:$0xff] }
 0x19e   : > { %2924 = vmatmul.f32.gmra.mxu2 %v1067_v23  ;;  %3093 = vmatpush.msra.mxu1 %v2450_v16  ;;  %6753 = vst [vmem:[#allocation39_spill] sm:$0xff] %v5282_v38  ;;  %v5292_v16 = vld [vmem:[%s4649_s13 + $0x38] sm:$0xff]  ;;  %v5301_v38 = vpop.f32.mrf.mxu2 }
 0x19f   : > { %1431 = vperm.xlu0 %4138, %v5166_v54   ;;  %3030 = vmatpush.msra.mxu0 %v2432_v30  ;;  %v1069_v30 = vmul.f32 %v5292_v16, %v5123_v49  ;;  %6755 = vst [vmem:[#allocation41_spill] sm:$0xff] %v5301_v38  ;;  %v2445_v49 = vld [vmem:[#allocation7 + $0x428] sm:$0xff] }
 0x1a0   : > { %3094 = vmatpush.msra.mxu1 %v2449_v48 }
 0x1a1   : > { %3031 = vmatpush.msra.mxu0 %v2431_v17  ;;  %v2429_v17 = vld [vmem:[#allocation7 + $0x3a8] sm:$0xff] }
 0x1a2   : > { %3095 = vmatpush.msra.mxu1 %v2448_v50 }
 0x1a3   : > { %v5262_v6 = vpop.permute.xlu1 %1059  ;;  %1315 = vperm.xlu2 %4136, %v4999_v0   ;;  %v5265_v23 = vpop.permute.xlu2 %1127  ;;  %3032 = vmatpush.msra.mxu0 %v2430_v41  ;;  %v2427_v41 = vld [vmem:[#allocation7 + $0x398] sm:$0xff] }
 0x1a4   : > { %1311 = vperm.xlu1 %4135, %v5120_v45   ;;  %v5275_v19 = vpop.permute.xlu0 %1155 }
 0x1a5   : > { %2877 = vmatmul.f32.gmra.mxu1 %v977_v27  ;;  %v978_v27 = vmul.f32 %v5126_v52, %v5026_v29  ;;  %v2446_v29 = vld [vmem:[#allocation7 + $0x430] sm:$0xff]  ;;  %3033 = vmatpush.msra.mxu0 %v2429_v17  ;;  %v5312_v17 = vpop.f32.mrf.mxu3 }
 0x1a6   : > { %2927 = vmatmul.f32.gmra.mxu2 %v1068_v39  ;;  %v2447_v39 = vld [vmem:[#allocation7 + $0x438] sm:$0xff]  ;;  %6757 = vst [vmem:[#allocation43_spill] sm:$0xff] %v5312_v17  ;;  %v2424_v17 = vld [vmem:[#allocation7 + $0x380] sm:$0xff] }
 0x1a7   : > { %1443 = vperm.xlu0 %4138, %v4936_v1   ;;  %3096 = vmatpush.msra.mxu1 %v2447_v39  ;;  %v979_v39 = vmul.f32 %v5145_v59, %v5031_v8 }
 0x1a8   : > { %3034 = vmatpush.msra.mxu0 %v2428_v10 }
 0x1a9   : > { %3097 = vmatpush.msra.mxu1 %v2446_v29  ;;  %v2425_v29 = vld [vmem:[#allocation7 + $0x388] sm:$0xff] }
 0x1aa   : > { %3035 = vmatpush.msra.mxu0 %v2427_v41  ;;  %v2442_v41 = vld [vmem:[#allocation7 + $0x410] sm:$0xff] }
 0x1ab   : > { %1327 = vperm.xlu2 %4136, %v5019_v21   ;;  %v5285_v7 = vpop.permute.xlu2 %1139  ;;  %3098 = vmatpush.msra.mxu1 %v2445_v49  ;;  %v5317_v49 = vpop.f32.mrf.mxu1 }
 0x1ac   : > { %1323 = vperm.xlu1 %4135, %v5139_v31   ;;  %v1104_v48 = vpop.permute.xlu1 %1103  ;;  %6758 = vst [vmem:[#allocation44_spill] sm:$0xff] %v5317_v49 }
 0x1ad   : > { %v1160_v24 = vmul.f32 %v5180_v35, %v1104_v48  ;;  %2880 = vmatmul.f32.gmra.mxu1 %v978_v27  ;;  %v2444_v48 = vld [vmem:[#allocation7 + $0x420] sm:$0xff]  ;;  %v1070_v27 = vmul.f32 %v5034_v61, %v5110_v56  ;;  %v1161_v56 = vmul.f32 %v5200_v28, %v5223_v11  ;;  %v5323_v11 = vpop.f32.mrf.mxu2 }
 0x1ae   : > { %2930 = vmatmul.f32.gmra.mxu2 %v1069_v30  ;;  %v5299_v50 = vpop.permute.xlu0 %1199  ;;  %v2426_v30 = vld [vmem:[#allocation7 + $0x390] sm:$0xff]  ;;  %3099 = vmatpush.msra.mxu1 %v2444_v48  ;;  %v2441_v48 = vld [vmem:[#allocation7 + $0x408] sm:$0xff]  ;;  %6759 = vst [vmem:[#allocation45_spill] sm:$0xff] %v5323_v11  ;;  %v1074_v11 = vmul.f32 %v5126_v52, %v5249_v43  ;;  %v2471_v43 = vld [vmem:[#allocation7 + $0x4f8] sm:$0xff] }
 0x1af   : > { %2980 = vmatmul.f32.gmra.mxu3 %v1160_v24  ;;  %v2443_v24 = vld [vmem:[#allocation7 + $0x418] sm:$0xff]  ;;  %3036 = vmatpush.msra.mxu0 %v2426_v30  ;;  %v5325_v30 = vpop.f32.mrf.mxu0 }
 0x1b0   : > { %3100 = vmatpush.msra.mxu1 %v2443_v24  ;;  %4142 = vset.pattern.permute.xlu0 %v6710_v26  ;;  %6760 = vst [vmem:[#allocation46_spill] sm:$0xff] %v5325_v30  ;;  %v2440_v24 = vld [vmem:[#allocation7 + $0x400] sm:$0xff] }
 0x1b1   : > { %3037 = vmatpush.msra.mxu0 %v2425_v29  ;;  %1487 = vperm.xlu0 %4142, %v4969_v25  }
 0x1b2   : > { %3101 = vmatpush.msra.mxu1 %v2442_v41  ;;  %3153 = vmatpush.msrb.mxu2 %v2471_v43 }
 0x1b3   : > { %1339 = vperm.xlu2 %4136, %v5043_v51   ;;  %v5310_v38 = vpop.permute.xlu2 %1151  ;;  %3038 = vmatpush.msra.mxu0 %v2424_v17  ;;  %v5337_v17 = vpop.f32.mrf.mxu3 }
 0x1b4   : > { %1335 = vperm.xlu1 %4135, %v5166_v54   ;;  %v1112_v10 = vpop.permute.xlu1 %1111  ;;  %3102 = vmatpush.msra.mxu1 %v2441_v48  ;;  %6762 = vst [vmem:[#allocation47_spill] sm:$0xff] %v5337_v17  ;;  %v981_v48 = vmul.f32 %v5190_v36, %v5055_v57 }
 0x1b5   : > { %2883 = vmatmul.f32.gmra.mxu1 %v979_v39  ;;  %v980_v39 = vmul.f32 %v5172_v18, %v5117_v32  ;;  %v1162_v41 = vmul.f32 %v5228_v22, %v1112_v10  ;;  %v5341_v32 = vpop.f32.mrf.mxu1  ;;  %v1072_v10 = vmul.f32 %v5084_v58, %v5142_v47 }
 0x1b6   : > { %2933 = vmatmul.f32.gmra.mxu2 %v1070_v27  ;;  %v5319_v8 = vpop.permute.xlu0 %1219  ;;  %v6761_v27 = vmov 9   ;;  %3103 = vmatpush.msra.mxu1 %v2440_v24  ;;  %6763 = vst [vmem:[#allocation48_spill] sm:$0xff] %v5341_v32 }
 0x1b7   : > { %2983 = vmatmul.f32.gmra.mxu3 %v1161_v56  ;;  %v1071_v56 = vmul.f32 %v5047_v5, %v5220_v34  ;;  %v5346_v34 = vpop.f32.mrf.mxu0 }
 0x1b8   : > { %6765 = vst [vmem:[#allocation50_spill] sm:$0xff] %v5346_v34  ;;  %v1073_v34 = vmul.f32 %v5103_v3, %v5133_v44 }
 0x1b9   : > { %1507 = vperm.xlu0 %4142, %v4999_v0  }
 0x1bb   : > { %4137 = vset.pattern.permute.xlu2 %v6761_v27  ;;  %v5363_v57 = vpop.f32.mrf.mxu3 }
 0x1bc   : > { %1347 = vperm.xlu1 %4135, %v4936_v1   ;;  %v1124_v29 = vpop.permute.xlu1 %1123  ;;  %1383 = vperm.xlu2 %4137, %v4942_v62   ;;  %v5334_v26 = vpop.permute.xlu2 %1195  ;;  %6766 = vst [vmem:[#allocation51_spill] sm:$0xff] %v5363_v57  ;;  %v2468_v57 = vld [vmem:[#allocation7 + $0x4e0] sm:$0xff] }
 0x1bd   : > { %2886 = vmatmul.f32.gmra.mxu1 %v980_v39  ;;  %v5344_v1 = vpop.f32.mrf.mxu2  ;;  %v5366_v47 = vpop.f32.mrf.mxu1 }
 0x1be   : > { %2936 = vmatmul.f32.gmra.mxu2 %v1071_v56  ;;  %v5339_v30 = vpop.permute.xlu0 %1231  ;;  %6764 = vst [vmem:[#allocation49_spill] sm:$0xff] %v5344_v1  ;;  %v1163_v56 = vmul.f32 %v5243_v46, %v5252_v63 }
 0x1bf   : > { %2986 = vmatmul.f32.gmra.mxu3 %v1162_v41  ;;  %6767 = vst [vmem:[#allocation52_spill] sm:$0xff] %v5366_v47 }
 0x1c1   : > { %1519 = vperm.xlu0 %4142, %v5019_v21  }
 0x1c3   : > { %v5384_v44 = vpop.f32.mrf.mxu3 }
 0x1c4   : > { %4139 = vset.pattern.permute.xlu1 %v6761_v27  ;;  %v5353_v39 = vpop.permute.xlu1 %1135  ;;  %1395 = vperm.xlu2 %4137, %v4961_v4   ;;  %v5356_v24 = vpop.permute.xlu2 %1207  ;;  %v1164_v27 = vmul.f32 %v5270_v60, %v5207_v37  ;;  %6770 = vst [vmem:[#allocation55_spill] sm:$0xff] %v5384_v44  ;;  %v2470_v44 = vld [vmem:[#allocation7 + $0x4f0] sm:$0xff] }
 0x1c5   : > { %1391 = vperm.xlu1 %4139, %v4969_v25   ;;  %2889 = vmatmul.f32.gmra.mxu1 %v981_v48  ;;  %v5377_v48 = vpop.f32.mrf.mxu0  ;;  %v5386_v1 = vpop.f32.mrf.mxu1 }
 0x1c6   : > { %2939 = vmatmul.f32.gmra.mxu2 %v1072_v10  ;;  %v5361_v41 = vpop.permute.xlu0 %1243  ;;  %6768 = vst [vmem:[#allocation53_spill] sm:$0xff] %v5377_v48  ;;  %v5380_v10 = vpop.f32.mrf.mxu2 }
 0x1c7   : > { %2989 = vmatmul.f32.gmra.mxu3 %v1163_v56  ;;  %6769 = vst [vmem:[#allocation54_spill] sm:$0xff] %v5380_v10  ;;  %3154 = vmatpush.msrb.mxu2 %v2470_v44  ;;  %v1076_v44 = vmul.f32 %v5172_v18, %v5152_v33 }
 0x1c8   : > { %6771 = vst [vmem:[#allocation56_spill] sm:$0xff] %v5386_v1  ;;  %v6712_v1 = vmov 11  }
 0x1c9   : > { %1531 = vperm.xlu0 %4142, %v5043_v51  }
 0x1cc   : > { %v5372_v63 = vpop.permute.xlu1 %1147  ;;  %1403 = vperm.xlu2 %4137, %v4987_v40   ;;  %v5375_v25 = vpop.permute.xlu2 %1215 }
 0x1cd   : > { %1399 = vperm.xlu1 %4139, %v4993_v12   ;;  %v5393_v10 = vpop.f32.mrf.mxu0  ;;  %v5414_v43 = vpop.f32.mrf.mxu1  ;;  %v1171_v17 = vmul.f32 %v5145_v59, %v5372_v63  ;;  %v2503_v63 = vld [vmem:[#allocation7 + $0x5f8] sm:$0xff] }
 0x1ce   : > { %2942 = vmatmul.f32.gmra.mxu2 %v1073_v34  ;;  %6772 = vst [vmem:[#allocation57_spill] sm:$0xff] %v5393_v10  ;;  %v1165_v34 = vmul.f32 %v5292_v16, %v1124_v29  ;;  %v1075_v29 = vmul.f32 %v5145_v59, %v5169_v2  ;;  %v1255_v2 = vmul.f32 %v5159_v53, %v5334_v26  ;;  %v2486_v59 = vld [vmem:[#allocation7 + $0x570] sm:$0xff] }
 0x1cf   : > { %2992 = vmatmul.f32.gmra.mxu3 %v1164_v27  ;;  %v1288_v56 = vpop.permute.xlu0 %1287  ;;  %6775 = vst [vmem:[#allocation60_spill] sm:$0xff] %v5414_v43  ;;  %v1256_v26 = vmul.f32 %v5180_v35, %v5299_v50  ;;  %v2464_v43 = vld [vmem:[#allocation7 + $0x4c0] sm:$0xff]  ;;  %3283 = vmatpush.msrb.mxu0 %v2503_v63  ;;  %v2518_v63 = vld [vmem:[#allocation7 + $0x670] sm:$0xff] }
 0x1d0   : > { %v1350_v37 = vmul.f32 %v5204_v9, %v1288_v56 }
 0x1d1   : > { %4143 = vset.pattern.permute.xlu0 %v6712_v1  ;;  %v2469_v1 = vld [vmem:[#allocation7 + $0x4e8] sm:$0xff] }
 0x1d2   : > { %3104 = vmatmul.f32.vlgmr.msra.gmra.mxu1 %v1350_v37  ;;  %v5398_v37 = vpop.f32.mrf.mxu2  ;;  %1575 = vperm.xlu0 %4143, %v4942_v62  }
 0x1d3   : > { %3155 = vmatpush.msrb.mxu2 %v2469_v1  ;;  %v1167_v1 = vmul.f32 %v5047_v5, %v5233_v13  ;;  %v2463_v13 = vld [vmem:[#allocation7 + $0x4b8] sm:$0xff] }
 0x1d4   : > { %1415 = vperm.xlu2 %4137, %v5005_v15   ;;  %v5391_v47 = vpop.permute.xlu2 %1227 }
 0x1d5   : > { %1411 = vperm.xlu1 %4139, %v4999_v0   ;;  %v1192_v27 = vpop.permute.xlu1 %1191  ;;  %v5404_v0 = vpop.f32.mrf.mxu3  ;;  %3156 = vmatpush.msrb.mxu2 %v2468_v57 }
 0x1d6   : > { %v1254_v56 = vmul.f32 %v5204_v9, %v1192_v27  ;;  %2945 = vmatmul.f32.gmra.mxu2 %v1074_v11  ;;  %6773 = vst [vmem:[#allocation58_spill] sm:$0xff] %v5404_v0  ;;  %v1166_v27 = vmul.f32 %v5034_v61, %v5265_v23  ;;  %v2467_v23 = vld [vmem:[#allocation7 + $0x4d8] sm:$0xff] }
 0x1d7   : > { %2995 = vmatmul.f32.gmra.mxu3 %v1165_v34  ;;  %v5409_v34 = vpop.f32.mrf.mxu0  ;;  %v5418_v0 = vpop.permute.xlu0 %1307  ;;  %3157 = vmatpush.msrb.mxu2 %v2467_v23 }
 0x1d8   : > { %3039 = vmatmul.f32.vlgmr.msra.gmra.mxu0 %v1254_v56  ;;  %6774 = vst [vmem:[#allocation59_spill] sm:$0xff] %v5409_v34  ;;  %v5440_v23 = vpop.f32.mrf.mxu1  ;;  %v2459_v34 = vld [vmem:[#allocation7 + $0x498] sm:$0xff] }
 0x1d9   : > { %6778 = vst [vmem:[#allocation63_spill] sm:$0xff] %v5440_v23 }
 0x1da   : > { %v5420_v32 = vpop.f32.mrf.mxu2 }
 0x1dc   : > { %1427 = vperm.xlu2 %4137, %v5023_v42   ;;  %v5407_v11 = vpop.permute.xlu2 %1239 }
 0x1dd   : > { %1423 = vperm.xlu1 %4139, %v5019_v21   ;;  %v1204_v56 = vpop.permute.xlu1 %1203  ;;  %v2466_v21 = vld [vmem:[#allocation7 + $0x4d0] sm:$0xff] }
 0x1de   : > { %2948 = vmatmul.f32.gmra.mxu2 %v1075_v29 }
 0x1df   : > { %2998 = vmatmul.f32.gmra.mxu3 %v1166_v27  ;;  %3158 = vmatpush.msrb.mxu2 %v2466_v21  ;;  %v5434_v27 = vpop.f32.mrf.mxu3  ;;  %v5436_v33 = vpop.f32.mrf.mxu0  ;;  %v1077_v21 = vmul.f32 %v5190_v36, %v5262_v6  ;;  %v2461_v6 = vld [vmem:[#allocation7 + $0x4a8] sm:$0xff] }
 0x1e0   : > { %3042 = vmatmul.f32.gmra.mxu0 %v1255_v2  ;;  %6776 = vst [vmem:[#allocation61_spill] sm:$0xff] %v5434_v27  ;;  %v2465_v2 = vld [vmem:[#allocation7 + $0x4c8] sm:$0xff]  ;;  %v5438_v50 = vpop.permute.xlu0 %1319  ;;  %v2462_v27 = vld [vmem:[#allocation7 + $0x4b0] sm:$0xff] }
 0x1e1   : > { %6777 = vst [vmem:[#allocation62_spill] sm:$0xff] %v5436_v33  ;;  %3159 = vmatpush.msrb.mxu2 %v2465_v2 }
 0x1e3   : > { %3160 = vmatpush.msrb.mxu2 %v2464_v43 }
 0x1e4   : > { %1439 = vperm.xlu2 %4137, %v5052_v20   ;;  %v5427_v29 = vpop.permute.xlu2 %1251 }
 0x1e5   : > { %1435 = vperm.xlu1 %4139, %v5043_v51   ;;  %v5432_v57 = vpop.permute.xlu1 %1211  ;;  %3161 = vmatpush.msrb.mxu2 %v2463_v13  ;;  %v5442_v51 = vpop.f32.mrf.mxu2 }
 0x1e6   : > { %2951 = vmatmul.f32.gmra.mxu2 %v1076_v44  ;;  %6779 = vst [vmem:[#allocation64_spill] sm:$0xff] %v5442_v51  ;;  %v6780_v44 = vmov 10  }
 0x1e7   : > { %3001 = vmatmul.f32.gmra.mxu3 %v1167_v1  ;;  %v1168_v1 = vmul.f32 %v5084_v58, %v5353_v39  ;;  %3162 = vmatpush.msrb.mxu2 %v2462_v27  ;;  %v5459_v23 = vpop.f32.mrf.mxu3  ;;  %v5461_v39 = vpop.f32.mrf.mxu1 }
 0x1e8   : > { %3045 = vmatmul.f32.gmra.mxu0 %v1256_v26  ;;  %v1257_v26 = vmul.f32 %v5200_v28, %v1204_v56  ;;  %v5457_v13 = vpop.permute.xlu0 %1331  ;;  %6781 = vst [vmem:[#allocation65_spill] sm:$0xff] %v5459_v23  ;;  %v5463_v33 = vpop.f32.mrf.mxu0  ;;  %v2458_v56 = vld [vmem:[#allocation7 + $0x490] sm:$0xff] }
 0x1e9   : > { %6782 = vst [vmem:[#allocation66_spill] sm:$0xff] %v5461_v39  ;;  %3163 = vmatpush.msrb.mxu2 %v2461_v6 }
 0x1ea   : > { %6783 = vst [vmem:[#allocation67_spill] sm:$0xff] %v5463_v33 }
 0x1ec   : > { %4141 = vset.pattern.permute.xlu2 %v6780_v44 }
 0x1ed   : > { %4140 = vset.pattern.permute.xlu1 %v6780_v44  ;;  %v5450_v2 = vpop.permute.xlu1 %1223  ;;  %1483 = vperm.xlu2 %4141, %v5078_v14   ;;  %v5453_v43 = vpop.permute.xlu2 %1295  ;;  %v2460_v44 = vld [vmem:[#allocation7 + $0x4a0] sm:$0xff] }
 0x1ee   : > { %1479 = vperm.xlu1 %4140, %v4942_v62   ;;  %2954 = vmatmul.f32.gmra.mxu2 %v1077_v21  ;;  %v1169_v62 = vmul.f32 %v5103_v3, %v5285_v7  ;;  %v5475_v6 = vpop.f32.mrf.mxu2  ;;  %v2456_v7 = vld [vmem:[#allocation7 + $0x480] sm:$0xff] }
 0x1ef   : > { %3004 = vmatmul.f32.gmra.mxu3 %v1168_v1  ;;  %3164 = vmatpush.msrb.mxu2 %v2460_v44  ;;  %v1258_v1 = vmul.f32 %v5228_v22, %v5356_v24  ;;  %6784 = vst [vmem:[#allocation68_spill] sm:$0xff] %v5475_v6  ;;  %v5479_v23 = vpop.f32.mrf.mxu3 }
 0x1f0   : > { %3048 = vmatmul.f32.gmra.mxu0 %v1257_v26  ;;  %v2457_v26 = vld [vmem:[#allocation7 + $0x488] sm:$0xff]  ;;  %v5477_v44 = vpop.permute.xlu0 %1343 }
 0x1f1   : > { %3165 = vmatpush.msrb.mxu2 %v2459_v34  ;;  %v5483_v34 = vpop.f32.mrf.mxu0 }
 0x1f2   : > { %6786 = vst [vmem:[#allocation70_spill] sm:$0xff] %v5483_v34 }
 0x1f3   : > { %3166 = vmatpush.msrb.mxu2 %v2458_v56 }
 0x1f5   : > { %v5467_v21 = vpop.permute.xlu1 %1235  ;;  %1495 = vperm.xlu2 %4141, %v4993_v12   ;;  %v5470_v27 = vpop.permute.xlu2 %1303  ;;  %3167 = vmatpush.msrb.mxu2 %v2457_v26 }
 0x1f6   : > { %1491 = vperm.xlu1 %4140, %v4961_v4   ;;  %v5481_v12 = vpop.f32.mrf.mxu1  ;;  %v1170_v4 = vmul.f32 %v5126_v52, %v5255_v55  ;;  %v5497_v26 = vpop.f32.mrf.mxu2 }
 0x1f7   : > { %3007 = vmatmul.f32.gmra.mxu3 %v1169_v62  ;;  %6785 = vst [vmem:[#allocation69_spill] sm:$0xff] %v5481_v12  ;;  %3168 = vmatpush.msrb.mxu2 %v2456_v7  ;;  %v1259_v62 = vmul.f32 %v5243_v46, %v5432_v57  ;;  %v2487_v7 = vld [vmem:[#allocation7 + $0x578] sm:$0xff]  ;;  %v5499_v34 = vpop.f32.mrf.mxu3  ;;  %v1260_v57 = vmul.f32 %v5270_v60, %v5375_v25 }
 0x1f8   : > { %3051 = vmatmul.f32.gmra.mxu0 %v1258_v1  ;;  %v5495_v1 = vpop.permute.xlu0 %1387  ;;  %6787 = vst [vmem:[#allocation71_spill] sm:$0xff] %v5497_v26  ;;  %3218 = vmatpush.msrb.mxu3 %v2487_v7  ;;  %v1172_v25 = vmul.f32 %v5172_v18, %v5310_v38  ;;  %v1352_v18 = vmul.f32 %v5180_v35, %v5453_v43 }
 0x1f9   : > { %6788 = vst [vmem:[#allocation72_spill] sm:$0xff] %v5499_v34  ;;  %v5503_v33 = vpop.f32.mrf.mxu0  ;;  %v1262_v43 = vmul.f32 %v5034_v61, %v5450_v2 }
 0x1fa   : > { %6790 = vst [vmem:[#allocation74_spill] sm:$0xff] %v5503_v33  ;;  %3219 = vmatpush.msrb.mxu3 %v2486_v59 }
 0x1fd   : > { %v5487_v24 = vpop.permute.xlu1 %1247  ;;  %1503 = vperm.xlu2 %4141, %v5120_v45   ;;  %v5490_v56 = vpop.permute.xlu2 %1315 }
 0x1fe   : > { %1499 = vperm.xlu1 %4140, %v4987_v40   ;;  %v5501_v55 = vpop.f32.mrf.mxu1  ;;  %v5516_v33 = vpop.f32.mrf.mxu2 }
 0x1ff   : > { %3010 = vmatmul.f32.gmra.mxu3 %v1170_v4  ;;  %6789 = vst [vmem:[#allocation73_spill] sm:$0xff] %v5501_v55  ;;  %v2519_v55 = vld [vmem:[#allocation7 + $0x678] sm:$0xff] }
 0x200   : > { %3054 = vmatmul.f32.gmra.mxu0 %v1259_v62  ;;  %6791 = vst [vmem:[#allocation75_spill] sm:$0xff] %v5516_v33  ;;  %3348 = vmatpush.msrb.mxu1 %v2519_v55  ;;  %v2485_v55 = vld [vmem:[#allocation7 + $0x568] sm:$0xff] }
 0x201   : > { %v5514_v7 = vpop.permute.xlu0 %1407  ;;  %v5530_v59 = vpop.f32.mrf.mxu0  ;;  %3220 = vmatpush.msrb.mxu3 %v2485_v55  ;;  %v5553_v55 = vld [vmem:[%s4570_s11 + $0x18] sm:$0xff] }
 0x202   : > { %6794 = vst [vmem:[#allocation78_spill] sm:$0xff] %v5530_v59  ;;  %v5541_v59 = vld [vmem:[%s4570_s11 + $0x78] sm:$0xff]  ;;  %3349 = vmatpush.msrb.mxu1 %v2518_v63  ;;  %v2501_v63 = vld [vmem:[#allocation7 + $0x5e8] sm:$0xff] }
 0x205   : > { %1515 = vperm.xlu2 %4141, %v5139_v31   ;;  %v5508_v40 = vpop.permute.xlu2 %1327 }
 0x206   : > { %1511 = vperm.xlu1 %4140, %v5005_v15   ;;  %v1292_v4 = vpop.permute.xlu1 %1291 }
 0x207   : > { %v1351_v62 = vmul.f32 %v5159_v53, %v1292_v4  ;;  %3013 = vmatmul.f32.gmra.mxu3 %v1171_v17  ;;  %v1261_v17 = vmul.f32 %v5292_v16, %v5319_v8  ;;  %v2502_v8 = vld [vmem:[#allocation7 + $0x5f0] sm:$0xff] }
 0x208   : > { %3057 = vmatmul.f32.gmra.mxu0 %v1260_v57  ;;  %v5525_v57 = vpop.f32.mrf.mxu1 }
 0x209   : > { %3107 = vmatmul.f32.gmra.mxu1 %v1351_v62  ;;  %6792 = vst [vmem:[#allocation76_spill] sm:$0xff] %v5525_v57  ;;  %v5528_v62 = vpop.f32.mrf.mxu3  ;;  %v5534_v38 = vpop.permute.xlu0 %1419  ;;  %3284 = vmatpush.msrb.mxu0 %v2502_v8 }
 0x20a   : > { %6793 = vst [vmem:[#allocation77_spill] sm:$0xff] %v5528_v62  ;;  %v5538_v57 = vpop.f32.mrf.mxu2  ;;  %v5562_v2 = vpop.f32.mrf.mxu0 }
 0x20b   : > { %6795 = vst [vmem:[#allocation79_spill] sm:$0xff] %v5538_v57  ;;  %3285 = vmatpush.msrb.mxu0 %v2501_v63  ;;  %v2479_v57 = vld [vmem:[#allocation7 + $0x538] sm:$0xff] }
 0x20d   : > { %1527 = vperm.xlu2 %4141, %v5166_v54   ;;  %v5521_v15 = vpop.permute.xlu2 %1339 }
 0x20e   : > { %1523 = vperm.xlu1 %4140, %v5023_v42   ;;  %v1300_v4 = vpop.permute.xlu1 %1299  ;;  %v1173_v42 = vmul.f32 %v5190_v36, %v5275_v19 }
 0x20f   : > { %3016 = vmatmul.f32.gmra.mxu3 %v1172_v25  ;;  %v1353_v36 = vmul.f32 %v5200_v28, %v1300_v4  ;;  %v2484_v4 = vld [vmem:[#allocation7 + $0x560] sm:$0xff] }
 0x210   : > { %3060 = vmatmul.f32.gmra.mxu0 %v1261_v17  ;;  %v5556_v8 = vpop.f32.mrf.mxu1  ;;  %3221 = vmatpush.msrb.mxu3 %v2484_v4  ;;  %v1354_v4 = vmul.f32 %v5228_v22, %v5470_v27 }
 0x211   : > { %3110 = vmatmul.f32.gmra.mxu1 %v1352_v18  ;;  %v6714_v18 = vmov 12   ;;  %6796 = vst [vmem:[#allocation80_spill] sm:$0xff] %v5556_v8  ;;  %v5558_v61 = vpop.permute.xlu0 %1431  ;;  %v2516_v8 = vld [vmem:[#allocation7 + $0x660] sm:$0xff] }
 0x212   : > { %4148 = vset.pattern.permute.xlu0 %v6714_v18  ;;  %v5594_v27 = vpop.f32.mrf.mxu0 }
 0x213   : > { %1683 = vperm.xlu0 %4148, %v5553_v55   ;;  %6802 = vst [vmem:[#allocation85_spill] sm:$0xff] %v5594_v27 }
 0x215   : > { %1539 = vperm.xlu2 %4141, %v5541_v59  }
 0x216   : > { %1535 = vperm.xlu1 %4140, %v5052_v20   ;;  %v5547_v25 = vpop.permute.xlu1 %1311  ;;  %v1384_v17 = vpop.permute.xlu2 %1383 }
 0x217   : > { %v1446_v19 = vmul.f32 %v5204_v9, %v1384_v17  ;;  %3019 = vmatmul.f32.gmra.mxu3 %v1173_v42  ;;  %v5560_v20 = vpop.f32.mrf.mxu3  ;;  %v2517_v9 = vld [vmem:[#allocation7 + $0x668] sm:$0xff]  ;;  %v6798_v42 = vmov 11   ;;  %v1263_v17 = vmul.f32 %v5047_v5, %v5391_v47 }
 0x218   : > { %3063 = vmatmul.f32.gmra.mxu0 %v1262_v43  ;;  %6797 = vst [vmem:[#allocation81_spill] sm:$0xff] %v5560_v20  ;;  %v1447_v43 = vmul.f32 %v5159_v53, %v5495_v1  ;;  %3350 = vmatpush.msrb.mxu1 %v2517_v9  ;;  %v5582_v53 = vpop.f32.mrf.mxu2  ;;  %v5585_v5 = vld [vmem:[%s4570_s11 + $0x28] sm:$0xff]  ;;  %v5590_v1 = vpop.f32.mrf.mxu1  ;;  %v2500_v9 = vld [vmem:[#allocation7 + $0x5e0] sm:$0xff]  ;;  %v5735_v20 = vld [vmem:[%s4570_s11 + $0x70] sm:$0xff] }
 0x219   : > { %3113 = vmatmul.f32.gmra.mxu1 %v1353_v36  ;;  %3169 = vmatmul.f32.vlgmr.msrb.gmra.mxu2 %v1446_v19  ;;  %v5573_v36 = vld [vmem:[%s4570_s11 + $0x10] sm:$0xff]  ;;  %6799 = vst [vmem:[#allocation82_spill] sm:$0xff] %v5582_v53  ;;  %v5588_v47 = vpop.permute.xlu0 %1443 }
 0x21a   : > { %6800 = vst [vmem:[#allocation83_spill] sm:$0xff] %v5590_v1  ;;  %3286 = vmatpush.msrb.mxu0 %v2500_v9  ;;  %3351 = vmatpush.msrb.mxu1 %v2516_v8  ;;  %v5603_v1 = vld [vmem:[%s4570_s11 + $0x20] sm:$0xff]  ;;  %v2515_v8 = vld [vmem:[#allocation7 + $0x658] sm:$0xff]  ;;  %v2498_v53 = vld [vmem:[#allocation7 + $0x5d0] sm:$0xff] }
 0x21b   : > { %4149 = vset.pattern.permute.xlu0 %v6798_v42 }
 0x21c   : > { %1595 = vperm.xlu0 %4149, %v5585_v5   ;;  %3352 = vmatpush.msrb.mxu1 %v2515_v8 }
 0x21d   : > { %4145 = vset.pattern.permute.xlu2 %v6798_v42 }
 0x21e   : > { %4144 = vset.pattern.permute.xlu1 %v6798_v42  ;;  %v5570_v18 = vpop.permute.xlu1 %1323  ;;  %1583 = vperm.xlu2 %4145, %v5573_v36   ;;  %v5576_v19 = vpop.permute.xlu2 %1395 }
 0x21f   : > { %1579 = vperm.xlu1 %4144, %v5078_v14   ;;  %v5592_v63 = vpop.f32.mrf.mxu3  ;;  %v2483_v14 = vld [vmem:[#allocation7 + $0x558] sm:$0xff] }
 0x220   : > { %3066 = vmatmul.f32.gmra.mxu0 %v1263_v17  ;;  %6801 = vst [vmem:[#allocation84_spill] sm:$0xff] %v5592_v63  ;;  %3222 = vmatpush.msrb.mxu3 %v2483_v14  ;;  %v1355_v17 = vmul.f32 %v5243_v46, %v5418_v0  ;;  %v5609_v12 = vpop.f32.mrf.mxu2  ;;  %v5612_v14 = vld [vmem:[%s4570_s11 + $0x40] sm:$0xff]  ;;  %v2499_v0 = vld [vmem:[#allocation7 + $0x5d8] sm:$0xff]  ;;  %v5617_v9 = vpop.f32.mrf.mxu1 }
 0x221   : > { %3116 = vmatmul.f32.gmra.mxu1 %v1354_v4  ;;  %3172 = vmatmul.f32.gmra.mxu2 %v1447_v43  ;;  %v1264_v4 = vmul.f32 %v5084_v58, %v5339_v30  ;;  %6803 = vst [vmem:[#allocation86_spill] sm:$0xff] %v5609_v12  ;;  %v2482_v30 = vld [vmem:[#allocation7 + $0x550] sm:$0xff]  ;;  %v5621_v12 = vpop.f32.mrf.mxu0  ;;  %v2495_v63 = vld [vmem:[#allocation7 + $0x5b8] sm:$0xff] }
 0x222   : > { %6804 = vst [vmem:[#allocation87_spill] sm:$0xff] %v5617_v9  ;;  %3223 = vmatpush.msrb.mxu3 %v2482_v30  ;;  %3287 = vmatpush.msrb.mxu0 %v2499_v0  ;;  %v1356_v30 = vmul.f32 %v5270_v60, %v5547_v25  ;;  %v2481_v0 = vld [vmem:[#allocation7 + $0x548] sm:$0xff]  ;;  %v1266_v25 = vmul.f32 %v5126_v52, %v5407_v11 }
 0x223   : > { %v5615_v58 = vpop.permute.xlu0 %1487  ;;  %6806 = vst [vmem:[#allocation89_spill] sm:$0xff] %v5621_v12  ;;  %v2497_v52 = vld [vmem:[#allocation7 + $0x5c8] sm:$0xff]  ;;  %v5760_v12 = vld [vmem:[%s4649_s13] sm:$0xff] }
 0x224   : > { %1607 = vperm.xlu0 %4149, %v5612_v14   ;;  %3224 = vmatpush.msrb.mxu3 %v2481_v0  ;;  %v2477_v11 = vld [vmem:[#allocation7 + $0x528] sm:$0xff] }
 0x225   : > { %3288 = vmatpush.msrb.mxu0 %v2498_v53  ;;  %v5657_v53 = vld [vmem:[%s4570_s11] sm:$0xff] }
 0x226   : > { %v5600_v43 = vpop.permute.xlu1 %1335  ;;  %1591 = vperm.xlu2 %4145, %v5603_v1   ;;  %v5606_v49 = vpop.permute.xlu2 %1403 }
 0x227   : > { %1587 = vperm.xlu1 %4144, %v5553_v55   ;;  %v5619_v10 = vpop.f32.mrf.mxu3  ;;  %3289 = vmatpush.msrb.mxu0 %v2497_v52 }
 0x228   : > { %3069 = vmatmul.f32.gmra.mxu0 %v1264_v4  ;;  %6805 = vst [vmem:[#allocation88_spill] sm:$0xff] %v5619_v10  ;;  %v1265_v4 = vmul.f32 %v5103_v3, %v5467_v21  ;;  %v5636_v9 = vpop.f32.mrf.mxu2  ;;  %v2480_v3 = vld [vmem:[#allocation7 + $0x540] sm:$0xff]  ;;  %v5639_v21 = vld [vmem:[%s4570_s11 + $0x50] sm:$0xff]  ;;  %v1357_v10 = vmul.f32 %v5292_v16, %v5490_v56 }
 0x229   : > { %3119 = vmatmul.f32.gmra.mxu1 %v1355_v17  ;;  %v5628_v17 = vld [vmem:[%s4570_s11 + $0x38] sm:$0xff]  ;;  %6807 = vst [vmem:[#allocation90_spill] sm:$0xff] %v5636_v9  ;;  %3225 = vmatpush.msrb.mxu3 %v2480_v3  ;;  %v2514_v9 = vld [vmem:[#allocation7 + $0x650] sm:$0xff]  ;;  %v2476_v56 = vld [vmem:[#allocation7 + $0x520] sm:$0xff] }
 0x22a   : > { %3353 = vmatpush.msrb.mxu1 %v2514_v9 }
 0x22b   : > { %v5642_v8 = vpop.permute.xlu0 %1507  ;;  %3226 = vmatpush.msrb.mxu3 %v2479_v57 }
 0x22c   : > { %1615 = vperm.xlu0 %4149, %v5639_v21  }
 0x22e   : > { %v5625_v39 = vpop.permute.xlu1 %1347  ;;  %1603 = vperm.xlu2 %4145, %v5628_v17   ;;  %v5631_v48 = vpop.permute.xlu2 %1415 }
 0x22f   : > { %1599 = vperm.xlu1 %4144, %v5120_v45   ;;  %v2478_v45 = vld [vmem:[#allocation7 + $0x530] sm:$0xff]  ;;  %v5651_v3 = vpop.f32.mrf.mxu3 }
 0x230   : > { %3072 = vmatmul.f32.gmra.mxu0 %v1265_v4  ;;  %v5646_v4 = vpop.f32.mrf.mxu1  ;;  %3227 = vmatpush.msrb.mxu3 %v2478_v45  ;;  %6810 = vst [vmem:[#allocation92_spill] sm:$0xff] %v5651_v3  ;;  %v2496_v45 = vld [vmem:[#allocation7 + $0x5c0] sm:$0xff]  ;;  %v2475_v3 = vld [vmem:[#allocation7 + $0x518] sm:$0xff] }
 0x231   : > { %3122 = vmatmul.f32.gmra.mxu1 %v1356_v30  ;;  %6808 = vst [vmem:[#allocation91_spill] sm:$0xff] %v5646_v4  ;;  %v6809_v30 = vmov 12   ;;  %v5660_v4 = vpop.f32.mrf.mxu0  ;;  %3290 = vmatpush.msrb.mxu0 %v2496_v45  ;;  %v2493_v45 = vld [vmem:[#allocation7 + $0x5a8] sm:$0xff] }
 0x232   : > { %6811 = vst [vmem:[#allocation93_spill] sm:$0xff] %v5660_v4  ;;  %3228 = vmatpush.msrb.mxu3 %v2477_v11  ;;  %v5687_v11 = vld [vmem:[%s4570_s11 + $0x8] sm:$0xff]  ;;  %v2492_v4 = vld [vmem:[#allocation7 + $0x5a0] sm:$0xff] }
 0x233   : > { %v5666_v26 = vpop.permute.xlu0 %1519  ;;  %3291 = vmatpush.msrb.mxu0 %v2495_v63  ;;  %v2513_v63 = vld [vmem:[#allocation7 + $0x648] sm:$0xff] }
 0x234   : > { %1623 = vperm.xlu0 %4149, %v5166_v54   ;;  %3229 = vmatpush.msrb.mxu3 %v2476_v56 }
 0x235   : > { %3354 = vmatpush.msrb.mxu1 %v2513_v63  ;;  %v5706_v63 = vld [vmem:[%s4649_s13 + $0x48] sm:$0xff] }
 0x236   : > { %4146 = vset.pattern.permute.xlu2 %v6809_v30  ;;  %v5649_v0 = vpop.permute.xlu2 %1427  ;;  %3230 = vmatpush.msrb.mxu3 %v2475_v3  ;;  %v2474_v3 = vld [vmem:[#allocation7 + $0x510] sm:$0xff]  ;;  %v1455_v51 = vmul.f32 %v5706_v63, %v5534_v38  ;;  %v2504_v38 = vld [vmem:[#allocation7 + $0x600] sm:$0xff] }
 0x237   : > { %1611 = vperm.xlu1 %4144, %v5139_v31   ;;  %v1392_v57 = vpop.permute.xlu1 %1391  ;;  %1671 = vperm.xlu2 %4146, %v5657_v53   ;;  %v5663_v31 = vpop.f32.mrf.mxu2 }
 0x238   : > { %v1448_v33 = vmul.f32 %v5180_v35, %v1392_v57  ;;  %3075 = vmatmul.f32.gmra.mxu0 %v1266_v25  ;;  %6812 = vst [vmem:[#allocation94_spill] sm:$0xff] %v5663_v31  ;;  %v5669_v35 = vld [vmem:[%s4649_s13 + $0x68] sm:$0xff]  ;;  %v5676_v25 = vld [vmem:[%s4649_s13 + $0x40] sm:$0xff]  ;;  %v5682_v52 = vpop.f32.mrf.mxu1  ;;  %3231 = vmatpush.msrb.mxu3 %v2474_v3 }
 0x239   : > { %3125 = vmatmul.f32.gmra.mxu1 %v1357_v10  ;;  %v1267_v10 = vmul.f32 %v5669_v35, %v5361_v41  ;;  %v1358_v57 = vmul.f32 %v5676_v25, %v5438_v50  ;;  %v1449_v41 = vmul.f32 %v5200_v28, %v5576_v19  ;;  %v5690_v50 = vpop.f32.mrf.mxu3  ;;  %v5692_v56 = vpop.f32.mrf.mxu0  ;;  %v2473_v31 = vld [vmem:[#allocation7 + $0x508] sm:$0xff]  ;;  %v2472_v19 = vld [vmem:[#allocation7 + $0x500] sm:$0xff] }
 0x23a   : > { %3175 = vmatmul.f32.gmra.mxu2 %v1448_v33  ;;  %v2494_v33 = vld [vmem:[#allocation7 + $0x5b0] sm:$0xff]  ;;  %6813 = vst [vmem:[#allocation95_spill] sm:$0xff] %v5690_v50  ;;  %3232 = vmatpush.msrb.mxu3 %v2473_v31  ;;  %v2491_v31 = vld [vmem:[#allocation7 + $0x598] sm:$0xff] }
 0x23b   : > { %3292 = vmatpush.msrb.mxu0 %v2494_v33  ;;  %6814 = vst [vmem:[#allocation96_spill] sm:$0xff] %v5692_v56  ;;  %v5720_v50 = vld [vmem:[%s4570_s11 + $0x58] sm:$0xff] }
 0x23c   : > { %4153 = vset.pattern.permute.xlu0 %v6809_v30  ;;  %3233 = vmatpush.msrb.mxu3 %v2472_v19 }
 0x23d   : > { %3293 = vmatpush.msrb.mxu0 %v2493_v45  ;;  %1711 = vperm.xlu0 %4153, %v5639_v21  }
 0x23e   : > { %v5673_v9 = vpop.permute.xlu2 %1439 }
 0x23f   : > { %4147 = vset.pattern.permute.xlu1 %v6809_v30  ;;  %v1400_v54 = vpop.permute.xlu1 %1399  ;;  %1679 = vperm.xlu2 %4146, %v5573_v36   ;;  %v5694_v28 = vpop.f32.mrf.mxu2 }
 0x240   : > { %1675 = vperm.xlu1 %4147, %v5687_v11   ;;  %3078 = vmatmul.f32.gmra.mxu0 %v1267_v10  ;;  %6815 = vst [vmem:[#allocation97_spill] sm:$0xff] %v5694_v28  ;;  %v5698_v10 = vld [vmem:[%s4649_s13 + $0x70] sm:$0xff]  ;;  %v1450_v45 = vmul.f32 %v5228_v22, %v1400_v54  ;;  %v5723_v56 = vpop.f32.mrf.mxu1  ;;  %v2489_v22 = vld [vmem:[#allocation7 + $0x588] sm:$0xff]  ;;  %v2511_v54 = vld [vmem:[#allocation7 + $0x638] sm:$0xff] }
 0x241   : > { %3128 = vmatmul.f32.gmra.mxu1 %v1358_v57  ;;  %3294 = vmatpush.msrb.mxu0 %v2492_v4  ;;  %v1268_v33 = vmul.f32 %v5698_v10, %v5487_v24  ;;  %v5702_v57 = vpop.permute.xlu0 %1531  ;;  %v2512_v24 = vld [vmem:[#allocation7 + $0x640] sm:$0xff]  ;;  %v5717_v28 = vpop.f32.mrf.mxu3  ;;  %6817 = vst [vmem:[#allocation99_spill] sm:$0xff] %v5723_v56 }
 0x242   : > { %3178 = vmatmul.f32.gmra.mxu2 %v1449_v41  ;;  %v1359_v41 = vmul.f32 %v5706_v63, %v5570_v18  ;;  %6816 = vst [vmem:[#allocation98_spill] sm:$0xff] %v5717_v28  ;;  %v2490_v18 = vld [vmem:[#allocation7 + $0x590] sm:$0xff]  ;;  %3355 = vmatpush.msrb.mxu1 %v2512_v24  ;;  %v5725_v19 = vpop.f32.mrf.mxu0 }
 0x243   : > { %3295 = vmatpush.msrb.mxu0 %v2491_v31  ;;  %6818 = vst [vmem:[#allocation100_spill] sm:$0xff] %v5725_v19  ;;  %v5739_v31 = vld [vmem:[%s4649_s13 + $0x50] sm:$0xff] }
 0x244   : > { %3356 = vmatpush.msrb.mxu1 %v2511_v54  ;;  %v2488_v54 = vld [vmem:[#allocation7 + $0x580] sm:$0xff]  ;;  %v2510_v19 = vld [vmem:[#allocation7 + $0x630] sm:$0xff] }
 0x245   : > { %3296 = vmatpush.msrb.mxu0 %v2490_v18  ;;  %1727 = vperm.xlu0 %4153, %v5735_v20   ;;  %v5746_v18 = vld [vmem:[%s4570_s11 + $0x30] sm:$0xff] }
 0x246   : > { %3357 = vmatpush.msrb.mxu1 %v2510_v19 }
 0x247   : > { %v5710_v3 = vpop.permute.xlu1 %1411  ;;  %1687 = vperm.xlu2 %4146, %v5603_v1   ;;  %v5713_v4 = vpop.permute.xlu2 %1483  ;;  %3297 = vmatpush.msrb.mxu0 %v2489_v22  ;;  %v1451_v22 = vmul.f32 %v5243_v46, %v5606_v49 }
 0x248   : > { %4150 = vset.pattern.permute.xlu1 %v6798_v42  ;;  %3081 = vmatmul.f32.gmra.mxu0 %v1268_v33  ;;  %v5728_v33 = vld [vmem:[%s4649_s13 + $0x78] sm:$0xff]  ;;  %v5757_v6 = vpop.f32.mrf.mxu1 }
 0x249   : > { %1619 = vperm.xlu1 %4150, %v5720_v50   ;;  %3131 = vmatmul.f32.gmra.mxu1 %v1359_v41  ;;  %v1269_v28 = vmul.f32 %v5728_v33, %v5427_v29  ;;  %v5732_v41 = vpop.f32.mrf.mxu2  ;;  %6821 = vst [vmem:[#allocation103_spill] sm:$0xff] %v5757_v6  ;;  %v6718_v6 = vmov 13  }
 0x24a   : > { %3181 = vmatmul.f32.gmra.mxu2 %v1450_v45  ;;  %6819 = vst [vmem:[#allocation101_spill] sm:$0xff] %v5732_v41  ;;  %v1360_v45 = vmul.f32 %v5739_v31, %v5508_v40  ;;  %v1576_v41 = vpop.permute.xlu0 %1575  ;;  %v5755_v40 = vpop.f32.mrf.mxu3  ;;  %3298 = vmatpush.msrb.mxu0 %v2488_v54 }
 0x24b   : > { %6820 = vst [vmem:[#allocation102_spill] sm:$0xff] %v5755_v40  ;;  %v1638_v46 = vmul.f32 %v5760_v12, %v1576_v41  ;;  %v5763_v49 = vpop.f32.mrf.mxu0 }
 0x24c   : > { %6822 = vst [vmem:[#allocation104_spill] sm:$0xff] %v5763_v49 }
 0x24f   : > { %v5743_v24 = vpop.permute.xlu1 %1423  ;;  %1695 = vperm.xlu2 %4146, %v5746_v18   ;;  %v5749_v29 = vpop.permute.xlu2 %1495 }
 0x250   : > { %3084 = vmatmul.f32.gmra.mxu0 %v1269_v28  ;;  %v1452_v28 = vmul.f32 %v5270_v60, %v5514_v7  ;;  %v2509_v7 = vld [vmem:[#allocation7 + $0x628] sm:$0xff]  ;;  %v5783_v19 = vpop.f32.mrf.mxu1 }
 0x251   : > { %4151 = vset.pattern.permute.xlu1 %v6809_v30  ;;  %3134 = vmatmul.f32.gmra.mxu1 %v1360_v45  ;;  %v5768_v45 = vld [vmem:[%s4649_s13 + $0x58] sm:$0xff]  ;;  %v5777_v41 = vpop.f32.mrf.mxu2  ;;  %6825 = vst [vmem:[#allocation107_spill] sm:$0xff] %v5783_v19  ;;  %v5804_v19 = vld [vmem:[%s4570_s11 + $0x48] sm:$0xff] }
 0x252   : > { %1691 = vperm.xlu1 %4151, %v5585_v5   ;;  %3184 = vmatmul.f32.gmra.mxu2 %v1451_v22  ;;  %v1361_v22 = vmul.f32 %v5768_v45, %v5457_v13  ;;  %6823 = vst [vmem:[#allocation105_spill] sm:$0xff] %v5777_v41  ;;  %v5780_v60 = vpop.f32.mrf.mxu3  ;;  %v6716_v13 = vmov 14  }
 0x253   : > { %6824 = vst [vmem:[#allocation106_spill] sm:$0xff] %v5780_v60  ;;  %3358 = vmatpush.msrb.mxu1 %v2509_v7  ;;  %4158 = vset.pattern.permute.xlu0 %v6716_v13  ;;  %v5797_v60 = vld [vmem:[%s4570_s11 + $0x68] sm:$0xff]  ;;  %v5800_v13 = vpop.f32.mrf.mxu0 }
 0x254   : > { %1863 = vperm.xlu0 %4158, %v5657_v53   ;;  %6826 = vst [vmem:[#allocation108_spill] sm:$0xff] %v5800_v13 }
 0x257   : > { %v5772_v54 = vpop.permute.xlu1 %1435  ;;  %1703 = vperm.xlu2 %4146, %v5612_v14   ;;  %v5775_v40 = vpop.permute.xlu2 %1503 }
 0x258   : > { %3299 = vmatmul.f32.vlgmr.msrb.gmra.mxu0 %v1638_v46  ;;  %v5787_v46 = vld [vmem:[%s4649_s13 + $0x60] sm:$0xff]  ;;  %v5817_v13 = vpop.f32.mrf.mxu1 }
 0x259   : > { %3137 = vmatmul.f32.gmra.mxu1 %v1361_v22  ;;  %v1362_v22 = vmul.f32 %v5787_v46, %v5600_v43  ;;  %v5807_v43 = vpop.f32.mrf.mxu2  ;;  %6829 = vst [vmem:[#allocation111_spill] sm:$0xff] %v5817_v13  ;;  %v1364_v13 = vmul.f32 %v5698_v10, %v5477_v44  ;;  %v2505_v44 = vld [vmem:[#allocation7 + $0x608] sm:$0xff] }
 0x25a   : > { %1699 = vperm.xlu1 %4151, %v5628_v17   ;;  %3187 = vmatmul.f32.gmra.mxu2 %v1452_v28  ;;  %v1453_v28 = vmul.f32 %v5292_v16, %v5710_v3  ;;  %6827 = vst [vmem:[#allocation109_spill] sm:$0xff] %v5807_v43  ;;  %v5809_v16 = vpop.f32.mrf.mxu3  ;;  %v2508_v3 = vld [vmem:[#allocation7 + $0x620] sm:$0xff]  ;;  %v5823_v43 = vld [vmem:[%s4649_s13 + $0x8] sm:$0xff] }
 0x25b   : > { %6828 = vst [vmem:[#allocation110_spill] sm:$0xff] %v5809_v16  ;;  %3359 = vmatpush.msrb.mxu1 %v2508_v3  ;;  %v5830_v3 = vld [vmem:[%s4570_s11 + $0x60] sm:$0xff]  ;;  %v2507_v16 = vld [vmem:[#allocation7 + $0x618] sm:$0xff] }
 0x25c   : > { %4163 = vset.pattern.permute.xlu0 %v6718_v6  ;;  %v1543_v6 = vmul.f32 %v5823_v43, %v5713_v4  ;;  %v5841_v4 = vld [vmem:[%s4649_s13 + $0x10] sm:$0xff] }
 0x25d   : > { %1775 = vperm.xlu0 %4163, %v5573_v36   ;;  %3360 = vmatpush.msrb.mxu1 %v2507_v16 }
 0x25f   : > { %v5791_v41 = vpop.permute.xlu2 %1515  ;;  %4152 = vset.pattern.permute.xlu2 %v6798_v42 }
 0x260   : > { %v1480_v7 = vpop.permute.xlu1 %1479  ;;  %1627 = vperm.xlu2 %4152, %v5797_v60   ;;  %v5850_v16 = vpop.f32.mrf.mxu1 }
 0x261   : > { %v1542_v49 = vmul.f32 %v5760_v12, %v1480_v7  ;;  %3140 = vmatmul.f32.gmra.mxu1 %v1362_v22  ;;  %v1363_v7 = vmul.f32 %v5669_v35, %v5521_v15  ;;  %v5827_v15 = vpop.f32.mrf.mxu0  ;;  %6833 = vst [vmem:[#allocation115_spill] sm:$0xff] %v5850_v16 }
 0x262   : > { %1707 = vperm.xlu1 %4151, %v5804_v19   ;;  %3190 = vmatmul.f32.gmra.mxu2 %v1453_v28  ;;  %6830 = vst [vmem:[#allocation112_spill] sm:$0xff] %v5827_v15  ;;  %v5838_v62 = vpop.f32.mrf.mxu3  ;;  %v2506_v15 = vld [vmem:[#allocation7 + $0x610] sm:$0xff] }
 0x263   : > { %3234 = vmatmul.f32.vlgmr.msrb.gmra.mxu3 %v1542_v49  ;;  %v1454_v49 = vmul.f32 %v5676_v25, %v5631_v48  ;;  %v5834_v48 = vpop.f32.mrf.mxu2  ;;  %6832 = vst [vmem:[#allocation114_spill] sm:$0xff] %v5838_v62  ;;  %3361 = vmatpush.msrb.mxu1 %v2506_v15  ;;  %v1456_v15 = vmul.f32 %v5739_v31, %v5743_v24 }
 0x264   : > { %6831 = vst [vmem:[#allocation113_spill] sm:$0xff] %v5834_v48 }
 0x265   : > { %3362 = vmatpush.msrb.mxu1 %v2505_v44 }
 0x267   : > { %v5814_v22 = vpop.permute.xlu2 %1527  ;;  %3363 = vmatpush.msrb.mxu1 %v2504_v38 }
 0x268   : > { %v1492_v28 = vpop.permute.xlu1 %1491  ;;  %4154 = vset.pattern.permute.xlu2 %v6809_v30  ;;  %v5875_v24 = vpop.f32.mrf.mxu1 }
 0x269   : > { %3143 = vmatmul.f32.gmra.mxu1 %v1363_v7  ;;  %1719 = vperm.xlu2 %4154, %v5830_v3   ;;  %v1544_v7 = vmul.f32 %v5841_v4, %v5615_v58  ;;  %v5853_v48 = vpop.f32.mrf.mxu0  ;;  %v1365_v58 = vmul.f32 %v5728_v33, %v5625_v39  ;;  %v6836_v39 = vmov 13   ;;  %6837 = vst [vmem:[#allocation118_spill] sm:$0xff] %v5875_v24  ;;  %v6720_v24 = vmov 15  }
 0x26a   : > { %1715 = vperm.xlu1 %4151, %v5720_v50   ;;  %3193 = vmatmul.f32.gmra.mxu2 %v1454_v49  ;;  %6834 = vst [vmem:[#allocation116_spill] sm:$0xff] %v5853_v48  ;;  %v5871_v44 = vpop.f32.mrf.mxu3 }
 0x26b   : > { %3237 = vmatmul.f32.gmra.mxu3 %v1543_v6  ;;  %6835 = vst [vmem:[#allocation117_spill] sm:$0xff] %v5871_v44  ;;  %v5887_v44 = vld [vmem:[%s4649_s13 + $0x20] sm:$0xff]  ;;  %4166 = vset.pattern.permute.xlu0 %v6720_v24 }
 0x26c   : > { %1967 = vperm.xlu0 %4166, %v5573_v36  }
 0x26f   : > { %v5847_v49 = vpop.permute.xlu2 %1539 }
 0x270   : > { %v1500_v6 = vpop.permute.xlu1 %1499 }
 0x271   : > { %3146 = vmatmul.f32.gmra.mxu1 %v1364_v13  ;;  %1723 = vperm.xlu2 %4154, %v5797_v60   ;;  %v5858_v13 = vpop.f32.mrf.mxu2  ;;  %v5878_v38 = vpop.f32.mrf.mxu0 }
 0x272   : > { %4155 = vset.pattern.permute.xlu1 %v6798_v42  ;;  %3196 = vmatmul.f32.gmra.mxu2 %v1455_v51  ;;  %v5867_v51 = vld [vmem:[%s4649_s13 + $0x18] sm:$0xff]  ;;  %6838 = vst [vmem:[#allocation119_spill] sm:$0xff] %v5878_v38  ;;  %v5895_v38 = vpop.f32.mrf.mxu3 }
 0x273   : > { %1631 = vperm.xlu1 %4155, %v5735_v20   ;;  %3240 = vmatmul.f32.gmra.mxu3 %v1544_v7  ;;  %v1545_v7 = vmul.f32 %v5867_v51, %v1492_v28  ;;  %v1457_v28 = vmul.f32 %v5768_v45, %v5649_v0  ;;  %v2551_v0 = vld [vmem:[#allocation7 + $0x778] sm:$0xff]  ;;  %6840 = vst [vmem:[#allocation121_spill] sm:$0xff] %v5895_v38 }
 0x274   : > { %3478 = vmatpush.msra.mxu3 %v2551_v0  ;;  %v2534_v0 = vld [vmem:[#allocation7 + $0x6f0] sm:$0xff] }
 0x278   : > { %v5862_v62 = vpop.permute.xlu1 %1511  ;;  %v5864_v16 = vpop.permute.xlu2 %1583 }
 0x279   : > { %3149 = vmatmul.f32.gmra.mxu1 %v1365_v58  ;;  %4157 = vset.pattern.permute.xlu2 %v6798_v42  ;;  %v5891_v48 = vpop.f32.mrf.mxu2 }
 0x27a   : > { %3199 = vmatmul.f32.gmra.mxu2 %v1456_v15  ;;  %1635 = vperm.xlu2 %4157, %v5541_v59   ;;  %v1546_v15 = vmul.f32 %v5887_v44, %v5749_v29  ;;  %6839 = vst [vmem:[#allocation120_spill] sm:$0xff] %v5891_v48  ;;  %v5899_v29 = vpop.f32.mrf.mxu1  ;;  %v5922_v34 = vpop.f32.mrf.mxu3 }
 0x27b   : > { %4156 = vset.pattern.permute.xlu1 %v6836_v39  ;;  %3243 = vmatmul.f32.gmra.mxu3 %v1545_v7  ;;  %v2535_v7 = vld [vmem:[#allocation7 + $0x6f8] sm:$0xff]  ;;  %6841 = vst [vmem:[#allocation122_spill] sm:$0xff] %v5899_v29  ;;  %v2550_v29 = vld [vmem:[#allocation7 + $0x770] sm:$0xff] }
 0x27c   : > { %1767 = vperm.xlu1 %4156, %v5657_v53   ;;  %3413 = vmatpush.msra.mxu2 %v2535_v7  ;;  %6846 = vst [vmem:[#allocation126_spill] sm:$0xff] %v5922_v34 }
 0x27d   : > { %3479 = vmatpush.msra.mxu3 %v2550_v29  ;;  %v2533_v29 = vld [vmem:[#allocation7 + $0x6e8] sm:$0xff] }
 0x27e   : > { %3414 = vmatpush.msra.mxu2 %v2534_v0 }
 0x280   : > { %v5882_v58 = vpop.permute.xlu1 %1523  ;;  %v5884_v42 = vpop.permute.xlu2 %1591  ;;  %3415 = vmatpush.msra.mxu2 %v2533_v29  ;;  %v1460_v29 = vmul.f32 %v5698_v10, %v5673_v9  ;;  %v2548_v9 = vld [vmem:[#allocation7 + $0x760] sm:$0xff] }
 0x281   : > { %v5916_v56 = vpop.f32.mrf.mxu2 }
 0x282   : > { %3202 = vmatmul.f32.gmra.mxu2 %v1457_v28  ;;  %4160 = vset.pattern.permute.xlu2 %v6836_v39  ;;  %v5902_v28 = vpop.f32.mrf.mxu0  ;;  %6843 = vst [vmem:[#allocation124_spill] sm:$0xff] %v5916_v56  ;;  %v5920_v27 = vpop.f32.mrf.mxu1 }
 0x283   : > { %3246 = vmatmul.f32.gmra.mxu3 %v1546_v15  ;;  %1771 = vperm.xlu2 %4160, %v5687_v11   ;;  %6842 = vst [vmem:[#allocation123_spill] sm:$0xff] %v5902_v28  ;;  %v1458_v15 = vmul.f32 %v5787_v46, %v5558_v61  ;;  %v2567_v28 = vld [vmem:[#allocation7 + $0x7f8] sm:$0xff]  ;;  %v6844_v61 = vmov 14  }
 0x284   : > { %4159 = vset.pattern.permute.xlu1 %v6809_v30  ;;  %v5912_v30 = vld [vmem:[%s4649_s13 + $0x28] sm:$0xff]  ;;  %6845 = vst [vmem:[#allocation125_spill] sm:$0xff] %v5920_v27  ;;  %3543 = vmatpush.msra.mxu0 %v2567_v28  ;;  %v2566_v27 = vld [vmem:[#allocation7 + $0x7f0] sm:$0xff] }
 0x285   : > { %1731 = vperm.xlu1 %4159, %v5541_v59   ;;  %v1547_v7 = vmul.f32 %v5912_v30, %v1500_v6  ;;  %v2055_v6 = vld [vmem:[%s6702_s2 + $0x8] sm:$0xff]  ;;  %4169 = vset.pattern.permute.xlu0 %v6844_v61 }
 0x286   : > { %3655 = vmatpush.msra.mxu1 %v2055_v6  ;;  %1883 = vperm.xlu0 %4169, %v5585_v5  }
 0x287   : > { %3544 = vmatpush.msra.mxu0 %v2566_v27  ;;  %v5962_v27 = vpop.permute.xlu0 %1683 }
 0x288   : > { %v5907_v48 = vpop.permute.xlu1 %1535  ;;  %v5909_v38 = vpop.permute.xlu2 %1603 }
 0x28a   : > { %3205 = vmatmul.f32.gmra.mxu2 %v1458_v15  ;;  %v5933_v15 = vld [vmem:[%s4649_s13 + $0x30] sm:$0xff]  ;;  %v5944_v56 = vpop.f32.mrf.mxu1 }
 0x28b   : > { %3249 = vmatmul.f32.gmra.mxu3 %v1547_v7  ;;  %4162 = vset.pattern.permute.xlu2 %v6720_v24  ;;  %v1548_v7 = vmul.f32 %v5933_v15, %v5775_v40  ;;  %v5937_v24 = vpop.f32.mrf.mxu0  ;;  %v5942_v40 = vpop.f32.mrf.mxu2  ;;  %6849 = vst [vmem:[#allocation129_spill] sm:$0xff] %v5944_v56 }
 0x28c   : > { %1959 = vperm.xlu2 %4162, %v5657_v53   ;;  %v1459_v53 = vmul.f32 %v5669_v35, %v5772_v54  ;;  %6847 = vst [vmem:[#allocation127_spill] sm:$0xff] %v5937_v24  ;;  %v2549_v54 = vld [vmem:[#allocation7 + $0x768] sm:$0xff] }
 0x28d   : > { %4161 = vset.pattern.permute.xlu1 %v6844_v61  ;;  %3480 = vmatpush.msra.mxu3 %v2549_v54  ;;  %6848 = vst [vmem:[#allocation128_spill] sm:$0xff] %v5942_v40 }
 0x28e   : > { %1867 = vperm.xlu1 %4161, %v5687_v11   ;;  %4172 = vset.pattern.permute.xlu0 %v6836_v39 }
 0x28f   : > { %1795 = vperm.xlu0 %4172, %v5628_v17   ;;  %3481 = vmatpush.msra.mxu3 %v2548_v9  ;;  %v2531_v9 = vld [vmem:[#allocation7 + $0x6d8] sm:$0xff] }
 0x291   : > { %v1580_v0 = vpop.permute.xlu1 %1579  ;;  %v1672_v28 = vpop.permute.xlu2 %1671 }
 0x292   : > { %v1639_v6 = vmul.f32 %v5823_v43, %v1580_v0  ;;  %v1734_v34 = vmul.f32 %v5760_v12, %v1672_v28  ;;  %3208 = vmatmul.f32.gmra.mxu2 %v1459_v53  ;;  %v5949_v53 = vpop.f32.mrf.mxu3  ;;  %v5953_v0 = vld [vmem:[%s4649_s13 + $0x38] sm:$0xff] }
 0x293   : > { %3252 = vmatmul.f32.gmra.mxu3 %v1548_v7  ;;  %v2532_v7 = vld [vmem:[#allocation7 + $0x6e0] sm:$0xff]  ;;  %v5964_v54 = vpop.f32.mrf.mxu0 }
 0x294   : > { %3302 = vmatmul.f32.gmra.mxu0 %v1639_v6  ;;  %3364 = vmatmul.f32.vlgmr.msrb.gmra.mxu1 %v1734_v34  ;;  %v1549_v34 = vmul.f32 %v5953_v0, %v5642_v8  ;;  %v2565_v6 = vld [vmem:[#allocation7 + $0x7e8] sm:$0xff]  ;;  %6850 = vst [vmem:[#allocation130_spill] sm:$0xff] %v5964_v54  ;;  %v1461_v8 = vmul.f32 %v5728_v33, %v5588_v47  ;;  %v2547_v47 = vld [vmem:[#allocation7 + $0x758] sm:$0xff] }
 0x295   : > { %1963 = vperm.xlu2 %4162, %v5687_v11   ;;  %3416 = vmatpush.msra.mxu2 %v2532_v7  ;;  %v1550_v7 = vmul.f32 %v5676_v25, %v5862_v62  ;;  %v1596_v62 = vpop.permute.xlu0 %1595 }
 0x296   : > { %1871 = vperm.xlu1 %4161, %v5573_v36   ;;  %v1640_v36 = vmul.f32 %v5841_v4, %v5864_v16  ;;  %3545 = vmatpush.msra.mxu0 %v2565_v6  ;;  %v5972_v16 = vpop.f32.mrf.mxu2  ;;  %v6853_v6 = vmov 15  }
 0x297   : > { %6851 = vst [vmem:[#allocation131_spill] sm:$0xff] %v5972_v16  ;;  %4175 = vset.pattern.permute.xlu0 %v6853_v6  ;;  %3417 = vmatpush.msra.mxu2 %v2531_v9 }
 0x298   : > { %1987 = vperm.xlu0 %4175, %v5628_v17   ;;  %3482 = vmatpush.msra.mxu3 %v2547_v47  ;;  %v2546_v47 = vld [vmem:[#allocation7 + $0x750] sm:$0xff] }
 0x299   : > { %v1588_v11 = vpop.permute.xlu1 %1587  ;;  %v5957_v28 = vpop.permute.xlu2 %1679 }
 0x29a   : > { %3211 = vmatmul.f32.gmra.mxu2 %v1460_v29  ;;  %v5974_v29 = vpop.f32.mrf.mxu1  ;;  %v5983_v54 = vpop.f32.mrf.mxu3  ;;  %v1641_v24 = vmul.f32 %v5867_v51, %v1588_v11  ;;  %v1551_v11 = vmul.f32 %v5706_v63, %v5791_v41  ;;  %3483 = vmatpush.msra.mxu3 %v2546_v47 }
 0x29b   : > { %3255 = vmatmul.f32.gmra.mxu3 %v1549_v34  ;;  %6852 = vst [vmem:[#allocation132_spill] sm:$0xff] %v5974_v29  ;;  %v2564_v29 = vld [vmem:[#allocation7 + $0x7e0] sm:$0xff]  ;;  %v5987_v56 = vpop.f32.mrf.mxu0 }
 0x29c   : > { %3305 = vmatmul.f32.gmra.mxu0 %v1640_v36  ;;  %6854 = vst [vmem:[#allocation133_spill] sm:$0xff] %v5987_v56  ;;  %v2563_v56 = vld [vmem:[#allocation7 + $0x7d8] sm:$0xff] }
 0x29d   : > { %4165 = vset.pattern.permute.xlu2 %v6844_v61  ;;  %3546 = vmatpush.msra.mxu0 %v2564_v29  ;;  %v6007_v40 = vpop.permute.xlu0 %1607 }
 0x29e   : > { %4164 = vset.pattern.permute.xlu1 %v6836_v39  ;;  %1875 = vperm.xlu2 %4165, %v5553_v55   ;;  %v6002_v29 = vpop.f32.mrf.mxu2 }
 0x29f   : > { %1779 = vperm.xlu1 %4164, %v5553_v55   ;;  %6856 = vst [vmem:[#allocation135_spill] sm:$0xff] %v6002_v29  ;;  %3547 = vmatpush.msra.mxu0 %v2563_v56  ;;  %v2545_v29 = vld [vmem:[#allocation7 + $0x748] sm:$0xff] }
 0x2a0   : > { %4178 = vset.pattern.permute.xlu0 %v6844_v61  ;;  %3484 = vmatpush.msra.mxu3 %v2545_v29 }
 0x2a1   : > { %v5978_v34 = vpop.permute.xlu1 %1599  ;;  %v5980_v36 = vpop.permute.xlu2 %1687  ;;  %1903 = vperm.xlu0 %4178, %v5639_v21  }
 0x2a2   : > { %3214 = vmatmul.f32.gmra.mxu2 %v1461_v8  ;;  %v5999_v9 = vpop.f32.mrf.mxu1  ;;  %v6005_v41 = vpop.f32.mrf.mxu3 }
 0x2a3   : > { %3258 = vmatmul.f32.gmra.mxu3 %v1550_v7  ;;  %v2530_v7 = vld [vmem:[#allocation7 + $0x6d0] sm:$0xff]  ;;  %6855 = vst [vmem:[#allocation134_spill] sm:$0xff] %v5999_v9 }
 0x2a4   : > { %3308 = vmatmul.f32.gmra.mxu0 %v1641_v24  ;;  %v1642_v24 = vmul.f32 %v5887_v44, %v5884_v42  ;;  %3418 = vmatpush.msra.mxu2 %v2530_v7  ;;  %6857 = vst [vmem:[#allocation136_spill] sm:$0xff] %v6005_v41  ;;  %v6012_v42 = vpop.f32.mrf.mxu0  ;;  %v1552_v7 = vmul.f32 %v5739_v31, %v5666_v26  ;;  %v2562_v41 = vld [vmem:[#allocation7 + $0x7d0] sm:$0xff] }
 0x2a5   : > { %6858 = vst [vmem:[#allocation137_spill] sm:$0xff] %v6012_v42  ;;  %3548 = vmatpush.msra.mxu0 %v2562_v41  ;;  %v1644_v41 = vmul.f32 %v5933_v15, %v5978_v34  ;;  %v2527_v34 = vld [vmem:[#allocation7 + $0x6b8] sm:$0xff] }
 0x2a6   : > { %1879 = vperm.xlu2 %4165, %v5603_v1  }
 0x2a7   : > { %1783 = vperm.xlu1 %4164, %v5603_v1  }
 0x2a9   : > { %v5993_v8 = vpop.permute.xlu1 %1611  ;;  %v5995_v16 = vpop.permute.xlu2 %1695  ;;  %4181 = vset.pattern.permute.xlu0 %v6836_v39 }
 0x2aa   : > { %v6022_v42 = vpop.f32.mrf.mxu1  ;;  %v6026_v26 = vpop.f32.mrf.mxu3  ;;  %1815 = vperm.xlu0 %4181, %v5830_v3  }
 0x2ab   : > { %3261 = vmatmul.f32.gmra.mxu3 %v1551_v11  ;;  %v1643_v11 = vmul.f32 %v5912_v30, %v1596_v62  ;;  %6859 = vst [vmem:[#allocation138_spill] sm:$0xff] %v6022_v42  ;;  %v6028_v62 = vpop.permute.xlu0 %1615  ;;  %v2544_v42 = vld [vmem:[#allocation7 + $0x740] sm:$0xff] }
 0x2ac   : > { %3311 = vmatmul.f32.gmra.mxu0 %v1642_v24  ;;  %v2529_v24 = vld [vmem:[#allocation7 + $0x6c8] sm:$0xff]  ;;  %6861 = vst [vmem:[#allocation140_spill] sm:$0xff] %v6026_v26  ;;  %v6035_v29 = vpop.f32.mrf.mxu0  ;;  %3485 = vmatpush.msra.mxu3 %v2544_v42  ;;  %v1554_v42 = vmul.f32 %v5787_v46, %v5814_v22 }
 0x2ad   : > { %3419 = vmatpush.msra.mxu2 %v2529_v24  ;;  %v2525_v22 = vld [vmem:[#allocation7 + $0x6a8] sm:$0xff] }
 0x2ae   : > { %4168 = vset.pattern.permute.xlu2 %v6836_v39 }
 0x2af   : > { %4167 = vset.pattern.permute.xlu1 %v6853_v6  ;;  %1787 = vperm.xlu2 %4168, %v5585_v5  }
 0x2b0   : > { %1971 = vperm.xlu1 %4167, %v5553_v55   ;;  %v6024_v55 = vpop.f32.mrf.mxu2 }
 0x2b1   : > { %v6018_v9 = vpop.permute.xlu2 %1703  ;;  %6860 = vst [vmem:[#allocation139_spill] sm:$0xff] %v6024_v55  ;;  %v2561_v55 = vld [vmem:[#allocation7 + $0x7c8] sm:$0xff] }
 0x2b2   : > { %v1676_v47 = vpop.permute.xlu1 %1675  ;;  %3549 = vmatpush.msra.mxu0 %v2561_v55  ;;  %4184 = vset.pattern.permute.xlu0 %v6853_v6  ;;  %v1737_v55 = vmul.f32 %v5867_v51, %v5962_v27  ;;  %v2542_v27 = vld [vmem:[#allocation7 + $0x730] sm:$0xff] }
 0x2b3   : > { %v1735_v56 = vmul.f32 %v5823_v43, %v1676_v47  ;;  %3264 = vmatmul.f32.gmra.mxu3 %v1552_v7  ;;  %v2528_v7 = vld [vmem:[#allocation7 + $0x6c0] sm:$0xff]  ;;  %v1736_v47 = vmul.f32 %v5841_v4, %v5957_v28  ;;  %2007 = vperm.xlu0 %4184, %v5830_v3   ;;  %v6052_v28 = vpop.f32.mrf.mxu3 }
 0x2b4   : > { %3314 = vmatmul.f32.gmra.mxu0 %v1643_v11  ;;  %3420 = vmatpush.msra.mxu2 %v2528_v7  ;;  %v1553_v11 = vmul.f32 %v5768_v45, %v5882_v58  ;;  %6864 = vst [vmem:[#allocation143_spill] sm:$0xff] %v6052_v28  ;;  %v6055_v7 = vpop.permute.xlu0 %1623  ;;  %v6067_v28 = vpop.f32.mrf.mxu0 }
 0x2b5   : > { %3367 = vmatmul.f32.gmra.mxu1 %v1735_v56  ;;  %6865 = vst [vmem:[#allocation144_spill] sm:$0xff] %v6067_v28  ;;  %v1646_v28 = vmul.f32 %v5676_v25, %v6007_v40  ;;  %v1738_v40 = vmul.f32 %v5887_v44, %v5980_v36  ;;  %v2521_v36 = vld [vmem:[#allocation7 + $0x688] sm:$0xff] }
 0x2b6   : > { %3421 = vmatpush.msra.mxu2 %v2527_v34 }
 0x2b7   : > { %1791 = vperm.xlu2 %4168, %v5746_v18  }
 0x2b8   : > { %1975 = vperm.xlu1 %4167, %v5603_v1   ;;  %v6045_v1 = vpop.f32.mrf.mxu1  ;;  %v6048_v58 = vpop.f32.mrf.mxu2 }
 0x2b9   : > { %6862 = vst [vmem:[#allocation141_spill] sm:$0xff] %v6045_v1  ;;  %v2560_v1 = vld [vmem:[#allocation7 + $0x7c0] sm:$0xff] }
 0x2ba   : > { %v6039_v24 = vpop.permute.xlu2 %1627  ;;  %6863 = vst [vmem:[#allocation142_spill] sm:$0xff] %v6048_v58  ;;  %v2526_v58 = vld [vmem:[#allocation7 + $0x6b0] sm:$0xff]  ;;  %3550 = vmatpush.msra.mxu0 %v2560_v1  ;;  %v1555_v1 = vmul.f32 %v5669_v35, %v5702_v57 }
 0x2bb   : > { %3267 = vmatmul.f32.gmra.mxu3 %v1553_v11  ;;  %v6043_v56 = vpop.permute.xlu1 %1619  ;;  %v1645_v11 = vmul.f32 %v5953_v0, %v5909_v38  ;;  %3422 = vmatpush.msra.mxu2 %v2526_v58  ;;  %v2524_v38 = vld [vmem:[#allocation7 + $0x6a0] sm:$0xff]  ;;  %v2523_v58 = vld [vmem:[#allocation7 + $0x698] sm:$0xff] }
 0x2bc   : > { %3317 = vmatmul.f32.gmra.mxu0 %v1644_v41  ;;  %4187 = vset.pattern.permute.xlu0 %v6844_v61  ;;  %v6091_v57 = vpop.f32.mrf.mxu0 }
 0x2bd   : > { %3370 = vmatmul.f32.gmra.mxu1 %v1736_v47  ;;  %v2543_v47 = vld [vmem:[#allocation7 + $0x738] sm:$0xff]  ;;  %3423 = vmatpush.msra.mxu2 %v2525_v22 }
 0x2be   : > { %3486 = vmatpush.msra.mxu3 %v2543_v47  ;;  %v2540_v47 = vld [vmem:[#allocation7 + $0x720] sm:$0xff]  ;;  %1923 = vperm.xlu0 %4187, %v5541_v59   ;;  %v2559_v22 = vld [vmem:[#allocation7 + $0x7b8] sm:$0xff] }
 0x2bf   : > { %4171 = vset.pattern.permute.xlu2 %v6853_v6  ;;  %3424 = vmatpush.msra.mxu2 %v2524_v38  ;;  %v2054_v59 = vld [vmem:[%s6702_s2] sm:$0xff]  ;;  %v2538_v38 = vld [vmem:[#allocation7 + $0x710] sm:$0xff] }
 0x2c0   : > { %4170 = vset.pattern.permute.xlu1 %v6844_v61  ;;  %1979 = vperm.xlu2 %4171, %v5585_v5   ;;  %v6069_v34 = vpop.f32.mrf.mxu2  ;;  %v6072_v26 = vpop.f32.mrf.mxu1 }
 0x2c1   : > { %1887 = vperm.xlu1 %4170, %v5746_v18   ;;  %3487 = vmatpush.msra.mxu3 %v2542_v27  ;;  %6866 = vst [vmem:[#allocation145_spill] sm:$0xff] %v6069_v34  ;;  %v2522_v27 = vld [vmem:[#allocation7 + $0x690] sm:$0xff]  ;;  %v2553_v34 = vld [vmem:[#allocation7 + $0x788] sm:$0xff] }
 0x2c2   : > { %6867 = vst [vmem:[#allocation146_spill] sm:$0xff] %v6072_v26  ;;  %3425 = vmatpush.msra.mxu2 %v2523_v58  ;;  %3551 = vmatpush.msra.mxu0 %v2559_v22  ;;  %v2537_v58 = vld [vmem:[#allocation7 + $0x708] sm:$0xff] }
 0x2c3   : > { %3270 = vmatmul.f32.gmra.mxu3 %v1554_v42  ;;  %v6065_v41 = vpop.permute.xlu2 %1719  ;;  %v2541_v42 = vld [vmem:[#allocation7 + $0x728] sm:$0xff]  ;;  %3656 = vmatpush.msra.mxu1 %v2054_v59 }
 0x2c4   : > { %v1692_v5 = vpop.permute.xlu1 %1691  ;;  %3320 = vmatmul.f32.gmra.mxu0 %v1645_v11  ;;  %v6077_v11 = vpop.permute.xlu0 %1711  ;;  %3488 = vmatpush.msra.mxu3 %v2541_v42  ;;  %v1556_v42 = vmul.f32 %v5698_v10, %v5907_v48  ;;  %v2536_v48 = vld [vmem:[#allocation7 + $0x700] sm:$0xff] }
 0x2c5   : > { %3373 = vmatmul.f32.gmra.mxu1 %v1737_v55  ;;  %v6082_v55 = vpop.f32.mrf.mxu3  ;;  %3426 = vmatpush.msra.mxu2 %v2522_v27  ;;  %v1739_v27 = vmul.f32 %v5912_v30, %v1692_v5  ;;  %v1557_v5 = vmul.f32 %v5728_v33, %v5847_v49 }
 0x2c6   : > { %3489 = vmatpush.msra.mxu3 %v2540_v47  ;;  %v1647_v47 = vmul.f32 %v5706_v63, %v5993_v8  ;;  %4189 = vset.pattern.permute.xlu0 %v6853_v6 }
 0x2c7   : > { %3427 = vmatpush.msra.mxu2 %v2521_v36 }
 0x2c8   : > { %1983 = vperm.xlu2 %4171, %v5746_v18  }
 0x2c9   : > { %1891 = vperm.xlu1 %4170, %v5628_v17   ;;  %v2539_v17 = vld [vmem:[#allocation7 + $0x718] sm:$0xff] }
 0x2ca   : > { %3490 = vmatpush.msra.mxu3 %v2539_v17  ;;  %v2558_v17 = vld [vmem:[#allocation7 + $0x7b0] sm:$0xff] }
 0x2cb   : > { %3273 = vmatmul.f32.gmra.mxu3 %v1555_v1  ;;  %v6087_v18 = vpop.permute.xlu2 %1723  ;;  %v6099_v1 = vpop.f32.mrf.mxu2  ;;  %3552 = vmatpush.msra.mxu0 %v2558_v17 }
 0x2cc   : > { %v6089_v26 = vpop.permute.xlu1 %1699  ;;  %3323 = vmatmul.f32.gmra.mxu0 %v1646_v28  ;;  %v2520_v28 = vld [vmem:[#allocation7 + $0x680] sm:$0xff]  ;;  %6868 = vst [vmem:[#allocation147_spill] sm:$0xff] %v6099_v1  ;;  %v6108_v22 = vpop.permute.xlu0 %1727  ;;  %3491 = vmatpush.msra.mxu3 %v2538_v38  ;;  %v2557_v38 = vld [vmem:[#allocation7 + $0x7a8] sm:$0xff] }
 0x2cd   : > { %3376 = vmatmul.f32.gmra.mxu1 %v1738_v40  ;;  %v6105_v40 = vpop.f32.mrf.mxu1  ;;  %3428 = vmatpush.msra.mxu2 %v2520_v28  ;;  %v6111_v59 = vpop.f32.mrf.mxu3 }
 0x2ce   : > { %6869 = vst [vmem:[#allocation148_spill] sm:$0xff] %v6105_v40  ;;  %3492 = vmatpush.msra.mxu3 %v2537_v58  ;;  %3553 = vmatpush.msra.mxu0 %v2557_v38  ;;  %v1740_v58 = vmul.f32 %v5933_v15, %v5995_v16  ;;  %v1649_v16 = vmul.f32 %v5768_v45, %v6043_v56  ;;  %v2555_v56 = vld [vmem:[#allocation7 + $0x798] sm:$0xff] }
 0x2d0   : > { %4174 = vset.pattern.permute.xlu2 %v6844_v61  ;;  %3493 = vmatpush.msra.mxu3 %v2536_v48 }
 0x2d1   : > { %4173 = vset.pattern.permute.xlu1 %v6836_v39  ;;  %1895 = vperm.xlu2 %4174, %v5612_v14  }
 0x2d2   : > { %1799 = vperm.xlu1 %4173, %v5612_v14   ;;  %v6118_v14 = vpop.f32.mrf.mxu0 }
 0x2d3   : > { %3276 = vmatmul.f32.gmra.mxu3 %v1556_v42  ;;  %v6123_v28 = vpop.f32.mrf.mxu2  ;;  %v1648_v42 = vmul.f32 %v5739_v31, %v6028_v62 }
 0x2d4   : > { %v6113_v36 = vpop.permute.xlu1 %1707  ;;  %3326 = vmatmul.f32.gmra.mxu0 %v1647_v47  ;;  %v6115_v8 = vpop.permute.xlu2 %1635  ;;  %6870 = vst [vmem:[#allocation149_spill] sm:$0xff] %v6123_v28 }
 0x2d5   : > { %3379 = vmatmul.f32.gmra.mxu1 %v1739_v27  ;;  %v6130_v47 = vpop.f32.mrf.mxu1  ;;  %v1864_v49 = vpop.permute.xlu0 %1863 }
 0x2d6   : > { %v6134_v48 = vpop.f32.mrf.mxu3  ;;  %v1926_v17 = vmul.f32 %v5760_v12, %v1864_v49 }
 0x2d9   : > { %1899 = vperm.xlu2 %4174, %v5804_v19  }
 0x2da   : > { %1803 = vperm.xlu1 %4173, %v5804_v19   ;;  %v6138_v38 = vpop.f32.mrf.mxu0 }
 0x2db   : > { %3279 = vmatmul.f32.gmra.mxu3 %v1557_v5  ;;  %v1741_v5 = vmul.f32 %v5953_v0, %v6089_v26  ;;  %v6150_v49 = vpop.f32.mrf.mxu2  ;;  %v2554_v26 = vld [vmem:[#allocation7 + $0x790] sm:$0xff] }
 0x2dc   : > { %3329 = vmatmul.f32.gmra.mxu0 %v1648_v42  ;;  %v6132_v27 = vpop.permute.xlu1 %1715  ;;  %v6147_v42 = vld [vmem:[%s4570_s11 + $0x40] sm:$0xff]  ;;  %6871 = vst [vmem:[#allocation150_spill] sm:$0xff] %v6150_v49 }
 0x2dd   : > { %3382 = vmatmul.f32.gmra.mxu1 %v1740_v58  ;;  %v1772_v62 = vpop.permute.xlu2 %1771  ;;  %v2556_v58 = vld [vmem:[#allocation7 + $0x7a0] sm:$0xff]  ;;  %v6152_v28 = vpop.f32.mrf.mxu1 }
 0x2de   : > { %3554 = vmatpush.msra.mxu0 %v2556_v58 }
 0x2e0   : > { %3555 = vmatpush.msra.mxu0 %v2555_v56 }
 0x2e1   : > { %4177 = vset.pattern.permute.xlu2 %v6836_v39 }
 0x2e2   : > { %4176 = vset.pattern.permute.xlu1 %v6853_v6  ;;  %1807 = vperm.xlu2 %4177, %v5639_v21   ;;  %v6164_v58 = vpop.f32.mrf.mxu0 }
 0x2e3   : > { %1991 = vperm.xlu1 %4176, %v6147_v42   ;;  %3494 = vmatmul.f32.vlgmr.msra.gmra.mxu3 %v1926_v17  ;;  %v1650_v17 = vmul.f32 %v5787_v46, %v6055_v7  ;;  %v6166_v56 = vpop.f32.mrf.mxu2 }
 0x2e4   : > { %3332 = vmatmul.f32.gmra.mxu0 %v1649_v16  ;;  %v1742_v16 = vmul.f32 %v5676_v25, %v6018_v9  ;;  %6873 = vst [vmem:[#allocation152_spill] sm:$0xff] %v6166_v56  ;;  %v1743_v9 = vmul.f32 %v5706_v63, %v6113_v36  ;;  %v1744_v36 = vmul.f32 %v5739_v31, %v6077_v11 }
 0x2e5   : > { %3385 = vmatmul.f32.gmra.mxu1 %v1741_v5  ;;  %v1632_v40 = vpop.permute.xlu1 %1631  ;;  %3556 = vmatpush.msra.mxu0 %v2554_v26  ;;  %v2552_v5 = vld [vmem:[#allocation7 + $0x780] sm:$0xff]  ;;  %v6173_v25 = vpop.f32.mrf.mxu1 }
 0x2e6   : > { %v6154_v1 = vpop.f32.mrf.mxu3  ;;  %v6156_v21 = vpop.permute.xlu2 %1959 }
 0x2e7   : > { %6872 = vst [vmem:[#allocation151_spill] sm:$0xff] %v6154_v1  ;;  %3557 = vmatpush.msra.mxu0 %v2553_v34  ;;  %v6182_v34 = vld [vmem:[%s4570_s11 + $0x50] sm:$0xff] }
 0x2e9   : > { %3558 = vmatpush.msra.mxu0 %v2552_v5 }
 0x2ea   : > { %1811 = vperm.xlu2 %4177, %v5720_v50  }
 0x2eb   : > { %1995 = vperm.xlu1 %4176, %v5804_v19   ;;  %v1651_v19 = vmul.f32 %v5669_v35, %v6039_v24  ;;  %v6193_v63 = vpop.f32.mrf.mxu2 }
 0x2ec   : > { %3335 = vmatmul.f32.gmra.mxu0 %v1650_v17  ;;  %v1831_v17 = vmul.f32 %v5823_v43, %v1772_v62  ;;  %6874 = vst [vmem:[#allocation153_spill] sm:$0xff] %v6193_v63 }
 0x2ed   : > { %3388 = vmatmul.f32.gmra.mxu1 %v1742_v16  ;;  %v6187_v16 = vpop.f32.mrf.mxu0 }
 0x2ee   : > { %v1768_v26 = vpop.permute.xlu1 %1767  ;;  %v6169_v49 = vpop.f32.mrf.mxu3 }
 0x2ef   : > { %v1830_v7 = vmul.f32 %v5760_v12, %v1768_v26  ;;  %v6171_v1 = vpop.permute.xlu2 %1963  ;;  %v6197_v26 = vpop.f32.mrf.mxu1 }
 0x2f1   : > { %3429 = vmatmul.f32.vlgmr.msra.gmra.mxu2 %v1830_v7  ;;  %v1652_v7 = vmul.f32 %v5698_v10, %v1632_v40  ;;  %v1653_v10 = vmul.f32 %v5728_v33, %v6115_v8  ;;  %v2022_v33 = vmul.f32 %v5760_v12, %v6156_v21 }
 0x2f2   : > { %4180 = vset.pattern.permute.xlu2 %v6853_v6 }
 0x2f3   : > { %4179 = vset.pattern.permute.xlu1 %v6844_v61  ;;  %1999 = vperm.xlu2 %4180, %v6182_v34  }
 0x2f4   : > { %1907 = vperm.xlu1 %4179, %v5720_v50   ;;  %3338 = vmatmul.f32.gmra.mxu0 %v1651_v19  ;;  %v1776_v19 = vpop.permute.xlu0 %1775 }
 0x2f5   : > { %3391 = vmatmul.f32.gmra.mxu1 %v1743_v9  ;;  %v1832_v62 = vmul.f32 %v5841_v4, %v1776_v19  ;;  %v6205_v56 = vpop.f32.mrf.mxu0 }
 0x2f6   : > { %v6189_v35 = vpop.f32.mrf.mxu3 }
 0x2f7   : > { %v6191_v24 = vpop.permute.xlu1 %1731  ;;  %v6215_v40 = vpop.f32.mrf.mxu1 }
 0x2f8   : > { %v1876_v5 = vpop.permute.xlu2 %1875 }
 0x2f9   : > { %3432 = vmatmul.f32.gmra.mxu2 %v1831_v17  ;;  %v1929_v21 = vmul.f32 %v5867_v51, %v1876_v5 }
 0x2fb   : > { %2003 = vperm.xlu2 %4180, %v5720_v50   ;;  %v1745_v50 = vmul.f32 %v5768_v45, %v6132_v27  ;;  %v1746_v27 = vmul.f32 %v5787_v46, %v6065_v41  ;;  %v2023_v46 = vmul.f32 %v5823_v43, %v6171_v1 }
 0x2fc   : > { %1911 = vperm.xlu1 %4179, %v5830_v3   ;;  %3341 = vmatmul.f32.gmra.mxu0 %v1652_v7  ;;  %v6212_v3 = vpop.f32.mrf.mxu2 }
 0x2fd   : > { %3394 = vmatmul.f32.gmra.mxu1 %v1744_v36  ;;  %v6224_v8 = vpop.f32.mrf.mxu0 }
 0x2fe   : > { %v6203_v9 = vpop.f32.mrf.mxu3 }
 0x2ff   : > { %v6232_v7 = vpop.f32.mrf.mxu1 }
 0x300   : > { %v1868_v63 = vpop.permute.xlu1 %1867  ;;  %v1880_v11 = vpop.permute.xlu2 %1879 }
 0x301   : > { %v1927_v31 = vmul.f32 %v5823_v43, %v1868_v63  ;;  %3435 = vmatmul.f32.gmra.mxu2 %v1832_v62 }
 0x303   : > { %3497 = vmatmul.f32.gmra.mxu3 %v1927_v31  ;;  %4183 = vset.pattern.permute.xlu2 %v6844_v61  ;;  %v6244_v31 = vld [vmem:[%s4649_s13 + $0x68] sm:$0xff] }
 0x304   : > { %4182 = vset.pattern.permute.xlu1 %v6836_v39  ;;  %3344 = vmatmul.f32.gmra.mxu0 %v1653_v10  ;;  %v6229_v36 = vpop.f32.mrf.mxu2  ;;  %v1747_v10 = vmul.f32 %v6244_v31, %v6087_v18  ;;  %v1930_v18 = vmul.f32 %v5887_v44, %v1880_v11 }
 0x305   : > { %1819 = vperm.xlu1 %4182, %v5797_v60   ;;  %3397 = vmatmul.f32.gmra.mxu1 %v1745_v50  ;;  %6875 = vst [vmem:[#allocation154_spill] sm:$0xff] %v6229_v36  ;;  %v6876_v50 = vld [vmem:[#allocation18_spill] sm:$0xff]  ;;  %v6886_v36 = vld [vmem:[#allocation77_spill] sm:$0xff] }
 0x306   : > { %1915 = vperm.xlu2 %4183, %v5797_v60   ;;  %v6220_v17 = vpop.f32.mrf.mxu3  ;;  %v2675_v43 = vadd.f32 %v5398_v37, %v6876_v50 }
 0x308   : > { %v1872_v45 = vpop.permute.xlu1 %1871 }
 0x309   : > { %v1928_v61 = vmul.f32 %v5841_v4, %v1872_v45  ;;  %v1788_v63 = vpop.permute.xlu2 %1787  ;;  %v6257_v45 = vld [vmem:[%s4570_s11 + $0x78] sm:$0xff] }
 0x30b   : > { %3500 = vmatmul.f32.gmra.mxu3 %v1928_v61  ;;  %v2740_v61 = vadd.f32 %v5479_v23, %v2675_v43 }
 0x30c   : > { %3559 = vmatmul.f32.vlgmr.msra.gmra.mxu0 %v2022_v33  ;;  %v3194_v1 = vpop.f32.mrf.mxu2 }
 0x30d   : > { %1823 = vperm.xlu1 %4182, %v5735_v20   ;;  %3400 = vmatmul.f32.gmra.mxu1 %v1746_v27  ;;  %v6261_v27 = vpop.f32.mrf.mxu1 }
 0x30e   : > { %1919 = vperm.xlu2 %4183, %v5735_v20   ;;  %v6235_v12 = vpop.f32.mrf.mxu3  ;;  %v1968_v20 = vpop.permute.xlu0 %1967 }
 0x30f   : > { %v2024_v37 = vmul.f32 %v5841_v4, %v1968_v20  ;;  %v6878_v4 = vld [vmem:[#allocation19_spill] sm:$0xff] }
 0x311   : > { %v1780_v19 = vpop.permute.xlu1 %1779  ;;  %v6238_v62 = vpop.f32.mrf.mxu0 }
 0x312   : > { %v1833_v41 = vmul.f32 %v5867_v51, %v1780_v19  ;;  %v1792_v5 = vpop.permute.xlu2 %1791 }
 0x313   : > { %3503 = vmatmul.f32.gmra.mxu3 %v1929_v21 }
 0x314   : > { %3438 = vmatmul.f32.gmra.mxu2 %v1833_v41  ;;  %3562 = vmatmul.f32.gmra.mxu0 %v2023_v46  ;;  %v6269_v46 = vld [vmem:[%s4649_s13 + $0x70] sm:$0xff] }
 0x315   : > { %4185 = vset.pattern.permute.xlu1 %v6853_v6  ;;  %3403 = vmatmul.f32.gmra.mxu1 %v1747_v10  ;;  %v1748_v11 = vmul.f32 %v6269_v46, %v6108_v22  ;;  %v2678_v10 = vadd.f32 %v5420_v32, %v6878_v4  ;;  %v1835_v32 = vmul.f32 %v5912_v30, %v1788_v63  ;;  %v6882_v63 = vld [vmem:[#allocation99_spill] sm:$0xff] }
 0x316   : > { %2011 = vperm.xlu1 %4185, %v5797_v60   ;;  %4186 = vset.pattern.permute.xlu2 %v6836_v39  ;;  %v6253_v33 = vpop.f32.mrf.mxu3  ;;  %v2805_v39 = vadd.f32 %v5562_v2, %v2740_v61  ;;  %v1884_v41 = vpop.permute.xlu0 %1883  ;;  %v6278_v2 = vld [vmem:[%s4570_s11 + $0x70] sm:$0xff] }
 0x317   : > { %6877 = vst [vmem:[#allocation18_spill] sm:$0xff] %v6253_v33  ;;  %1827 = vperm.xlu2 %4186, %v6257_v45   ;;  %v1931_v22 = vmul.f32 %v5912_v30, %v1884_v41  ;;  %v6296_v41 = vld [vmem:[%s4649_s13 + $0x78] sm:$0xff] }
 0x318   : > { %v2870_v23 = vadd.f32 %v5682_v52, %v2805_v39  ;;  %v6880_v52 = vld [vmem:[#allocation72_spill] sm:$0xff] }
 0x319   : > { %v1784_v21 = vpop.permute.xlu1 %1783  ;;  %v6264_v60 = vpop.f32.mrf.mxu0 }
 0x31a   : > { %v1834_v19 = vmul.f32 %v5887_v44, %v1784_v21  ;;  %v2935_v20 = vadd.f32 %v5858_v13, %v2870_v23  ;;  %v1980_v43 = vpop.permute.xlu2 %1979  ;;  %v3197_v13 = vpop.f32.mrf.mxu2  ;;  %v6881_v21 = vld [vmem:[#allocation85_spill] sm:$0xff] }
 0x31b   : > { %3506 = vmatmul.f32.gmra.mxu3 %v1930_v18  ;;  %v2743_v18 = vadd.f32 %v6880_v52, %v2678_v10 }
 0x31c   : > { %3441 = vmatmul.f32.gmra.mxu2 %v1834_v19  ;;  %3565 = vmatmul.f32.gmra.mxu0 %v2024_v37  ;;  %v3000_v61 = vadd.f32 %v5949_v53, %v2935_v20  ;;  %v6883_v20 = vld [vmem:[#allocation21_spill] sm:$0xff] }
 0x31d   : > { %3406 = vmatmul.f32.gmra.mxu1 %v1748_v11  ;;  %v2808_v39 = vadd.f32 %v6881_v21, %v2743_v18  ;;  %v6293_v11 = vpop.f32.mrf.mxu1  ;;  %v6885_v18 = vld [vmem:[#allocation120_spill] sm:$0xff] }
 0x31e   : > { %2015 = vperm.xlu1 %4185, %v6278_v2   ;;  %v6281_v50 = vpop.f32.mrf.mxu3  ;;  %v3065_v19 = vadd.f32 %v6035_v29, %v3000_v61  ;;  %v6884_v29 = vld [vmem:[#allocation64_spill] sm:$0xff] }
 0x31f   : > { %6879 = vst [vmem:[#allocation19_spill] sm:$0xff] %v6281_v50  ;;  %4188 = vset.pattern.permute.xlu2 %v6853_v6  ;;  %v1749_v6 = vmul.f32 %v6296_v41, %v6191_v24  ;;  %v2873_v4 = vadd.f32 %v6882_v63, %v2808_v39  ;;  %v2681_v52 = vadd.f32 %v6884_v29, %v6883_v20  ;;  %v6887_v39 = vld [vmem:[#allocation89_spill] sm:$0xff]  ;;  %v6891_v20 = vld [vmem:[#allocation68_spill] sm:$0xff] }
 0x320   : > { %2019 = vperm.xlu2 %4188, %v6257_v45   ;;  %v3130_v10 = vadd.f32 %v6130_v47, %v3065_v19 }
 0x321   : > { %v6289_v37 = vpop.f32.mrf.mxu0  ;;  %v2938_v61 = vadd.f32 %v6885_v18, %v2873_v4  ;;  %v2746_v33 = vadd.f32 %v6886_v36, %v2681_v52  ;;  %v6892_v52 = vld [vmem:[#allocation124_spill] sm:$0xff] }
 0x322   : > { %v1972_v23 = vpop.permute.xlu1 %1971  ;;  %v3195_v21 = vadd.f32 %v3194_v1, %v3130_v10  ;;  %v3200_v63 = vpop.f32.mrf.mxu2 }
 0x323   : > { %v2025_v53 = vmul.f32 %v5867_v51, %v1972_v23  ;;  %3509 = vmatmul.f32.gmra.mxu3 %v1931_v22  ;;  %v3003_v24 = vadd.f32 %v5983_v54, %v2938_v61  ;;  %v1836_v22 = vmul.f32 %v5933_v15, %v1792_v5  ;;  %v2811_v19 = vadd.f32 %v6887_v39, %v2746_v33  ;;  %v6888_v23 = vld [vmem:[#allocation144_spill] sm:$0xff]  ;;  %v6889_v54 = vld [vmem:[#allocation103_spill] sm:$0xff]  ;;  %v4261_v5 = vld [vmem:[%s4570_s11] sm:$0xff]  ;;  %v1796_v10 = vpop.permute.xlu0 %1795 }
 0x324   : > { %3444 = vmatmul.f32.gmra.mxu2 %v1835_v32  ;;  %v1984_v32 = vpop.permute.xlu2 %1983  ;;  %v6890_v33 = vld [vmem:[#allocation23_spill] sm:$0xff] }
 0x325   : > { %3409 = vmatmul.f32.gmra.mxu1 %v1749_v6  ;;  %3568 = vmatmul.f32.gmra.mxu0 %v2025_v53  ;;  %v3068_v6 = vadd.f32 %v6888_v23, %v3003_v24  ;;  %v6315_v53 = vpop.f32.mrf.mxu1  ;;  %v2876_v4 = vadd.f32 %v6889_v54, %v2811_v19  ;;  %v2684_v29 = vadd.f32 %v6891_v20, %v6890_v33  ;;  %v6893_v24 = vld [vmem:[#allocation81_spill] sm:$0xff] }
 0x326   : > { %v3259_v50 = vpop.f32.mrf.mxu3 }
 0x327   : > { %v6308_v51 = vadd.f32 %v3259_v50, %v3195_v21  ;;  %v3133_v50 = vadd.f32 %v6152_v28, %v3068_v6  ;;  %v2941_v18 = vadd.f32 %v6892_v52, %v2876_v4  ;;  %v2749_v39 = vadd.f32 %v6893_v24, %v2684_v29  ;;  %v4262_v52 = vld [vmem:[%s4570_s11 + $0x8] sm:$0xff] }
 0x328   : > { %v1837_v28 = vmul.f32 %v5953_v0, %v1796_v10  ;;  %v2027_v6 = vmul.f32 %v5912_v30, %v1980_v43  ;;  %v6897_v30 = vld [vmem:[#allocation26_spill] sm:$0xff]  ;;  %v6898_v43 = vld [vmem:[#allocation71_spill] sm:$0xff] }
 0x329   : > { %v6311_v47 = vpop.f32.mrf.mxu0  ;;  %v3198_v61 = vadd.f32 %v3197_v13, %v3133_v50 }
 0x32a   : > { %v1976_v1 = vpop.permute.xlu1 %1975  ;;  %v3203_v10 = vpop.f32.mrf.mxu2 }
 0x32b   : > { %v2026_v36 = vmul.f32 %v5887_v44, %v1976_v1  ;;  %v6894_v44 = vld [vmem:[#allocation136_spill] sm:$0xff]  ;;  %v6895_v1 = vld [vmem:[#allocation93_spill] sm:$0xff] }
 0x32c   : > { %3447 = vmatmul.f32.gmra.mxu2 %v1836_v22  ;;  %v3006_v23 = vadd.f32 %v6894_v44, %v2941_v18  ;;  %v1896_v50 = vpop.permute.xlu2 %1895  ;;  %v2687_v18 = vadd.f32 %v6898_v43, %v6897_v30  ;;  %v4263_v30 = vld [vmem:[%s4570_s11 + $0x10] sm:$0xff] }
 0x32d   : > { %3571 = vmatmul.f32.gmra.mxu0 %v2026_v36  ;;  %3960 = vmatmul.msk.f32.vlgmr.msra.gmra.mxu1 %vm3608_vm0, %v4261_v5  ;;  %v2814_v36 = vadd.f32 %v6895_v1, %v2749_v39  ;;  %v6896_v5 = vld [vmem:[#allocation107_spill] sm:$0xff]  ;;  %v6900_v39 = vld [vmem:[#allocation84_spill] sm:$0xff] }
 0x32e   : > { %v3262_v21 = vpop.f32.mrf.mxu3  ;;  %v3071_v54 = vadd.f32 %v6091_v57, %v3006_v23  ;;  %v6899_v57 = vld [vmem:[#allocation128_spill] sm:$0xff]  ;;  %v2752_v44 = vadd.f32 %v6900_v39, %v2687_v18  ;;  %v6904_v18 = vld [vmem:[#allocation29_spill] sm:$0xff] }
 0x32f   : > { %v6327_v19 = vadd.f32 %v3262_v21, %v3198_v61  ;;  %v2879_v33 = vadd.f32 %v6896_v5, %v2814_v36  ;;  %v6902_v36 = vld [vmem:[#allocation96_spill] sm:$0xff] }
 0x330   : > { %v3136_v20 = vadd.f32 %v6173_v25, %v3071_v54  ;;  %v6901_v25 = vld [vmem:[#allocation140_spill] sm:$0xff]  ;;  %v2817_v54 = vadd.f32 %v6902_v36, %v2752_v44 }
 0x331   : > { %v6330_v22 = vpop.f32.mrf.mxu0  ;;  %v2944_v61 = vadd.f32 %v6899_v57, %v2879_v33  ;;  %v6906_v57 = vld [vmem:[#allocation131_spill] sm:$0xff] }
 0x332   : > { %v6335_v4 = vpop.f32.mrf.mxu1  ;;  %v3201_v21 = vadd.f32 %v3200_v63, %v3136_v20  ;;  %v6903_v63 = vld [vmem:[#allocation111_spill] sm:$0xff] }
 0x333   : > { %v1888_v13 = vpop.permute.xlu1 %1887  ;;  %v3009_v23 = vadd.f32 %v6901_v25, %v2944_v61  ;;  %v2882_v20 = vadd.f32 %v6903_v63, %v2817_v54  ;;  %v6908_v25 = vld [vmem:[#allocation143_spill] sm:$0xff] }
 0x334   : > { %v1932_v29 = vmul.f32 %v5933_v15, %v1888_v13  ;;  %3450 = vmatmul.f32.gmra.mxu2 %v1837_v28  ;;  %v1900_v43 = vpop.permute.xlu2 %1899 }
 0x335   : > { %3574 = vmatmul.f32.gmra.mxu0 %v2027_v6  ;;  %3961 = vmatmul.msk.f32.gmra.mxu1 %vm3608_vm0, %v4262_v52  ;;  %v2028_v6 = vmul.f32 %v5933_v15, %v1984_v32  ;;  %v3074_v13 = vadd.f32 %v6118_v14, %v3009_v23  ;;  %v6905_v15 = vld [vmem:[#allocation75_spill] sm:$0xff]  ;;  %v2947_v14 = vadd.f32 %v6906_v57, %v2882_v20  ;;  %v4264_v20 = vld [vmem:[%s4649_s13 + $0x40] sm:$0xff]  ;;  %v4265_v57 = vld [vmem:[%s4570_s11 + $0x18] sm:$0xff] }
 0x336   : > { %3512 = vmatmul.f32.gmra.mxu3 %v1932_v29  ;;  %v3265_v24 = vpop.f32.mrf.mxu3  ;;  %v2690_v32 = vadd.f32 %v6905_v15, %v6904_v18 }
 0x337   : > { %v6347_v1 = vadd.f32 %v3265_v24, %v3201_v21  ;;  %v3139_v29 = vadd.f32 %v6197_v26, %v3074_v13  ;;  %v1988_v21 = vpop.permute.xlu0 %1987  ;;  %v3206_v24 = vpop.f32.mrf.mxu2  ;;  %v6907_v26 = vld [vmem:[#allocation88_spill] sm:$0xff]  ;;  %v3012_v23 = vadd.f32 %v6908_v25, %v2947_v14 }
 0x338   : > { %v2755_v44 = vadd.f32 %v6907_v26, %v2690_v32  ;;  %v2029_v54 = vmul.f32 %v5953_v0, %v1988_v21  ;;  %v6909_v13 = vld [vmem:[#allocation100_spill] sm:$0xff]  ;;  %v6913_v21 = vld [vmem:[#allocation135_spill] sm:$0xff] }
 0x339   : > { %v6349_v28 = vpop.f32.mrf.mxu0  ;;  %v3204_v61 = vadd.f32 %v3203_v10, %v3139_v29  ;;  %v3077_v63 = vadd.f32 %v6138_v38, %v3012_v23  ;;  %v1934_v29 = vmul.f32 %v4264_v20, %v1896_v50  ;;  %v6911_v14 = vld [vmem:[#allocation32_spill] sm:$0xff] }
 0x33a   : > { %v6354_v5 = vpop.f32.mrf.mxu1 }
 0x33b   : > { %v1892_v33 = vpop.permute.xlu1 %1891  ;;  %v3142_v18 = vadd.f32 %v6215_v40, %v3077_v63 }
 0x33c   : > { %v1933_v52 = vmul.f32 %v5953_v0, %v1892_v33  ;;  %v2820_v33 = vadd.f32 %v6909_v13, %v2755_v44  ;;  %v6912_v0 = vld [vmem:[#allocation79_spill] sm:$0xff]  ;;  %v1808_v50 = vpop.permute.xlu2 %1807  ;;  %v6914_v44 = vld [vmem:[#allocation92_spill] sm:$0xff] }
 0x33d   : > { %3962 = vmatmul.msk.f32.gmra.mxu1 %vm3608_vm0, %v4263_v30  ;;  %3577 = vmatmul.f32.gmra.mxu0 %v2028_v6 }
 0x33e   : > { %3515 = vmatmul.f32.gmra.mxu3 %v1933_v52  ;;  %v3268_v39 = vpop.f32.mrf.mxu3  ;;  %v6910_v52 = vld [vmem:[#allocation115_spill] sm:$0xff] }
 0x33f   : > { %v6366_v36 = vadd.f32 %v3268_v39, %v3204_v61  ;;  %v2885_v30 = vadd.f32 %v6910_v52, %v2820_v33  ;;  %v2693_v61 = vadd.f32 %v6912_v0, %v6911_v14  ;;  %v3207_v39 = vadd.f32 %v3206_v24, %v3142_v18  ;;  %v3209_v13 = vpop.f32.mrf.mxu2  ;;  %v6915_v33 = vld [vmem:[#allocation104_spill] sm:$0xff]  ;;  %v4267_v0 = vld [vmem:[%s4570_s11 + $0x20] sm:$0xff] }
 0x341   : > { %v6368_v6 = vpop.f32.mrf.mxu0  ;;  %v2950_v38 = vadd.f32 %v6913_v21, %v2885_v30  ;;  %v2758_v40 = vadd.f32 %v6914_v44, %v2693_v61  ;;  %v6917_v61 = vld [vmem:[#allocation139_spill] sm:$0xff] }
 0x342   : > { %v6373_v10 = vpop.f32.mrf.mxu1 }
 0x343   : > { %v3015_v25 = vadd.f32 %v6082_v55, %v2950_v38  ;;  %v2823_v63 = vadd.f32 %v6915_v33, %v2758_v40  ;;  %v1904_v38 = vpop.permute.xlu0 %1903 }
 0x344   : > { %v1800_v15 = vpop.permute.xlu1 %1799 }
 0x345   : > { %v1838_v32 = vmul.f32 %v4264_v20, %v1800_v15  ;;  %3963 = vmatmul.msk.f32.gmra.mxu1 %vm3608_vm0, %v4265_v57  ;;  %3580 = vmatmul.f32.gmra.mxu0 %v2029_v54  ;;  %v3080_v52 = vadd.f32 %v6164_v58, %v3015_v25  ;;  %v6916_v15 = vld [vmem:[#allocation118_spill] sm:$0xff] }
 0x346   : > { %3518 = vmatmul.f32.gmra.mxu3 %v1934_v29  ;;  %v3271_v26 = vpop.f32.mrf.mxu3  ;;  %v4266_v29 = vld [vmem:[%s4649_s13 + $0x48] sm:$0xff] }
 0x347   : > { %3453 = vmatmul.f32.gmra.mxu2 %v1838_v32  ;;  %v6385_v23 = vadd.f32 %v3271_v26, %v3207_v39  ;;  %v1935_v18 = vmul.f32 %v4266_v29, %v1900_v43  ;;  %v2888_v32 = vadd.f32 %v6916_v15, %v2823_v63  ;;  %v3145_v57 = vadd.f32 %v6232_v7, %v3080_v52  ;;  %v1812_v7 = vpop.permute.xlu2 %1811  ;;  %v4269_v15 = vld [vmem:[%s4570_s11 + $0x28] sm:$0xff] }
 0x349   : > { %v3324_v54 = vpop.f32.mrf.mxu0  ;;  %v2953_v21 = vadd.f32 %v6917_v61, %v2888_v32  ;;  %v3210_v58 = vadd.f32 %v3209_v13, %v3145_v57  ;;  %v3212_v13 = vpop.f32.mrf.mxu2 }
 0x34a   : > { %v6390_v30 = vadd.f32 %v3324_v54, %v6308_v51  ;;  %v6392_v24 = vpop.f32.mrf.mxu1  ;;  %v4268_v54 = vld [vmem:[%s4649_s13 + $0x50] sm:$0xff] }
 0x34b   : > { %v3018_v43 = vadd.f32 %v6111_v59, %v2953_v21  ;;  %v1936_v33 = vmul.f32 %v4268_v54, %v1904_v38  ;;  %v1840_v63 = vmul.f32 %v4268_v54, %v1808_v50  ;;  %v4271_v21 = vld [vmem:[%s4570_s11 + $0x30] sm:$0xff] }
 0x34c   : > { %v1804_v55 = vpop.permute.xlu1 %1803 }
 0x34d   : > { %v1839_v14 = vmul.f32 %v4266_v29, %v1804_v55  ;;  %3964 = vmatmul.msk.f32.gmra.mxu1 %vm3608_vm0, %v4267_v0  ;;  %v3083_v44 = vadd.f32 %v6187_v16, %v3018_v43  ;;  %v4272_v43 = vld [vmem:[%s4649_s13 + $0x60] sm:$0xff] }
 0x34e   : > { %3521 = vmatmul.f32.gmra.mxu3 %v1935_v18  ;;  %v3274_v51 = vpop.f32.mrf.mxu3 }
 0x34f   : > { %3456 = vmatmul.f32.gmra.mxu2 %v1839_v14  ;;  %v6401_v39 = vadd.f32 %v3274_v51, %v3210_v58  ;;  %v3148_v52 = vadd.f32 %v6261_v27, %v3083_v44  ;;  %v4270_v27 = vld [vmem:[%s4649_s13 + $0x58] sm:$0xff]  ;;  %v2000_v0 = vpop.permute.xlu2 %1999  ;;  %v1816_v58 = vpop.permute.xlu0 %1815  ;;  %s4354_s13 = scalar_lea.hbm %s4353_s12, 128 }
 0x350   : > { %v1841_v14 = vmul.f32 %v4270_v27, %v1812_v7  ;;  %v2032_v44 = vmul.f32 %v4268_v54, %v2000_v0  ;;  %v6918_v54 = vld [vmem:[#allocation35_spill] sm:$0xff]  ;;  %p4355_p1 = scmp.ne.s32.totalorder %s4353_s12, %s4354_s13  ;;  %p4360_p6 = scmp.lt.s32.totalorder %s4358_s16, %s4354_s13 }
 0x351   : > { %v3327_v26 = vpop.f32.mrf.mxu0  ;;  %v3213_v59 = vadd.f32 %v3212_v13, %v3148_v52  ;;  %v6920_v0 = vld [vmem:[#allocation95_spill] sm:$0xff] }
 0x352   : > { %v3328_v40 = vadd.f32 %v3327_v26, %v6327_v19  ;;  %v6405_v25 = vpop.f32.mrf.mxu1  ;;  %v1842_v26 = vmul.f32 %v4272_v43, %v1816_v58  ;;  %p4356_p2 = pnand %p4355_p1, %p4518_p4  ;;  %p4361_p7 = por %p4360_p6, %p4359_p5 }
 0x354   : > { %p4357_p3 = pneg %p4356_p2 }
 0x355   : > { %v1992_v18 = vpop.permute.xlu1 %1991  ;;  %3965 = vmatmul.msk.f32.gmra.mxu1 %vm3608_vm0, %v4269_v15 }
 0x356   : > { %v2030_v32 = vmul.f32 %v4264_v20, %v1992_v18  ;;  %3524 = vmatmul.f32.gmra.mxu3 %v1936_v33  ;;  %v3277_v16 = vpop.f32.mrf.mxu3  ;;  %v4273_v33 = vld [vmem:[%s4570_s11 + $0x38] sm:$0xff]  ;;  %p4362_p9 = pnand %p4361_p7, %p4357_p3 }
 0x357   : > { %3459 = vmatmul.f32.gmra.mxu2 %v1840_v63  ;;  %v3278_v19 = vadd.f32 %v3277_v16, %v3213_v59  ;;  %v2004_v7 = vpop.permute.xlu2 %2003  ;;  %v6919_v59 = vld [vmem:[#allocation82_spill] sm:$0xff] }
 0x358   : > { %3583 = vmatmul.f32.gmra.mxu0 %v2030_v32  ;;  %v2033_v15 = vmul.f32 %v4270_v27, %v2004_v7  ;;  %v2696_v32 = vadd.f32 %v6919_v59, %v6918_v54 }
 0x359   : > { %v3330_v57 = vpop.f32.mrf.mxu0 }
 0x35a   : > { %v6412_v55 = vadd.f32 %v3330_v57, %v6347_v1  ;;  %v6414_v50 = vpop.f32.mrf.mxu1 }
 0x35d   : > { %v1996_v61 = vpop.permute.xlu1 %1995  ;;  %3966 = vmatmul.msk.f32.gmra.mxu1 %vm3608_vm0, %v4271_v21  ;;  %v2008_v21 = vpop.permute.xlu0 %2007 }
 0x35e   : > { %v2031_v20 = vmul.f32 %v4266_v29, %v1996_v61  ;;  %v2761_v61 = vadd.f32 %v6920_v0, %v2696_v32  ;;  %v3215_v32 = vpop.f32.mrf.mxu2 }
 0x35f   : > { %3462 = vmatmul.f32.gmra.mxu2 %v1841_v14 }
 0x360   : > { %3586 = vmatmul.f32.gmra.mxu0 %v2031_v20  ;;  %v1916_v14 = vpop.permute.xlu2 %1915  ;;  %v6921_v20 = vld [vmem:[#allocation108_spill] sm:$0xff] }
 0x361   : > { %v3333_v51 = vpop.f32.mrf.mxu0  ;;  %v1939_v7 = vmul.f32 %v6244_v31, %v1916_v14 }
 0x362   : > { %v6420_v38 = vadd.f32 %v3333_v51, %v6366_v36  ;;  %v6422_v1 = vpop.f32.mrf.mxu1  ;;  %v6922_v51 = vld [vmem:[#allocation122_spill] sm:$0xff] }
 0x365   : > { %3967 = vmatmul.msk.f32.gmra.mxu1 %vm3608_vm0, %v4273_v33  ;;  %v4274_v33 = vld [vmem:[%s4570_s11 + $0x48] sm:$0xff] }
 0x366   : > { %v1908_v13 = vpop.permute.xlu1 %1907 }
 0x367   : > { %v1937_v63 = vmul.f32 %v4270_v27, %v1908_v13  ;;  %3465 = vmatmul.f32.gmra.mxu2 %v1842_v26  ;;  %v6923_v13 = vld [vmem:[#allocation142_spill] sm:$0xff] }
 0x368   : > { %3589 = vmatmul.f32.gmra.mxu0 %v2032_v44  ;;  %v2034_v44 = vmul.f32 %v4272_v43, %v2008_v21 }
 0x369   : > { %v3336_v29 = vpop.f32.mrf.mxu0  ;;  %3527 = vmatmul.f32.gmra.mxu3 %v1937_v63 }
 0x36a   : > { %v6428_v52 = vadd.f32 %v3336_v29, %v6385_v23  ;;  %v3389_v36 = vpop.f32.mrf.mxu1 }
 0x36b   : > { %v6431_v18 = vadd.f32 %v3389_v36, %v6390_v30  ;;  %v2826_v30 = vadd.f32 %v6921_v20, %v2761_v61  ;;  %v1924_v20 = vpop.permute.xlu0 %1923 }
 0x36d   : > { %3968 = vmatmul.msk.f32.gmra.mxu1 %vm3608_vm0, %v6147_v42  ;;  %v2891_v26 = vadd.f32 %v6922_v51, %v2826_v30 }
 0x36e   : > { %v1912_v16 = vpop.permute.xlu1 %1911 }
 0x36f   : > { %v1938_v57 = vmul.f32 %v4272_v43, %v1912_v16  ;;  %v2956_v63 = vadd.f32 %v6923_v13, %v2891_v26  ;;  %v6924_v26 = vld [vmem:[#allocation36_spill] sm:$0xff] }
 0x370   : > { %3592 = vmatmul.f32.gmra.mxu0 %v2033_v15 }
 0x371   : > { %v3339_v23 = vpop.f32.mrf.mxu0  ;;  %3530 = vmatmul.f32.gmra.mxu3 %v1938_v57  ;;  %v3021_v36 = vadd.f32 %v6134_v48, %v2956_v63  ;;  %v3280_v48 = vpop.f32.mrf.mxu3  ;;  %v6926_v63 = vld [vmem:[#allocation39_spill] sm:$0xff] }
 0x372   : > { %v6440_v27 = vadd.f32 %v3339_v23, %v6401_v39  ;;  %v3392_v58 = vpop.f32.mrf.mxu1 }
 0x373   : > { %v6442_v42 = vadd.f32 %v3392_v58, %v3328_v40  ;;  %v1920_v40 = vpop.permute.xlu2 %1919  ;;  %v3086_v54 = vadd.f32 %v6205_v56, %v3021_v36  ;;  %v4275_v58 = vld [vmem:[%s4570_s11 + $0x58] sm:$0xff] }
 0x374   : > { %v1940_v14 = vmul.f32 %v6269_v46, %v1920_v40 }
 0x375   : > { %3969 = vmatmul.msk.f32.gmra.mxu1 %vm3608_vm0, %v4274_v33  ;;  %v3151_v57 = vadd.f32 %v6293_v11, %v3086_v54 }
 0x377   : > { %v1820_v29 = vpop.permute.xlu1 %1819  ;;  %v3216_v0 = vadd.f32 %v3215_v32, %v3151_v57  ;;  %v4276_v57 = vld [vmem:[%s4570_s11 + $0x60] sm:$0xff] }
 0x378   : > { %v1843_v15 = vmul.f32 %v6244_v31, %v1820_v29  ;;  %3595 = vmatmul.f32.gmra.mxu0 %v2034_v44  ;;  %v6925_v44 = vld [vmem:[#allocation27_spill] sm:$0xff] }
 0x379   : > { %v3342_v39 = vpop.f32.mrf.mxu0  ;;  %3533 = vmatmul.f32.gmra.mxu3 %v1939_v7  ;;  %v3281_v56 = vadd.f32 %v3280_v48, %v3216_v0  ;;  %v2651_v33 = vadd.f32 %v6925_v44, %v6924_v26  ;;  %v3430_v7 = vpop.f32.mrf.mxu2  ;;  %v6929_v48 = vld [vmem:[#allocation86_spill] sm:$0xff] }
 0x37a   : > { %v6452_v59 = vadd.f32 %v3342_v39, %v3278_v19  ;;  %v3395_v43 = vpop.f32.mrf.mxu1  ;;  %3468 = vmatmul.f32.gmra.mxu2 %v1843_v15  ;;  %v6927_v15 = vld [vmem:[#allocation53_spill] sm:$0xff]  ;;  %v4277_v44 = vld [vmem:[%s4570_s11 + $0x68] sm:$0xff]  ;;  %s3803_s11 = sshll.u32 %s6560_s27, 4  ;;  %s3804_s11 = int_to_ptr.vmem [resolvable:$true] %s3803_s11 }
 0x37b   : > { %v6455_v16 = vadd.f32 %v3395_v43, %v6412_v55  ;;  %v1828_v30 = vpop.permute.xlu2 %1827  ;;  %v2716_v29 = vadd.f32 %v6926_v63, %v2651_v33  ;;  %v6928_v43 = vld [vmem:[#allocation66_spill] sm:$0xff]  ;;  %v6935_v63 = vld [vmem:[#allocation125_spill] sm:$0xff] }
 0x37c   : > { %v1845_v51 = vmul.f32 %v6296_v41, %v1828_v30 }
 0x37d   : > { %3970 = vmatmul.msk.f32.gmra.mxu1 %vm3608_vm0, %v6182_v34  ;;  %v1941_v34 = vmul.f32 %v6296_v41, %v1924_v20  ;;  %v2781_v39 = vadd.f32 %v6927_v15, %v2716_v29 }
 0x37f   : > { %v1824_v61 = vpop.permute.xlu1 %1823  ;;  %v2846_v32 = vadd.f32 %v6928_v43, %v2781_v39 }
 0x380   : > { %v1844_v19 = vmul.f32 %v6269_v46, %v1824_v61 }
 0x381   : > { %v3345_v23 = vpop.f32.mrf.mxu0  ;;  %3536 = vmatmul.f32.gmra.mxu3 %v1940_v14  ;;  %v2911_v14 = vadd.f32 %v6929_v48, %v2846_v32 }
 0x382   : > { %v6462_v21 = vadd.f32 %v3345_v23, %v3281_v56  ;;  %v3398_v55 = vpop.f32.mrf.mxu1  ;;  %3471 = vmatmul.f32.gmra.mxu2 %v1844_v19  ;;  %v3495_v56 = vpop.f32.mrf.mxu3 }
 0x383   : > { %v6465_v11 = vadd.f32 %v3398_v55, %v6420_v38  ;;  %v6485_v23 = vpop.f32.mrf.mxu2  ;;  %v6931_v55 = vld [vmem:[#allocation112_spill] sm:$0xff] }
 0x385   : > { %3971 = vmatmul.msk.f32.gmra.mxu1 %vm3608_vm0, %v4275_v58  ;;  %v2020_v58 = vpop.permute.xlu2 %2019 }
 0x388   : > { %v2012_v13 = vpop.permute.xlu1 %2011 }
 0x389   : > { %v2035_v36 = vmul.f32 %v6244_v31, %v2012_v13  ;;  %3539 = vmatmul.f32.gmra.mxu3 %v1941_v34  ;;  %v3560_v54 = vpop.f32.mrf.mxu0  ;;  %v6930_v31 = vld [vmem:[#allocation98_spill] sm:$0xff]  ;;  %v6932_v34 = vld [vmem:[#allocation40_spill] sm:$0xff]  ;;  %v6934_v13 = vld [vmem:[#allocation43_spill] sm:$0xff] }
 0x38a   : > { %v3401_v38 = vpop.f32.mrf.mxu1  ;;  %3474 = vmatmul.f32.gmra.mxu2 %v1845_v51  ;;  %v2976_v61 = vadd.f32 %v6930_v31, %v2911_v14  ;;  %v6933_v51 = vld [vmem:[#allocation30_spill] sm:$0xff]  ;;  %v3498_v43 = vpop.f32.mrf.mxu3  ;;  %v6939_v14 = vld [vmem:[#allocation151_spill] sm:$0xff] }
 0x38b   : > { %v6477_v40 = vadd.f32 %v3401_v38, %v6428_v52  ;;  %3598 = vmatmul.f32.gmra.mxu0 %v2035_v36  ;;  %v2654_v26 = vadd.f32 %v6933_v51, %v6932_v34  ;;  %v2037_v36 = vmul.f32 %v6296_v41, %v2020_v58  ;;  %v6936_v38 = vld [vmem:[#allocation57_spill] sm:$0xff]  ;;  %v6942_v41 = vld [vmem:[#allocation90_spill] sm:$0xff]  ;;  %v6943_v58 = vld [vmem:[#allocation47_spill] sm:$0xff] }
 0x38c   : > { %v3041_v20 = vadd.f32 %v6931_v55, %v2976_v61  ;;  %v6507_v61 = vpop.f32.mrf.mxu2  ;;  %v6944_v51 = vld [vmem:[#allocation102_spill] sm:$0xff] }
 0x38d   : > { %3972 = vmatmul.msk.f32.gmra.mxu1 %vm3608_vm0, %v4276_v57  ;;  %v6938_v57 = vld [vmem:[#allocation69_spill] sm:$0xff] }
 0x38e   : > { %v3106_v29 = vadd.f32 %v6935_v63, %v3041_v20  ;;  %v6946_v63 = vld [vmem:[#allocation116_spill] sm:$0xff] }
 0x390   : > { %v2016_v0 = vpop.permute.xlu1 %2015 }
 0x391   : > { %v2036_v19 = vmul.f32 %v6269_v46, %v2016_v0  ;;  %v6495_v33 = vpop.f32.mrf.mxu0  ;;  %v2719_v46 = vadd.f32 %v6934_v13, %v2654_v26 }
 0x392   : > { %v3404_v52 = vpop.f32.mrf.mxu1 }
 0x393   : > { %v6489_v30 = vadd.f32 %v3404_v52, %v6440_v27  ;;  %3601 = vmatmul.f32.gmra.mxu0 %v2036_v19  ;;  %v2784_v15 = vadd.f32 %v6936_v38, %v2719_v46  ;;  %v6937_v27 = vld [vmem:[#allocation145_spill] sm:$0xff]  ;;  %v6940_v19 = vld [vmem:[#allocation44_spill] sm:$0xff] }
 0x394   : > { %v3171_v39 = vadd.f32 %v6937_v27, %v3106_v29  ;;  %v6941_v52 = vld [vmem:[#allocation33_spill] sm:$0xff]  ;;  %v6947_v38 = vld [vmem:[#allocation48_spill] sm:$0xff] }
 0x395   : > { %3973 = vmatmul.msk.f32.gmra.mxu1 %vm3608_vm0, %v4277_v44  ;;  %v2849_v48 = vadd.f32 %v6938_v57, %v2784_v15  ;;  %v2657_v55 = vadd.f32 %v6941_v52, %v6940_v19  ;;  %v6948_v15 = vld [vmem:[#allocation37_spill] sm:$0xff]  ;;  %v3501_v19 = vpop.f32.mrf.mxu3  ;;  %v6951_v52 = vld [vmem:[#allocation51_spill] sm:$0xff] }
 0x396   : > { %v3236_v0 = vadd.f32 %v6939_v14, %v3171_v39  ;;  %v2660_v27 = vadd.f32 %v6948_v15, %v6947_v38  ;;  %v6950_v57 = vld [vmem:[#allocation129_spill] sm:$0xff]  ;;  %v6958_v15 = vld [vmem:[#allocation52_spill] sm:$0xff] }
 0x397   : > { %v2914_v20 = vadd.f32 %v6942_v41, %v2849_v48  ;;  %v2722_v34 = vadd.f32 %v6943_v58, %v2657_v55  ;;  %v6952_v41 = vld [vmem:[#allocation94_spill] sm:$0xff] }
 0x398   : > { %v3301_v44 = vadd.f32 %v6224_v8, %v3236_v0  ;;  %v6529_v0 = vpop.f32.mrf.mxu2  ;;  %v2725_v55 = vadd.f32 %v6951_v52, %v2660_v27  ;;  %v6959_v27 = vld [vmem:[#allocation41_spill] sm:$0xff] }
 0x399   : > { %v2979_v26 = vadd.f32 %v6944_v51, %v2914_v20  ;;  %v6517_v13 = vpop.f32.mrf.mxu0  ;;  %v6953_v20 = vld [vmem:[#allocation147_spill] sm:$0xff] }
 0x39a   : > { %v3407_v32 = vpop.f32.mrf.mxu1 }
 0x39b   : > { %v6505_v31 = vadd.f32 %v3407_v32, %v6452_v59  ;;  %3604 = vmatmul.f32.gmra.mxu0 %v2037_v36  ;;  %v6945_v59 = vld [vmem:[#allocation59_spill] sm:$0xff]  ;;  %v3044_v29 = vadd.f32 %v6946_v63, %v2979_v26  ;;  %v3366_v36 = vadd.f32 %v6315_v53, %v3301_v44 }
 0x39c   : > { %v2787_v46 = vadd.f32 %v6945_v59, %v2722_v34  ;;  %v6954_v34 = vld [vmem:[#allocation62_spill] sm:$0xff]  ;;  %v6956_v59 = vld [vmem:[#allocation76_spill] sm:$0xff]  ;;  %v6957_v63 = vld [vmem:[#allocation119_spill] sm:$0xff] }
 0x39d   : > { %3974 = vmatmul.msk.f32.gmra.mxu1 %vm3608_vm0, %v6278_v2  ;;  %v6949_v2 = vld [vmem:[#allocation73_spill] sm:$0xff]  ;;  %v3109_v48 = vadd.f32 %v6950_v57, %v3044_v29  ;;  %v3431_v14 = vadd.f32 %v3430_v7, %v3366_v36  ;;  %v2790_v51 = vadd.f32 %v6954_v34, %v2725_v55  ;;  %v6955_v7 = vld [vmem:[#allocation106_spill] sm:$0xff]  ;;  %v6962_v55 = vld [vmem:[#allocation55_spill] sm:$0xff] }
 0x39e   : > { %v2852_v32 = vadd.f32 %v6949_v2, %v2787_v46  ;;  %v6965_v34 = vld [vmem:[#allocation25_spill] sm:$0xff] }
 0x39f   : > { %v3174_v58 = vadd.f32 %v6953_v20, %v3109_v48  ;;  %v2855_v46 = vadd.f32 %v6956_v59, %v2790_v51  ;;  %v6961_v48 = vld [vmem:[#allocation132_spill] sm:$0xff] }
 0x3a0   : > { %v2917_v53 = vadd.f32 %v6952_v41, %v2852_v32  ;;  %v6960_v32 = vld [vmem:[#allocation97_spill] sm:$0xff] }
 0x3a1   : > { %v3239_v44 = vadd.f32 %v6169_v49, %v3174_v58  ;;  %v2920_v57 = vadd.f32 %v6960_v32, %v2855_v46 }
 0x3a2   : > { %v3410_v39 = vpop.f32.mrf.mxu1  ;;  %v2982_v26 = vadd.f32 %v6955_v7, %v2917_v53  ;;  %v6964_v53 = vld [vmem:[#allocation149_spill] sm:$0xff]  ;;  %v3442_v7 = vpop.f32.mrf.mxu2 }
 0x3a3   : > { %v6527_v8 = vadd.f32 %v3410_v39, %v6462_v21  ;;  %v3496_v21 = vadd.f32 %v3495_v56, %v3431_v14  ;;  %v3304_v36 = vadd.f32 %v6238_v62, %v3239_v44  ;;  %v6547_v39 = vpop.f32.mrf.mxu0  ;;  %v3504_v14 = vpop.f32.mrf.mxu3  ;;  %v6963_v62 = vld [vmem:[#allocation110_spill] sm:$0xff] }
 0x3a4   : > { %v3047_v29 = vadd.f32 %v6957_v63, %v2982_v26  ;;  %v6966_v26 = vld [vmem:[#allocation67_spill] sm:$0xff]  ;;  %v6968_v63 = vld [vmem:[#allocation80_spill] sm:$0xff] }
 0x3a5   : > { %3975 = vmatmul.msk.f32.gmra.mxu1 %vm3608_vm0, %v6257_v45  ;;  %v3561_v38 = vadd.f32 %v3560_v54, %v3496_v21  ;;  %v2663_v45 = vadd.f32 %v6959_v27, %v6958_v15  ;;  %v3369_v56 = vadd.f32 %v6335_v4, %v3304_v36  ;;  %v2985_v54 = vadd.f32 %v6963_v62, %v2920_v57  ;;  %v6967_v21 = vld [vmem:[#allocation123_spill] sm:$0xff]  ;;  %v6969_v36 = vld [vmem:[#allocation134_spill] sm:$0xff]  ;;  %v6970_v27 = vld [vmem:[#allocation56_spill] sm:$0xff] }
 0x3a6   : > { %v3112_v49 = vadd.f32 %v6961_v48, %v3047_v29  ;;  %v6972_v57 = vld [vmem:[#allocation101_spill] sm:$0xff]  ;;  %v6975_v62 = vld [vmem:[#allocation114_spill] sm:$0xff] }
 0x3a7   : > { %v2728_v41 = vadd.f32 %v6962_v55, %v2663_v45  ;;  %v3434_v58 = vadd.f32 %v6485_v23, %v3369_v56  ;;  %v3050_v59 = vadd.f32 %v6967_v21, %v2985_v54  ;;  %v6971_v45 = vld [vmem:[#allocation45_spill] sm:$0xff] }
 0x3a8   : > { %v3177_v20 = vadd.f32 %v6964_v53, %v3112_v49 }
 0x3a9   : > { %v2793_v44 = vadd.f32 %v6966_v26, %v2728_v41  ;;  %v3499_v4 = vadd.f32 %v3498_v43, %v3434_v58  ;;  %v6973_v43 = vld [vmem:[#allocation150_spill] sm:$0xff]  ;;  %v6978_v26 = vld [vmem:[#allocation127_spill] sm:$0xff] }
 0x3aa   : > { %v3658_v2 = vpop.f32.mrf.mxu1  ;;  %v3242_v46 = vadd.f32 %v6189_v35, %v3177_v20  ;;  %v6976_v20 = vld [vmem:[#allocation28_spill] sm:$0xff] }
 0x3ab   : > { %v3659_v52 = vadd.f32 %v3658_v2, %v3561_v38  ;;  %v2858_v29 = vadd.f32 %v6968_v63, %v2793_v44  ;;  %v3115_v38 = vadd.f32 %v6969_v36, %v3050_v59  ;;  %v3564_v15 = vadd.f32 %v6495_v33, %v3499_v4  ;;  %v3572_v41 = vpop.f32.mrf.mxu0  ;;  %v3507_v53 = vpop.f32.mrf.mxu3  ;;  %v6980_v63 = vld [vmem:[#allocation138_spill] sm:$0xff]  ;;  %v6981_v36 = vld [vmem:[#allocation60_spill] sm:$0xff] }
 0x3ac   : > { %v3307_v23 = vadd.f32 %v6264_v60, %v3242_v46  ;;  %v2666_v2 = vadd.f32 %v6971_v45, %v6970_v27  ;;  %v3445_v59 = vpop.f32.mrf.mxu2  ;;  %v6979_v46 = vld [vmem:[#allocation83_spill] sm:$0xff]  ;;  %v6983_v27 = vld [vmem:[#allocation105_spill] sm:$0xff] }
 0x3ad   : > { %v3722_v51 = vadd.f32 %v3659_v52, %v6965_v34  ;;  %v2923_v35 = vadd.f32 %v6972_v57, %v2858_v29  ;;  %v3180_v48 = vadd.f32 %v6973_v43, %v3115_v38  ;;  %v6974_v52 = vld [vmem:[#allocation58_spill] sm:$0xff]  ;;  %v6982_v38 = vld [vmem:[#allocation49_spill] sm:$0xff] }
 0x3ae   : > { %v3372_v49 = vadd.f32 %v6354_v5, %v3307_v23  ;;  %v2731_v55 = vadd.f32 %v6974_v52, %v2666_v2  ;;  %v6977_v34 = vld [vmem:[#allocation70_spill] sm:$0xff]  ;;  %v2669_v23 = vadd.f32 %v6982_v38, %v6981_v36  ;;  %v6984_v2 = vld [vmem:[#allocation152_spill] sm:$0xff]  ;;  %v6985_v57 = vld [vmem:[#allocation61_spill] sm:$0xff] }
 0x3af   : > { %3773 = vst [vmem:[%s6560_s27] sm:$0xff] %v3722_v51  ;;  %v2988_v54 = vadd.f32 %v6975_v62, %v2923_v35  ;;  %v3245_v60 = vadd.f32 %v6203_v9, %v3180_v48  ;;  %v6986_v43 = vld [vmem:[#allocation117_spill] sm:$0xff]  ;;  %v6988_v52 = vld [vmem:[#allocation74_spill] sm:$0xff] }
 0x3b0   : > { %v3437_v33 = vadd.f32 %v6507_v61, %v3372_v49  ;;  %v2796_v51 = vadd.f32 %v6977_v34, %v2731_v55  ;;  %v2734_v35 = vadd.f32 %v6985_v57, %v2669_v23  ;;  %v6987_v49 = vld [vmem:[#allocation31_spill] sm:$0xff]  ;;  %v6989_v62 = vld [vmem:[#allocation130_spill] sm:$0xff]  ;;  %v6991_v34 = vld [vmem:[#allocation141_spill] sm:$0xff] }
 0x3b1   : > { %v3053_v44 = vadd.f32 %v6978_v26, %v2988_v54  ;;  %v3310_v21 = vadd.f32 %v6289_v37, %v3245_v60  ;;  %v6996_v36 = vld [vmem:[#allocation65_spill] sm:$0xff] }
 0x3b2   : > { %v3661_v32 = vpop.f32.mrf.mxu1  ;;  %v3502_v5 = vadd.f32 %v3501_v19, %v3437_v33  ;;  %v2861_v4 = vadd.f32 %v6979_v46, %v2796_v51  ;;  %v2799_v55 = vadd.f32 %v6988_v52, %v2734_v35  ;;  %v6997_v23 = vld [vmem:[#allocation121_spill] sm:$0xff] }
 0x3b3   : > { %v3662_v56 = vadd.f32 %v3661_v32, %v3564_v15  ;;  %v3118_v29 = vadd.f32 %v6980_v63, %v3053_v44  ;;  %v3375_v9 = vadd.f32 %v6373_v10, %v3310_v21  ;;  %v6992_v44 = vld [vmem:[#allocation63_spill] sm:$0xff]  ;;  %v6993_v21 = vld [vmem:[#allocation54_spill] sm:$0xff]  ;;  %v6994_v63 = vld [vmem:[#allocation109_spill] sm:$0xff] }
 0x3b4   : > { %v3567_v61 = vadd.f32 %v6517_v13, %v3502_v5  ;;  %v2926_v45 = vadd.f32 %v6983_v27, %v2861_v4  ;;  %v2672_v5 = vadd.f32 %v6993_v21, %v6992_v44  ;;  %v3448_v46 = vpop.f32.mrf.mxu2  ;;  %v6998_v27 = vld [vmem:[#allocation34_spill] sm:$0xff] }
 0x3b5   : > { %v3723_v58 = vadd.f32 %v3662_v56, %v6976_v20  ;;  %v3183_v37 = vadd.f32 %v6984_v2, %v3118_v29  ;;  %v3440_v19 = vadd.f32 %v6529_v0, %v3375_v9  ;;  %v3575_v56 = vpop.f32.mrf.mxu0  ;;  %v3510_v20 = vpop.f32.mrf.mxu3  ;;  %v6990_v0 = vld [vmem:[#allocation87_spill] sm:$0xff] }
 0x3b6   : > { %v2991_v48 = vadd.f32 %v6986_v43, %v2926_v45  ;;  %v2737_v38 = vadd.f32 %v6996_v36, %v2672_v5  ;;  %v6999_v45 = vld [vmem:[#allocation78_spill] sm:$0xff] }
 0x3b7   : > { %3774 = vst [vmem:[%s6560_s27 + $0x8] sm:$0xff] %v3723_v58  ;;  %v3248_v10 = vadd.f32 %v6220_v17, %v3183_v37  ;;  %v3505_v33 = vadd.f32 %v3504_v14, %v3440_v19  ;;  %v2864_v58 = vadd.f32 %v6990_v0, %v2799_v55  ;;  %v7000_v37 = vld [vmem:[#allocation133_spill] sm:$0xff] }
 0x3b8   : > { %v3056_v54 = vadd.f32 %v6989_v62, %v2991_v48  ;;  %v2802_v2 = vadd.f32 %v6999_v45, %v2737_v38  ;;  %v7003_v55 = vld [vmem:[#allocation113_spill] sm:$0xff]  ;;  %v7010_v38 = vld [vmem:[#allocation19_spill] sm:$0xff] }
 0x3b9   : > { %v3313_v60 = vadd.f32 %v6311_v47, %v3248_v10  ;;  %v3570_v17 = vadd.f32 %v6547_v39, %v3505_v33  ;;  %v2929_v29 = vadd.f32 %v6994_v63, %v2864_v58  ;;  %v6995_v47 = vld [vmem:[#allocation153_spill] sm:$0xff]  ;;  %v7002_v10 = vld [vmem:[#allocation146_spill] sm:$0xff] }
 0x3ba   : > { %v3664_v15 = vpop.f32.mrf.mxu1  ;;  %v3121_v51 = vadd.f32 %v6991_v34, %v3056_v54  ;;  %v7005_v58 = vld [vmem:[#allocation18_spill] sm:$0xff] }
 0x3bb   : > { %v3665_v32 = vadd.f32 %v3664_v15, %v3567_v61  ;;  %v3378_v26 = vadd.f32 %v6392_v24, %v3313_v60  ;;  %v2994_v15 = vadd.f32 %v6997_v23, %v2929_v29 }
 0x3bc   : > { %v3186_v14 = vadd.f32 %v6995_v47, %v3121_v51  ;;  %v7006_v51 = vld [vmem:[#allocation38_spill] sm:$0xff] }
 0x3bd   : > { %v3724_v13 = vadd.f32 %v3665_v32, %v6987_v49  ;;  %v3443_v9 = vadd.f32 %v3442_v7, %v3378_v26  ;;  %v3059_v19 = vadd.f32 %v7000_v37, %v2994_v15  ;;  %v3513_v35 = vpop.f32.mrf.mxu3  ;;  %v3578_v43 = vpop.f32.mrf.mxu0  ;;  %v7001_v7 = vld [vmem:[#allocation91_spill] sm:$0xff]  ;;  %v7009_v47 = vld [vmem:[#allocation154_spill] sm:$0xff] }
 0x3be   : > { %v3251_v24 = vadd.f32 %v6235_v12, %v3186_v14  ;;  %v2867_v48 = vadd.f32 %v7001_v7, %v2802_v2 }
 0x3bf   : > { %3775 = vst [vmem:[%s6560_s27 + $0x10] sm:$0xff] %v3724_v13  ;;  %v3508_v57 = vadd.f32 %v3507_v53, %v3443_v9  ;;  %v3124_v49 = vadd.f32 %v7002_v10, %v3059_v19  ;;  %v7004_v53 = vld [vmem:[#allocation126_spill] sm:$0xff] }
 0x3c0   : > { %v3316_v32 = vadd.f32 %v6330_v22, %v3251_v24  ;;  %v2932_v62 = vadd.f32 %v7003_v55, %v2867_v48  ;;  %v3451_v22 = vpop.f32.mrf.mxu2  ;;  %v7012_v19 = vld [vmem:[#allocation46_spill] sm:$0xff] }
 0x3c1   : > { %v3573_v12 = vadd.f32 %v3572_v41, %v3508_v57  ;;  %v3189_v54 = vadd.f32 %v6212_v3, %v3124_v49  ;;  %v7008_v41 = vld [vmem:[#allocation148_spill] sm:$0xff] }
 0x3c2   : > { %v3667_v4 = vpop.f32.mrf.mxu1  ;;  %v3381_v13 = vadd.f32 %v6405_v25, %v3316_v32  ;;  %v2997_v0 = vadd.f32 %v7004_v53, %v2932_v62 }
 0x3c3   : > { %v3668_v61 = vadd.f32 %v3667_v4, %v3570_v17  ;;  %v3254_v34 = vadd.f32 %v7005_v58, %v3189_v54  ;;  %v7007_v17 = vld [vmem:[#allocation137_spill] sm:$0xff] }
 0x3c4   : > { %v3446_v60 = vadd.f32 %v3445_v59, %v3381_v13  ;;  %v3062_v44 = vadd.f32 %v7007_v17, %v2997_v0  ;;  %v7015_v17 = vld [vmem:[#allocation14_spill] sm:$0xff] }
 0x3c5   : > { %v3725_v39 = vadd.f32 %v3668_v61, %v6998_v27  ;;  %v3319_v21 = vadd.f32 %v6349_v28, %v3254_v34  ;;  %v3516_v4 = vpop.f32.mrf.mxu3  ;;  %v3581_v63 = vpop.f32.mrf.mxu0 }
 0x3c6   : > { %v3511_v25 = vadd.f32 %v3510_v20, %v3446_v60  ;;  %v3127_v5 = vadd.f32 %v7008_v41, %v3062_v44  ;;  %v7011_v20 = vld [vmem:[#allocation42_spill] sm:$0xff]  ;;  %v7014_v60 = vld [vmem:[#allocation13_spill] sm:$0xff] }
 0x3c7   : > { %3776 = vst [vmem:[%s6560_s27 + $0x18] sm:$0xff] %v3725_v39  ;;  %v3384_v3 = vadd.f32 %v6414_v50, %v3319_v21 }
 0x3c8   : > { %v3576_v59 = vadd.f32 %v3575_v56, %v3511_v25  ;;  %v3192_v14 = vadd.f32 %v7009_v47, %v3127_v5 }
 0x3c9   : > { %v3449_v9 = vadd.f32 %v3448_v46, %v3384_v3 }
 0x3ca   : > { %v3670_v52 = vpop.f32.mrf.mxu1  ;;  %v3454_v36 = vpop.f32.mrf.mxu2  ;;  %v3257_v23 = vadd.f32 %v7010_v38, %v3192_v14 }
 0x3cb   : > { %v3671_v33 = vadd.f32 %v3670_v52, %v3573_v12  ;;  %v3514_v28 = vadd.f32 %v3513_v35, %v3449_v9  ;;  %v3455_v48 = vadd.f32 %v3454_v36, %v6431_v18 }
 0x3cc   : > { %v3322_v24 = vadd.f32 %v6368_v6, %v3257_v23 }
 0x3cd   : > { %v3726_v26 = vadd.f32 %v3671_v33, %v7006_v51  ;;  %v3579_v56 = vadd.f32 %v3578_v43, %v3514_v28  ;;  %v3519_v27 = vpop.f32.mrf.mxu3  ;;  %v7013_v43 = vld [vmem:[#allocation50_spill] sm:$0xff] }
 0x3ce   : > { %v3387_v50 = vadd.f32 %v6422_v1, %v3322_v24  ;;  %v3520_v13 = vadd.f32 %v3519_v27, %v3455_v48  ;;  %v7019_v48 = vld [vmem:[#allocation20_spill] sm:$0xff] }
 0x3cf   : > { %3777 = vst [vmem:[%s6560_s27 + $0x20] sm:$0xff] %v3726_v26 }
 0x3d0   : > { %v3452_v2 = vadd.f32 %v3451_v22, %v3387_v50 }
 0x3d2   : > { %v3673_v29 = vpop.f32.mrf.mxu1  ;;  %v3517_v37 = vadd.f32 %v3516_v4, %v3452_v2  ;;  %v3457_v57 = vpop.f32.mrf.mxu2 }
 0x3d3   : > { %v3674_v61 = vadd.f32 %v3673_v29, %v3576_v59  ;;  %v3458_v62 = vadd.f32 %v3457_v57, %v6442_v42  ;;  %v7016_v29 = vld [vmem:[#allocation15_spill] sm:$0xff] }
 0x3d4   : > { %v3582_v35 = vadd.f32 %v3581_v63, %v3517_v37 }
 0x3d5   : > { %v3727_v15 = vadd.f32 %v3674_v61, %v7011_v20  ;;  %v3584_v39 = vpop.f32.mrf.mxu0  ;;  %v3522_v10 = vpop.f32.mrf.mxu3  ;;  %v7017_v20 = vld [vmem:[#allocation16_spill] sm:$0xff] }
 0x3d6   : > { %v3585_v52 = vadd.f32 %v3584_v39, %v3520_v13  ;;  %v3523_v18 = vadd.f32 %v3522_v10, %v3458_v62 }
 0x3d7   : > { %3778 = vst [vmem:[%s6560_s27 + $0x28] sm:$0xff] %v3727_v15 }
 0x3da   : > { %v3676_v45 = vpop.f32.mrf.mxu1  ;;  %v3460_v12 = vpop.f32.mrf.mxu2 }
 0x3db   : > { %v3677_v46 = vadd.f32 %v3676_v45, %v3579_v56  ;;  %v3461_v51 = vadd.f32 %v3460_v12, %v6455_v16  ;;  %v7018_v45 = vld [vmem:[#allocation17_spill] sm:$0xff] }
 0x3dd   : > { %v3728_v32 = vadd.f32 %v3677_v46, %v7012_v19  ;;  %v3587_v1 = vpop.f32.mrf.mxu0  ;;  %v3525_v22 = vpop.f32.mrf.mxu3 }
 0x3de   : > { %v3588_v0 = vadd.f32 %v3587_v1, %v3523_v18  ;;  %v3526_v25 = vadd.f32 %v3525_v22, %v3461_v51 }
 0x3df   : > { %3779 = vst [vmem:[%s6560_s27 + $0x30] sm:$0xff] %v3728_v32 }
 0x3e2   : > { %v3679_v7 = vpop.f32.mrf.mxu1  ;;  %v3463_v58 = vpop.f32.mrf.mxu2 }
 0x3e3   : > { %v3680_v6 = vadd.f32 %v3679_v7, %v3582_v35  ;;  %v3464_v3 = vadd.f32 %v3463_v58, %v6465_v11 }
 0x3e5   : > { %v3729_v49 = vadd.f32 %v3680_v6, %v7013_v43  ;;  %v3590_v53 = vpop.f32.mrf.mxu0 }
 0x3e6   : > { %v3591_v41 = vadd.f32 %v3590_v53, %v3526_v25 }
 0x3e7   : > { %3780 = vst [vmem:[%s6560_s27 + $0x38] sm:$0xff] %v3729_v49 }
 0x3ea   : > { %v3682_v55 = vpop.f32.mrf.mxu1  ;;  %v3466_v4 = vpop.f32.mrf.mxu2 }
 0x3eb   : > { %v3683_v54 = vadd.f32 %v3682_v55, %v3585_v52  ;;  %v3467_v36 = vadd.f32 %v3466_v4, %v6477_v40  ;;  %v7020_v52 = vld [vmem:[#allocation22_spill] sm:$0xff] }
 0x3ec   : > { %v3528_v21 = vpop.f32.mrf.mxu3 }
 0x3ed   : > { %v3730_v33 = vadd.f32 %v3683_v54, %v7014_v60  ;;  %v3593_v42 = vpop.f32.mrf.mxu0  ;;  %v3529_v63 = vadd.f32 %v3528_v21, %v3464_v3 }
 0x3ef   : > { %3781 = vst [vmem:[%s6560_s27 + $0x40] sm:$0xff] %v3730_v33  ;;  %v3594_v16 = vadd.f32 %v3593_v42, %v3529_v63  ;;  %v7021_v33 = vld [vmem:[#allocation24_spill] sm:$0xff] }
 0x3f2   : > { %v3685_v34 = vpop.f32.mrf.mxu1 }
 0x3f3   : > { %v3686_v26 = vadd.f32 %v3685_v34, %v3588_v0 }
 0x3f4   : > { %v3531_v14 = vpop.f32.mrf.mxu3 }
 0x3f5   : > { %v3731_v44 = vadd.f32 %v3686_v26, %v7015_v17  ;;  %v3596_v9 = vpop.f32.mrf.mxu0  ;;  %v3532_v28 = vadd.f32 %v3531_v14, %v3467_v36 }
 0x3f7   : > { %3782 = vst [vmem:[%s6560_s27 + $0x48] sm:$0xff] %v3731_v44  ;;  %v3597_v24 = vadd.f32 %v3596_v9, %v3532_v28 }
 0x3fa   : > { %v3688_v5 = vpop.f32.mrf.mxu1 }
 0x3fb   : > { %v3689_v59 = vadd.f32 %v3688_v5, %v3591_v41 }
 0x3fc   : > { %v3534_v11 = vpop.f32.mrf.mxu3 }
 0x3fd   : > { %v3732_v47 = vadd.f32 %v3689_v59, %v7016_v29  ;;  %v3469_v23 = vpop.f32.mrf.mxu2 }
 0x3fe   : > { %v3470_v27 = vadd.f32 %v3469_v23, %v6489_v30 }
 0x3ff   : > { %3783 = vst [vmem:[%s6560_s27 + $0x50] sm:$0xff] %v3732_v47 }
 0x400   : > { %v3535_v37 = vadd.f32 %v3534_v11, %v3470_v27 }
 0x402   : > { %v3691_v61 = vpop.f32.mrf.mxu1 }
 0x403   : > { %v3692_v38 = vadd.f32 %v3691_v61, %v3594_v16 }
 0x404   : > { %v3537_v19 = vpop.f32.mrf.mxu3 }
 0x405   : > { %v3733_v15 = vadd.f32 %v3692_v38, %v7017_v20  ;;  %v3472_v46 = vpop.f32.mrf.mxu2 }
 0x406   : > { %v3473_v57 = vadd.f32 %v3472_v46, %v6505_v31 }
 0x407   : > { %3784 = vst [vmem:[%s6560_s27 + $0x58] sm:$0xff] %v3733_v15 }
 0x408   : > { %v3599_v50 = vpop.f32.mrf.mxu0  ;;  %v3538_v10 = vadd.f32 %v3537_v19, %v3473_v57 }
 0x409   : > { %v3600_v40 = vadd.f32 %v3599_v50, %v3535_v37 }
 0x40a   : > { %v3694_v56 = vpop.f32.mrf.mxu1 }
 0x40b   : > { %v3695_v39 = vadd.f32 %v3694_v56, %v3597_v24 }
 0x40c   : > { %v3540_v12 = vpop.f32.mrf.mxu3 }
 0x40d   : > { %v3734_v2 = vadd.f32 %v3695_v39, %v7018_v45  ;;  %v3475_v30 = vpop.f32.mrf.mxu2 }
 0x40e   : > { %v3476_v49 = vadd.f32 %v3475_v30, %v6527_v8 }
 0x40f   : > { %3785 = vst [vmem:[%s6560_s27 + $0x60] sm:$0xff] %v3734_v2 }
 0x410   : > { %v3602_v7 = vpop.f32.mrf.mxu0  ;;  %v3541_v62 = vadd.f32 %v3540_v12, %v3476_v49 }
 0x411   : > { %v3603_v1 = vadd.f32 %v3602_v7, %v3538_v10 }
 0x412   : > { %v3697_v32 = vpop.f32.mrf.mxu1 }
 0x413   : > { %v3698_v35 = vadd.f32 %v3697_v32, %v3600_v40 }
 0x415   : > { %v3735_v6 = vadd.f32 %v3698_v35, %v7019_v48 }
 0x417   : > { %3786 = vst [vmem:[%s6560_s27 + $0x68] sm:$0xff] %v3735_v6 }
 0x418   : > { %v3605_v55 = vpop.f32.mrf.mxu0 }
 0x419   : > { %v3606_v54 = vadd.f32 %v3605_v55, %v3541_v62 }
 0x41a   : > { %v3700_v43 = vpop.f32.mrf.mxu1 }
 0x41b   : > { %v3701_v13 = vadd.f32 %v3700_v43, %v3603_v1 }
 0x41d   : > { %v3736_v31 = vadd.f32 %v3701_v13, %v7020_v52 }
 0x41f   : > { %3787 = vst [vmem:[%s6560_s27 + $0x70] sm:$0xff] %v3736_v31 }
 0x422   : > { %v3703_v60 = vpop.f32.mrf.mxu1 }
 0x423   : > { %v3704_v8 = vadd.f32 %v3703_v60, %v3606_v54 }
 0x425   : > { %v3737_v22 = vadd.f32 %v3704_v8, %v7021_v33 }
 0x427   : > { %3788 = vst [vmem:[%s6560_s27 + $0x78] sm:$0xff] %v3737_v22 }
 0x428   : > { %4365 = shalt.err (!%p4362_p9)
}
 0x429   : > { %s4446_s24 = smov 128   ;;  %s4447_s27 = smov 8  }
 0x42a   : > { %4022 = dma.vmem_to_hbm [thread:$0]  (%p4518_p4), %s3804_s11, 2048, %s3806_s8, %s3790_s21, %s4446_s24, %s4446_s24, %s4447_s27  }
 0x42b PF: > { %p4039_p10 = scmp.ge.s32.totalorder %s4424_s23, 2  ;;  %s3820_s29 = sand.u32 1, %s4404_s18  }
 0x42c   : > { %s3821_s7 = scalar_lea.sflag [#allocation6], %s3820_s29 }
 0x42d   : > { %p4032_p11 = pnand %p4039_p10, %p4525_p8 }
 0x42f   : > { %p4033_p12 = pneg %p4032_p11 }
 0x431   : > { %4399 = dma.done.wait (%p4033_p12), %s3821_s7, 2048  }
 0x432   : > { %4401 = vsyncadd (%p4033_p12), %s3821_s7, 4294965248  ;;  %s20_s23 = sadd.s32 1, %s4424_s23   ;;  %s7022_s18 = smov %s4408_s19 }
 0x433   : > { %p17_p13 = scmp.ge.s32.totalorder %s20_s23, 4   ;;  %s7023_s19 = smov %s4412_s20 }
 0x434   : > { %s7024_s20 = smov %s4531_s6  ;;  %s7025_s21 = smov %s4420_s22 }
 0x435   : > { %s7026_s22 = smov %s7028_s26  ;;  %19 = sbr.rel (!%p17_p13) target bundleno = 6 (0x6), region = 100 }
 0x43a   :  { %3827 = vsyncpa [#allocation5], 1 }
 0x43b   :  { %3829 = vsyncpa [#allocation5 + $0x1], 1 }
 0x43c   :  { %3830 = vsyncpa [#allocation8], 1 }
 0x43d   :  { %3831 = vsyncpa [#allocation6], 1 }
 0x43e   :  { %3833 = vsyncpa [#allocation6 + $0x1], 1 }

</bundles_post_ra>
